<compile_context>
chip_gen: v6e
topology: v6e:2x2x1
jax: 0.10.0
libtpu: 0.0.40
codegen_flags: <defaults>
</compile_context>

<pallas_src>
import functools

import jax
import jax.numpy as jnp
from jax.experimental import pallas as pl
from jax.experimental.pallas import tpu as pltpu  # noqa: F401  (TPU backend)


# ----------------------------- fused kernel ---------------------------------

def fused_multilstm_kernel(x_ref, w0in_ref, b0_ref, wh0f_ref, whh1_ref, b1_ref,
                           fcw_ref, fcb_ref, o_ref, *, Bp, T, Gp):
    """Whole forward (all features, both LSTM layers, FC head) in one kernel.

    x_ref    : [T*Bp, Ein_p]  time-major rows, feature-concat lanes (zero padded)
    w0in_ref : [Ein_p, 4*Gp]  layer-0 input weights, block-diag, gate-grouped
    b0_ref   : [1,     4*Gp]  layer-0 bias (b_ih + b_hh)
    wh0f_ref : [Gp,    8*Gp]  column-fused [ W0_hh | W1_ih ]
    whh1_ref : [Gp,    4*Gp]  layer-1 recurrent weights
    b1_ref   : [1,     4*Gp]
    fcw_ref  : [Gp,    Op  ]  FC weight (rows beyond F*H and cols beyond O zero)
    fcb_ref  : [1,     Op  ]
    o_ref    : [Bp,    Op  ]
    """
    f32 = jnp.float32
    G4 = 4 * Gp

    # Hoisted layer-0 input projection (+ bias folded): one big matmul covering
    # all timesteps / batch rows / features (no recurrence dependency).
    zin = (jnp.dot(x_ref[...], w0in_ref[...], preferred_element_type=f32)
           + b0_ref[...])                                       # [T*Bp, 4*Gp]

    wh0f = wh0f_ref[...]                                        # [Gp, 8*Gp]
    whh1 = whh1_ref[...]                                        # [Gp, 4*Gp]
    b1 = jnp.broadcast_to(b1_ref[...], (Bp, G4))                # hoisted bcast

    h0 = jnp.zeros((Bp, Gp), f32)
    c0 = jnp.zeros((Bp, Gp), f32)
    h1 = jnp.zeros((Bp, Gp), f32)
    c1 = jnp.zeros((Bp, Gp), f32)
    rec0 = jnp.zeros((Bp, G4), f32)   # h0(t-1) @ W0_hh   (h0(-1) = 0)
    r1 = jnp.zeros((Bp, G4), f32)     # h1(t-1) @ W1_hh   (h1(-1) = 0)

    def sigm(v):
        # One EUP push (tanh) instead of exp + divide.
        return 0.5 * jnp.tanh(0.5 * v) + 0.5

    def cell(z, c):
        # Slice the (128-lane aligned) gate blocks first, then activate only
        # what each gate needs: 3 sigmoid + 1 tanh (+ tanh(c_new)).
        i_g = sigm(z[:, 0 * Gp:1 * Gp])
        f_g = sigm(z[:, 1 * Gp:2 * Gp])
        g_g = jnp.tanh(z[:, 2 * Gp:3 * Gp])
        o_g = sigm(z[:, 3 * Gp:4 * Gp])
        c_new = f_g * c + i_g * g_g
        h_new = o_g * jnp.tanh(c_new)
        return h_new, c_new

    for t in range(T):                 # static unroll: T small and fixed
        # layer 0: hoisted input term + previous step's recurrent term
        z0 = zin[t * Bp:(t + 1) * Bp, :] + rec0
        h0, c0 = cell(z0, c0)
        # ONE fused matmul on the fresh h0: [rec0(t+1) | layer-1 input(t)]
        m = jnp.dot(h0, wh0f, preferred_element_type=f32)       # [Bp, 8*Gp]
        rec0 = m[:, :G4]
        # layer 1: r1 (= h1(t-1) @ W1_hh) was issued off the h0 chain last step
        z1 = m[:, G4:] + r1 + b1
        h1, c1 = cell(z1, c1)
        if t + 1 < T:
            r1 = jnp.dot(h1, whh1, preferred_element_type=f32)  # for step t+1

    # Fused FC epilogue: h1's lane layout already equals torch.cat(dim=1);
    # padded lanes multiply zero rows of fc_w.  Op is a 128 multiple -> dense vst.
    o_ref[...] = (jnp.dot(h1, fcw_ref[...], preferred_element_type=f32)
                  + fcb_ref[...])


# ----------------------- weight packing (ONE-TIME, in JAX) -------------------

def _pack_block_diag(w, H, Gp, in_stride=None, n_rows=None):
    """w: [F, K, 4*H] per-feature weights (already in `x @ W` layout).

    Returns a [n_rows, 4*Gp] block-diagonal matrix with gate-grouped columns:
      rows f*in_stride : f*in_stride+K,
      cols g*Gp + f*H : g*Gp + (f+1)*H   <-   w[f, :, g*H:(g+1)*H]
    """
    F, K, _ = w.shape
    if in_stride is None:
        in_stride = K
    if n_rows is None:
        n_rows = F * in_stride
    out = jnp.zeros((n_rows, 4 * Gp), w.dtype)
    for f in range(F):
        for g in range(4):
            out = out.at[f * in_stride:f * in_stride + K,
                         g * Gp + f * H:g * Gp + (f + 1) * H].set(
                             w[f, :, g * H:(g + 1) * H])
    return out


def _pack_bias(b, H, Gp):
    """b: [F, 4*H] (b_ih + b_hh) -> [1, 4*Gp] gate-grouped, zero in padding."""
    F = b.shape[0]
    out = jnp.zeros((4 * Gp,), b.dtype)
    for f in range(F):
        for g in range(4):
            out = out.at[g * Gp + f * H:g * Gp + (f + 1) * H].set(
                b[f, g * H:(g + 1) * H])
    return out[None, :]


def pack_multilstm_params(lstm_params, fc_w, fc_b, E):
    """One-time packing of per-feature LSTM + FC weights (hoisted out of forward)."""
    wih0, whh0, b0, wih1, whh1, b1 = lstm_params
    F, _, H4 = wih0.shape
    H = H4 // 4
    FH = F * H
    Gp = pl.cdiv(FH, 128) * 128           # gate-block width (lane multiple)
    Ein_p = pl.cdiv(F * E, 128) * 128     # padded layer-0 input width
    O = fc_w.shape[1]
    Op = pl.cdiv(O, 128) * 128            # padded FC output width

    w0in = _pack_block_diag(wih0, H, Gp, in_stride=E, n_rows=Ein_p)   # [Ein_p,4Gp]
    whh0_p = _pack_block_diag(whh0, H, Gp, in_stride=H, n_rows=Gp)    # [Gp, 4Gp]
    wih1_p = _pack_block_diag(wih1, H, Gp, in_stride=H, n_rows=Gp)    # [Gp, 4Gp]
    wh0f = jnp.concatenate([whh0_p, wih1_p], axis=1)                  # [Gp, 8Gp]
    whh1_p = _pack_block_diag(whh1, H, Gp, in_stride=H, n_rows=Gp)    # [Gp, 4Gp]
    b0p = _pack_bias(b0, H, Gp)                                       # [1, 4Gp]
    b1p = _pack_bias(b1, H, Gp)
    fcw_p = jnp.zeros((Gp, Op), fc_w.dtype).at[:FH, :O].set(fc_w)     # [Gp, Op]
    fcb_p = jnp.zeros((1, Op), fc_b.dtype).at[:, :O].set(fc_b)        # [1, Op]

    return dict(w0in=w0in, b0=b0p, wh0f=wh0f, whh1=whh1_p, b1=b1p,
                fcw=fcw_p, fcb=fcb_p)


# ------------------------------ full forward --------------------------------

@functools.partial(jax.jit, static_argnames=("out_dim",))
def multi_lstm_forward(inputs, emb_tables, packed, *, out_dim):
    """inputs: [B, F, T] int32 tokens; emb_tables: list of [dim_i, E].

    packed: output of pack_multilstm_params (done once at model init).
    Returns [B, out_dim].
    """
    B, F, T = inputs.shape
    E = emb_tables[0].shape[1]
    Gp = packed["wh0f"].shape[0]
    Ein_p = packed["w0in"].shape[0]
    Op = packed["fcw"].shape[1]
    Bp = ((B + 7) // 8) * 8               # sublane-aligned batch

    # ---- glue kept in plain JAX: embedding gathers + time-major reshape ----
    emb = [emb_tables[i][inputs[:, i]] for i in range(F)]        # each [B,T,E]
    x = jnp.concatenate(emb, axis=-1)                            # [B, T, F*E]
    x = jnp.transpose(x, (1, 0, 2))                              # [T, B, F*E]
    x = jnp.pad(x, ((0, 0), (0, Bp - B), (0, Ein_p - F * E)))    # tile-align
    x = x.reshape(T * Bp, Ein_p)

    kern = functools.partial(fused_multilstm_kernel, Bp=Bp, T=T, Gp=Gp)
    # No grid: every operand is a single whole-array VMEM block (total < 1 MB).
    out = pl.pallas_call(
        kern,
        out_shape=jax.ShapeDtypeStruct((Bp, Op), jnp.float32),
    )(x, packed["w0in"], packed["b0"], packed["wh0f"], packed["whh1"],
      packed["b1"], packed["fcw"], packed["fcb"])
    return out[:B, :out_dim]


# --------------------------- pure-JAX reference ------------------------------

def _ref_forward(inputs, emb_tables, lstm_params, fc_w, fc_b):
    wih0, whh0, b0, wih1, whh1, b1 = lstm_params
    B, F, T = inputs.shape
    H = whh0.shape[1]

    def cell(x_t, h, c, w_ih, w_hh, b):
        z = x_t @ w_ih + h @ w_hh + b
        i = jax.nn.sigmoid(z[:, 0 * H:1 * H])
        f = jax.nn.sigmoid(z[:, 1 * H:2 * H])
        g = jnp.tanh(z[:, 2 * H:3 * H])
        o = jax.nn.sigmoid(z[:, 3 * H:4 * H])
        c_new = f * c + i * g
        return o * jnp.tanh(c_new), c_new

    outs = []
    for i in range(F):
        xf = emb_tables[i][inputs[:, i]]                         # [B,T,E]
        h0 = c0 = h1 = c1 = jnp.zeros((B, H), jnp.float32)
        for t in range(T):
            h0, c0 = cell(xf[:, t, :], h0, c0, wih0[i], whh0[i], b0[i])
            h1, c1 = cell(h0, h1, c1, wih1[i], whh1[i], b1[i])
        outs.append(h1)
    return jnp.concatenate(outs, axis=1) @ fc_w + fc_b


# ----------------------------------- main ------------------------------------

if __name__ == "__main__":
    # Small config consistent with the module's __init__:
    #   3 features, vocab sizes 15/19/23 -> feature_dims = [16, 20, 24]
    #   embedding_dim = 32, hidden_dim = 32, num_layers = 2
    B, T, E, H = 2, 8, 32, 32
    feature_dims = [16, 20, 24]
    F = len(feature_dims)
    O = max(feature_dims)

    key = jax.random.PRNGKey(0)
    k_in, k_par = jax.random.split(key)

    # Integer token inputs: [B, F, T]
    in_keys = jax.random.split(k_in, F)
    inputs = jnp.stack(
        [jax.random.randint(in_keys[i], (B, T), 0, feature_dims[i], jnp.int32)
         for i in range(F)], axis=1)

    # Deterministic parameter init.
    pk = jax.random.split(k_par, 12)
    scale = 0.1
    emb_tables = [scale * jax.random.normal(pk[i], (feature_dims[i], E),
                                            jnp.float32) for i in range(F)]
    # Per-feature LSTM weights, pre-transposed for x @ W; bias = b_ih + b_hh
    # (wrapper contract: callers must pre-sum the two PyTorch LSTM biases).
    wih0 = scale * jax.random.normal(pk[3], (F, E, 4 * H), jnp.float32)
    whh0 = scale * jax.random.normal(pk[4], (F, H, 4 * H), jnp.float32)
    b0 = scale * jax.random.normal(pk[5], (F, 4 * H), jnp.float32)
    wih1 = scale * jax.random.normal(pk[6], (F, H, 4 * H), jnp.float32)
    whh1 = scale * jax.random.normal(pk[7], (F, H, 4 * H), jnp.float32)
    b1 = scale * jax.random.normal(pk[8], (F, 4 * H), jnp.float32)
    lstm_params = (wih0, whh0, b0, wih1, whh1, b1)

    fc_w = scale * jax.random.normal(pk[9], (H * F, O), jnp.float32)
    fc_b = scale * jax.random.normal(pk[10], (1, O), jnp.float32)

    # One-time packing (hoisted out of the forward path).
    packed = pack_multilstm_params(lstm_params, fc_w, fc_b, E)
    packed = jax.tree_util.tree_map(jax.block_until_ready, packed)

    out = multi_lstm_forward(inputs, emb_tables, packed, out_dim=O)
    out = jax.block_until_ready(out)

    ref = _ref_forward(inputs, emb_tables, lstm_params, fc_w, fc_b)
    assert out.shape == (B, O), out.shape
    assert jnp.allclose(out, ref, atol=1e-4, rtol=1e-4), "mismatch vs reference"

    print("KERNEL_OK")
</pallas_src>

<mosaic_0001>
module attributes {stable_mosaic.version = 11 : i64} {
  func.func @fused_multilstm_kernel(%arg0: memref<64x128xf32, #tpu.memory_space<vmem>>, %arg1: memref<128x512xf32, #tpu.memory_space<vmem>>, %arg2: memref<1x512xf32, #tpu.memory_space<vmem>>, %arg3: memref<128x1024xf32, #tpu.memory_space<vmem>>, %arg4: memref<128x512xf32, #tpu.memory_space<vmem>>, %arg5: memref<1x512xf32, #tpu.memory_space<vmem>>, %arg6: memref<128x128xf32, #tpu.memory_space<vmem>>, %arg7: memref<1x128xf32, #tpu.memory_space<vmem>>, %arg8: memref<8x128xf32, #tpu.memory_space<vmem>>) attributes {dimension_semantics = [], scalar_prefetch = 0 : i64, scratch_operands = 0 : i64, tpu.core_type = #tpu.core_type<tc>} {
    %c0 = arith.constant 0 : index
    %c0_0 = arith.constant 0 : index
    %0 = vector.load %arg0[%c0, %c0_0] : memref<64x128xf32, #tpu.memory_space<vmem>>, vector<64x128xf32>
    %c0_1 = arith.constant 0 : index
    %c0_2 = arith.constant 0 : index
    %1 = vector.load %arg1[%c0_1, %c0_2] : memref<128x512xf32, #tpu.memory_space<vmem>>, vector<128x512xf32>
    %cst = arith.constant dense<0.000000e+00> : vector<64x512xf32>
    %2 = tpu.matmul %0, %1, %cst {dimension_numbers = #tpu.dot_dimension_numbers<[1], [0], [0], [1], [0, 0, 1, 1], [], []>} : vector<64x128xf32>, vector<128x512xf32>, vector<64x512xf32> -> vector<64x512xf32>
    %c0_3 = arith.constant 0 : index
    %c0_4 = arith.constant 0 : index
    %3 = vector.load %arg2[%c0_3, %c0_4] : memref<1x512xf32, #tpu.memory_space<vmem>>, vector<1x512xf32>
    %4 = vector.broadcast %3 : vector<1x512xf32> to vector<64x512xf32>
    %5 = arith.addf %2, %4 : vector<64x512xf32>
    %c0_5 = arith.constant 0 : index
    %c0_6 = arith.constant 0 : index
    %6 = vector.load %arg3[%c0_5, %c0_6] : memref<128x1024xf32, #tpu.memory_space<vmem>>, vector<128x1024xf32>
    %c0_7 = arith.constant 0 : index
    %c0_8 = arith.constant 0 : index
    %7 = vector.load %arg4[%c0_7, %c0_8] : memref<128x512xf32, #tpu.memory_space<vmem>>, vector<128x512xf32>
    %c0_9 = arith.constant 0 : index
    %c0_10 = arith.constant 0 : index
    %8 = vector.load %arg5[%c0_9, %c0_10] : memref<1x512xf32, #tpu.memory_space<vmem>>, vector<1x512xf32>
    %9 = vector.shape_cast %8 : vector<1x512xf32> to vector<1x512xf32>
    %10 = vector.broadcast %9 : vector<1x512xf32> to vector<8x512xf32>
    %cst_11 = arith.constant 0.000000e+00 : f32
    %11 = vector.broadcast %cst_11 : f32 to vector<8x128xf32>
    %cst_12 = arith.constant 0.000000e+00 : f32
    %12 = vector.broadcast %cst_12 : f32 to vector<8x128xf32>
    %cst_13 = arith.constant 0.000000e+00 : f32
    %13 = vector.broadcast %cst_13 : f32 to vector<8x512xf32>
    %cst_14 = arith.constant 0.000000e+00 : f32
    %14 = vector.broadcast %cst_14 : f32 to vector<8x512xf32>
    %15 = vector.extract_strided_slice %5 {offsets = [0, 0], sizes = [8, 512], strides = [1, 1]} : vector<64x512xf32> to vector<8x512xf32>
    %16 = arith.addf %15, %13 : vector<8x512xf32>
    %17 = vector.extract_strided_slice %16 {offsets = [0, 0], sizes = [8, 128], strides = [1, 1]} : vector<8x512xf32> to vector<8x128xf32>
    %cst_15 = arith.constant 5.000000e-01 : f32
    %18 = vector.broadcast %cst_15 : f32 to vector<8x128xf32>
    %19 = arith.mulf %18, %17 : vector<8x128xf32>
    %20 = math.tanh %19 : vector<8x128xf32>
    %cst_16 = arith.constant 5.000000e-01 : f32
    %21 = vector.broadcast %cst_16 : f32 to vector<8x128xf32>
    %22 = arith.mulf %21, %20 : vector<8x128xf32>
    %cst_17 = arith.constant 5.000000e-01 : f32
    %23 = vector.broadcast %cst_17 : f32 to vector<8x128xf32>
    %24 = arith.addf %22, %23 : vector<8x128xf32>
    %25 = vector.extract_strided_slice %16 {offsets = [0, 128], sizes = [8, 128], strides = [1, 1]} : vector<8x512xf32> to vector<8x128xf32>
    %cst_18 = arith.constant 5.000000e-01 : f32
    %26 = vector.broadcast %cst_18 : f32 to vector<8x128xf32>
    %27 = arith.mulf %26, %25 : vector<8x128xf32>
    %28 = math.tanh %27 : vector<8x128xf32>
    %cst_19 = arith.constant 5.000000e-01 : f32
    %29 = vector.broadcast %cst_19 : f32 to vector<8x128xf32>
    %30 = arith.mulf %29, %28 : vector<8x128xf32>
    %cst_20 = arith.constant 5.000000e-01 : f32
    %31 = vector.broadcast %cst_20 : f32 to vector<8x128xf32>
    %32 = arith.addf %30, %31 : vector<8x128xf32>
    %33 = vector.extract_strided_slice %16 {offsets = [0, 256], sizes = [8, 128], strides = [1, 1]} : vector<8x512xf32> to vector<8x128xf32>
    %34 = math.tanh %33 : vector<8x128xf32>
    %35 = vector.extract_strided_slice %16 {offsets = [0, 384], sizes = [8, 128], strides = [1, 1]} : vector<8x512xf32> to vector<8x128xf32>
    %cst_21 = arith.constant 5.000000e-01 : f32
    %36 = vector.broadcast %cst_21 : f32 to vector<8x128xf32>
    %37 = arith.mulf %36, %35 : vector<8x128xf32>
    %38 = math.tanh %37 : vector<8x128xf32>
    %cst_22 = arith.constant 5.000000e-01 : f32
    %39 = vector.broadcast %cst_22 : f32 to vector<8x128xf32>
    %40 = arith.mulf %39, %38 : vector<8x128xf32>
    %cst_23 = arith.constant 5.000000e-01 : f32
    %41 = vector.broadcast %cst_23 : f32 to vector<8x128xf32>
    %42 = arith.addf %40, %41 : vector<8x128xf32>
    %43 = arith.mulf %32, %11 : vector<8x128xf32>
    %44 = arith.mulf %24, %34 : vector<8x128xf32>
    %45 = arith.addf %43, %44 : vector<8x128xf32>
    %46 = math.tanh %45 : vector<8x128xf32>
    %47 = arith.mulf %42, %46 : vector<8x128xf32>
    %cst_24 = arith.constant dense<0.000000e+00> : vector<8x1024xf32>
    %48 = tpu.matmul %47, %6, %cst_24 {dimension_numbers = #tpu.dot_dimension_numbers<[1], [0], [0], [1], [0, 0, 1, 1], [], []>} : vector<8x128xf32>, vector<128x1024xf32>, vector<8x1024xf32> -> vector<8x1024xf32>
    %49 = vector.extract_strided_slice %48 {offsets = [0, 0], sizes = [8, 512], strides = [1, 1]} : vector<8x1024xf32> to vector<8x512xf32>
    %50 = vector.extract_strided_slice %48 {offsets = [0, 512], sizes = [8, 512], strides = [1, 1]} : vector<8x1024xf32> to vector<8x512xf32>
    %51 = arith.addf %50, %14 : vector<8x512xf32>
    %52 = arith.addf %51, %10 : vector<8x512xf32>
    %53 = vector.extract_strided_slice %52 {offsets = [0, 0], sizes = [8, 128], strides = [1, 1]} : vector<8x512xf32> to vector<8x128xf32>
    %cst_25 = arith.constant 5.000000e-01 : f32
    %54 = vector.broadcast %cst_25 : f32 to vector<8x128xf32>
    %55 = arith.mulf %54, %53 : vector<8x128xf32>
    %56 = math.tanh %55 : vector<8x128xf32>
    %cst_26 = arith.constant 5.000000e-01 : f32
    %57 = vector.broadcast %cst_26 : f32 to vector<8x128xf32>
    %58 = arith.mulf %57, %56 : vector<8x128xf32>
    %cst_27 = arith.constant 5.000000e-01 : f32
    %59 = vector.broadcast %cst_27 : f32 to vector<8x128xf32>
    %60 = arith.addf %58, %59 : vector<8x128xf32>
    %61 = vector.extract_strided_slice %52 {offsets = [0, 128], sizes = [8, 128], strides = [1, 1]} : vector<8x512xf32> to vector<8x128xf32>
    %cst_28 = arith.constant 5.000000e-01 : f32
    %62 = vector.broadcast %cst_28 : f32 to vector<8x128xf32>
    %63 = arith.mulf %62, %61 : vector<8x128xf32>
    %64 = math.tanh %63 : vector<8x128xf32>
    %cst_29 = arith.constant 5.000000e-01 : f32
    %65 = vector.broadcast %cst_29 : f32 to vector<8x128xf32>
    %66 = arith.mulf %65, %64 : vector<8x128xf32>
    %cst_30 = arith.constant 5.000000e-01 : f32
    %67 = vector.broadcast %cst_30 : f32 to vector<8x128xf32>
    %68 = arith.addf %66, %67 : vector<8x128xf32>
    %69 = vector.extract_strided_slice %52 {offsets = [0, 256], sizes = [8, 128], strides = [1, 1]} : vector<8x512xf32> to vector<8x128xf32>
    %70 = math.tanh %69 : vector<8x128xf32>
    %71 = vector.extract_strided_slice %52 {offsets = [0, 384], sizes = [8, 128], strides = [1, 1]} : vector<8x512xf32> to vector<8x128xf32>
    %cst_31 = arith.constant 5.000000e-01 : f32
    %72 = vector.broadcast %cst_31 : f32 to vector<8x128xf32>
    %73 = arith.mulf %72, %71 : vector<8x128xf32>
    %74 = math.tanh %73 : vector<8x128xf32>
    %cst_32 = arith.constant 5.000000e-01 : f32
    %75 = vector.broadcast %cst_32 : f32 to vector<8x128xf32>
    %76 = arith.mulf %75, %74 : vector<8x128xf32>
    %cst_33 = arith.constant 5.000000e-01 : f32
    %77 = vector.broadcast %cst_33 : f32 to vector<8x128xf32>
    %78 = arith.addf %76, %77 : vector<8x128xf32>
    %79 = arith.mulf %68, %12 : vector<8x128xf32>
    %80 = arith.mulf %60, %70 : vector<8x128xf32>
    %81 = arith.addf %79, %80 : vector<8x128xf32>
    %82 = math.tanh %81 : vector<8x128xf32>
    %83 = arith.mulf %78, %82 : vector<8x128xf32>
    %cst_34 = arith.constant dense<0.000000e+00> : vector<8x512xf32>
    %84 = tpu.matmul %83, %7, %cst_34 {dimension_numbers = #tpu.dot_dimension_numbers<[1], [0], [0], [1], [0, 0, 1, 1], [], []>} : vector<8x128xf32>, vector<128x512xf32>, vector<8x512xf32> -> vector<8x512xf32>
    %85 = vector.extract_strided_slice %5 {offsets = [8, 0], sizes = [8, 512], strides = [1, 1]} : vector<64x512xf32> to vector<8x512xf32>
    %86 = arith.addf %85, %49 : vector<8x512xf32>
    %87 = vector.extract_strided_slice %86 {offsets = [0, 0], sizes = [8, 128], strides = [1, 1]} : vector<8x512xf32> to vector<8x128xf32>
    %cst_35 = arith.constant 5.000000e-01 : f32
    %88 = vector.broadcast %cst_35 : f32 to vector<8x128xf32>
    %89 = arith.mulf %88, %87 : vector<8x128xf32>
    %90 = math.tanh %89 : vector<8x128xf32>
    %cst_36 = arith.constant 5.000000e-01 : f32
    %91 = vector.broadcast %cst_36 : f32 to vector<8x128xf32>
    %92 = arith.mulf %91, %90 : vector<8x128xf32>
    %cst_37 = arith.constant 5.000000e-01 : f32
    %93 = vector.broadcast %cst_37 : f32 to vector<8x128xf32>
    %94 = arith.addf %92, %93 : vector<8x128xf32>
    %95 = vector.extract_strided_slice %86 {offsets = [0, 128], sizes = [8, 128], strides = [1, 1]} : vector<8x512xf32> to vector<8x128xf32>
    %cst_38 = arith.constant 5.000000e-01 : f32
    %96 = vector.broadcast %cst_38 : f32 to vector<8x128xf32>
    %97 = arith.mulf %96, %95 : vector<8x128xf32>
    %98 = math.tanh %97 : vector<8x128xf32>
    %cst_39 = arith.constant 5.000000e-01 : f32
    %99 = vector.broadcast %cst_39 : f32 to vector<8x128xf32>
    %100 = arith.mulf %99, %98 : vector<8x128xf32>
    %cst_40 = arith.constant 5.000000e-01 : f32
    %101 = vector.broadcast %cst_40 : f32 to vector<8x128xf32>
    %102 = arith.addf %100, %101 : vector<8x128xf32>
    %103 = vector.extract_strided_slice %86 {offsets = [0, 256], sizes = [8, 128], strides = [1, 1]} : vector<8x512xf32> to vector<8x128xf32>
    %104 = math.tanh %103 : vector<8x128xf32>
    %105 = vector.extract_strided_slice %86 {offsets = [0, 384], sizes = [8, 128], strides = [1, 1]} : vector<8x512xf32> to vector<8x128xf32>
    %cst_41 = arith.constant 5.000000e-01 : f32
    %106 = vector.broadcast %cst_41 : f32 to vector<8x128xf32>
    %107 = arith.mulf %106, %105 : vector<8x128xf32>
    %108 = math.tanh %107 : vector<8x128xf32>
    %cst_42 = arith.constant 5.000000e-01 : f32
    %109 = vector.broadcast %cst_42 : f32 to vector<8x128xf32>
    %110 = arith.mulf %109, %108 : vector<8x128xf32>
    %cst_43 = arith.constant 5.000000e-01 : f32
    %111 = vector.broadcast %cst_43 : f32 to vector<8x128xf32>
    %112 = arith.addf %110, %111 : vector<8x128xf32>
    %113 = arith.mulf %102, %45 : vector<8x128xf32>
    %114 = arith.mulf %94, %104 : vector<8x128xf32>
    %115 = arith.addf %113, %114 : vector<8x128xf32>
    %116 = math.tanh %115 : vector<8x128xf32>
    %117 = arith.mulf %112, %116 : vector<8x128xf32>
    %cst_44 = arith.constant dense<0.000000e+00> : vector<8x1024xf32>
    %118 = tpu.matmul %117, %6, %cst_44 {dimension_numbers = #tpu.dot_dimension_numbers<[1], [0], [0], [1], [0, 0, 1, 1], [], []>} : vector<8x128xf32>, vector<128x1024xf32>, vector<8x1024xf32> -> vector<8x1024xf32>
    %119 = vector.extract_strided_slice %118 {offsets = [0, 0], sizes = [8, 512], strides = [1, 1]} : vector<8x1024xf32> to vector<8x512xf32>
    %120 = vector.extract_strided_slice %118 {offsets = [0, 512], sizes = [8, 512], strides = [1, 1]} : vector<8x1024xf32> to vector<8x512xf32>
    %121 = arith.addf %120, %84 : vector<8x512xf32>
    %122 = arith.addf %121, %10 : vector<8x512xf32>
    %123 = vector.extract_strided_slice %122 {offsets = [0, 0], sizes = [8, 128], strides = [1, 1]} : vector<8x512xf32> to vector<8x128xf32>
    %cst_45 = arith.constant 5.000000e-01 : f32
    %124 = vector.broadcast %cst_45 : f32 to vector<8x128xf32>
    %125 = arith.mulf %124, %123 : vector<8x128xf32>
    %126 = math.tanh %125 : vector<8x128xf32>
    %cst_46 = arith.constant 5.000000e-01 : f32
    %127 = vector.broadcast %cst_46 : f32 to vector<8x128xf32>
    %128 = arith.mulf %127, %126 : vector<8x128xf32>
    %cst_47 = arith.constant 5.000000e-01 : f32
    %129 = vector.broadcast %cst_47 : f32 to vector<8x128xf32>
    %130 = arith.addf %128, %129 : vector<8x128xf32>
    %131 = vector.extract_strided_slice %122 {offsets = [0, 128], sizes = [8, 128], strides = [1, 1]} : vector<8x512xf32> to vector<8x128xf32>
    %cst_48 = arith.constant 5.000000e-01 : f32
    %132 = vector.broadcast %cst_48 : f32 to vector<8x128xf32>
    %133 = arith.mulf %132, %131 : vector<8x128xf32>
    %134 = math.tanh %133 : vector<8x128xf32>
    %cst_49 = arith.constant 5.000000e-01 : f32
    %135 = vector.broadcast %cst_49 : f32 to vector<8x128xf32>
    %136 = arith.mulf %135, %134 : vector<8x128xf32>
    %cst_50 = arith.constant 5.000000e-01 : f32
    %137 = vector.broadcast %cst_50 : f32 to vector<8x128xf32>
    %138 = arith.addf %136, %137 : vector<8x128xf32>
    %139 = vector.extract_strided_slice %122 {offsets = [0, 256], sizes = [8, 128], strides = [1, 1]} : vector<8x512xf32> to vector<8x128xf32>
    %140 = math.tanh %139 : vector<8x128xf32>
    %141 = vector.extract_strided_slice %122 {offsets = [0, 384], sizes = [8, 128], strides = [1, 1]} : vector<8x512xf32> to vector<8x128xf32>
    %cst_51 = arith.constant 5.000000e-01 : f32
    %142 = vector.broadcast %cst_51 : f32 to vector<8x128xf32>
    %143 = arith.mulf %142, %141 : vector<8x128xf32>
    %144 = math.tanh %143 : vector<8x128xf32>
    %cst_52 = arith.constant 5.000000e-01 : f32
    %145 = vector.broadcast %cst_52 : f32 to vector<8x128xf32>
    %146 = arith.mulf %145, %144 : vector<8x128xf32>
    %cst_53 = arith.constant 5.000000e-01 : f32
    %147 = vector.broadcast %cst_53 : f32 to vector<8x128xf32>
    %148 = arith.addf %146, %147 : vector<8x128xf32>
    %149 = arith.mulf %138, %81 : vector<8x128xf32>
    %150 = arith.mulf %130, %140 : vector<8x128xf32>
    %151 = arith.addf %149, %150 : vector<8x128xf32>
    %152 = math.tanh %151 : vector<8x128xf32>
    %153 = arith.mulf %148, %152 : vector<8x128xf32>
    %cst_54 = arith.constant dense<0.000000e+00> : vector<8x512xf32>
    %154 = tpu.matmul %153, %7, %cst_54 {dimension_numbers = #tpu.dot_dimension_numbers<[1], [0], [0], [1], [0, 0, 1, 1], [], []>} : vector<8x128xf32>, vector<128x512xf32>, vector<8x512xf32> -> vector<8x512xf32>
    %155 = vector.extract_strided_slice %5 {offsets = [16, 0], sizes = [8, 512], strides = [1, 1]} : vector<64x512xf32> to vector<8x512xf32>
    %156 = arith.addf %155, %119 : vector<8x512xf32>
    %157 = vector.extract_strided_slice %156 {offsets = [0, 0], sizes = [8, 128], strides = [1, 1]} : vector<8x512xf32> to vector<8x128xf32>
    %cst_55 = arith.constant 5.000000e-01 : f32
    %158 = vector.broadcast %cst_55 : f32 to vector<8x128xf32>
    %159 = arith.mulf %158, %157 : vector<8x128xf32>
    %160 = math.tanh %159 : vector<8x128xf32>
    %cst_56 = arith.constant 5.000000e-01 : f32
    %161 = vector.broadcast %cst_56 : f32 to vector<8x128xf32>
    %162 = arith.mulf %161, %160 : vector<8x128xf32>
    %cst_57 = arith.constant 5.000000e-01 : f32
    %163 = vector.broadcast %cst_57 : f32 to vector<8x128xf32>
    %164 = arith.addf %162, %163 : vector<8x128xf32>
    %165 = vector.extract_strided_slice %156 {offsets = [0, 128], sizes = [8, 128], strides = [1, 1]} : vector<8x512xf32> to vector<8x128xf32>
    %cst_58 = arith.constant 5.000000e-01 : f32
    %166 = vector.broadcast %cst_58 : f32 to vector<8x128xf32>
    %167 = arith.mulf %166, %165 : vector<8x128xf32>
    %168 = math.tanh %167 : vector<8x128xf32>
    %cst_59 = arith.constant 5.000000e-01 : f32
    %169 = vector.broadcast %cst_59 : f32 to vector<8x128xf32>
    %170 = arith.mulf %169, %168 : vector<8x128xf32>
    %cst_60 = arith.constant 5.000000e-01 : f32
    %171 = vector.broadcast %cst_60 : f32 to vector<8x128xf32>
    %172 = arith.addf %170, %171 : vector<8x128xf32>
    %173 = vector.extract_strided_slice %156 {offsets = [0, 256], sizes = [8, 128], strides = [1, 1]} : vector<8x512xf32> to vector<8x128xf32>
    %174 = math.tanh %173 : vector<8x128xf32>
    %175 = vector.extract_strided_slice %156 {offsets = [0, 384], sizes = [8, 128], strides = [1, 1]} : vector<8x512xf32> to vector<8x128xf32>
    %cst_61 = arith.constant 5.000000e-01 : f32
    %176 = vector.broadcast %cst_61 : f32 to vector<8x128xf32>
    %177 = arith.mulf %176, %175 : vector<8x128xf32>
    %178 = math.tanh %177 : vector<8x128xf32>
    %cst_62 = arith.constant 5.000000e-01 : f32
    %179 = vector.broadcast %cst_62 : f32 to vector<8x128xf32>
    %180 = arith.mulf %179, %178 : vector<8x128xf32>
    %cst_63 = arith.constant 5.000000e-01 : f32
    %181 = vector.broadcast %cst_63 : f32 to vector<8x128xf32>
    %182 = arith.addf %180, %181 : vector<8x128xf32>
    %183 = arith.mulf %172, %115 : vector<8x128xf32>
    %184 = arith.mulf %164, %174 : vector<8x128xf32>
    %185 = arith.addf %183, %184 : vector<8x128xf32>
    %186 = math.tanh %185 : vector<8x128xf32>
    %187 = arith.mulf %182, %186 : vector<8x128xf32>
    %cst_64 = arith.constant dense<0.000000e+00> : vector<8x1024xf32>
    %188 = tpu.matmul %187, %6, %cst_64 {dimension_numbers = #tpu.dot_dimension_numbers<[1], [0], [0], [1], [0, 0, 1, 1], [], []>} : vector<8x128xf32>, vector<128x1024xf32>, vector<8x1024xf32> -> vector<8x1024xf32>
    %189 = vector.extract_strided_slice %188 {offsets = [0, 0], sizes = [8, 512], strides = [1, 1]} : vector<8x1024xf32> to vector<8x512xf32>
    %190 = vector.extract_strided_slice %188 {offsets = [0, 512], sizes = [8, 512], strides = [1, 1]} : vector<8x1024xf32> to vector<8x512xf32>
    %191 = arith.addf %190, %154 : vector<8x512xf32>
    %192 = arith.addf %191, %10 : vector<8x512xf32>
    %193 = vector.extract_strided_slice %192 {offsets = [0, 0], sizes = [8, 128], strides = [1, 1]} : vector<8x512xf32> to vector<8x128xf32>
    %cst_65 = arith.constant 5.000000e-01 : f32
    %194 = vector.broadcast %cst_65 : f32 to vector<8x128xf32>
    %195 = arith.mulf %194, %193 : vector<8x128xf32>
    %196 = math.tanh %195 : vector<8x128xf32>
    %cst_66 = arith.constant 5.000000e-01 : f32
    %197 = vector.broadcast %cst_66 : f32 to vector<8x128xf32>
    %198 = arith.mulf %197, %196 : vector<8x128xf32>
    %cst_67 = arith.constant 5.000000e-01 : f32
    %199 = vector.broadcast %cst_67 : f32 to vector<8x128xf32>
    %200 = arith.addf %198, %199 : vector<8x128xf32>
    %201 = vector.extract_strided_slice %192 {offsets = [0, 128], sizes = [8, 128], strides = [1, 1]} : vector<8x512xf32> to vector<8x128xf32>
    %cst_68 = arith.constant 5.000000e-01 : f32
    %202 = vector.broadcast %cst_68 : f32 to vector<8x128xf32>
    %203 = arith.mulf %202, %201 : vector<8x128xf32>
    %204 = math.tanh %203 : vector<8x128xf32>
    %cst_69 = arith.constant 5.000000e-01 : f32
    %205 = vector.broadcast %cst_69 : f32 to vector<8x128xf32>
    %206 = arith.mulf %205, %204 : vector<8x128xf32>
    %cst_70 = arith.constant 5.000000e-01 : f32
    %207 = vector.broadcast %cst_70 : f32 to vector<8x128xf32>
    %208 = arith.addf %206, %207 : vector<8x128xf32>
    %209 = vector.extract_strided_slice %192 {offsets = [0, 256], sizes = [8, 128], strides = [1, 1]} : vector<8x512xf32> to vector<8x128xf32>
    %210 = math.tanh %209 : vector<8x128xf32>
    %211 = vector.extract_strided_slice %192 {offsets = [0, 384], sizes = [8, 128], strides = [1, 1]} : vector<8x512xf32> to vector<8x128xf32>
    %cst_71 = arith.constant 5.000000e-01 : f32
    %212 = vector.broadcast %cst_71 : f32 to vector<8x128xf32>
    %213 = arith.mulf %212, %211 : vector<8x128xf32>
    %214 = math.tanh %213 : vector<8x128xf32>
    %cst_72 = arith.constant 5.000000e-01 : f32
    %215 = vector.broadcast %cst_72 : f32 to vector<8x128xf32>
    %216 = arith.mulf %215, %214 : vector<8x128xf32>
    %cst_73 = arith.constant 5.000000e-01 : f32
    %217 = vector.broadcast %cst_73 : f32 to vector<8x128xf32>
    %218 = arith.addf %216, %217 : vector<8x128xf32>
    %219 = arith.mulf %208, %151 : vector<8x128xf32>
    %220 = arith.mulf %200, %210 : vector<8x128xf32>
    %221 = arith.addf %219, %220 : vector<8x128xf32>
    %222 = math.tanh %221 : vector<8x128xf32>
    %223 = arith.mulf %218, %222 : vector<8x128xf32>
    %cst_74 = arith.constant dense<0.000000e+00> : vector<8x512xf32>
    %224 = tpu.matmul %223, %7, %cst_74 {dimension_numbers = #tpu.dot_dimension_numbers<[1], [0], [0], [1], [0, 0, 1, 1], [], []>} : vector<8x128xf32>, vector<128x512xf32>, vector<8x512xf32> -> vector<8x512xf32>
    %225 = vector.extract_strided_slice %5 {offsets = [24, 0], sizes = [8, 512], strides = [1, 1]} : vector<64x512xf32> to vector<8x512xf32>
    %226 = arith.addf %225, %189 : vector<8x512xf32>
    %227 = vector.extract_strided_slice %226 {offsets = [0, 0], sizes = [8, 128], strides = [1, 1]} : vector<8x512xf32> to vector<8x128xf32>
    %cst_75 = arith.constant 5.000000e-01 : f32
    %228 = vector.broadcast %cst_75 : f32 to vector<8x128xf32>
    %229 = arith.mulf %228, %227 : vector<8x128xf32>
    %230 = math.tanh %229 : vector<8x128xf32>
    %cst_76 = arith.constant 5.000000e-01 : f32
    %231 = vector.broadcast %cst_76 : f32 to vector<8x128xf32>
    %232 = arith.mulf %231, %230 : vector<8x128xf32>
    %cst_77 = arith.constant 5.000000e-01 : f32
    %233 = vector.broadcast %cst_77 : f32 to vector<8x128xf32>
    %234 = arith.addf %232, %233 : vector<8x128xf32>
    %235 = vector.extract_strided_slice %226 {offsets = [0, 128], sizes = [8, 128], strides = [1, 1]} : vector<8x512xf32> to vector<8x128xf32>
    %cst_78 = arith.constant 5.000000e-01 : f32
    %236 = vector.broadcast %cst_78 : f32 to vector<8x128xf32>
    %237 = arith.mulf %236, %235 : vector<8x128xf32>
    %238 = math.tanh %237 : vector<8x128xf32>
    %cst_79 = arith.constant 5.000000e-01 : f32
    %239 = vector.broadcast %cst_79 : f32 to vector<8x128xf32>
    %240 = arith.mulf %239, %238 : vector<8x128xf32>
    %cst_80 = arith.constant 5.000000e-01 : f32
    %241 = vector.broadcast %cst_80 : f32 to vector<8x128xf32>
    %242 = arith.addf %240, %241 : vector<8x128xf32>
    %243 = vector.extract_strided_slice %226 {offsets = [0, 256], sizes = [8, 128], strides = [1, 1]} : vector<8x512xf32> to vector<8x128xf32>
    %244 = math.tanh %243 : vector<8x128xf32>
    %245 = vector.extract_strided_slice %226 {offsets = [0, 384], sizes = [8, 128], strides = [1, 1]} : vector<8x512xf32> to vector<8x128xf32>
    %cst_81 = arith.constant 5.000000e-01 : f32
    %246 = vector.broadcast %cst_81 : f32 to vector<8x128xf32>
    %247 = arith.mulf %246, %245 : vector<8x128xf32>
    %248 = math.tanh %247 : vector<8x128xf32>
    %cst_82 = arith.constant 5.000000e-01 : f32
    %249 = vector.broadcast %cst_82 : f32 to vector<8x128xf32>
    %250 = arith.mulf %249, %248 : vector<8x128xf32>
    %cst_83 = arith.constant 5.000000e-01 : f32
    %251 = vector.broadcast %cst_83 : f32 to vector<8x128xf32>
    %252 = arith.addf %250, %251 : vector<8x128xf32>
    %253 = arith.mulf %242, %185 : vector<8x128xf32>
    %254 = arith.mulf %234, %244 : vector<8x128xf32>
    %255 = arith.addf %253, %254 : vector<8x128xf32>
    %256 = math.tanh %255 : vector<8x128xf32>
    %257 = arith.mulf %252, %256 : vector<8x128xf32>
    %cst_84 = arith.constant dense<0.000000e+00> : vector<8x1024xf32>
    %258 = tpu.matmul %257, %6, %cst_84 {dimension_numbers = #tpu.dot_dimension_numbers<[1], [0], [0], [1], [0, 0, 1, 1], [], []>} : vector<8x128xf32>, vector<128x1024xf32>, vector<8x1024xf32> -> vector<8x1024xf32>
    %259 = vector.extract_strided_slice %258 {offsets = [0, 0], sizes = [8, 512], strides = [1, 1]} : vector<8x1024xf32> to vector<8x512xf32>
    %260 = vector.extract_strided_slice %258 {offsets = [0, 512], sizes = [8, 512], strides = [1, 1]} : vector<8x1024xf32> to vector<8x512xf32>
    %261 = arith.addf %260, %224 : vector<8x512xf32>
    %262 = arith.addf %261, %10 : vector<8x512xf32>
    %263 = vector.extract_strided_slice %262 {offsets = [0, 0], sizes = [8, 128], strides = [1, 1]} : vector<8x512xf32> to vector<8x128xf32>
    %cst_85 = arith.constant 5.000000e-01 : f32
    %264 = vector.broadcast %cst_85 : f32 to vector<8x128xf32>
    %265 = arith.mulf %264, %263 : vector<8x128xf32>
    %266 = math.tanh %265 : vector<8x128xf32>
    %cst_86 = arith.constant 5.000000e-01 : f32
    %267 = vector.broadcast %cst_86 : f32 to vector<8x128xf32>
    %268 = arith.mulf %267, %266 : vector<8x128xf32>
    %cst_87 = arith.constant 5.000000e-01 : f32
    %269 = vector.broadcast %cst_87 : f32 to vector<8x128xf32>
    %270 = arith.addf %268, %269 : vector<8x128xf32>
    %271 = vector.extract_strided_slice %262 {offsets = [0, 128], sizes = [8, 128], strides = [1, 1]} : vector<8x512xf32> to vector<8x128xf32>
    %cst_88 = arith.constant 5.000000e-01 : f32
    %272 = vector.broadcast %cst_88 : f32 to vector<8x128xf32>
    %273 = arith.mulf %272, %271 : vector<8x128xf32>
    %274 = math.tanh %273 : vector<8x128xf32>
    %cst_89 = arith.constant 5.000000e-01 : f32
    %275 = vector.broadcast %cst_89 : f32 to vector<8x128xf32>
    %276 = arith.mulf %275, %274 : vector<8x128xf32>
    %cst_90 = arith.constant 5.000000e-01 : f32
    %277 = vector.broadcast %cst_90 : f32 to vector<8x128xf32>
    %278 = arith.addf %276, %277 : vector<8x128xf32>
    %279 = vector.extract_strided_slice %262 {offsets = [0, 256], sizes = [8, 128], strides = [1, 1]} : vector<8x512xf32> to vector<8x128xf32>
    %280 = math.tanh %279 : vector<8x128xf32>
    %281 = vector.extract_strided_slice %262 {offsets = [0, 384], sizes = [8, 128], strides = [1, 1]} : vector<8x512xf32> to vector<8x128xf32>
    %cst_91 = arith.constant 5.000000e-01 : f32
    %282 = vector.broadcast %cst_91 : f32 to vector<8x128xf32>
    %283 = arith.mulf %282, %281 : vector<8x128xf32>
    %284 = math.tanh %283 : vector<8x128xf32>
    %cst_92 = arith.constant 5.000000e-01 : f32
    %285 = vector.broadcast %cst_92 : f32 to vector<8x128xf32>
    %286 = arith.mulf %285, %284 : vector<8x128xf32>
    %cst_93 = arith.constant 5.000000e-01 : f32
    %287 = vector.broadcast %cst_93 : f32 to vector<8x128xf32>
    %288 = arith.addf %286, %287 : vector<8x128xf32>
    %289 = arith.mulf %278, %221 : vector<8x128xf32>
    %290 = arith.mulf %270, %280 : vector<8x128xf32>
    %291 = arith.addf %289, %290 : vector<8x128xf32>
    %292 = math.tanh %291 : vector<8x128xf32>
    %293 = arith.mulf %288, %292 : vector<8x128xf32>
    %cst_94 = arith.constant dense<0.000000e+00> : vector<8x512xf32>
    %294 = tpu.matmul %293, %7, %cst_94 {dimension_numbers = #tpu.dot_dimension_numbers<[1], [0], [0], [1], [0, 0, 1, 1], [], []>} : vector<8x128xf32>, vector<128x512xf32>, vector<8x512xf32> -> vector<8x512xf32>
    %295 = vector.extract_strided_slice %5 {offsets = [32, 0], sizes = [8, 512], strides = [1, 1]} : vector<64x512xf32> to vector<8x512xf32>
    %296 = arith.addf %295, %259 : vector<8x512xf32>
    %297 = vector.extract_strided_slice %296 {offsets = [0, 0], sizes = [8, 128], strides = [1, 1]} : vector<8x512xf32> to vector<8x128xf32>
    %cst_95 = arith.constant 5.000000e-01 : f32
    %298 = vector.broadcast %cst_95 : f32 to vector<8x128xf32>
    %299 = arith.mulf %298, %297 : vector<8x128xf32>
    %300 = math.tanh %299 : vector<8x128xf32>
    %cst_96 = arith.constant 5.000000e-01 : f32
    %301 = vector.broadcast %cst_96 : f32 to vector<8x128xf32>
    %302 = arith.mulf %301, %300 : vector<8x128xf32>
    %cst_97 = arith.constant 5.000000e-01 : f32
    %303 = vector.broadcast %cst_97 : f32 to vector<8x128xf32>
    %304 = arith.addf %302, %303 : vector<8x128xf32>
    %305 = vector.extract_strided_slice %296 {offsets = [0, 128], sizes = [8, 128], strides = [1, 1]} : vector<8x512xf32> to vector<8x128xf32>
    %cst_98 = arith.constant 5.000000e-01 : f32
    %306 = vector.broadcast %cst_98 : f32 to vector<8x128xf32>
    %307 = arith.mulf %306, %305 : vector<8x128xf32>
    %308 = math.tanh %307 : vector<8x128xf32>
    %cst_99 = arith.constant 5.000000e-01 : f32
    %309 = vector.broadcast %cst_99 : f32 to vector<8x128xf32>
    %310 = arith.mulf %309, %308 : vector<8x128xf32>
    %cst_100 = arith.constant 5.000000e-01 : f32
    %311 = vector.broadcast %cst_100 : f32 to vector<8x128xf32>
    %312 = arith.addf %310, %311 : vector<8x128xf32>
    %313 = vector.extract_strided_slice %296 {offsets = [0, 256], sizes = [8, 128], strides = [1, 1]} : vector<8x512xf32> to vector<8x128xf32>
    %314 = math.tanh %313 : vector<8x128xf32>
    %315 = vector.extract_strided_slice %296 {offsets = [0, 384], sizes = [8, 128], strides = [1, 1]} : vector<8x512xf32> to vector<8x128xf32>
    %cst_101 = arith.constant 5.000000e-01 : f32
    %316 = vector.broadcast %cst_101 : f32 to vector<8x128xf32>
    %317 = arith.mulf %316, %315 : vector<8x128xf32>
    %318 = math.tanh %317 : vector<8x128xf32>
    %cst_102 = arith.constant 5.000000e-01 : f32
    %319 = vector.broadcast %cst_102 : f32 to vector<8x128xf32>
    %320 = arith.mulf %319, %318 : vector<8x128xf32>
    %cst_103 = arith.constant 5.000000e-01 : f32
    %321 = vector.broadcast %cst_103 : f32 to vector<8x128xf32>
    %322 = arith.addf %320, %321 : vector<8x128xf32>
    %323 = arith.mulf %312, %255 : vector<8x128xf32>
    %324 = arith.mulf %304, %314 : vector<8x128xf32>
    %325 = arith.addf %323, %324 : vector<8x128xf32>
    %326 = math.tanh %325 : vector<8x128xf32>
    %327 = arith.mulf %322, %326 : vector<8x128xf32>
    %cst_104 = arith.constant dense<0.000000e+00> : vector<8x1024xf32>
    %328 = tpu.matmul %327, %6, %cst_104 {dimension_numbers = #tpu.dot_dimension_numbers<[1], [0], [0], [1], [0, 0, 1, 1], [], []>} : vector<8x128xf32>, vector<128x1024xf32>, vector<8x1024xf32> -> vector<8x1024xf32>
    %329 = vector.extract_strided_slice %328 {offsets = [0, 0], sizes = [8, 512], strides = [1, 1]} : vector<8x1024xf32> to vector<8x512xf32>
    %330 = vector.extract_strided_slice %328 {offsets = [0, 512], sizes = [8, 512], strides = [1, 1]} : vector<8x1024xf32> to vector<8x512xf32>
    %331 = arith.addf %330, %294 : vector<8x512xf32>
    %332 = arith.addf %331, %10 : vector<8x512xf32>
    %333 = vector.extract_strided_slice %332 {offsets = [0, 0], sizes = [8, 128], strides = [1, 1]} : vector<8x512xf32> to vector<8x128xf32>
    %cst_105 = arith.constant 5.000000e-01 : f32
    %334 = vector.broadcast %cst_105 : f32 to vector<8x128xf32>
    %335 = arith.mulf %334, %333 : vector<8x128xf32>
    %336 = math.tanh %335 : vector<8x128xf32>
    %cst_106 = arith.constant 5.000000e-01 : f32
    %337 = vector.broadcast %cst_106 : f32 to vector<8x128xf32>
    %338 = arith.mulf %337, %336 : vector<8x128xf32>
    %cst_107 = arith.constant 5.000000e-01 : f32
    %339 = vector.broadcast %cst_107 : f32 to vector<8x128xf32>
    %340 = arith.addf %338, %339 : vector<8x128xf32>
    %341 = vector.extract_strided_slice %332 {offsets = [0, 128], sizes = [8, 128], strides = [1, 1]} : vector<8x512xf32> to vector<8x128xf32>
    %cst_108 = arith.constant 5.000000e-01 : f32
    %342 = vector.broadcast %cst_108 : f32 to vector<8x128xf32>
    %343 = arith.mulf %342, %341 : vector<8x128xf32>
    %344 = math.tanh %343 : vector<8x128xf32>
    %cst_109 = arith.constant 5.000000e-01 : f32
    %345 = vector.broadcast %cst_109 : f32 to vector<8x128xf32>
    %346 = arith.mulf %345, %344 : vector<8x128xf32>
    %cst_110 = arith.constant 5.000000e-01 : f32
    %347 = vector.broadcast %cst_110 : f32 to vector<8x128xf32>
    %348 = arith.addf %346, %347 : vector<8x128xf32>
    %349 = vector.extract_strided_slice %332 {offsets = [0, 256], sizes = [8, 128], strides = [1, 1]} : vector<8x512xf32> to vector<8x128xf32>
    %350 = math.tanh %349 : vector<8x128xf32>
    %351 = vector.extract_strided_slice %332 {offsets = [0, 384], sizes = [8, 128], strides = [1, 1]} : vector<8x512xf32> to vector<8x128xf32>
    %cst_111 = arith.constant 5.000000e-01 : f32
    %352 = vector.broadcast %cst_111 : f32 to vector<8x128xf32>
    %353 = arith.mulf %352, %351 : vector<8x128xf32>
    %354 = math.tanh %353 : vector<8x128xf32>
    %cst_112 = arith.constant 5.000000e-01 : f32
    %355 = vector.broadcast %cst_112 : f32 to vector<8x128xf32>
    %356 = arith.mulf %355, %354 : vector<8x128xf32>
    %cst_113 = arith.constant 5.000000e-01 : f32
    %357 = vector.broadcast %cst_113 : f32 to vector<8x128xf32>
    %358 = arith.addf %356, %357 : vector<8x128xf32>
    %359 = arith.mulf %348, %291 : vector<8x128xf32>
    %360 = arith.mulf %340, %350 : vector<8x128xf32>
    %361 = arith.addf %359, %360 : vector<8x128xf32>
    %362 = math.tanh %361 : vector<8x128xf32>
    %363 = arith.mulf %358, %362 : vector<8x128xf32>
    %cst_114 = arith.constant dense<0.000000e+00> : vector<8x512xf32>
    %364 = tpu.matmul %363, %7, %cst_114 {dimension_numbers = #tpu.dot_dimension_numbers<[1], [0], [0], [1], [0, 0, 1, 1], [], []>} : vector<8x128xf32>, vector<128x512xf32>, vector<8x512xf32> -> vector<8x512xf32>
    %365 = vector.extract_strided_slice %5 {offsets = [40, 0], sizes = [8, 512], strides = [1, 1]} : vector<64x512xf32> to vector<8x512xf32>
    %366 = arith.addf %365, %329 : vector<8x512xf32>
    %367 = vector.extract_strided_slice %366 {offsets = [0, 0], sizes = [8, 128], strides = [1, 1]} : vector<8x512xf32> to vector<8x128xf32>
    %cst_115 = arith.constant 5.000000e-01 : f32
    %368 = vector.broadcast %cst_115 : f32 to vector<8x128xf32>
    %369 = arith.mulf %368, %367 : vector<8x128xf32>
    %370 = math.tanh %369 : vector<8x128xf32>
    %cst_116 = arith.constant 5.000000e-01 : f32
    %371 = vector.broadcast %cst_116 : f32 to vector<8x128xf32>
    %372 = arith.mulf %371, %370 : vector<8x128xf32>
    %cst_117 = arith.constant 5.000000e-01 : f32
    %373 = vector.broadcast %cst_117 : f32 to vector<8x128xf32>
    %374 = arith.addf %372, %373 : vector<8x128xf32>
    %375 = vector.extract_strided_slice %366 {offsets = [0, 128], sizes = [8, 128], strides = [1, 1]} : vector<8x512xf32> to vector<8x128xf32>
    %cst_118 = arith.constant 5.000000e-01 : f32
    %376 = vector.broadcast %cst_118 : f32 to vector<8x128xf32>
    %377 = arith.mulf %376, %375 : vector<8x128xf32>
    %378 = math.tanh %377 : vector<8x128xf32>
    %cst_119 = arith.constant 5.000000e-01 : f32
    %379 = vector.broadcast %cst_119 : f32 to vector<8x128xf32>
    %380 = arith.mulf %379, %378 : vector<8x128xf32>
    %cst_120 = arith.constant 5.000000e-01 : f32
    %381 = vector.broadcast %cst_120 : f32 to vector<8x128xf32>
    %382 = arith.addf %380, %381 : vector<8x128xf32>
    %383 = vector.extract_strided_slice %366 {offsets = [0, 256], sizes = [8, 128], strides = [1, 1]} : vector<8x512xf32> to vector<8x128xf32>
    %384 = math.tanh %383 : vector<8x128xf32>
    %385 = vector.extract_strided_slice %366 {offsets = [0, 384], sizes = [8, 128], strides = [1, 1]} : vector<8x512xf32> to vector<8x128xf32>
    %cst_121 = arith.constant 5.000000e-01 : f32
    %386 = vector.broadcast %cst_121 : f32 to vector<8x128xf32>
    %387 = arith.mulf %386, %385 : vector<8x128xf32>
    %388 = math.tanh %387 : vector<8x128xf32>
    %cst_122 = arith.constant 5.000000e-01 : f32
    %389 = vector.broadcast %cst_122 : f32 to vector<8x128xf32>
    %390 = arith.mulf %389, %388 : vector<8x128xf32>
    %cst_123 = arith.constant 5.000000e-01 : f32
    %391 = vector.broadcast %cst_123 : f32 to vector<8x128xf32>
    %392 = arith.addf %390, %391 : vector<8x128xf32>
    %393 = arith.mulf %382, %325 : vector<8x128xf32>
    %394 = arith.mulf %374, %384 : vector<8x128xf32>
    %395 = arith.addf %393, %394 : vector<8x128xf32>
    %396 = math.tanh %395 : vector<8x128xf32>
    %397 = arith.mulf %392, %396 : vector<8x128xf32>
    %cst_124 = arith.constant dense<0.000000e+00> : vector<8x1024xf32>
    %398 = tpu.matmul %397, %6, %cst_124 {dimension_numbers = #tpu.dot_dimension_numbers<[1], [0], [0], [1], [0, 0, 1, 1], [], []>} : vector<8x128xf32>, vector<128x1024xf32>, vector<8x1024xf32> -> vector<8x1024xf32>
    %399 = vector.extract_strided_slice %398 {offsets = [0, 0], sizes = [8, 512], strides = [1, 1]} : vector<8x1024xf32> to vector<8x512xf32>
    %400 = vector.extract_strided_slice %398 {offsets = [0, 512], sizes = [8, 512], strides = [1, 1]} : vector<8x1024xf32> to vector<8x512xf32>
    %401 = arith.addf %400, %364 : vector<8x512xf32>
    %402 = arith.addf %401, %10 : vector<8x512xf32>
    %403 = vector.extract_strided_slice %402 {offsets = [0, 0], sizes = [8, 128], strides = [1, 1]} : vector<8x512xf32> to vector<8x128xf32>
    %cst_125 = arith.constant 5.000000e-01 : f32
    %404 = vector.broadcast %cst_125 : f32 to vector<8x128xf32>
    %405 = arith.mulf %404, %403 : vector<8x128xf32>
    %406 = math.tanh %405 : vector<8x128xf32>
    %cst_126 = arith.constant 5.000000e-01 : f32
    %407 = vector.broadcast %cst_126 : f32 to vector<8x128xf32>
    %408 = arith.mulf %407, %406 : vector<8x128xf32>
    %cst_127 = arith.constant 5.000000e-01 : f32
    %409 = vector.broadcast %cst_127 : f32 to vector<8x128xf32>
    %410 = arith.addf %408, %409 : vector<8x128xf32>
    %411 = vector.extract_strided_slice %402 {offsets = [0, 128], sizes = [8, 128], strides = [1, 1]} : vector<8x512xf32> to vector<8x128xf32>
    %cst_128 = arith.constant 5.000000e-01 : f32
    %412 = vector.broadcast %cst_128 : f32 to vector<8x128xf32>
    %413 = arith.mulf %412, %411 : vector<8x128xf32>
    %414 = math.tanh %413 : vector<8x128xf32>
    %cst_129 = arith.constant 5.000000e-01 : f32
    %415 = vector.broadcast %cst_129 : f32 to vector<8x128xf32>
    %416 = arith.mulf %415, %414 : vector<8x128xf32>
    %cst_130 = arith.constant 5.000000e-01 : f32
    %417 = vector.broadcast %cst_130 : f32 to vector<8x128xf32>
    %418 = arith.addf %416, %417 : vector<8x128xf32>
    %419 = vector.extract_strided_slice %402 {offsets = [0, 256], sizes = [8, 128], strides = [1, 1]} : vector<8x512xf32> to vector<8x128xf32>
    %420 = math.tanh %419 : vector<8x128xf32>
    %421 = vector.extract_strided_slice %402 {offsets = [0, 384], sizes = [8, 128], strides = [1, 1]} : vector<8x512xf32> to vector<8x128xf32>
    %cst_131 = arith.constant 5.000000e-01 : f32
    %422 = vector.broadcast %cst_131 : f32 to vector<8x128xf32>
    %423 = arith.mulf %422, %421 : vector<8x128xf32>
    %424 = math.tanh %423 : vector<8x128xf32>
    %cst_132 = arith.constant 5.000000e-01 : f32
    %425 = vector.broadcast %cst_132 : f32 to vector<8x128xf32>
    %426 = arith.mulf %425, %424 : vector<8x128xf32>
    %cst_133 = arith.constant 5.000000e-01 : f32
    %427 = vector.broadcast %cst_133 : f32 to vector<8x128xf32>
    %428 = arith.addf %426, %427 : vector<8x128xf32>
    %429 = arith.mulf %418, %361 : vector<8x128xf32>
    %430 = arith.mulf %410, %420 : vector<8x128xf32>
    %431 = arith.addf %429, %430 : vector<8x128xf32>
    %432 = math.tanh %431 : vector<8x128xf32>
    %433 = arith.mulf %428, %432 : vector<8x128xf32>
    %cst_134 = arith.constant dense<0.000000e+00> : vector<8x512xf32>
    %434 = tpu.matmul %433, %7, %cst_134 {dimension_numbers = #tpu.dot_dimension_numbers<[1], [0], [0], [1], [0, 0, 1, 1], [], []>} : vector<8x128xf32>, vector<128x512xf32>, vector<8x512xf32> -> vector<8x512xf32>
    %435 = vector.extract_strided_slice %5 {offsets = [48, 0], sizes = [8, 512], strides = [1, 1]} : vector<64x512xf32> to vector<8x512xf32>
    %436 = arith.addf %435, %399 : vector<8x512xf32>
    %437 = vector.extract_strided_slice %436 {offsets = [0, 0], sizes = [8, 128], strides = [1, 1]} : vector<8x512xf32> to vector<8x128xf32>
    %cst_135 = arith.constant 5.000000e-01 : f32
    %438 = vector.broadcast %cst_135 : f32 to vector<8x128xf32>
    %439 = arith.mulf %438, %437 : vector<8x128xf32>
    %440 = math.tanh %439 : vector<8x128xf32>
    %cst_136 = arith.constant 5.000000e-01 : f32
    %441 = vector.broadcast %cst_136 : f32 to vector<8x128xf32>
    %442 = arith.mulf %441, %440 : vector<8x128xf32>
    %cst_137 = arith.constant 5.000000e-01 : f32
    %443 = vector.broadcast %cst_137 : f32 to vector<8x128xf32>
    %444 = arith.addf %442, %443 : vector<8x128xf32>
    %445 = vector.extract_strided_slice %436 {offsets = [0, 128], sizes = [8, 128], strides = [1, 1]} : vector<8x512xf32> to vector<8x128xf32>
    %cst_138 = arith.constant 5.000000e-01 : f32
    %446 = vector.broadcast %cst_138 : f32 to vector<8x128xf32>
    %447 = arith.mulf %446, %445 : vector<8x128xf32>
    %448 = math.tanh %447 : vector<8x128xf32>
    %cst_139 = arith.constant 5.000000e-01 : f32
    %449 = vector.broadcast %cst_139 : f32 to vector<8x128xf32>
    %450 = arith.mulf %449, %448 : vector<8x128xf32>
    %cst_140 = arith.constant 5.000000e-01 : f32
    %451 = vector.broadcast %cst_140 : f32 to vector<8x128xf32>
    %452 = arith.addf %450, %451 : vector<8x128xf32>
    %453 = vector.extract_strided_slice %436 {offsets = [0, 256], sizes = [8, 128], strides = [1, 1]} : vector<8x512xf32> to vector<8x128xf32>
    %454 = math.tanh %453 : vector<8x128xf32>
    %455 = vector.extract_strided_slice %436 {offsets = [0, 384], sizes = [8, 128], strides = [1, 1]} : vector<8x512xf32> to vector<8x128xf32>
    %cst_141 = arith.constant 5.000000e-01 : f32
    %456 = vector.broadcast %cst_141 : f32 to vector<8x128xf32>
    %457 = arith.mulf %456, %455 : vector<8x128xf32>
    %458 = math.tanh %457 : vector<8x128xf32>
    %cst_142 = arith.constant 5.000000e-01 : f32
    %459 = vector.broadcast %cst_142 : f32 to vector<8x128xf32>
    %460 = arith.mulf %459, %458 : vector<8x128xf32>
    %cst_143 = arith.constant 5.000000e-01 : f32
    %461 = vector.broadcast %cst_143 : f32 to vector<8x128xf32>
    %462 = arith.addf %460, %461 : vector<8x128xf32>
    %463 = arith.mulf %452, %395 : vector<8x128xf32>
    %464 = arith.mulf %444, %454 : vector<8x128xf32>
    %465 = arith.addf %463, %464 : vector<8x128xf32>
    %466 = math.tanh %465 : vector<8x128xf32>
    %467 = arith.mulf %462, %466 : vector<8x128xf32>
    %cst_144 = arith.constant dense<0.000000e+00> : vector<8x1024xf32>
    %468 = tpu.matmul %467, %6, %cst_144 {dimension_numbers = #tpu.dot_dimension_numbers<[1], [0], [0], [1], [0, 0, 1, 1], [], []>} : vector<8x128xf32>, vector<128x1024xf32>, vector<8x1024xf32> -> vector<8x1024xf32>
    %469 = vector.extract_strided_slice %468 {offsets = [0, 0], sizes = [8, 512], strides = [1, 1]} : vector<8x1024xf32> to vector<8x512xf32>
    %470 = vector.extract_strided_slice %468 {offsets = [0, 512], sizes = [8, 512], strides = [1, 1]} : vector<8x1024xf32> to vector<8x512xf32>
    %471 = arith.addf %470, %434 : vector<8x512xf32>
    %472 = arith.addf %471, %10 : vector<8x512xf32>
    %473 = vector.extract_strided_slice %472 {offsets = [0, 0], sizes = [8, 128], strides = [1, 1]} : vector<8x512xf32> to vector<8x128xf32>
    %cst_145 = arith.constant 5.000000e-01 : f32
    %474 = vector.broadcast %cst_145 : f32 to vector<8x128xf32>
    %475 = arith.mulf %474, %473 : vector<8x128xf32>
    %476 = math.tanh %475 : vector<8x128xf32>
    %cst_146 = arith.constant 5.000000e-01 : f32
    %477 = vector.broadcast %cst_146 : f32 to vector<8x128xf32>
    %478 = arith.mulf %477, %476 : vector<8x128xf32>
    %cst_147 = arith.constant 5.000000e-01 : f32
    %479 = vector.broadcast %cst_147 : f32 to vector<8x128xf32>
    %480 = arith.addf %478, %479 : vector<8x128xf32>
    %481 = vector.extract_strided_slice %472 {offsets = [0, 128], sizes = [8, 128], strides = [1, 1]} : vector<8x512xf32> to vector<8x128xf32>
    %cst_148 = arith.constant 5.000000e-01 : f32
    %482 = vector.broadcast %cst_148 : f32 to vector<8x128xf32>
    %483 = arith.mulf %482, %481 : vector<8x128xf32>
    %484 = math.tanh %483 : vector<8x128xf32>
    %cst_149 = arith.constant 5.000000e-01 : f32
    %485 = vector.broadcast %cst_149 : f32 to vector<8x128xf32>
    %486 = arith.mulf %485, %484 : vector<8x128xf32>
    %cst_150 = arith.constant 5.000000e-01 : f32
    %487 = vector.broadcast %cst_150 : f32 to vector<8x128xf32>
    %488 = arith.addf %486, %487 : vector<8x128xf32>
    %489 = vector.extract_strided_slice %472 {offsets = [0, 256], sizes = [8, 128], strides = [1, 1]} : vector<8x512xf32> to vector<8x128xf32>
    %490 = math.tanh %489 : vector<8x128xf32>
    %491 = vector.extract_strided_slice %472 {offsets = [0, 384], sizes = [8, 128], strides = [1, 1]} : vector<8x512xf32> to vector<8x128xf32>
    %cst_151 = arith.constant 5.000000e-01 : f32
    %492 = vector.broadcast %cst_151 : f32 to vector<8x128xf32>
    %493 = arith.mulf %492, %491 : vector<8x128xf32>
    %494 = math.tanh %493 : vector<8x128xf32>
    %cst_152 = arith.constant 5.000000e-01 : f32
    %495 = vector.broadcast %cst_152 : f32 to vector<8x128xf32>
    %496 = arith.mulf %495, %494 : vector<8x128xf32>
    %cst_153 = arith.constant 5.000000e-01 : f32
    %497 = vector.broadcast %cst_153 : f32 to vector<8x128xf32>
    %498 = arith.addf %496, %497 : vector<8x128xf32>
    %499 = arith.mulf %488, %431 : vector<8x128xf32>
    %500 = arith.mulf %480, %490 : vector<8x128xf32>
    %501 = arith.addf %499, %500 : vector<8x128xf32>
    %502 = math.tanh %501 : vector<8x128xf32>
    %503 = arith.mulf %498, %502 : vector<8x128xf32>
    %cst_154 = arith.constant dense<0.000000e+00> : vector<8x512xf32>
    %504 = tpu.matmul %503, %7, %cst_154 {dimension_numbers = #tpu.dot_dimension_numbers<[1], [0], [0], [1], [0, 0, 1, 1], [], []>} : vector<8x128xf32>, vector<128x512xf32>, vector<8x512xf32> -> vector<8x512xf32>
    %505 = vector.extract_strided_slice %5 {offsets = [56, 0], sizes = [8, 512], strides = [1, 1]} : vector<64x512xf32> to vector<8x512xf32>
    %506 = arith.addf %505, %469 : vector<8x512xf32>
    %507 = vector.extract_strided_slice %506 {offsets = [0, 0], sizes = [8, 128], strides = [1, 1]} : vector<8x512xf32> to vector<8x128xf32>
    %cst_155 = arith.constant 5.000000e-01 : f32
    %508 = vector.broadcast %cst_155 : f32 to vector<8x128xf32>
    %509 = arith.mulf %508, %507 : vector<8x128xf32>
    %510 = math.tanh %509 : vector<8x128xf32>
    %cst_156 = arith.constant 5.000000e-01 : f32
    %511 = vector.broadcast %cst_156 : f32 to vector<8x128xf32>
    %512 = arith.mulf %511, %510 : vector<8x128xf32>
    %cst_157 = arith.constant 5.000000e-01 : f32
    %513 = vector.broadcast %cst_157 : f32 to vector<8x128xf32>
    %514 = arith.addf %512, %513 : vector<8x128xf32>
    %515 = vector.extract_strided_slice %506 {offsets = [0, 128], sizes = [8, 128], strides = [1, 1]} : vector<8x512xf32> to vector<8x128xf32>
    %cst_158 = arith.constant 5.000000e-01 : f32
    %516 = vector.broadcast %cst_158 : f32 to vector<8x128xf32>
    %517 = arith.mulf %516, %515 : vector<8x128xf32>
    %518 = math.tanh %517 : vector<8x128xf32>
    %cst_159 = arith.constant 5.000000e-01 : f32
    %519 = vector.broadcast %cst_159 : f32 to vector<8x128xf32>
    %520 = arith.mulf %519, %518 : vector<8x128xf32>
    %cst_160 = arith.constant 5.000000e-01 : f32
    %521 = vector.broadcast %cst_160 : f32 to vector<8x128xf32>
    %522 = arith.addf %520, %521 : vector<8x128xf32>
    %523 = vector.extract_strided_slice %506 {offsets = [0, 256], sizes = [8, 128], strides = [1, 1]} : vector<8x512xf32> to vector<8x128xf32>
    %524 = math.tanh %523 : vector<8x128xf32>
    %525 = vector.extract_strided_slice %506 {offsets = [0, 384], sizes = [8, 128], strides = [1, 1]} : vector<8x512xf32> to vector<8x128xf32>
    %cst_161 = arith.constant 5.000000e-01 : f32
    %526 = vector.broadcast %cst_161 : f32 to vector<8x128xf32>
    %527 = arith.mulf %526, %525 : vector<8x128xf32>
    %528 = math.tanh %527 : vector<8x128xf32>
    %cst_162 = arith.constant 5.000000e-01 : f32
    %529 = vector.broadcast %cst_162 : f32 to vector<8x128xf32>
    %530 = arith.mulf %529, %528 : vector<8x128xf32>
    %cst_163 = arith.constant 5.000000e-01 : f32
    %531 = vector.broadcast %cst_163 : f32 to vector<8x128xf32>
    %532 = arith.addf %530, %531 : vector<8x128xf32>
    %533 = arith.mulf %522, %465 : vector<8x128xf32>
    %534 = arith.mulf %514, %524 : vector<8x128xf32>
    %535 = arith.addf %533, %534 : vector<8x128xf32>
    %536 = math.tanh %535 : vector<8x128xf32>
    %537 = arith.mulf %532, %536 : vector<8x128xf32>
    %cst_164 = arith.constant dense<0.000000e+00> : vector<8x1024xf32>
    %538 = tpu.matmul %537, %6, %cst_164 {dimension_numbers = #tpu.dot_dimension_numbers<[1], [0], [0], [1], [0, 0, 1, 1], [], []>} : vector<8x128xf32>, vector<128x1024xf32>, vector<8x1024xf32> -> vector<8x1024xf32>
    %539 = vector.extract_strided_slice %538 {offsets = [0, 512], sizes = [8, 512], strides = [1, 1]} : vector<8x1024xf32> to vector<8x512xf32>
    %540 = arith.addf %539, %504 : vector<8x512xf32>
    %541 = arith.addf %540, %10 : vector<8x512xf32>
    %542 = vector.extract_strided_slice %541 {offsets = [0, 0], sizes = [8, 128], strides = [1, 1]} : vector<8x512xf32> to vector<8x128xf32>
    %cst_165 = arith.constant 5.000000e-01 : f32
    %543 = vector.broadcast %cst_165 : f32 to vector<8x128xf32>
    %544 = arith.mulf %543, %542 : vector<8x128xf32>
    %545 = math.tanh %544 : vector<8x128xf32>
    %cst_166 = arith.constant 5.000000e-01 : f32
    %546 = vector.broadcast %cst_166 : f32 to vector<8x128xf32>
    %547 = arith.mulf %546, %545 : vector<8x128xf32>
    %cst_167 = arith.constant 5.000000e-01 : f32
    %548 = vector.broadcast %cst_167 : f32 to vector<8x128xf32>
    %549 = arith.addf %547, %548 : vector<8x128xf32>
    %550 = vector.extract_strided_slice %541 {offsets = [0, 128], sizes = [8, 128], strides = [1, 1]} : vector<8x512xf32> to vector<8x128xf32>
    %cst_168 = arith.constant 5.000000e-01 : f32
    %551 = vector.broadcast %cst_168 : f32 to vector<8x128xf32>
    %552 = arith.mulf %551, %550 : vector<8x128xf32>
    %553 = math.tanh %552 : vector<8x128xf32>
    %cst_169 = arith.constant 5.000000e-01 : f32
    %554 = vector.broadcast %cst_169 : f32 to vector<8x128xf32>
    %555 = arith.mulf %554, %553 : vector<8x128xf32>
    %cst_170 = arith.constant 5.000000e-01 : f32
    %556 = vector.broadcast %cst_170 : f32 to vector<8x128xf32>
    %557 = arith.addf %555, %556 : vector<8x128xf32>
    %558 = vector.extract_strided_slice %541 {offsets = [0, 256], sizes = [8, 128], strides = [1, 1]} : vector<8x512xf32> to vector<8x128xf32>
    %559 = math.tanh %558 : vector<8x128xf32>
    %560 = vector.extract_strided_slice %541 {offsets = [0, 384], sizes = [8, 128], strides = [1, 1]} : vector<8x512xf32> to vector<8x128xf32>
    %cst_171 = arith.constant 5.000000e-01 : f32
    %561 = vector.broadcast %cst_171 : f32 to vector<8x128xf32>
    %562 = arith.mulf %561, %560 : vector<8x128xf32>
    %563 = math.tanh %562 : vector<8x128xf32>
    %cst_172 = arith.constant 5.000000e-01 : f32
    %564 = vector.broadcast %cst_172 : f32 to vector<8x128xf32>
    %565 = arith.mulf %564, %563 : vector<8x128xf32>
    %cst_173 = arith.constant 5.000000e-01 : f32
    %566 = vector.broadcast %cst_173 : f32 to vector<8x128xf32>
    %567 = arith.addf %565, %566 : vector<8x128xf32>
    %568 = arith.mulf %557, %501 : vector<8x128xf32>
    %569 = arith.mulf %549, %559 : vector<8x128xf32>
    %570 = arith.addf %568, %569 : vector<8x128xf32>
    %571 = math.tanh %570 : vector<8x128xf32>
    %572 = arith.mulf %567, %571 : vector<8x128xf32>
    %c0_174 = arith.constant 0 : index
    %c0_175 = arith.constant 0 : index
    %573 = vector.load %arg6[%c0_174, %c0_175] : memref<128x128xf32, #tpu.memory_space<vmem>>, vector<128x128xf32>
    %cst_176 = arith.constant dense<0.000000e+00> : vector<8x128xf32>
    %574 = tpu.matmul %572, %573, %cst_176 {dimension_numbers = #tpu.dot_dimension_numbers<[1], [0], [0], [1], [0, 0, 1, 1], [], []>} : vector<8x128xf32>, vector<128x128xf32>, vector<8x128xf32> -> vector<8x128xf32>
    %c0_177 = arith.constant 0 : index
    %c0_178 = arith.constant 0 : index
    %575 = vector.load %arg7[%c0_177, %c0_178] : memref<1x128xf32, #tpu.memory_space<vmem>>, vector<1x128xf32>
    %576 = vector.broadcast %575 : vector<1x128xf32> to vector<8x128xf32>
    %577 = arith.addf %574, %576 : vector<8x128xf32>
    %c0_179 = arith.constant 0 : index
    %c0_180 = arith.constant 0 : index
    %578 = vector.load %arg8[%c0_179, %c0_180] : memref<8x128xf32, #tpu.memory_space<vmem>>, vector<8x128xf32>
    tpu.vector_store %arg8[%c0_179, %c0_180], %577 {strides = array<i32>} : memref<8x128xf32, #tpu.memory_space<vmem>>, vector<8x128xf32>,
    return
  }
}

</mosaic_0001>

<bundles_post_ra>
// kernel: multi_lstm_forward.1
= control target key start
LH: loop header
LB: loop body
LE: loop exit
PB: predicated region body
PF: predicated region fallthrough
CT: control target
= control target key end

     0   :  { %13 = vsyncpa [#allocation3], 0  ;;  %s8139_s0 = inlined_call_operand.vmem [shape: f32[64,128], index: 0, kind: input, shape index: {}]   ;;  %s8140_s1 = inlined_call_operand.hbm [shape: f32[128,512], index: 1, kind: input, shape index: {}]   ;;  %s8141_s2 = inlined_call_operand.vmem [shape: f32[1,512], index: 2, kind: input, shape index: {}]   ;;  %s8142_s3 = inlined_call_operand.hbm [shape: f32[128,1024], index: 3, kind: input, shape index: {}]   ;;  %s8143_s4 = inlined_call_operand.hbm [shape: f32[128,512], index: 4, kind: input, shape index: {}]   ;;  %s8144_s5 = inlined_call_operand.vmem [shape: f32[1,512], index: 5, kind: input, shape index: {}]   ;;  %s8145_s6 = inlined_call_operand.vmem [shape: f32[128,128], index: 6, kind: input, shape index: {}]   ;;  %s8146_s7 = inlined_call_operand.vmem [shape: f32[1,128], index: 7, kind: input, shape index: {}]   ;;  %s8147_s8 = inlined_call_operand.vmem [shape: f32[8,128], index: 8, kind: output, shape index: {}]  }
   0x1   :  { %14 = vsyncpa [#allocation5], 0  ;;  %s5074_s27 = smov [#allocation4]  }
   0x2   :  { %s36_s28 = sshll.u32 %s5074_s27, 4  ;;  %s37_s28 = int_to_ptr.vmem [resolvable:$true] %s36_s28 }
   0x3   :  { %s5018_s29 = scalar_lea.vmem %s37_s28, 16384  ;;  %p5023_p1 = scmp.lt.s32.totalorder %s37_s28, %s37_s28 }
   0x4   :  { %p5019_p0 = scmp.ne.s32.totalorder %s37_s28, %s5018_s29  ;;  %p5024_p2 = scmp.lt.s32.totalorder %s5018_s29, %s5018_s29 }
   0x6   :  { %p5025_p3 = por %p5024_p2, %p5023_p1 }
   0x8   :  { %p5026_p4 = pnand %p5025_p3, %p5019_p0 }
   0xa   :  { %5029 = shalt.err (!%p5026_p4)
}
   0xb   :  { %s5075_s30 = smov 1024   ;;  %s5076_s9 = smov 64  }
   0xc   :  { %42 = dma.hbm_to_vmem [thread:$0]  %s8142_s3, 16384, %s37_s28, [#allocation5], %s5075_s30, %s5075_s30, %s5076_s9  }
   0xd   :  { %s5077_s12 = smov [#allocation2]  }
   0xe   :  { %s22_s13 = sshll.u32 %s5077_s12, 4  ;;  %s23_s13 = int_to_ptr.vmem [resolvable:$true] %s22_s13 }
   0xf   :  { %s5038_s14 = scalar_lea.vmem %s23_s13, 8192  ;;  %p5043_p6 = scmp.lt.s32.totalorder %s23_s13, %s23_s13 }
  0x10   :  { %p5039_p5 = scmp.ne.s32.totalorder %s23_s13, %s5038_s14  ;;  %p5044_p7 = scmp.lt.s32.totalorder %s5038_s14, %s5038_s14 }
  0x12   :  { %p5045_p8 = por %p5044_p7, %p5043_p6 }
  0x14   :  { %p5046_p9 = pnand %p5045_p8, %p5039_p5 }
  0x16   :  { %5049 = shalt.err (!%p5046_p9)
}
  0x17   :  { %s5078_s15 = smov 512   ;;  %s5079_s16 = smov 32  }
  0x18   :  { %28 = dma.hbm_to_vmem [thread:$0]  %s8140_s1, 8192, %s23_s13, [#allocation3], %s5078_s15, %s5078_s15, %s5079_s16  }
  0x19   :  { %s5080_s19 = smov [#allocation6]  }
  0x1a   :  { %s48_s20 = sshll.u32 %s5080_s19, 4  ;;  %s49_s20 = int_to_ptr.vmem [resolvable:$true] %s48_s20 }
  0x1b   :  { %s5058_s3 = scalar_lea.vmem %s49_s20, 8192  ;;  %p5063_p11 = scmp.lt.s32.totalorder %s49_s20, %s49_s20 }
  0x1c   :  { %p5059_p10 = scmp.ne.s32.totalorder %s49_s20, %s5058_s3  ;;  %p5064_p12 = scmp.lt.s32.totalorder %s5058_s3, %s5058_s3 }
  0x1e   :  { %p5065_p13 = por %p5064_p12, %p5063_p11 }
  0x20   :  { %p5066_p0 = pnand %p5065_p13, %p5059_p10 }
  0x22   :  { %5069 = shalt.err (!%p5066_p0)
}
  0x23   :  { %54 = dma.hbm_to_vmem [thread:$0]  %s8143_s4, 8192, %s49_s20, [#allocation5], %s5078_s15, %s5078_s15, %s5079_s16  }
  0x24   :  { %5070 = dma.done.wait [#allocation3], 8192  }
  0x25   :  { %5071 = vsyncadd [#allocation3], 4294959104 }
  0x26   :  { %5072 = dma.done.wait [#allocation5], 24576  }
  0x27   :  { %5073 = vsyncadd [#allocation5], 4294942720  ;;  %v8152_v0 = vmov 0.0   ;;  %v139_v1 = vld [vmem:[#allocation2 + $0x1e8] sm:$0xff]  ;;  %v138_v2 = vld [vmem:[#allocation2 + $0x1e0] sm:$0xff]  ;;  %vm5082_vm0 = vmmov 0  }
  0x28   :  { %228 = vmatprep.mubr.f32.mxu0 %v8152_v0  ;;  %341 = vmatprep.mubr.f32.mxu1 %v8152_v0  ;;  %v135_v3 = vld [vmem:[#allocation2 + $0x1c8] sm:$0xff]  ;;  %v134_v4 = vld [vmem:[#allocation2 + $0x1c0] sm:$0xff]  ;;  %v141_v6 = vld [vmem:[#allocation2 + $0x1f8] sm:$0xff] }
  0x29   :  { %164 = vmatprep.subr.mxu0 %v139_v1  ;;  %v131_v5 = vld [vmem:[#allocation2 + $0x1a8] sm:$0xff]  ;;  %v130_v7 = vld [vmem:[#allocation2 + $0x1a0] sm:$0xff]  ;;  %277 = vmatprep.subr.mxu1 %v141_v6  ;;  %v140_v8 = vld [vmem:[#allocation2 + $0x1f0] sm:$0xff] }
  0x2a   :  { %165 = vmatpush1.msra.mxu0 %v138_v2  ;;  %v137_v9 = vld [vmem:[#allocation2 + $0x1d8] sm:$0xff]  ;;  %v127_v10 = vld [vmem:[#allocation2 + $0x188] sm:$0xff]  ;;  %278 = vmatpush1.msra.mxu1 %v140_v8  ;;  %v136_v11 = vld [vmem:[#allocation2 + $0x1d0] sm:$0xff] }
  0x2b   :  { %166 = vmatprep.subr.mxu0 %v135_v3  ;;  %v126_v12 = vld [vmem:[#allocation2 + $0x180] sm:$0xff]  ;;  %279 = vmatprep.subr.mxu1 %v137_v9  ;;  %v133_v13 = vld [vmem:[#allocation2 + $0x1b8] sm:$0xff]  ;;  %v132_v14 = vld [vmem:[#allocation2 + $0x1b0] sm:$0xff] }
  0x2c   :  { %167 = vmatpush1.msra.mxu0 %v134_v4  ;;  %v123_v15 = vld [vmem:[#allocation2 + $0x168] sm:$0xff]  ;;  %280 = vmatpush1.msra.mxu1 %v136_v11  ;;  %v129_v16 = vld [vmem:[#allocation2 + $0x198] sm:$0xff]  ;;  %v122_v17 = vld [vmem:[#allocation2 + $0x160] sm:$0xff] }
  0x2d   :  { %168 = vmatprep.subr.mxu0 %v131_v5  ;;  %281 = vmatprep.subr.mxu1 %v133_v13  ;;  %v128_v18 = vld [vmem:[#allocation2 + $0x190] sm:$0xff]  ;;  %v119_v19 = vld [vmem:[#allocation2 + $0x148] sm:$0xff]  ;;  %v125_v20 = vld [vmem:[#allocation2 + $0x178] sm:$0xff] }
  0x2e   :  { %169 = vmatpush1.msra.mxu0 %v130_v7  ;;  %282 = vmatpush1.msra.mxu1 %v132_v14  ;;  %v118_v21 = vld [vmem:[#allocation2 + $0x140] sm:$0xff]  ;;  %v124_v22 = vld [vmem:[#allocation2 + $0x170] sm:$0xff]  ;;  %v115_v23 = vld [vmem:[#allocation2 + $0x128] sm:$0xff] }
  0x2f   :  { %170 = vmatprep.subr.mxu0 %v127_v10  ;;  %283 = vmatprep.subr.mxu1 %v129_v16  ;;  %v121_v24 = vld [vmem:[#allocation2 + $0x158] sm:$0xff]  ;;  %v114_v25 = vld [vmem:[#allocation2 + $0x120] sm:$0xff]  ;;  %v120_v26 = vld [vmem:[#allocation2 + $0x150] sm:$0xff] }
  0x30   :  { %171 = vmatpush1.msra.mxu0 %v126_v12  ;;  %284 = vmatpush1.msra.mxu1 %v128_v18  ;;  %v111_v27 = vld [vmem:[#allocation2 + $0x108] sm:$0xff]  ;;  %v117_v28 = vld [vmem:[#allocation2 + $0x138] sm:$0xff]  ;;  %v110_v29 = vld [vmem:[#allocation2 + $0x100] sm:$0xff] }
  0x31   :  { %172 = vmatprep.subr.mxu0 %v123_v15  ;;  %285 = vmatprep.subr.mxu1 %v125_v20  ;;  %v116_v30 = vld [vmem:[#allocation2 + $0x130] sm:$0xff]  ;;  %v107_v31 = vld [vmem:[#allocation2 + $0xe8] sm:$0xff]  ;;  %v113_v32 = vld [vmem:[#allocation2 + $0x118] sm:$0xff] }
  0x32   :  { %173 = vmatpush1.msra.mxu0 %v122_v17  ;;  %286 = vmatpush1.msra.mxu1 %v124_v22  ;;  %v106_v33 = vld [vmem:[#allocation2 + $0xe0] sm:$0xff]  ;;  %v112_v34 = vld [vmem:[#allocation2 + $0x110] sm:$0xff]  ;;  %v103_v35 = vld [vmem:[#allocation2 + $0xc8] sm:$0xff] }
  0x33   :  { %174 = vmatprep.subr.mxu0 %v119_v19  ;;  %287 = vmatprep.subr.mxu1 %v121_v24  ;;  %v109_v36 = vld [vmem:[#allocation2 + $0xf8] sm:$0xff]  ;;  %v102_v37 = vld [vmem:[#allocation2 + $0xc0] sm:$0xff]  ;;  %v108_v38 = vld [vmem:[#allocation2 + $0xf0] sm:$0xff] }
  0x34   :  { %175 = vmatpush1.msra.mxu0 %v118_v21  ;;  %288 = vmatpush1.msra.mxu1 %v120_v26  ;;  %v99_v39 = vld [vmem:[#allocation2 + $0xa8] sm:$0xff]  ;;  %v105_v40 = vld [vmem:[#allocation2 + $0xd8] sm:$0xff]  ;;  %v98_v41 = vld [vmem:[#allocation2 + $0xa0] sm:$0xff] }
  0x35   :  { %176 = vmatprep.subr.mxu0 %v115_v23  ;;  %289 = vmatprep.subr.mxu1 %v117_v28  ;;  %v104_v42 = vld [vmem:[#allocation2 + $0xd0] sm:$0xff]  ;;  %v95_v43 = vld [vmem:[#allocation2 + $0x88] sm:$0xff]  ;;  %v101_v44 = vld [vmem:[#allocation2 + $0xb8] sm:$0xff] }
  0x36   :  { %177 = vmatpush1.msra.mxu0 %v114_v25  ;;  %290 = vmatpush1.msra.mxu1 %v116_v30  ;;  %v94_v45 = vld [vmem:[#allocation2 + $0x80] sm:$0xff]  ;;  %v100_v46 = vld [vmem:[#allocation2 + $0xb0] sm:$0xff]  ;;  %v91_v47 = vld [vmem:[#allocation2 + $0x68] sm:$0xff] }
  0x37   :  { %178 = vmatprep.subr.mxu0 %v111_v27  ;;  %291 = vmatprep.subr.mxu1 %v113_v32  ;;  %v97_v48 = vld [vmem:[#allocation2 + $0x98] sm:$0xff]  ;;  %v90_v49 = vld [vmem:[#allocation2 + $0x60] sm:$0xff]  ;;  %v96_v50 = vld [vmem:[#allocation2 + $0x90] sm:$0xff] }
  0x38   :  { %179 = vmatpush1.msra.mxu0 %v110_v29  ;;  %292 = vmatpush1.msra.mxu1 %v112_v34  ;;  %v87_v51 = vld [vmem:[#allocation2 + $0x48] sm:$0xff]  ;;  %v93_v52 = vld [vmem:[#allocation2 + $0x78] sm:$0xff]  ;;  %v86_v53 = vld [vmem:[#allocation2 + $0x40] sm:$0xff] }
  0x39   :  { %180 = vmatprep.subr.mxu0 %v107_v31  ;;  %293 = vmatprep.subr.mxu1 %v109_v36  ;;  %v92_v54 = vld [vmem:[#allocation2 + $0x70] sm:$0xff]  ;;  %v83_v55 = vld [vmem:[#allocation2 + $0x28] sm:$0xff]  ;;  %v89_v56 = vld [vmem:[#allocation2 + $0x58] sm:$0xff] }
  0x3a   :  { %181 = vmatpush1.msra.mxu0 %v106_v33  ;;  %294 = vmatpush1.msra.mxu1 %v108_v38  ;;  %v82_v57 = vld [vmem:[#allocation2 + $0x20] sm:$0xff]  ;;  %v88_v58 = vld [vmem:[#allocation2 + $0x50] sm:$0xff]  ;;  %v79_v59 = vld [vmem:[#allocation2 + $0x8] sm:$0xff] }
  0x3b   :  { %182 = vmatprep.subr.mxu0 %v103_v35  ;;  %295 = vmatprep.subr.mxu1 %v105_v40  ;;  %v85_v60 = vld [vmem:[#allocation2 + $0x38] sm:$0xff]  ;;  %v78_v61 = vld [vmem:[#allocation2] sm:$0xff]  ;;  %v84_v62 = vld [vmem:[#allocation2 + $0x30] sm:$0xff] }
  0x3c   :  { %183 = vmatpush1.msra.mxu0 %v102_v37  ;;  %296 = vmatpush1.msra.mxu1 %v104_v42  ;;  %v70_v63 = vld [vmem:[%s8139_s0] sm:$0xff]  ;;  %v81_v1 = vld [vmem:[#allocation2 + $0x18] sm:$0xff]  ;;  %v80_v2 = vld [vmem:[#allocation2 + $0x10] sm:$0xff] }
  0x3d   :  { %184 = vmatprep.subr.mxu0 %v99_v39  ;;  %297 = vmatprep.subr.mxu1 %v101_v44  ;;  %v5144_v3 = vld [vmem:[#allocation4 + $0x3c8] sm:$0xff]  ;;  %v5146_v4 = vld [vmem:[#allocation4 + $0x3d8] sm:$0xff]  ;;  %v510_v5 = vld [vmem:[#allocation4 + $0x3c0] sm:$0xff] }
  0x3e   :  { %185 = vmatpush1.msra.mxu0 %v98_v41  ;;  %298 = vmatpush1.msra.mxu1 %v100_v46  ;;  %v512_v6 = vld [vmem:[#allocation4 + $0x3d0] sm:$0xff]  ;;  %v503_v7 = vld [vmem:[#allocation4 + $0x388] sm:$0xff]  ;;  %v505_v8 = vld [vmem:[#allocation4 + $0x398] sm:$0xff] }
  0x3f   :  { %186 = vmatprep.subr.mxu0 %v95_v43  ;;  %299 = vmatprep.subr.mxu1 %v97_v48  ;;  %v71_v9 = vld [vmem:[%s8139_s0 + $0x8] sm:$0xff]  ;;  %v502_v10 = vld [vmem:[#allocation4 + $0x380] sm:$0xff]  ;;  %v504_v11 = vld [vmem:[#allocation4 + $0x390] sm:$0xff] }
  0x40   :  { %187 = vmatpush1.msra.mxu0 %v94_v45  ;;  %300 = vmatpush1.msra.mxu1 %v96_v50  ;;  %v495_v12 = vld [vmem:[#allocation4 + $0x348] sm:$0xff]  ;;  %v497_v13 = vld [vmem:[#allocation4 + $0x358] sm:$0xff]  ;;  %v494_v14 = vld [vmem:[#allocation4 + $0x340] sm:$0xff] }
  0x41   :  { %188 = vmatprep.subr.mxu0 %v91_v47  ;;  %301 = vmatprep.subr.mxu1 %v93_v52  ;;  %v496_v15 = vld [vmem:[#allocation4 + $0x350] sm:$0xff]  ;;  %v487_v16 = vld [vmem:[#allocation4 + $0x308] sm:$0xff]  ;;  %v489_v17 = vld [vmem:[#allocation4 + $0x318] sm:$0xff] }
  0x42   :  { %189 = vmatpush1.msra.mxu0 %v90_v49  ;;  %302 = vmatpush1.msra.mxu1 %v92_v54  ;;  %v72_v18 = vld [vmem:[%s8139_s0 + $0x10] sm:$0xff]  ;;  %v486_v19 = vld [vmem:[#allocation4 + $0x300] sm:$0xff]  ;;  %v479_v21 = vld [vmem:[#allocation4 + $0x2c8] sm:$0xff] }
  0x43   :  { %190 = vmatprep.subr.mxu0 %v87_v51  ;;  %303 = vmatprep.subr.mxu1 %v89_v56  ;;  %v488_v20 = vld [vmem:[#allocation4 + $0x310] sm:$0xff]  ;;  %v481_v22 = vld [vmem:[#allocation4 + $0x2d8] sm:$0xff]  ;;  %v478_v23 = vld [vmem:[#allocation4 + $0x2c0] sm:$0xff] }
  0x44   :  { %191 = vmatpush1.msra.mxu0 %v86_v53  ;;  %304 = vmatpush1.msra.mxu1 %v88_v58  ;;  %v480_v24 = vld [vmem:[#allocation4 + $0x2d0] sm:$0xff]  ;;  %v471_v25 = vld [vmem:[#allocation4 + $0x288] sm:$0xff]  ;;  %v473_v26 = vld [vmem:[#allocation4 + $0x298] sm:$0xff] }
  0x45   :  { %192 = vmatprep.subr.mxu0 %v83_v55  ;;  %305 = vmatprep.subr.mxu1 %v85_v60  ;;  %v73_v27 = vld [vmem:[%s8139_s0 + $0x18] sm:$0xff]  ;;  %v470_v28 = vld [vmem:[#allocation4 + $0x280] sm:$0xff]  ;;  %v472_v29 = vld [vmem:[#allocation4 + $0x290] sm:$0xff] }
  0x46   :  { %193 = vmatpush1.msra.mxu0 %v82_v57  ;;  %306 = vmatpush1.msra.mxu1 %v84_v62  ;;  %v463_v30 = vld [vmem:[#allocation4 + $0x248] sm:$0xff]  ;;  %v465_v31 = vld [vmem:[#allocation4 + $0x258] sm:$0xff]  ;;  %v462_v32 = vld [vmem:[#allocation4 + $0x240] sm:$0xff] }
  0x47   :  { %194 = vmatprep.subr.mxu0 %v79_v59  ;;  %307 = vmatprep.subr.mxu1 %v81_v1  ;;  %v464_v33 = vld [vmem:[#allocation4 + $0x250] sm:$0xff]  ;;  %v455_v34 = vld [vmem:[#allocation4 + $0x208] sm:$0xff]  ;;  %v457_v35 = vld [vmem:[#allocation4 + $0x218] sm:$0xff] }
  0x48   :  { %195 = vmatpush1.msra.mxu0 %v78_v61  ;;  %308 = vmatpush1.msra.mxu1 %v80_v2  ;;  %v74_v36 = vld [vmem:[%s8139_s0 + $0x20] sm:$0xff]  ;;  %v456_v38 = vld [vmem:[#allocation4 + $0x210] sm:$0xff]  ;;  %v447_v39 = vld [vmem:[#allocation4 + $0x1c8] sm:$0xff] }
  0x49   :  { %229 = vmatmul.mubr.f32.vlgmr.msra.gmra.mxu0 %v70_v63  ;;  %342 = vmatmul.mubr.f32.vlgmr.msra.gmra.mxu1 %v70_v63  ;;  %v454_v37 = vld [vmem:[#allocation4 + $0x200] sm:$0xff]  ;;  %v449_v40 = vld [vmem:[#allocation4 + $0x1d8] sm:$0xff]  ;;  %v448_v42 = vld [vmem:[#allocation4 + $0x1d0] sm:$0xff] }
  0x4a   :  { %234 = vmatprep.mubr.f32.mxu0 %v8152_v0  ;;  %347 = vmatprep.mubr.f32.mxu1 %v8152_v0  ;;  %v446_v41 = vld [vmem:[#allocation4 + $0x1c0] sm:$0xff]  ;;  %v439_v43 = vld [vmem:[#allocation4 + $0x188] sm:$0xff]  ;;  %v441_v44 = vld [vmem:[#allocation4 + $0x198] sm:$0xff] }
  0x4b   :  { %626 = vmatprep.subr.mxu0 %v5144_v3  ;;  %697 = vmatprep.subr.mxu1 %v5146_v4  ;;  %v75_v45 = vld [vmem:[%s8139_s0 + $0x28] sm:$0xff]  ;;  %v5171_v46 = vld [vmem:[#allocation4 + $0x180] sm:$0xff]  ;;  %v5173_v47 = vld [vmem:[#allocation4 + $0x190] sm:$0xff] }
  0x4c   :  { %627 = vmatpush1.msra.mxu0 %v510_v5  ;;  %698 = vmatpush1.msra.mxu1 %v512_v6  ;;  %v5176_v48 = vld [vmem:[#allocation4 + $0x148] sm:$0xff]  ;;  %v5178_v49 = vld [vmem:[#allocation4 + $0x158] sm:$0xff]  ;;  %v5182_v50 = vld [vmem:[#allocation4 + $0x140] sm:$0xff] }
  0x4d   :  { %628 = vmatprep.subr.mxu0 %v503_v7  ;;  %699 = vmatprep.subr.mxu1 %v505_v8  ;;  %v5184_v51 = vld [vmem:[#allocation4 + $0x150] sm:$0xff]  ;;  %v5188_v52 = vld [vmem:[#allocation4 + $0x108] sm:$0xff]  ;;  %v5191_v53 = vld [vmem:[#allocation4 + $0x118] sm:$0xff] }
  0x4e   :  { %235 = vmatmul.mubr.f32.gmra.mxu0 %v71_v9  ;;  %700 = vmatpush1.msra.mxu1 %v504_v11  ;;  %v76_v54 = vld [vmem:[%s8139_s0 + $0x30] sm:$0xff]  ;;  %v5198_v55 = vld [vmem:[#allocation4 + $0x100] sm:$0xff]  ;;  %v5204_v57 = vld [vmem:[#allocation4 + $0xc8] sm:$0xff] }
  0x4f   :  { %629 = vmatpush1.msra.mxu0 %v502_v10  ;;  %701 = vmatprep.subr.mxu1 %v497_v13  ;;  %v5200_v56 = vld [vmem:[#allocation4 + $0x110] sm:$0xff]  ;;  %v5207_v58 = vld [vmem:[#allocation4 + $0xd8] sm:$0xff]  ;;  %v5211_v59 = vld [vmem:[#allocation4 + $0xc0] sm:$0xff] }
  0x50   :  { %630 = vmatprep.subr.mxu0 %v495_v12  ;;  %348 = vmatmul.mubr.f32.gmra.mxu1 %v71_v9  ;;  %v5213_v60 = vld [vmem:[#allocation4 + $0xd0] sm:$0xff]  ;;  %v5217_v61 = vld [vmem:[#allocation4 + $0x88] sm:$0xff]  ;;  %v5220_v62 = vld [vmem:[#allocation4 + $0x98] sm:$0xff] }
  0x51   :  { %631 = vmatpush1.msra.mxu0 %v494_v14  ;;  %702 = vmatpush1.msra.mxu1 %v496_v15  ;;  %v77_v63 = vld [vmem:[%s8139_s0 + $0x38] sm:$0xff]  ;;  %v5227_v1 = vld [vmem:[#allocation4 + $0x80] sm:$0xff]  ;;  %v5229_v2 = vld [vmem:[#allocation4 + $0x90] sm:$0xff]  ;;  %v144_v15 = vlaneseq }
  0x52   :  { %240 = vmatprep.mubr.f32.mxu0 %v8152_v0  ;;  %632 = vmatprep.subr.mxu0 %v487_v16  ;;  %v5233_v5 = vld [vmem:[#allocation4 + $0x48] sm:$0xff]  ;;  %v5236_v6 = vld [vmem:[#allocation4 + $0x58] sm:$0xff]  ;;  %v5240_v7 = vld [vmem:[#allocation4 + $0x40] sm:$0xff] }
  0x53   :  { %703 = vmatprep.subr.mxu1 %v489_v17  ;;  %241 = vmatmul.mubr.f32.gmra.mxu0 %v72_v18  ;;  %v5242_v8 = vld [vmem:[#allocation4 + $0x50] sm:$0xff]  ;;  %v5246_v9 = vld [vmem:[#allocation4 + $0x8] sm:$0xff]  ;;  %v5248_v10 = vld [vmem:[#allocation4 + $0x18] sm:$0xff]  ;;  %v5269_v16 = vshrl.u32 %v144_v15, 7 }
  0x54   :  { %633 = vmatpush1.msra.mxu0 %v486_v19  ;;  %704 = vmatpush1.msra.mxu1 %v488_v20  ;;  %v5251_v11 = vld [vmem:[#allocation4] sm:$0xff]  ;;  %v5253_v12 = vld [vmem:[#allocation4 + $0x10] sm:$0xff]  ;;  %v5259_v13 = vld [vmem:[#allocation4 + $0x3e8] sm:$0xff] }
  0x55   :  { %353 = vmatprep.mubr.f32.mxu1 %v8152_v0  ;;  %634 = vmatprep.subr.mxu0 %v479_v21  ;;  %v5261_v14 = vld [vmem:[#allocation4 + $0x3f8] sm:$0xff]  ;;  %v8151_v17 = vsub.s32 0, %v5269_v16  ;;  %v8150_v19 = vsub.s32 1, %v5269_v16  ;;  %v8149_v21 = vsub.s32 2, %v5269_v16 }
  0x56   :  { %705 = vmatprep.subr.mxu1 %v481_v22  ;;  %354 = vmatmul.mubr.f32.gmra.mxu1 %v72_v18  ;;  %v142_v18 = vld [vmem:[%s8141_s2] sm:$0xf] }
  0x57   :  { %635 = vmatpush1.msra.mxu0 %v478_v23  ;;  %706 = vmatpush1.msra.mxu1 %v480_v24  ;;  %v5278_v20 = vrot.slane %v142_v18, %v8151_v17  ;;  %v5283_v22 = vrot.slane %v142_v18, %v8150_v19  ;;  %v5373_v19 = vld [vmem:[#allocation4 + $0x260] sm:$0xff]  ;;  %v5375_v17 = vld [vmem:[#allocation4 + $0x270] sm:$0xff] }
  0x58   :  { %246 = vmatprep.mubr.f32.mxu0 %v8152_v0  ;;  %636 = vmatprep.subr.mxu0 %v471_v25  ;;  %v5288_v25 = vrot.slane %v142_v18, %v8149_v21  ;;  %v5369_v21 = vld [vmem:[#allocation4 + $0x278] sm:$0xff]  ;;  %8627 = vst [vmem:[#allocation32_spill] sm:$0xff] %v5373_v19  ;;  %8628 = vst [vmem:[#allocation33_spill] sm:$0xff] %v5375_v17 }
  0x59   :  { %707 = vmatprep.subr.mxu1 %v473_v26  ;;  %247 = vmatmul.mubr.f32.gmra.mxu0 %v73_v27  ;;  %8604 = vst [vmem:[#allocation9_spill] sm:$0xff] %v5278_v20  ;;  %8605 = vst [vmem:[#allocation10_spill] sm:$0xff] %v5283_v22 }
  0x5a   :  { %637 = vmatpush1.msra.mxu0 %v470_v28  ;;  %708 = vmatpush1.msra.mxu1 %v472_v29  ;;  %8626 = vst [vmem:[#allocation31_spill] sm:$0xff] %v5369_v21 }
  0x5b   :  { %359 = vmatprep.mubr.f32.mxu1 %v8152_v0  ;;  %638 = vmatprep.subr.mxu0 %v463_v30 }
  0x5c   :  { %709 = vmatprep.subr.mxu1 %v465_v31  ;;  %360 = vmatmul.mubr.f32.gmra.mxu1 %v73_v27 }
  0x5d   :  { %639 = vmatpush1.msra.mxu0 %v462_v32  ;;  %710 = vmatpush1.msra.mxu1 %v464_v33  ;;  %v8148_v32 = vsub.s32 3, %v5269_v16 }
  0x5e   :  { %252 = vmatprep.mubr.f32.mxu0 %v8152_v0  ;;  %640 = vmatprep.subr.mxu0 %v455_v34 }
  0x5f   :  { %711 = vmatprep.subr.mxu1 %v457_v35  ;;  %253 = vmatmul.mubr.f32.gmra.mxu0 %v74_v36  ;;  %v5295_v33 = vrot.slane %v142_v18, %v8148_v32  ;;  %v5367_v32 = vld [vmem:[#allocation4 + $0x268] sm:$0xff] }
  0x60   :  { %641 = vmatpush1.msra.mxu0 %v454_v37  ;;  %712 = vmatpush1.msra.mxu1 %v456_v38  ;;  %8625 = vst [vmem:[#allocation30_spill] sm:$0xff] %v5367_v32 }
  0x61   :  { %365 = vmatprep.mubr.f32.mxu1 %v8152_v0  ;;  %642 = vmatprep.subr.mxu0 %v447_v39 }
  0x62   :  { %713 = vmatprep.subr.mxu1 %v449_v40  ;;  %366 = vmatmul.mubr.f32.gmra.mxu1 %v74_v36 }
  0x63   :  { %643 = vmatpush1.msra.mxu0 %v446_v41  ;;  %714 = vmatpush1.msra.mxu1 %v448_v42 }
  0x64   :  { %258 = vmatprep.mubr.f32.mxu0 %v8152_v0  ;;  %644 = vmatprep.subr.mxu0 %v439_v43 }
  0x65   :  { %715 = vmatprep.subr.mxu1 %v441_v44  ;;  %259 = vmatmul.mubr.f32.gmra.mxu0 %v75_v45 }
  0x66   :  { %645 = vmatpush1.msra.mxu0 %v5171_v46  ;;  %716 = vmatpush1.msra.mxu1 %v5173_v47 }
  0x67   :  { %371 = vmatprep.mubr.f32.mxu1 %v8152_v0  ;;  %646 = vmatprep.subr.mxu0 %v5176_v48 }
  0x68   :  { %717 = vmatprep.subr.mxu1 %v5178_v49  ;;  %372 = vmatmul.mubr.f32.gmra.mxu1 %v75_v45 }
  0x69   :  { %647 = vmatpush1.msra.mxu0 %v5182_v50  ;;  %718 = vmatpush1.msra.mxu1 %v5184_v51 }
  0x6a   :  { %264 = vmatprep.mubr.f32.mxu0 %v8152_v0  ;;  %648 = vmatprep.subr.mxu0 %v5188_v52 }
  0x6b   :  { %719 = vmatprep.subr.mxu1 %v5191_v53  ;;  %265 = vmatmul.mubr.f32.gmra.mxu0 %v76_v54 }
  0x6c   :  { %649 = vmatpush1.msra.mxu0 %v5198_v55  ;;  %720 = vmatpush1.msra.mxu1 %v5200_v56 }
  0x6d   :  { %377 = vmatprep.mubr.f32.mxu1 %v8152_v0  ;;  %650 = vmatprep.subr.mxu0 %v5204_v57 }
  0x6e   :  { %721 = vmatprep.subr.mxu1 %v5207_v58  ;;  %378 = vmatmul.mubr.f32.gmra.mxu1 %v76_v54 }
  0x6f   :  { %651 = vmatpush1.msra.mxu0 %v5211_v59  ;;  %722 = vmatpush1.msra.mxu1 %v5213_v60 }
  0x70   :  { %270 = vmatprep.mubr.f32.mxu0 %v8152_v0  ;;  %652 = vmatprep.subr.mxu0 %v5217_v61 }
  0x71   :  { %723 = vmatprep.subr.mxu1 %v5220_v62  ;;  %271 = vmatmul.mubr.f32.gmra.mxu0 %v77_v63 }
  0x72   :  { %653 = vmatpush1.msra.mxu0 %v5227_v1  ;;  %724 = vmatpush1.msra.mxu1 %v5229_v2 }
  0x73   :  { %383 = vmatprep.mubr.f32.mxu1 %v8152_v0  ;;  %654 = vmatprep.subr.mxu0 %v5233_v5 }
  0x74   :  { %725 = vmatprep.subr.mxu1 %v5236_v6  ;;  %384 = vmatmul.mubr.f32.gmra.mxu1 %v77_v63 }
  0x75   :  { %655 = vmatpush1.msra.mxu0 %v5240_v7  ;;  %726 = vmatpush1.msra.mxu1 %v5242_v8 }
  0x76   :  { %656 = vmatprep.subr.mxu0 %v5246_v9  ;;  %727 = vmatprep.subr.mxu1 %v5248_v10 }
  0x77   :  { %657 = vmatpush1.msra.mxu0 %v5251_v11  ;;  %728 = vmatpush1.msra.mxu1 %v5253_v12 }
  0x78   :  { %690 = vmatprep.mubr.f32.mxu0 %v8152_v0  ;;  %761 = vmatprep.mubr.f32.mxu1 %v8152_v0  ;;  %v5379_v0 = vld [vmem:[#allocation4 + $0x228] sm:$0xff] }
  0x79   :  { %768 = vmatprep.subr.mxu0 %v5259_v13  ;;  %839 = vmatprep.subr.mxu1 %v5261_v14  ;;  %8629 = vst [vmem:[#allocation34_spill] sm:$0xff] %v5379_v0 }
 0x109   :  { %v230_v23 = vpop.f32.mrf.mxu0  ;;  %v343_v27 = vpop.f32.mrf.mxu1 }
 0x10a   :  { %v231_v24 = vadd.f32 %v230_v23, %v5278_v20  ;;  %v344_v31 = vadd.f32 %v343_v27, %v5288_v25  ;;  %v5305_v27 = vld [vmem:[#allocation4 + $0x3f0] sm:$0xff] }
 0x10b   :  { %v232_v26 = vpop.f32.mrf.mxu0  ;;  %v345_v34 = vpop.f32.mrf.mxu1 }
 0x10c   :  { %v608_v28 = vmul.f32 0.5, %v231_v24  ;;  %v233_v29 = vadd.f32 %v232_v26, %v5283_v22  ;;  %v346_v35 = vadd.f32 %v345_v34, %v5295_v33  ;;  %v5303_v26 = vld [vmem:[#allocation4 + $0x3e0] sm:$0xff]  ;;  %v5319_v34 = vld [vmem:[#allocation4 + $0x368] sm:$0xff] }
 0x10d   :  { %8609 = vst [vmem:[#allocation14_spill] sm:$0xff] %v5319_v34 }
 0x10e   :  { %4274 = vtanh.f32 %v608_v28  ;;  %v612_v30 = vmul.f32 0.5, %v233_v29  ;;  %v617_v36 = vmul.f32 0.5, %v346_v35  ;;  %v5307_v28 = vld [vmem:[#allocation4 + $0x3a8] sm:$0xff]  ;;  %v5309_v29 = vld [vmem:[#allocation4 + $0x3b8] sm:$0xff] }
 0x10f   :  { %8606 = vst [vmem:[#allocation11_spill] sm:$0xff] %v5309_v29  ;;  %v5321_v35 = vld [vmem:[#allocation4 + $0x378] sm:$0xff] }
 0x110   :  { %4276 = vtanh.f32 %v612_v30  ;;  %v5313_v30 = vld [vmem:[#allocation4 + $0x3a0] sm:$0xff]  ;;  %8610 = vst [vmem:[#allocation15_spill] sm:$0xff] %v5321_v35 }
 0x111   :  { %4278 = vtanh.f32 %v344_v31  ;;  %8607 = vst [vmem:[#allocation12_spill] sm:$0xff] %v5313_v30  ;;  %v5315_v31 = vld [vmem:[#allocation4 + $0x3b0] sm:$0xff] }
 0x112   :  { %4280 = vtanh.f32 %v617_v36  ;;  %8608 = vst [vmem:[#allocation13_spill] sm:$0xff] %v5315_v31  ;;  %v5325_v36 = vld [vmem:[#allocation4 + $0x360] sm:$0xff] }
 0x113   :  { %8611 = vst [vmem:[#allocation16_spill] sm:$0xff] %v5325_v36 }
 0x11b   :  { %v4275_v37 = vpop.eup %4274 }
 0x11c   :  { %v610_v38 = vmul.f32 0.5, %v4275_v37  ;;  %v5327_v37 = vld [vmem:[#allocation4 + $0x370] sm:$0xff] }
 0x11d   :  { %v4277_v39 = vpop.eup %4276  ;;  %8612 = vst [vmem:[#allocation17_spill] sm:$0xff] %v5327_v37 }
 0x11e   :  { %v611_v40 = vadd.f32 0.5, %v610_v38  ;;  %v614_v41 = vmul.f32 0.5, %v4277_v39  ;;  %v4279_v42 = vpop.eup %4278  ;;  %v5331_v38 = vld [vmem:[#allocation4 + $0x328] sm:$0xff]  ;;  %v5333_v39 = vld [vmem:[#allocation4 + $0x338] sm:$0xff] }
 0x11f   :  { %v4281_v63 = vpop.eup %4280  ;;  %8613 = vst [vmem:[#allocation18_spill] sm:$0xff] %v5331_v38  ;;  %8614 = vst [vmem:[#allocation19_spill] sm:$0xff] %v5333_v39 }
 0x120   :  { %v615_v43 = vadd.f32 0.5, %v614_v41  ;;  %v622_v45 = vmul.f32 %v4279_v42, %v611_v40  ;;  %v619_v15 = vmul.f32 0.5, %v4281_v63  ;;  %v5337_v40 = vld [vmem:[#allocation4 + $0x320] sm:$0xff]  ;;  %v5339_v41 = vld [vmem:[#allocation4 + $0x330] sm:$0xff]  ;;  %v5343_v42 = vld [vmem:[#allocation4 + $0x2e8] sm:$0xff] }
 0x121   :  { %8615 = vst [vmem:[#allocation20_spill] sm:$0xff] %v5337_v40  ;;  %8616 = vst [vmem:[#allocation21_spill] sm:$0xff] %v5339_v41  ;;  %v5355_v63 = vld [vmem:[#allocation4 + $0x2a8] sm:$0xff] }
 0x122   :  { %v621_v44 = vmul.f32 0.0, %v615_v43  ;;  %v620_v18 = vadd.f32 0.5, %v619_v15  ;;  %8617 = vst [vmem:[#allocation22_spill] sm:$0xff] %v5343_v42  ;;  %v5345_v43 = vld [vmem:[#allocation4 + $0x2f8] sm:$0xff]  ;;  %8621 = vst [vmem:[#allocation26_spill] sm:$0xff] %v5355_v63 }
 0x123   :  { %8618 = vst [vmem:[#allocation23_spill] sm:$0xff] %v5345_v43  ;;  %v5357_v15 = vld [vmem:[#allocation4 + $0x2b8] sm:$0xff] }
 0x124   :  { %v5298_v54 = vadd.f32 %v622_v45, %v621_v44  ;;  %v5349_v44 = vld [vmem:[#allocation4 + $0x2e0] sm:$0xff]  ;;  %v5351_v45 = vld [vmem:[#allocation4 + $0x2f0] sm:$0xff]  ;;  %8622 = vst [vmem:[#allocation27_spill] sm:$0xff] %v5357_v15 }
 0x125   :  { %8619 = vst [vmem:[#allocation24_spill] sm:$0xff] %v5349_v44  ;;  %8620 = vst [vmem:[#allocation25_spill] sm:$0xff] %v5351_v45 }
 0x126   :  { %4282 = vtanh.f32 %v5298_v54 }
 0x133   :  { %v4283_v23 = vpop.eup %4282 }
 0x134   :  { %v5301_v24 = vmul.f32 %v4283_v23, %v620_v18  ;;  %v5361_v18 = vld [vmem:[#allocation4 + $0x2a0] sm:$0xff]  ;;  %v5363_v23 = vld [vmem:[#allocation4 + $0x2b0] sm:$0xff] }
 0x135   :  { %8623 = vst [vmem:[#allocation28_spill] sm:$0xff] %v5361_v18  ;;  %8624 = vst [vmem:[#allocation29_spill] sm:$0xff] %v5363_v23 }
 0x136   :  { %691 = vmatmul.mubr.f32.vlgmr.msra.gmra.mxu0 %v5301_v24  ;;  %762 = vmatmul.mubr.f32.vlgmr.msra.gmra.mxu1 %v5301_v24 }
 0x137   :  { %769 = vmatpush1.msra.mxu0 %v5303_v26  ;;  %840 = vmatpush1.msra.mxu1 %v5305_v27 }
 0x138   :  { %770 = vmatprep.subr.mxu0 %v5307_v28  ;;  %841 = vmatprep.subr.mxu1 %v5309_v29 }
 0x139   :  { %771 = vmatpush1.msra.mxu0 %v5313_v30  ;;  %842 = vmatpush1.msra.mxu1 %v5315_v31 }
 0x13a   :  { %772 = vmatprep.subr.mxu0 %v5319_v34  ;;  %843 = vmatprep.subr.mxu1 %v5321_v35 }
 0x13b   :  { %773 = vmatpush1.msra.mxu0 %v5325_v36  ;;  %844 = vmatpush1.msra.mxu1 %v5327_v37 }
 0x13c   :  { %774 = vmatprep.subr.mxu0 %v5331_v38  ;;  %845 = vmatprep.subr.mxu1 %v5333_v39  ;;  %v8758_v39 = vsub.s32 2, %v5269_v16 }
 0x13d   :  { %775 = vmatpush1.msra.mxu0 %v5337_v40  ;;  %846 = vmatpush1.msra.mxu1 %v5339_v41 }
 0x13e   :  { %776 = vmatprep.subr.mxu0 %v5343_v42  ;;  %847 = vmatprep.subr.mxu1 %v5345_v43 }
 0x13f   :  { %777 = vmatpush1.msra.mxu0 %v5349_v44  ;;  %848 = vmatpush1.msra.mxu1 %v5351_v45  ;;  %v5381_v44 = vld [vmem:[#allocation4 + $0x238] sm:$0xff]  ;;  %v5385_v45 = vld [vmem:[#allocation4 + $0x220] sm:$0xff] }
 0x140   :  { %778 = vmatprep.subr.mxu0 %v5355_v63  ;;  %849 = vmatprep.subr.mxu1 %v5357_v15  ;;  %8630 = vst [vmem:[#allocation35_spill] sm:$0xff] %v5381_v44  ;;  %8631 = vst [vmem:[#allocation36_spill] sm:$0xff] %v5385_v45  ;;  %v5387_v63 = vld [vmem:[#allocation4 + $0x230] sm:$0xff]  ;;  %v5391_v15 = vld [vmem:[#allocation4 + $0x1e8] sm:$0xff] }
 0x141   :  { %779 = vmatpush1.msra.mxu0 %v5361_v18  ;;  %850 = vmatpush1.msra.mxu1 %v5363_v23  ;;  %8632 = vst [vmem:[#allocation37_spill] sm:$0xff] %v5387_v63  ;;  %8633 = vst [vmem:[#allocation38_spill] sm:$0xff] %v5391_v15  ;;  %v5393_v18 = vld [vmem:[#allocation4 + $0x1f8] sm:$0xff]  ;;  %v5397_v23 = vld [vmem:[#allocation4 + $0x1e0] sm:$0xff] }
 0x142   :  { %780 = vmatprep.subr.mxu0 %v5367_v32  ;;  %851 = vmatprep.subr.mxu1 %v5369_v21  ;;  %8634 = vst [vmem:[#allocation39_spill] sm:$0xff] %v5393_v18  ;;  %8635 = vst [vmem:[#allocation40_spill] sm:$0xff] %v5397_v23  ;;  %v5399_v32 = vld [vmem:[#allocation4 + $0x1f0] sm:$0xff]  ;;  %v5403_v21 = vld [vmem:[#allocation4 + $0x1a8] sm:$0xff] }
 0x143   :  { %781 = vmatpush1.msra.mxu0 %v5373_v19  ;;  %852 = vmatpush1.msra.mxu1 %v5375_v17  ;;  %8636 = vst [vmem:[#allocation41_spill] sm:$0xff] %v5399_v32  ;;  %8637 = vst [vmem:[#allocation42_spill] sm:$0xff] %v5403_v21  ;;  %v5405_v19 = vld [vmem:[#allocation4 + $0x1b8] sm:$0xff]  ;;  %v5409_v17 = vld [vmem:[#allocation4 + $0x1a0] sm:$0xff] }
 0x144   :  { %782 = vmatprep.subr.mxu0 %v5379_v0  ;;  %853 = vmatprep.subr.mxu1 %v5381_v44  ;;  %8638 = vst [vmem:[#allocation43_spill] sm:$0xff] %v5405_v19  ;;  %8639 = vst [vmem:[#allocation44_spill] sm:$0xff] %v5409_v17  ;;  %v5411_v0 = vld [vmem:[#allocation4 + $0x1b0] sm:$0xff]  ;;  %v5415_v44 = vld [vmem:[#allocation4 + $0x168] sm:$0xff] }
 0x145   :  { %783 = vmatpush1.msra.mxu0 %v5385_v45  ;;  %854 = vmatpush1.msra.mxu1 %v5387_v63  ;;  %8640 = vst [vmem:[#allocation45_spill] sm:$0xff] %v5411_v0  ;;  %8641 = vst [vmem:[#allocation46_spill] sm:$0xff] %v5415_v44  ;;  %v5417_v45 = vld [vmem:[#allocation4 + $0x178] sm:$0xff]  ;;  %v5421_v63 = vld [vmem:[#allocation4 + $0x160] sm:$0xff] }
 0x146   :  { %784 = vmatprep.subr.mxu0 %v5391_v15  ;;  %855 = vmatprep.subr.mxu1 %v5393_v18  ;;  %8642 = vst [vmem:[#allocation47_spill] sm:$0xff] %v5417_v45  ;;  %8643 = vst [vmem:[#allocation48_spill] sm:$0xff] %v5421_v63  ;;  %v5423_v15 = vld [vmem:[#allocation4 + $0x170] sm:$0xff]  ;;  %v5427_v18 = vld [vmem:[#allocation4 + $0x128] sm:$0xff] }
 0x147   :  { %785 = vmatpush1.msra.mxu0 %v5397_v23  ;;  %856 = vmatpush1.msra.mxu1 %v5399_v32  ;;  %8644 = vst [vmem:[#allocation49_spill] sm:$0xff] %v5423_v15  ;;  %8645 = vst [vmem:[#allocation50_spill] sm:$0xff] %v5427_v18  ;;  %v5429_v23 = vld [vmem:[#allocation4 + $0x138] sm:$0xff]  ;;  %v5433_v32 = vld [vmem:[#allocation4 + $0x120] sm:$0xff] }
 0x148   :  { %786 = vmatprep.subr.mxu0 %v5403_v21  ;;  %857 = vmatprep.subr.mxu1 %v5405_v19  ;;  %8646 = vst [vmem:[#allocation51_spill] sm:$0xff] %v5429_v23  ;;  %8647 = vst [vmem:[#allocation52_spill] sm:$0xff] %v5433_v32  ;;  %v5435_v21 = vld [vmem:[#allocation4 + $0x130] sm:$0xff]  ;;  %v5439_v19 = vld [vmem:[#allocation4 + $0xe8] sm:$0xff] }
 0x149   :  { %787 = vmatpush1.msra.mxu0 %v5409_v17  ;;  %858 = vmatpush1.msra.mxu1 %v5411_v0  ;;  %8648 = vst [vmem:[#allocation53_spill] sm:$0xff] %v5435_v21  ;;  %8649 = vst [vmem:[#allocation54_spill] sm:$0xff] %v5439_v19  ;;  %v5441_v17 = vld [vmem:[#allocation4 + $0xf8] sm:$0xff]  ;;  %v5445_v0 = vld [vmem:[#allocation4 + $0xe0] sm:$0xff] }
 0x14a   :  { %788 = vmatprep.subr.mxu0 %v5415_v44  ;;  %859 = vmatprep.subr.mxu1 %v5417_v45  ;;  %8650 = vst [vmem:[#allocation55_spill] sm:$0xff] %v5441_v17  ;;  %8651 = vst [vmem:[#allocation56_spill] sm:$0xff] %v5445_v0  ;;  %v5447_v44 = vld [vmem:[#allocation4 + $0xf0] sm:$0xff]  ;;  %v5451_v45 = vld [vmem:[#allocation4 + $0xa8] sm:$0xff] }
 0x14b   :  { %789 = vmatpush1.msra.mxu0 %v5421_v63  ;;  %860 = vmatpush1.msra.mxu1 %v5423_v15  ;;  %8652 = vst [vmem:[#allocation57_spill] sm:$0xff] %v5447_v44  ;;  %8653 = vst [vmem:[#allocation58_spill] sm:$0xff] %v5451_v45  ;;  %v5453_v63 = vld [vmem:[#allocation4 + $0xb8] sm:$0xff]  ;;  %v5457_v15 = vld [vmem:[#allocation4 + $0xa0] sm:$0xff] }
 0x14c   :  { %790 = vmatprep.subr.mxu0 %v5427_v18  ;;  %861 = vmatprep.subr.mxu1 %v5429_v23  ;;  %8654 = vst [vmem:[#allocation59_spill] sm:$0xff] %v5453_v63  ;;  %8655 = vst [vmem:[#allocation60_spill] sm:$0xff] %v5457_v15  ;;  %v5459_v18 = vld [vmem:[#allocation4 + $0xb0] sm:$0xff]  ;;  %v5463_v23 = vld [vmem:[#allocation4 + $0x68] sm:$0xff] }
 0x14d   :  { %791 = vmatpush1.msra.mxu0 %v5433_v32  ;;  %862 = vmatpush1.msra.mxu1 %v5435_v21  ;;  %8656 = vst [vmem:[#allocation61_spill] sm:$0xff] %v5459_v18  ;;  %8657 = vst [vmem:[#allocation62_spill] sm:$0xff] %v5463_v23  ;;  %v5465_v32 = vld [vmem:[#allocation4 + $0x78] sm:$0xff]  ;;  %v5469_v21 = vld [vmem:[#allocation4 + $0x60] sm:$0xff] }
 0x14e   :  { %792 = vmatprep.subr.mxu0 %v5439_v19  ;;  %863 = vmatprep.subr.mxu1 %v5441_v17  ;;  %8658 = vst [vmem:[#allocation63_spill] sm:$0xff] %v5465_v32  ;;  %8659 = vst [vmem:[#allocation64_spill] sm:$0xff] %v5469_v21  ;;  %v5471_v19 = vld [vmem:[#allocation4 + $0x70] sm:$0xff]  ;;  %v5475_v17 = vld [vmem:[#allocation4 + $0x28] sm:$0xff] }
 0x14f   :  { %793 = vmatpush1.msra.mxu0 %v5445_v0  ;;  %864 = vmatpush1.msra.mxu1 %v5447_v44  ;;  %8660 = vst [vmem:[#allocation65_spill] sm:$0xff] %v5471_v19  ;;  %8661 = vst [vmem:[#allocation66_spill] sm:$0xff] %v5475_v17  ;;  %v5477_v0 = vld [vmem:[#allocation4 + $0x38] sm:$0xff]  ;;  %v5481_v44 = vld [vmem:[#allocation4 + $0x20] sm:$0xff] }
 0x150   :  { %794 = vmatprep.subr.mxu0 %v5451_v45  ;;  %865 = vmatprep.subr.mxu1 %v5453_v63  ;;  %8662 = vst [vmem:[#allocation67_spill] sm:$0xff] %v5477_v0  ;;  %8663 = vst [vmem:[#allocation68_spill] sm:$0xff] %v5481_v44  ;;  %v5485_v63 = vld [vmem:[#allocation4 + $0x30] sm:$0xff]  ;;  %v5643_v45 = vld [vmem:[#allocation6 + $0x60] sm:$0xff] }
 0x151   :  { %795 = vmatpush1.msra.mxu0 %v5457_v15  ;;  %866 = vmatpush1.msra.mxu1 %v5459_v18  ;;  %8664 = vst [vmem:[#allocation69_spill] sm:$0xff] %v5485_v63  ;;  %v8665_v18 = vmov 0.0   ;;  %v5627_v15 = vld [vmem:[#allocation6 + $0x98] sm:$0xff]  ;;  %8716 = vst [vmem:[#allocation120_spill] sm:$0xff] %v5643_v45 }
 0x152   :  { %796 = vmatprep.subr.mxu0 %v5463_v23  ;;  %867 = vmatprep.subr.mxu1 %v5465_v32  ;;  %v5611_v32 = vld [vmem:[#allocation6 + $0xd0] sm:$0xff]  ;;  %v5619_v23 = vld [vmem:[#allocation6 + $0xa0] sm:$0xff]  ;;  %8711 = vst [vmem:[#allocation115_spill] sm:$0xff] %v5627_v15 }
 0x153   :  { %797 = vmatpush1.msra.mxu0 %v5469_v21  ;;  %868 = vmatpush1.msra.mxu1 %v5471_v19  ;;  %v5497_v19 = vld [vmem:[#allocation6 + $0x1e8] sm:$0xff]  ;;  %v5515_v21 = vld [vmem:[#allocation6 + $0x1c0] sm:$0xff]  ;;  %8705 = vst [vmem:[#allocation109_spill] sm:$0xff] %v5611_v32  ;;  %8708 = vst [vmem:[#allocation112_spill] sm:$0xff] %v5619_v23 }
 0x154   :  { %798 = vmatprep.subr.mxu0 %v5475_v17  ;;  %869 = vmatprep.subr.mxu1 %v5477_v0  ;;  %8666 = vst [vmem:[#allocation70_spill] sm:$0xff] %v5497_v19  ;;  %v5499_v17 = vld [vmem:[#allocation6 + $0x1f8] sm:$0xff]  ;;  %8672 = vst [vmem:[#allocation76_spill] sm:$0xff] %v5515_v21 }
 0x155   :  { %799 = vmatpush1.msra.mxu0 %v5481_v44  ;;  %832 = vmatprep.mubr.f32.mxu0 %v8665_v18  ;;  %8667 = vst [vmem:[#allocation71_spill] sm:$0xff] %v5499_v17  ;;  %v5503_v44 = vld [vmem:[#allocation6 + $0x1e0] sm:$0xff]  ;;  %v5511_v0 = vld [vmem:[#allocation6 + $0x1d8] sm:$0xff] }
 0x156   :  { %870 = vmatpush1.msra.mxu1 %v5485_v63  ;;  %903 = vmatprep.mubr.f32.mxu1 %v8665_v18  ;;  %8668 = vst [vmem:[#allocation72_spill] sm:$0xff] %v5503_v44  ;;  %v5505_v63 = vld [vmem:[#allocation6 + $0x1f0] sm:$0xff]  ;;  %8671 = vst [vmem:[#allocation75_spill] sm:$0xff] %v5511_v0 }
 0x157   :  { %833 = vmatmul.mubr.f32.vlgmr.msra.gmra.mxu0 %v5301_v24  ;;  %904 = vmatmul.mubr.f32.vlgmr.msra.gmra.mxu1 %v5301_v24  ;;  %8669 = vst [vmem:[#allocation73_spill] sm:$0xff] %v5505_v63  ;;  %v5509_v24 = vld [vmem:[#allocation6 + $0x1c8] sm:$0xff] }
 0x158   :  { %1000 = vmatprep.mubr.f32.mxu0 %v8665_v18  ;;  %1071 = vmatprep.mubr.f32.mxu1 %v8665_v18  ;;  %8670 = vst [vmem:[#allocation74_spill] sm:$0xff] %v5509_v24 }
 0x159   :  { %936 = vmatprep.subr.mxu0 %v5497_v19  ;;  %1007 = vmatprep.subr.mxu1 %v5499_v17  ;;  %v5517_v19 = vld [vmem:[#allocation6 + $0x1d0] sm:$0xff]  ;;  %v5521_v17 = vld [vmem:[#allocation6 + $0x1a8] sm:$0xff] }
 0x15a   :  { %937 = vmatpush1.msra.mxu0 %v5503_v44  ;;  %1008 = vmatpush1.msra.mxu1 %v5505_v63  ;;  %8673 = vst [vmem:[#allocation77_spill] sm:$0xff] %v5517_v19  ;;  %8674 = vst [vmem:[#allocation78_spill] sm:$0xff] %v5521_v17  ;;  %v5523_v44 = vld [vmem:[#allocation6 + $0x1b8] sm:$0xff]  ;;  %v5527_v63 = vld [vmem:[#allocation6 + $0x1a0] sm:$0xff] }
 0x15b   :  { %938 = vmatprep.subr.mxu0 %v5509_v24  ;;  %1009 = vmatprep.subr.mxu1 %v5511_v0  ;;  %8675 = vst [vmem:[#allocation79_spill] sm:$0xff] %v5523_v44  ;;  %8676 = vst [vmem:[#allocation80_spill] sm:$0xff] %v5527_v63  ;;  %v5529_v24 = vld [vmem:[#allocation6 + $0x1b0] sm:$0xff]  ;;  %v5533_v0 = vld [vmem:[#allocation6 + $0x188] sm:$0xff] }
 0x15c   :  { %939 = vmatpush1.msra.mxu0 %v5515_v21  ;;  %1010 = vmatpush1.msra.mxu1 %v5517_v19  ;;  %8677 = vst [vmem:[#allocation81_spill] sm:$0xff] %v5529_v24  ;;  %8678 = vst [vmem:[#allocation82_spill] sm:$0xff] %v5533_v0  ;;  %v5535_v21 = vld [vmem:[#allocation6 + $0x198] sm:$0xff]  ;;  %v5539_v19 = vld [vmem:[#allocation6 + $0x180] sm:$0xff] }
 0x15d   :  { %940 = vmatprep.subr.mxu0 %v5521_v17  ;;  %1011 = vmatprep.subr.mxu1 %v5523_v44  ;;  %8679 = vst [vmem:[#allocation83_spill] sm:$0xff] %v5535_v21  ;;  %8680 = vst [vmem:[#allocation84_spill] sm:$0xff] %v5539_v19  ;;  %v5541_v17 = vld [vmem:[#allocation6 + $0x190] sm:$0xff]  ;;  %v5545_v44 = vld [vmem:[#allocation6 + $0x168] sm:$0xff] }
 0x15e   :  { %941 = vmatpush1.msra.mxu0 %v5527_v63  ;;  %1012 = vmatpush1.msra.mxu1 %v5529_v24  ;;  %8681 = vst [vmem:[#allocation85_spill] sm:$0xff] %v5541_v17  ;;  %8682 = vst [vmem:[#allocation86_spill] sm:$0xff] %v5545_v44  ;;  %v5547_v63 = vld [vmem:[#allocation6 + $0x178] sm:$0xff]  ;;  %v5551_v24 = vld [vmem:[#allocation6 + $0x160] sm:$0xff] }
 0x15f   :  { %942 = vmatprep.subr.mxu0 %v5533_v0  ;;  %1013 = vmatprep.subr.mxu1 %v5535_v21  ;;  %8683 = vst [vmem:[#allocation87_spill] sm:$0xff] %v5547_v63  ;;  %8684 = vst [vmem:[#allocation88_spill] sm:$0xff] %v5551_v24  ;;  %v5553_v0 = vld [vmem:[#allocation6 + $0x170] sm:$0xff]  ;;  %v5557_v21 = vld [vmem:[#allocation6 + $0x148] sm:$0xff] }
 0x160   :  { %943 = vmatpush1.msra.mxu0 %v5539_v19  ;;  %1014 = vmatpush1.msra.mxu1 %v5541_v17  ;;  %8685 = vst [vmem:[#allocation89_spill] sm:$0xff] %v5553_v0  ;;  %8686 = vst [vmem:[#allocation90_spill] sm:$0xff] %v5557_v21  ;;  %v5559_v19 = vld [vmem:[#allocation6 + $0x158] sm:$0xff]  ;;  %v5563_v17 = vld [vmem:[#allocation6 + $0x140] sm:$0xff] }
 0x161   :  { %944 = vmatprep.subr.mxu0 %v5545_v44  ;;  %1015 = vmatprep.subr.mxu1 %v5547_v63  ;;  %8687 = vst [vmem:[#allocation91_spill] sm:$0xff] %v5559_v19  ;;  %8688 = vst [vmem:[#allocation92_spill] sm:$0xff] %v5563_v17  ;;  %v5565_v44 = vld [vmem:[#allocation6 + $0x150] sm:$0xff]  ;;  %v5569_v63 = vld [vmem:[#allocation6 + $0x128] sm:$0xff] }
 0x162   :  { %945 = vmatpush1.msra.mxu0 %v5551_v24  ;;  %1016 = vmatpush1.msra.mxu1 %v5553_v0  ;;  %8689 = vst [vmem:[#allocation93_spill] sm:$0xff] %v5565_v44  ;;  %8690 = vst [vmem:[#allocation94_spill] sm:$0xff] %v5569_v63  ;;  %v5571_v24 = vld [vmem:[#allocation6 + $0x138] sm:$0xff]  ;;  %v5575_v0 = vld [vmem:[#allocation6 + $0x120] sm:$0xff] }
 0x163   :  { %946 = vmatprep.subr.mxu0 %v5557_v21  ;;  %1017 = vmatprep.subr.mxu1 %v5559_v19  ;;  %8691 = vst [vmem:[#allocation95_spill] sm:$0xff] %v5571_v24  ;;  %8692 = vst [vmem:[#allocation96_spill] sm:$0xff] %v5575_v0  ;;  %v5577_v21 = vld [vmem:[#allocation6 + $0x130] sm:$0xff]  ;;  %v5581_v19 = vld [vmem:[#allocation6 + $0x108] sm:$0xff] }
 0x164   :  { %947 = vmatpush1.msra.mxu0 %v5563_v17  ;;  %1018 = vmatpush1.msra.mxu1 %v5565_v44  ;;  %8693 = vst [vmem:[#allocation97_spill] sm:$0xff] %v5577_v21  ;;  %8694 = vst [vmem:[#allocation98_spill] sm:$0xff] %v5581_v19  ;;  %v5583_v17 = vld [vmem:[#allocation6 + $0x118] sm:$0xff]  ;;  %v5587_v44 = vld [vmem:[#allocation6 + $0x100] sm:$0xff] }
 0x165   :  { %948 = vmatprep.subr.mxu0 %v5569_v63  ;;  %1019 = vmatprep.subr.mxu1 %v5571_v24  ;;  %8695 = vst [vmem:[#allocation99_spill] sm:$0xff] %v5583_v17  ;;  %8696 = vst [vmem:[#allocation100_spill] sm:$0xff] %v5587_v44  ;;  %v5589_v63 = vld [vmem:[#allocation6 + $0x110] sm:$0xff]  ;;  %v5593_v24 = vld [vmem:[#allocation6 + $0xe8] sm:$0xff] }
 0x166   :  { %949 = vmatpush1.msra.mxu0 %v5575_v0  ;;  %1020 = vmatpush1.msra.mxu1 %v5577_v21  ;;  %8697 = vst [vmem:[#allocation101_spill] sm:$0xff] %v5589_v63  ;;  %8698 = vst [vmem:[#allocation102_spill] sm:$0xff] %v5593_v24  ;;  %v5595_v0 = vld [vmem:[#allocation6 + $0xf8] sm:$0xff]  ;;  %v5599_v21 = vld [vmem:[#allocation6 + $0xe0] sm:$0xff] }
 0x167   :  { %950 = vmatprep.subr.mxu0 %v5581_v19  ;;  %1021 = vmatprep.subr.mxu1 %v5583_v17  ;;  %8699 = vst [vmem:[#allocation103_spill] sm:$0xff] %v5595_v0  ;;  %8700 = vst [vmem:[#allocation104_spill] sm:$0xff] %v5599_v21  ;;  %v5601_v19 = vld [vmem:[#allocation6 + $0xf0] sm:$0xff]  ;;  %v5603_v17 = vld [vmem:[#allocation6 + $0xc8] sm:$0xff] }
 0x168   :  { %951 = vmatpush1.msra.mxu0 %v5587_v44  ;;  %1022 = vmatpush1.msra.mxu1 %v5589_v63  ;;  %8701 = vst [vmem:[#allocation105_spill] sm:$0xff] %v5601_v19  ;;  %8702 = vst [vmem:[#allocation106_spill] sm:$0xff] %v5603_v17  ;;  %v5607_v44 = vld [vmem:[#allocation6 + $0xd8] sm:$0xff]  ;;  %v5609_v63 = vld [vmem:[#allocation6 + $0xc0] sm:$0xff] }
 0x169   :  { %952 = vmatprep.subr.mxu0 %v5593_v24  ;;  %1023 = vmatprep.subr.mxu1 %v5595_v0  ;;  %8703 = vst [vmem:[#allocation107_spill] sm:$0xff] %v5607_v44  ;;  %8704 = vst [vmem:[#allocation108_spill] sm:$0xff] %v5609_v63  ;;  %v5615_v0 = vld [vmem:[#allocation6 + $0xa8] sm:$0xff]  ;;  %v5617_v24 = vld [vmem:[#allocation6 + $0xb8] sm:$0xff] }
 0x16a   :  { %953 = vmatpush1.msra.mxu0 %v5599_v21  ;;  %1024 = vmatpush1.msra.mxu1 %v5601_v19  ;;  %8706 = vst [vmem:[#allocation110_spill] sm:$0xff] %v5615_v0  ;;  %8707 = vst [vmem:[#allocation111_spill] sm:$0xff] %v5617_v24  ;;  %v5623_v19 = vld [vmem:[#allocation6 + $0xb0] sm:$0xff]  ;;  %v5625_v21 = vld [vmem:[#allocation6 + $0x88] sm:$0xff] }
 0x16b   :  { %954 = vmatprep.subr.mxu0 %v5603_v17  ;;  %1025 = vmatprep.subr.mxu1 %v5607_v44  ;;  %8709 = vst [vmem:[#allocation113_spill] sm:$0xff] %v5623_v19  ;;  %8710 = vst [vmem:[#allocation114_spill] sm:$0xff] %v5625_v21  ;;  %v5631_v44 = vld [vmem:[#allocation6 + $0x80] sm:$0xff]  ;;  %v5633_v17 = vld [vmem:[#allocation6 + $0x90] sm:$0xff] }
 0x16c   :  { %955 = vmatpush1.msra.mxu0 %v5609_v63  ;;  %1026 = vmatpush1.msra.mxu1 %v5611_v32  ;;  %8712 = vst [vmem:[#allocation116_spill] sm:$0xff] %v5631_v44  ;;  %8713 = vst [vmem:[#allocation117_spill] sm:$0xff] %v5633_v17  ;;  %v5637_v63 = vld [vmem:[#allocation6 + $0x68] sm:$0xff]  ;;  %v5639_v32 = vld [vmem:[#allocation6 + $0x78] sm:$0xff] }
 0x16d   :  { %956 = vmatprep.subr.mxu0 %v5615_v0  ;;  %1027 = vmatprep.subr.mxu1 %v5617_v24  ;;  %8714 = vst [vmem:[#allocation118_spill] sm:$0xff] %v5637_v63  ;;  %8715 = vst [vmem:[#allocation119_spill] sm:$0xff] %v5639_v32  ;;  %v5645_v0 = vld [vmem:[#allocation6 + $0x70] sm:$0xff]  ;;  %v5649_v24 = vld [vmem:[#allocation6 + $0x48] sm:$0xff] }
 0x16e   :  { %957 = vmatpush1.msra.mxu0 %v5619_v23  ;;  %1028 = vmatpush1.msra.mxu1 %v5623_v19  ;;  %8717 = vst [vmem:[#allocation121_spill] sm:$0xff] %v5645_v0  ;;  %8718 = vst [vmem:[#allocation122_spill] sm:$0xff] %v5649_v24  ;;  %v5651_v23 = vld [vmem:[#allocation6 + $0x58] sm:$0xff]  ;;  %v5655_v19 = vld [vmem:[#allocation6 + $0x40] sm:$0xff] }
 0x16f   :  { %958 = vmatprep.subr.mxu0 %v5625_v21  ;;  %1029 = vmatprep.subr.mxu1 %v5627_v15  ;;  %8719 = vst [vmem:[#allocation123_spill] sm:$0xff] %v5651_v23  ;;  %8720 = vst [vmem:[#allocation124_spill] sm:$0xff] %v5655_v19  ;;  %v5657_v21 = vld [vmem:[#allocation6 + $0x50] sm:$0xff]  ;;  %v5661_v15 = vld [vmem:[#allocation6 + $0x28] sm:$0xff] }
 0x170   :  { %959 = vmatpush1.msra.mxu0 %v5631_v44  ;;  %1030 = vmatpush1.msra.mxu1 %v5633_v17  ;;  %8721 = vst [vmem:[#allocation125_spill] sm:$0xff] %v5657_v21  ;;  %8722 = vst [vmem:[#allocation126_spill] sm:$0xff] %v5661_v15  ;;  %v5663_v44 = vld [vmem:[#allocation6 + $0x38] sm:$0xff]  ;;  %v5667_v17 = vld [vmem:[#allocation6 + $0x20] sm:$0xff] }
 0x171   :  { %960 = vmatprep.subr.mxu0 %v5637_v63  ;;  %1031 = vmatprep.subr.mxu1 %v5639_v32  ;;  %8723 = vst [vmem:[#allocation127_spill] sm:$0xff] %v5663_v44  ;;  %8724 = vst [vmem:[#allocation128_spill] sm:$0xff] %v5667_v17  ;;  %v5669_v63 = vld [vmem:[#allocation6 + $0x30] sm:$0xff]  ;;  %v5673_v32 = vld [vmem:[#allocation6 + $0x8] sm:$0xff] }
 0x172   :  { %961 = vmatpush1.msra.mxu0 %v5643_v45  ;;  %1032 = vmatpush1.msra.mxu1 %v5645_v0  ;;  %8725 = vst [vmem:[#allocation129_spill] sm:$0xff] %v5669_v63  ;;  %8726 = vst [vmem:[#allocation130_spill] sm:$0xff] %v5673_v32  ;;  %v5675_v45 = vld [vmem:[#allocation6 + $0x18] sm:$0xff]  ;;  %v5679_v0 = vld [vmem:[#allocation6] sm:$0xff] }
 0x173   :  { %962 = vmatprep.subr.mxu0 %v5649_v24  ;;  %1033 = vmatprep.subr.mxu1 %v5651_v23  ;;  %8727 = vst [vmem:[#allocation131_spill] sm:$0xff] %v5675_v45  ;;  %8728 = vst [vmem:[#allocation132_spill] sm:$0xff] %v5679_v0  ;;  %v5681_v24 = vld [vmem:[#allocation6 + $0x10] sm:$0xff] }
 0x174   :  { %963 = vmatpush1.msra.mxu0 %v5655_v19  ;;  %1034 = vmatpush1.msra.mxu1 %v5657_v21  ;;  %8729 = vst [vmem:[#allocation133_spill] sm:$0xff] %v5681_v24 }
 0x175   :  { %964 = vmatprep.subr.mxu0 %v5661_v15  ;;  %1035 = vmatprep.subr.mxu1 %v5663_v44  ;;  %v236_v44 = vpop.f32.mrf.mxu0  ;;  %v5691_v15 = vpop.f32.mrf.mxu1 }
 0x176   :  { %965 = vmatpush1.msra.mxu0 %v5667_v17  ;;  %1036 = vmatpush1.msra.mxu1 %v5669_v63 }
 0x177   :  { %966 = vmatprep.subr.mxu0 %v5673_v32  ;;  %1037 = vmatprep.subr.mxu1 %v5675_v45  ;;  %v238_v21 = vpop.f32.mrf.mxu0  ;;  %v5693_v19 = vpop.f32.mrf.mxu1 }
 0x178   :  { %967 = vmatpush1.msra.mxu0 %v5679_v0  ;;  %1038 = vmatpush1.msra.mxu1 %v5681_v24 }
 0x179   :  { %1100 = vmatprep.subr.mxu0 %v5144_v3  ;;  %1171 = vmatprep.subr.mxu1 %v5146_v4  ;;  %v5695_v17 = vpop.f32.mrf.mxu0  ;;  %v5697_v63 = vpop.f32.mrf.mxu1 }
 0x17a   :  { %8730 = vst [vmem:[#allocation134_spill] sm:$0xff] %v5695_v17  ;;  %8731 = vst [vmem:[#allocation135_spill] sm:$0xff] %v5697_v63 }
 0x17b   :  { %v5699_v32 = vpop.f32.mrf.mxu0  ;;  %v5701_v45 = vpop.f32.mrf.mxu1 }
 0x17c   :  { %8732 = vst [vmem:[#allocation136_spill] sm:$0xff] %v5699_v32  ;;  %8733 = vst [vmem:[#allocation137_spill] sm:$0xff] %v5701_v45 }
 0x17d   :  { %v5703_v0 = vpop.f32.mrf.mxu0  ;;  %v5705_v24 = vpop.f32.mrf.mxu1 }
 0x17e   :  { %8734 = vst [vmem:[#allocation138_spill] sm:$0xff] %v5703_v0  ;;  %8735 = vst [vmem:[#allocation139_spill] sm:$0xff] %v5705_v24 }
 0x17f   :  { %v5707_v3 = vpop.f32.mrf.mxu0  ;;  %v5709_v4 = vpop.f32.mrf.mxu1 }
 0x180   :  { %8736 = vst [vmem:[#allocation140_spill] sm:$0xff] %v5707_v3  ;;  %8737 = vst [vmem:[#allocation141_spill] sm:$0xff] %v5709_v4 }
 0x181   :  { %v5711_v23 = vpop.f32.mrf.mxu0  ;;  %v5713_v43 = vpop.f32.mrf.mxu1 }
 0x182   :  { %8738 = vst [vmem:[#allocation142_spill] sm:$0xff] %v5711_v23  ;;  %8739 = vst [vmem:[#allocation143_spill] sm:$0xff] %v5713_v43 }
 0x183   :  { %v5715_v42 = vpop.f32.mrf.mxu0  ;;  %v5717_v17 = vpop.f32.mrf.mxu1 }
 0x184   :  { %8740 = vst [vmem:[#allocation144_spill] sm:$0xff] %v5715_v42  ;;  %8741 = vst [vmem:[#allocation145_spill] sm:$0xff] %v5717_v17 }
 0x185   :  { %v5719_v63 = vpop.f32.mrf.mxu0  ;;  %v5721_v32 = vpop.f32.mrf.mxu1 }
 0x186   :  { %8742 = vst [vmem:[#allocation146_spill] sm:$0xff] %v5719_v63  ;;  %8743 = vst [vmem:[#allocation147_spill] sm:$0xff] %v5721_v32 }
 0x187   :  { %v5723_v45 = vpop.f32.mrf.mxu0  ;;  %v5725_v0 = vpop.f32.mrf.mxu1 }
 0x188   :  { %8744 = vst [vmem:[#allocation148_spill] sm:$0xff] %v5723_v45  ;;  %8745 = vst [vmem:[#allocation149_spill] sm:$0xff] %v5725_v0  ;;  %v582_v0 = vld [vmem:[%s8144_s5] sm:$0xf] }
 0x189   :  { %v5727_v24 = vpop.f32.mrf.mxu0  ;;  %v5729_v3 = vpop.f32.mrf.mxu1  ;;  %v5757_v38 = vrot.slane %v582_v0, %v8758_v39  ;;  %v239_v39 = vadd.f32 %v238_v21, %v5283_v22 }
 0x18a   :  { %8746 = vst [vmem:[#allocation150_spill] sm:$0xff] %v5727_v24  ;;  %8747 = vst [vmem:[#allocation151_spill] sm:$0xff] %v5729_v3  ;;  %v8754_v24 = vsub.s32 0, %v5269_v16 }
 0x18b   :  { %v5731_v4 = vpop.f32.mrf.mxu0  ;;  %v5733_v23 = vpop.f32.mrf.mxu1  ;;  %8759 = vst [vmem:[#allocation160_spill] sm:$0xff] %v5757_v38 }
 0x18c   :  { %8748 = vst [vmem:[#allocation152_spill] sm:$0xff] %v5731_v4  ;;  %8749 = vst [vmem:[#allocation153_spill] sm:$0xff] %v5733_v23  ;;  %v5748_v3 = vrot.slane %v582_v0, %v8754_v24  ;;  %v8756_v23 = vsub.s32 1, %v5269_v16 }
 0x18d   :  { %v5735_v43 = vpop.f32.mrf.mxu0  ;;  %v5737_v42 = vpop.f32.mrf.mxu1 }
 0x18e   :  { %8750 = vst [vmem:[#allocation154_spill] sm:$0xff] %v5735_v43  ;;  %8751 = vst [vmem:[#allocation155_spill] sm:$0xff] %v5737_v42  ;;  %v5752_v43 = vrot.slane %v582_v0, %v8756_v23  ;;  %v8760_v23 = vsub.s32 3, %v5269_v16 }
 0x18f   :  { %v5739_v17 = vpop.f32.mrf.mxu0  ;;  %v5741_v63 = vpop.f32.mrf.mxu1  ;;  %8755 = vst [vmem:[#allocation158_spill] sm:$0xff] %v5748_v3 }
 0x190   :  { %8752 = vst [vmem:[#allocation156_spill] sm:$0xff] %v5739_v17  ;;  %8753 = vst [vmem:[#allocation157_spill] sm:$0xff] %v5741_v63  ;;  %v5763_v34 = vrot.slane %v582_v0, %v8760_v23 }
 0x191   :  { %8757 = vst [vmem:[#allocation159_spill] sm:$0xff] %v5752_v43 }
 0x1f6   :  { %v692_v32 = vpop.f32.mrf.mxu0  ;;  %v763_v4 = vpop.f32.mrf.mxu1 }
 0x1f8   :  { %v694_v45 = vpop.f32.mrf.mxu0  ;;  %v765_v41 = vpop.f32.mrf.mxu1 }
 0x217   :  { %v834_v42 = vpop.f32.mrf.mxu0  ;;  %v905_v24 = vpop.f32.mrf.mxu1 }
 0x218   :  { %v914_v17 = vadd.f32 %v834_v42, %v5748_v3  ;;  %v916_v35 = vadd.f32 %v905_v24, %v5757_v38 }
 0x219   :  { %v836_v63 = vpop.f32.mrf.mxu0  ;;  %v907_v42 = vpop.f32.mrf.mxu1 }
 0x21a   :  { %v918_v40 = vmul.f32 0.5, %v914_v17  ;;  %v915_v37 = vadd.f32 %v836_v63, %v5752_v43  ;;  %v917_v17 = vadd.f32 %v907_v42, %v5763_v34 }
 0x21c   :  { %4284 = vtanh.f32 %v918_v40  ;;  %v922_v36 = vmul.f32 0.5, %v915_v37  ;;  %v927_v3 = vmul.f32 0.5, %v917_v17  ;;  %v237_v40 = vadd.f32 %v236_v44, %v5278_v20 }
 0x21d   :  { %v1079_v37 = vadd.f32 %v694_v45, %v239_v39 }
 0x21e   :  { %4286 = vtanh.f32 %v922_v36  ;;  %v1078_v36 = vadd.f32 %v692_v32, %v237_v40  ;;  %v5775_v40 = vld [vmem:[#allocation4 + $0x3c0] sm:$0xff] }
 0x21f   :  { %4288 = vtanh.f32 %v916_v35  ;;  %v1086_v23 = vmul.f32 0.5, %v1079_v37  ;;  %v5784_v37 = vld [vmem:[#allocation4 + $0x398] sm:$0xff] }
 0x220   :  { %4290 = vtanh.f32 %v927_v3  ;;  %v1082_v29 = vmul.f32 0.5, %v1078_v36  ;;  %v5793_v36 = vld [vmem:[#allocation4 + $0x348] sm:$0xff] }
 0x221   :  { %4292 = vtanh.f32 %v1086_v23 }
 0x229   :  { %v4285_v31 = vpop.eup %4284 }
 0x22a   :  { %v920_v30 = vmul.f32 0.5, %v4285_v31  ;;  %v350_v31 = vadd.f32 %v5691_v15, %v5288_v25  ;;  %v5778_v15 = vld [vmem:[#allocation4 + $0x3d0] sm:$0xff] }
 0x22b   :  { %v4287_v63 = vpop.eup %4286 }
 0x22c   :  { %v921_v43 = vadd.f32 0.5, %v920_v30  ;;  %v924_v24 = vmul.f32 0.5, %v4287_v63  ;;  %v4289_v0 = vpop.eup %4288  ;;  %v1080_v30 = vadd.f32 %v763_v4, %v350_v31  ;;  %v5781_v4 = vld [vmem:[#allocation4 + $0x388] sm:$0xff] }
 0x22d   :  { %v4291_v21 = vpop.eup %4290  ;;  %v5805_v31 = vld [vmem:[#allocation4 + $0x308] sm:$0xff] }
 0x22e   :  { %v925_v16 = vadd.f32 0.5, %v924_v24  ;;  %v932_v35 = vmul.f32 %v4289_v0, %v921_v43  ;;  %v929_v44 = vmul.f32 0.5, %v4291_v21  ;;  %v4293_v32 = vpop.eup %4292  ;;  %v5787_v24 = vld [vmem:[#allocation4 + $0x380] sm:$0xff]  ;;  %v5802_v21 = vld [vmem:[#allocation4 + $0x350] sm:$0xff] }
 0x22f   :  { %v1088_v43 = vmul.f32 0.5, %v4293_v32  ;;  %v5812_v32 = vld [vmem:[#allocation4 + $0x300] sm:$0xff] }
 0x230   :  { %v931_v38 = vmul.f32 0.0, %v925_v16  ;;  %v930_v45 = vadd.f32 0.5, %v929_v44  ;;  %v5796_v16 = vld [vmem:[#allocation4 + $0x358] sm:$0xff] }
 0x232   :  { %v5768_v42 = vadd.f32 %v932_v35, %v931_v38  ;;  %v352_v38 = vadd.f32 %v5693_v19, %v5295_v33  ;;  %v1089_v19 = vadd.f32 0.5, %v1088_v43  ;;  %v5799_v35 = vld [vmem:[#allocation4 + $0x340] sm:$0xff]  ;;  %v5827_v43 = vld [vmem:[#allocation4 + $0x2d0] sm:$0xff] }
 0x233   :  { %8761 = vst [vmem:[#allocation161_spill] sm:$0xff] %v5827_v43 }
 0x234   :  { %4294 = vtanh.f32 %v5768_v42  ;;  %v1095_v44 = vmul.f32 %v1089_v19, %v5298_v54  ;;  %v5824_v54 = vld [vmem:[#allocation4 + $0x2c0] sm:$0xff] }
 0x235   :  { %4296 = vtanh.f32 %v1082_v29  ;;  %v1081_v29 = vadd.f32 %v765_v41, %v352_v38  ;;  %v5790_v41 = vld [vmem:[#allocation4 + $0x390] sm:$0xff] }
 0x236   :  { %4298 = vtanh.f32 %v1080_v30  ;;  %v5808_v30 = vld [vmem:[#allocation4 + $0x318] sm:$0xff] }
 0x237   :  { %v1091_v23 = vmul.f32 0.5, %v1081_v29  ;;  %v5833_v29 = vld [vmem:[#allocation4 + $0x298] sm:$0xff] }
 0x239   :  { %4300 = vtanh.f32 %v1091_v23  ;;  %v5841_v23 = vld [vmem:[#allocation4 + $0x290] sm:$0xff] }
 0x23a   :  { %8763 = vst [vmem:[#allocation163_spill] sm:$0xff] %v5841_v23 }
 0x241   :  { %v4295_v3 = vpop.eup %4294 }
 0x242   :  { %v4297_v17 = vpop.eup %4296  ;;  %v935_v39 = vmul.f32 %v4295_v3, %v930_v45  ;;  %v5815_v45 = vld [vmem:[#allocation4 + $0x310] sm:$0xff] }
 0x243   :  { %v1084_v63 = vmul.f32 0.5, %v4297_v17  ;;  %v4299_v3 = vpop.eup %4298  ;;  %v5818_v17 = vld [vmem:[#allocation4 + $0x2c8] sm:$0xff] }
 0x244   :  { %1001 = vmatmul.mubr.f32.vlgmr.msra.gmra.mxu0 %v935_v39  ;;  %1072 = vmatmul.mubr.f32.vlgmr.msra.gmra.mxu1 %v935_v39  ;;  %v5821_v39 = vld [vmem:[#allocation4 + $0x2d8] sm:$0xff] }
 0x245   :  { %1101 = vmatpush1.msra.mxu0 %v5775_v40  ;;  %1172 = vmatpush1.msra.mxu1 %v5778_v15  ;;  %v1085_v0 = vadd.f32 0.5, %v1084_v63  ;;  %v5830_v63 = vld [vmem:[#allocation4 + $0x288] sm:$0xff] }
 0x246   :  { %1102 = vmatprep.subr.mxu0 %v5781_v4  ;;  %1173 = vmatprep.subr.mxu1 %v5784_v37  ;;  %8762 = vst [vmem:[#allocation162_spill] sm:$0xff] %v5830_v63 }
 0x247   :  { %1103 = vmatpush1.msra.mxu0 %v5787_v24  ;;  %1174 = vmatpush1.msra.mxu1 %v5790_v41  ;;  %v1096_v38 = vmul.f32 %v4299_v3, %v1085_v0  ;;  %v5838_v0 = vld [vmem:[#allocation4 + $0x280] sm:$0xff]  ;;  %v5844_v3 = vld [vmem:[#allocation4 + $0x248] sm:$0xff] }
 0x248   :  { %1104 = vmatprep.subr.mxu0 %v5793_v36  ;;  %1175 = vmatprep.subr.mxu1 %v5796_v16  ;;  %8764 = vst [vmem:[#allocation164_spill] sm:$0xff] %v5844_v3 }
 0x249   :  { %1105 = vmatpush1.msra.mxu0 %v5799_v35  ;;  %1176 = vmatpush1.msra.mxu1 %v5802_v21  ;;  %v5836_v19 = vadd.f32 %v1096_v38, %v1095_v44  ;;  %v5853_v44 = vld [vmem:[#allocation4 + $0x250] sm:$0xff]  ;;  %v5856_v38 = vld [vmem:[#allocation4 + $0x208] sm:$0xff] }
 0x24a   :  { %1106 = vmatprep.subr.mxu0 %v5805_v31  ;;  %1177 = vmatprep.subr.mxu1 %v5808_v30  ;;  %8767 = vst [vmem:[#allocation167_spill] sm:$0xff] %v5853_v44  ;;  %8768 = vst [vmem:[#allocation168_spill] sm:$0xff] %v5856_v38 }
 0x24b   :  { %1107 = vmatpush1.msra.mxu0 %v5812_v32  ;;  %1178 = vmatpush1.msra.mxu1 %v5815_v45  ;;  %4302 = vtanh.f32 %v5836_v19 }
 0x24c   :  { %1108 = vmatprep.subr.mxu0 %v5818_v17  ;;  %1179 = vmatprep.subr.mxu1 %v5821_v39 }
 0x24d   :  { %1109 = vmatpush1.msra.mxu0 %v5824_v54  ;;  %1180 = vmatpush1.msra.mxu1 %v5827_v43  ;;  %v5847_v43 = vld [vmem:[#allocation4 + $0x258] sm:$0xff] }
 0x24e   :  { %1110 = vmatprep.subr.mxu0 %v5830_v63  ;;  %1181 = vmatprep.subr.mxu1 %v5833_v29  ;;  %8765 = vst [vmem:[#allocation165_spill] sm:$0xff] %v5847_v43  ;;  %v5850_v63 = vld [vmem:[#allocation4 + $0x240] sm:$0xff] }
 0x24f   :  { %1111 = vmatpush1.msra.mxu0 %v5838_v0  ;;  %1182 = vmatpush1.msra.mxu1 %v5841_v23  ;;  %8766 = vst [vmem:[#allocation166_spill] sm:$0xff] %v5850_v63  ;;  %v5859_v23 = vld [vmem:[#allocation4 + $0x218] sm:$0xff] }
 0x250   :  { %1112 = vmatprep.subr.mxu0 %v5844_v3  ;;  %1183 = vmatprep.subr.mxu1 %v5847_v43  ;;  %8769 = vst [vmem:[#allocation169_spill] sm:$0xff] %v5859_v23  ;;  %v5863_v3 = vld [vmem:[#allocation4 + $0x200] sm:$0xff]  ;;  %v5866_v43 = vld [vmem:[#allocation4 + $0x210] sm:$0xff] }
 0x251   :  { %1113 = vmatpush1.msra.mxu0 %v5850_v63  ;;  %1184 = vmatpush1.msra.mxu1 %v5853_v44  ;;  %8770 = vst [vmem:[#allocation170_spill] sm:$0xff] %v5863_v3  ;;  %8771 = vst [vmem:[#allocation171_spill] sm:$0xff] %v5866_v43  ;;  %v5869_v63 = vld [vmem:[#allocation4 + $0x1c8] sm:$0xff]  ;;  %v5872_v44 = vld [vmem:[#allocation4 + $0x1d8] sm:$0xff] }
 0x252   :  { %1114 = vmatprep.subr.mxu0 %v5856_v38  ;;  %1185 = vmatprep.subr.mxu1 %v5859_v23  ;;  %v5875_v38 = vld [vmem:[#allocation4 + $0x1c0] sm:$0xff]  ;;  %v5878_v23 = vld [vmem:[#allocation4 + $0x1d0] sm:$0xff] }
 0x253   :  { %1115 = vmatpush1.msra.mxu0 %v5863_v3  ;;  %1186 = vmatpush1.msra.mxu1 %v5866_v43  ;;  %8772 = vst [vmem:[#allocation172_spill] sm:$0xff] %v5878_v23  ;;  %v5881_v3 = vld [vmem:[#allocation4 + $0x188] sm:$0xff]  ;;  %v5884_v43 = vld [vmem:[#allocation4 + $0x198] sm:$0xff] }
 0x254   :  { %1116 = vmatprep.subr.mxu0 %v5869_v63  ;;  %1187 = vmatprep.subr.mxu1 %v5872_v44 }
 0x255   :  { %1117 = vmatpush1.msra.mxu0 %v5875_v38  ;;  %1188 = vmatpush1.msra.mxu1 %v5878_v23  ;;  %v4301_v23 = vpop.eup %4300 }
 0x256   :  { %1118 = vmatprep.subr.mxu0 %v5881_v3  ;;  %1189 = vmatprep.subr.mxu1 %v5884_v43 }
 0x257   :  { %1119 = vmatpush1.msra.mxu0 %v5171_v46  ;;  %1190 = vmatpush1.msra.mxu1 %v5173_v47  ;;  %v1093_v46 = vmul.f32 0.5, %v4301_v23  ;;  %v8800_v23 = vld [vmem:[#allocation38_spill] sm:$0xff] }
 0x258   :  { %1120 = vmatprep.subr.mxu0 %v5176_v48  ;;  %1191 = vmatprep.subr.mxu1 %v5178_v49  ;;  %v4303_v47 = vpop.eup %4302 }
 0x259   :  { %1121 = vmatpush1.msra.mxu0 %v5182_v50  ;;  %1192 = vmatpush1.msra.mxu1 %v5184_v51  ;;  %v1094_v48 = vadd.f32 0.5, %v1093_v46  ;;  %v8773_v50 = vld [vmem:[#allocation11_spill] sm:$0xff]  ;;  %v8774_v51 = vld [vmem:[#allocation12_spill] sm:$0xff] }
 0x25a   :  { %1122 = vmatprep.subr.mxu0 %v5188_v52  ;;  %1193 = vmatprep.subr.mxu1 %v5191_v53  ;;  %v8775_v52 = vld [vmem:[#allocation13_spill] sm:$0xff]  ;;  %v8776_v53 = vld [vmem:[#allocation14_spill] sm:$0xff]  ;;  %v8801_v46 = vld [vmem:[#allocation39_spill] sm:$0xff] }
 0x25b   :  { %1123 = vmatpush1.msra.mxu0 %v5198_v55  ;;  %1194 = vmatpush1.msra.mxu1 %v5200_v56  ;;  %v5913_v49 = vmul.f32 %v4303_v47, %v1094_v48  ;;  %v8777_v55 = vld [vmem:[#allocation15_spill] sm:$0xff]  ;;  %v8778_v56 = vld [vmem:[#allocation16_spill] sm:$0xff]  ;;  %v8803_v48 = vld [vmem:[#allocation41_spill] sm:$0xff] }
 0x25c   :  { %1124 = vmatprep.subr.mxu0 %v5204_v57  ;;  %1195 = vmatprep.subr.mxu1 %v5207_v58  ;;  %v8779_v57 = vld [vmem:[#allocation17_spill] sm:$0xff]  ;;  %v8780_v58 = vld [vmem:[#allocation18_spill] sm:$0xff]  ;;  %v8802_v47 = vld [vmem:[#allocation40_spill] sm:$0xff] }
 0x25d   :  { %1125 = vmatpush1.msra.mxu0 %v5211_v59  ;;  %1196 = vmatpush1.msra.mxu1 %v5213_v60  ;;  %v8781_v59 = vld [vmem:[#allocation19_spill] sm:$0xff]  ;;  %v8782_v60 = vld [vmem:[#allocation20_spill] sm:$0xff] }
 0x25e   :  { %1126 = vmatprep.subr.mxu0 %v5217_v61  ;;  %1197 = vmatprep.subr.mxu1 %v5220_v62  ;;  %v8783_v61 = vld [vmem:[#allocation21_spill] sm:$0xff]  ;;  %v8784_v62 = vld [vmem:[#allocation22_spill] sm:$0xff] }
 0x25f   :  { %1127 = vmatpush1.msra.mxu0 %v5227_v1  ;;  %1198 = vmatpush1.msra.mxu1 %v5229_v2  ;;  %v8785_v1 = vld [vmem:[#allocation23_spill] sm:$0xff]  ;;  %v8786_v2 = vld [vmem:[#allocation24_spill] sm:$0xff] }
 0x260   :  { %1128 = vmatprep.subr.mxu0 %v5233_v5  ;;  %1199 = vmatprep.subr.mxu1 %v5236_v6  ;;  %v8787_v5 = vld [vmem:[#allocation25_spill] sm:$0xff]  ;;  %v8788_v6 = vld [vmem:[#allocation26_spill] sm:$0xff] }
 0x261   :  { %1129 = vmatpush1.msra.mxu0 %v5240_v7  ;;  %1200 = vmatpush1.msra.mxu1 %v5242_v8  ;;  %v8789_v7 = vld [vmem:[#allocation27_spill] sm:$0xff]  ;;  %v8790_v8 = vld [vmem:[#allocation28_spill] sm:$0xff] }
 0x262   :  { %1130 = vmatprep.subr.mxu0 %v5246_v9  ;;  %1201 = vmatprep.subr.mxu1 %v5248_v10  ;;  %v8791_v9 = vld [vmem:[#allocation29_spill] sm:$0xff]  ;;  %v8792_v10 = vld [vmem:[#allocation30_spill] sm:$0xff] }
 0x263   :  { %1131 = vmatpush1.msra.mxu0 %v5251_v11  ;;  %1164 = vmatprep.mubr.f32.mxu0 %v8665_v18  ;;  %v8793_v11 = vld [vmem:[#allocation31_spill] sm:$0xff] }
 0x264   :  { %1202 = vmatpush1.msra.mxu1 %v5253_v12  ;;  %1235 = vmatprep.mubr.f32.mxu1 %v8665_v18  ;;  %v8794_v12 = vld [vmem:[#allocation32_spill] sm:$0xff] }
 0x265   :  { %1165 = vmatmul.mubr.f32.vlgmr.msra.gmra.mxu0 %v5913_v49  ;;  %1236 = vmatmul.mubr.f32.vlgmr.msra.gmra.mxu1 %v5913_v49 }
 0x266   :  { %1242 = vmatprep.subr.mxu0 %v5259_v13  ;;  %1313 = vmatprep.subr.mxu1 %v5261_v14  ;;  %v8795_v13 = vld [vmem:[#allocation33_spill] sm:$0xff]  ;;  %v8796_v14 = vld [vmem:[#allocation34_spill] sm:$0xff] }
 0x267   :  { %1243 = vmatpush1.msra.mxu0 %v5303_v26  ;;  %1314 = vmatpush1.msra.mxu1 %v5305_v27  ;;  %v8797_v26 = vld [vmem:[#allocation35_spill] sm:$0xff]  ;;  %v8798_v27 = vld [vmem:[#allocation36_spill] sm:$0xff] }
 0x268   :  { %1244 = vmatprep.subr.mxu0 %v5307_v28  ;;  %1315 = vmatprep.subr.mxu1 %v8773_v50  ;;  %v8799_v28 = vld [vmem:[#allocation37_spill] sm:$0xff]  ;;  %v8804_v50 = vld [vmem:[#allocation42_spill] sm:$0xff] }
 0x269   :  { %1245 = vmatpush1.msra.mxu0 %v8774_v51  ;;  %1316 = vmatpush1.msra.mxu1 %v8775_v52  ;;  %v8805_v51 = vld [vmem:[#allocation43_spill] sm:$0xff]  ;;  %v8806_v52 = vld [vmem:[#allocation44_spill] sm:$0xff] }
 0x26a   :  { %1246 = vmatprep.subr.mxu0 %v8776_v53  ;;  %1317 = vmatprep.subr.mxu1 %v8777_v55  ;;  %v8807_v53 = vld [vmem:[#allocation45_spill] sm:$0xff]  ;;  %v8808_v55 = vld [vmem:[#allocation46_spill] sm:$0xff] }
 0x26b   :  { %1247 = vmatpush1.msra.mxu0 %v8778_v56  ;;  %1318 = vmatpush1.msra.mxu1 %v8779_v57  ;;  %v8809_v56 = vld [vmem:[#allocation47_spill] sm:$0xff]  ;;  %v8810_v57 = vld [vmem:[#allocation48_spill] sm:$0xff] }
 0x26c   :  { %1248 = vmatprep.subr.mxu0 %v8780_v58  ;;  %1319 = vmatprep.subr.mxu1 %v8781_v59  ;;  %v8811_v58 = vld [vmem:[#allocation49_spill] sm:$0xff]  ;;  %v8812_v59 = vld [vmem:[#allocation50_spill] sm:$0xff] }
 0x26d   :  { %1249 = vmatpush1.msra.mxu0 %v8782_v60  ;;  %1320 = vmatpush1.msra.mxu1 %v8783_v61  ;;  %v8813_v60 = vld [vmem:[#allocation51_spill] sm:$0xff]  ;;  %v8814_v61 = vld [vmem:[#allocation52_spill] sm:$0xff] }
 0x26e   :  { %1250 = vmatprep.subr.mxu0 %v8784_v62  ;;  %1321 = vmatprep.subr.mxu1 %v8785_v1  ;;  %v8815_v62 = vld [vmem:[#allocation53_spill] sm:$0xff]  ;;  %v8816_v1 = vld [vmem:[#allocation54_spill] sm:$0xff] }
 0x26f   :  { %1251 = vmatpush1.msra.mxu0 %v8786_v2  ;;  %1322 = vmatpush1.msra.mxu1 %v8787_v5  ;;  %v8817_v2 = vld [vmem:[#allocation55_spill] sm:$0xff]  ;;  %v8818_v5 = vld [vmem:[#allocation56_spill] sm:$0xff] }
 0x270   :  { %1252 = vmatprep.subr.mxu0 %v8788_v6  ;;  %1323 = vmatprep.subr.mxu1 %v8789_v7  ;;  %v8819_v6 = vld [vmem:[#allocation57_spill] sm:$0xff]  ;;  %v8820_v7 = vld [vmem:[#allocation58_spill] sm:$0xff] }
 0x271   :  { %1253 = vmatpush1.msra.mxu0 %v8790_v8  ;;  %1324 = vmatpush1.msra.mxu1 %v8791_v9  ;;  %v8821_v8 = vld [vmem:[#allocation59_spill] sm:$0xff]  ;;  %v8822_v9 = vld [vmem:[#allocation60_spill] sm:$0xff] }
 0x272   :  { %1254 = vmatprep.subr.mxu0 %v8792_v10  ;;  %1325 = vmatprep.subr.mxu1 %v8793_v11  ;;  %v8823_v10 = vld [vmem:[#allocation61_spill] sm:$0xff]  ;;  %v8824_v11 = vld [vmem:[#allocation62_spill] sm:$0xff] }
 0x273   :  { %1255 = vmatpush1.msra.mxu0 %v8794_v12  ;;  %1326 = vmatpush1.msra.mxu1 %v8795_v13  ;;  %v8825_v12 = vld [vmem:[#allocation63_spill] sm:$0xff]  ;;  %v8826_v13 = vld [vmem:[#allocation64_spill] sm:$0xff] }
 0x274   :  { %1256 = vmatprep.subr.mxu0 %v8796_v14  ;;  %1327 = vmatprep.subr.mxu1 %v8797_v26  ;;  %v8827_v14 = vld [vmem:[#allocation65_spill] sm:$0xff]  ;;  %v8828_v26 = vld [vmem:[#allocation66_spill] sm:$0xff] }
 0x275   :  { %1257 = vmatpush1.msra.mxu0 %v8798_v27  ;;  %1328 = vmatpush1.msra.mxu1 %v8799_v28  ;;  %v8829_v27 = vld [vmem:[#allocation67_spill] sm:$0xff]  ;;  %v8830_v28 = vld [vmem:[#allocation68_spill] sm:$0xff] }
 0x276   :  { %1258 = vmatprep.subr.mxu0 %v8800_v23  ;;  %1329 = vmatprep.subr.mxu1 %v8801_v46  ;;  %v8831_v23 = vld [vmem:[#allocation69_spill] sm:$0xff]  ;;  %v8832_v46 = vld [vmem:[#allocation70_spill] sm:$0xff] }
 0x277   :  { %1259 = vmatpush1.msra.mxu0 %v8802_v47  ;;  %1330 = vmatpush1.msra.mxu1 %v8803_v48  ;;  %v8833_v47 = vld [vmem:[#allocation71_spill] sm:$0xff]  ;;  %v8834_v48 = vld [vmem:[#allocation72_spill] sm:$0xff] }
 0x278   :  { %1260 = vmatprep.subr.mxu0 %v8804_v50  ;;  %1331 = vmatprep.subr.mxu1 %v8805_v51  ;;  %v8835_v50 = vld [vmem:[#allocation73_spill] sm:$0xff]  ;;  %v8836_v51 = vld [vmem:[#allocation74_spill] sm:$0xff] }
 0x279   :  { %1261 = vmatpush1.msra.mxu0 %v8806_v52  ;;  %1332 = vmatpush1.msra.mxu1 %v8807_v53  ;;  %v8837_v52 = vld [vmem:[#allocation75_spill] sm:$0xff]  ;;  %v8838_v53 = vld [vmem:[#allocation76_spill] sm:$0xff] }
 0x27a   :  { %1262 = vmatprep.subr.mxu0 %v8808_v55  ;;  %1333 = vmatprep.subr.mxu1 %v8809_v56  ;;  %v8839_v55 = vld [vmem:[#allocation77_spill] sm:$0xff]  ;;  %v8840_v56 = vld [vmem:[#allocation78_spill] sm:$0xff] }
 0x27b   :  { %1263 = vmatpush1.msra.mxu0 %v8810_v57  ;;  %1334 = vmatpush1.msra.mxu1 %v8811_v58  ;;  %v8841_v57 = vld [vmem:[#allocation79_spill] sm:$0xff]  ;;  %v8843_v58 = vld [vmem:[#allocation81_spill] sm:$0xff] }
 0x27c   :  { %1264 = vmatprep.subr.mxu0 %v8812_v59  ;;  %1335 = vmatprep.subr.mxu1 %v8813_v60  ;;  %v8844_v59 = vld [vmem:[#allocation82_spill] sm:$0xff]  ;;  %v8845_v60 = vld [vmem:[#allocation83_spill] sm:$0xff] }
 0x27d   :  { %1265 = vmatpush1.msra.mxu0 %v8814_v61  ;;  %1336 = vmatpush1.msra.mxu1 %v8815_v62  ;;  %v8846_v61 = vld [vmem:[#allocation84_spill] sm:$0xff]  ;;  %v8847_v62 = vld [vmem:[#allocation85_spill] sm:$0xff] }
 0x27e   :  { %1266 = vmatprep.subr.mxu0 %v8816_v1  ;;  %1337 = vmatprep.subr.mxu1 %v8817_v2  ;;  %v8848_v1 = vld [vmem:[#allocation86_spill] sm:$0xff]  ;;  %v8849_v2 = vld [vmem:[#allocation87_spill] sm:$0xff] }
 0x27f   :  { %1267 = vmatpush1.msra.mxu0 %v8818_v5  ;;  %1338 = vmatpush1.msra.mxu1 %v8819_v6  ;;  %v8850_v5 = vld [vmem:[#allocation88_spill] sm:$0xff]  ;;  %v8851_v6 = vld [vmem:[#allocation89_spill] sm:$0xff] }
 0x280   :  { %1268 = vmatprep.subr.mxu0 %v8820_v7  ;;  %1339 = vmatprep.subr.mxu1 %v8821_v8  ;;  %v8852_v7 = vld [vmem:[#allocation90_spill] sm:$0xff]  ;;  %v8853_v8 = vld [vmem:[#allocation91_spill] sm:$0xff] }
 0x281   :  { %1269 = vmatpush1.msra.mxu0 %v8822_v9  ;;  %1340 = vmatpush1.msra.mxu1 %v8823_v10  ;;  %v8854_v9 = vld [vmem:[#allocation92_spill] sm:$0xff]  ;;  %v8855_v10 = vld [vmem:[#allocation93_spill] sm:$0xff] }
 0x282   :  { %1270 = vmatprep.subr.mxu0 %v8824_v11  ;;  %1341 = vmatprep.subr.mxu1 %v8825_v12  ;;  %v8856_v11 = vld [vmem:[#allocation94_spill] sm:$0xff]  ;;  %v8857_v12 = vld [vmem:[#allocation95_spill] sm:$0xff] }
 0x283   :  { %1271 = vmatpush1.msra.mxu0 %v8826_v13  ;;  %1342 = vmatpush1.msra.mxu1 %v8827_v14  ;;  %v8858_v13 = vld [vmem:[#allocation96_spill] sm:$0xff]  ;;  %v8859_v14 = vld [vmem:[#allocation97_spill] sm:$0xff] }
 0x284   :  { %1272 = vmatprep.subr.mxu0 %v8828_v26  ;;  %1343 = vmatprep.subr.mxu1 %v8829_v27  ;;  %v8860_v26 = vld [vmem:[#allocation98_spill] sm:$0xff]  ;;  %v8861_v27 = vld [vmem:[#allocation99_spill] sm:$0xff] }
 0x285   :  { %1273 = vmatpush1.msra.mxu0 %v8830_v28  ;;  %1306 = vmatprep.mubr.f32.mxu0 %v8665_v18  ;;  %v8862_v28 = vld [vmem:[#allocation100_spill] sm:$0xff] }
 0x286   :  { %1344 = vmatpush1.msra.mxu1 %v8831_v23  ;;  %1377 = vmatprep.mubr.f32.mxu1 %v8665_v18  ;;  %v8863_v23 = vld [vmem:[#allocation101_spill] sm:$0xff] }
 0x287   :  { %1307 = vmatmul.mubr.f32.vlgmr.msra.gmra.mxu0 %v5913_v49  ;;  %1378 = vmatmul.mubr.f32.vlgmr.msra.gmra.mxu1 %v5913_v49  ;;  %v8842_v49 = vld [vmem:[#allocation80_spill] sm:$0xff] }
 0x288   :  { %1410 = vmatprep.subr.mxu0 %v8832_v46  ;;  %1481 = vmatprep.subr.mxu1 %v8833_v47  ;;  %v8864_v46 = vld [vmem:[#allocation102_spill] sm:$0xff]  ;;  %v8865_v47 = vld [vmem:[#allocation103_spill] sm:$0xff] }
 0x289   :  { %1411 = vmatpush1.msra.mxu0 %v8834_v48  ;;  %1482 = vmatpush1.msra.mxu1 %v8835_v50  ;;  %v8866_v48 = vld [vmem:[#allocation104_spill] sm:$0xff]  ;;  %v8867_v50 = vld [vmem:[#allocation105_spill] sm:$0xff] }
 0x28a   :  { %1412 = vmatprep.subr.mxu0 %v8836_v51  ;;  %1483 = vmatprep.subr.mxu1 %v8837_v52  ;;  %v8868_v51 = vld [vmem:[#allocation106_spill] sm:$0xff]  ;;  %v8869_v52 = vld [vmem:[#allocation107_spill] sm:$0xff] }
 0x28b   :  { %1413 = vmatpush1.msra.mxu0 %v8838_v53  ;;  %1484 = vmatpush1.msra.mxu1 %v8839_v55  ;;  %v8870_v53 = vld [vmem:[#allocation108_spill] sm:$0xff]  ;;  %v8871_v55 = vld [vmem:[#allocation109_spill] sm:$0xff] }
 0x28c   :  { %1414 = vmatprep.subr.mxu0 %v8840_v56  ;;  %1485 = vmatprep.subr.mxu1 %v8841_v57  ;;  %v8872_v56 = vld [vmem:[#allocation110_spill] sm:$0xff]  ;;  %v8873_v57 = vld [vmem:[#allocation111_spill] sm:$0xff] }
 0x28d   :  { %1415 = vmatpush1.msra.mxu0 %v8842_v49  ;;  %1486 = vmatpush1.msra.mxu1 %v8843_v58  ;;  %v8874_v49 = vld [vmem:[#allocation112_spill] sm:$0xff]  ;;  %v8875_v58 = vld [vmem:[#allocation113_spill] sm:$0xff] }
 0x28e   :  { %1416 = vmatprep.subr.mxu0 %v8844_v59  ;;  %1487 = vmatprep.subr.mxu1 %v8845_v60  ;;  %v8876_v59 = vld [vmem:[#allocation114_spill] sm:$0xff]  ;;  %v8877_v60 = vld [vmem:[#allocation115_spill] sm:$0xff] }
 0x28f   :  { %1417 = vmatpush1.msra.mxu0 %v8846_v61  ;;  %1488 = vmatpush1.msra.mxu1 %v8847_v62  ;;  %v8878_v61 = vld [vmem:[#allocation116_spill] sm:$0xff]  ;;  %v8879_v62 = vld [vmem:[#allocation117_spill] sm:$0xff] }
 0x290   :  { %1418 = vmatprep.subr.mxu0 %v8848_v1  ;;  %1489 = vmatprep.subr.mxu1 %v8849_v2  ;;  %v8880_v1 = vld [vmem:[#allocation118_spill] sm:$0xff]  ;;  %v8881_v2 = vld [vmem:[#allocation119_spill] sm:$0xff] }
 0x291   :  { %1419 = vmatpush1.msra.mxu0 %v8850_v5  ;;  %1490 = vmatpush1.msra.mxu1 %v8851_v6  ;;  %v8882_v5 = vld [vmem:[#allocation120_spill] sm:$0xff]  ;;  %v8883_v6 = vld [vmem:[#allocation121_spill] sm:$0xff] }
 0x292   :  { %1420 = vmatprep.subr.mxu0 %v8852_v7  ;;  %1491 = vmatprep.subr.mxu1 %v8853_v8  ;;  %v8884_v7 = vld [vmem:[#allocation122_spill] sm:$0xff]  ;;  %v8885_v8 = vld [vmem:[#allocation123_spill] sm:$0xff] }
 0x293   :  { %1421 = vmatpush1.msra.mxu0 %v8854_v9  ;;  %1492 = vmatpush1.msra.mxu1 %v8855_v10  ;;  %v8886_v9 = vld [vmem:[#allocation124_spill] sm:$0xff]  ;;  %v8887_v10 = vld [vmem:[#allocation125_spill] sm:$0xff] }
 0x294   :  { %1422 = vmatprep.subr.mxu0 %v8856_v11  ;;  %1493 = vmatprep.subr.mxu1 %v8857_v12  ;;  %v8888_v11 = vld [vmem:[#allocation126_spill] sm:$0xff]  ;;  %v8889_v12 = vld [vmem:[#allocation127_spill] sm:$0xff] }
 0x295   :  { %1423 = vmatpush1.msra.mxu0 %v8858_v13  ;;  %1494 = vmatpush1.msra.mxu1 %v8859_v14  ;;  %v8890_v13 = vld [vmem:[#allocation128_spill] sm:$0xff]  ;;  %v8891_v14 = vld [vmem:[#allocation129_spill] sm:$0xff] }
 0x296   :  { %1424 = vmatprep.subr.mxu0 %v8860_v26  ;;  %1495 = vmatprep.subr.mxu1 %v8861_v27  ;;  %v8892_v26 = vld [vmem:[#allocation130_spill] sm:$0xff]  ;;  %v8893_v27 = vld [vmem:[#allocation131_spill] sm:$0xff] }
 0x297   :  { %1425 = vmatpush1.msra.mxu0 %v8862_v28  ;;  %1496 = vmatpush1.msra.mxu1 %v8863_v23  ;;  %v8894_v28 = vld [vmem:[#allocation132_spill] sm:$0xff]  ;;  %v8895_v23 = vld [vmem:[#allocation133_spill] sm:$0xff] }
 0x298   :  { %1426 = vmatprep.subr.mxu0 %v8864_v46  ;;  %1497 = vmatprep.subr.mxu1 %v8865_v47  ;;  %v6053_v46 = vld [vmem:[#allocation4 + $0x3c8] sm:$0xff]  ;;  %v6056_v47 = vld [vmem:[#allocation4 + $0x3d8] sm:$0xff] }
 0x299   :  { %1427 = vmatpush1.msra.mxu0 %v8866_v48  ;;  %1498 = vmatpush1.msra.mxu1 %v8867_v50 }
 0x29a   :  { %1428 = vmatprep.subr.mxu0 %v8868_v51  ;;  %1499 = vmatprep.subr.mxu1 %v8869_v52  ;;  %v8896_v52 = vld [vmem:[#allocation134_spill] sm:$0xff] }
 0x29b   :  { %1429 = vmatpush1.msra.mxu0 %v8870_v53  ;;  %1500 = vmatpush1.msra.mxu1 %v8871_v55  ;;  %v243_v53 = vadd.f32 %v8896_v52, %v5278_v20 }
 0x29c   :  { %1430 = vmatprep.subr.mxu0 %v8872_v56  ;;  %1501 = vmatprep.subr.mxu1 %v8873_v57  ;;  %v8897_v57 = vld [vmem:[#allocation136_spill] sm:$0xff] }
 0x29d   :  { %1431 = vmatpush1.msra.mxu0 %v8874_v49  ;;  %1502 = vmatpush1.msra.mxu1 %v8875_v58  ;;  %v245_v49 = vadd.f32 %v8897_v57, %v5283_v22  ;;  %v8899_v57 = vld [vmem:[#allocation158_spill] sm:$0xff] }
 0x29e   :  { %1432 = vmatprep.subr.mxu0 %v8876_v59  ;;  %1503 = vmatprep.subr.mxu1 %v8877_v60 }
 0x29f   :  { %1433 = vmatpush1.msra.mxu0 %v8878_v61  ;;  %1504 = vmatpush1.msra.mxu1 %v8879_v62  ;;  %v8898_v61 = vld [vmem:[#allocation135_spill] sm:$0xff] }
 0x2a0   :  { %1434 = vmatprep.subr.mxu0 %v8880_v1  ;;  %1505 = vmatprep.subr.mxu1 %v8881_v2  ;;  %v356_v62 = vadd.f32 %v8898_v61, %v5288_v25  ;;  %v8900_v61 = vld [vmem:[#allocation159_spill] sm:$0xff] }
 0x2a1   :  { %1435 = vmatpush1.msra.mxu0 %v8882_v5  ;;  %1506 = vmatpush1.msra.mxu1 %v8883_v6 }
 0x2a2   :  { %1436 = vmatprep.subr.mxu0 %v8884_v7  ;;  %1507 = vmatprep.subr.mxu1 %v8885_v8 }
 0x2a3   :  { %1437 = vmatpush1.msra.mxu0 %v8886_v9  ;;  %1508 = vmatpush1.msra.mxu1 %v8887_v10 }
 0x2a4   :  { %1438 = vmatprep.subr.mxu0 %v8888_v11  ;;  %1509 = vmatprep.subr.mxu1 %v8889_v12 }
 0x2a5   :  { %1439 = vmatpush1.msra.mxu0 %v8890_v13  ;;  %1510 = vmatpush1.msra.mxu1 %v8891_v14 }
 0x2a6   :  { %1440 = vmatprep.subr.mxu0 %v8892_v26  ;;  %1511 = vmatprep.subr.mxu1 %v8893_v27 }
 0x2a7   :  { %1441 = vmatpush1.msra.mxu0 %v8894_v28  ;;  %1512 = vmatpush1.msra.mxu1 %v8895_v23 }
 0x2a8   :  { %1474 = vmatprep.mubr.f32.mxu0 %v8665_v18  ;;  %1545 = vmatprep.mubr.f32.mxu1 %v8665_v18 }
 0x2a9   :  { %1574 = vmatprep.subr.mxu0 %v6053_v46  ;;  %1645 = vmatprep.subr.mxu1 %v6056_v47 }
 0x304   :  { %v1002_v48 = vpop.f32.mrf.mxu0  ;;  %v1073_v50 = vpop.f32.mrf.mxu1 }
 0x306   :  { %v1004_v51 = vpop.f32.mrf.mxu0  ;;  %v1075_v55 = vpop.f32.mrf.mxu1 }
 0x325   :  { %v1166_v56 = vpop.f32.mrf.mxu0  ;;  %v1237_v59 = vpop.f32.mrf.mxu1 }
 0x326   :  { %v1552_v58 = vadd.f32 %v1166_v56, %v243_v53  ;;  %v1554_v5 = vadd.f32 %v1237_v59, %v356_v62 }
 0x327   :  { %v1168_v60 = vpop.f32.mrf.mxu0  ;;  %v1239_v28 = vpop.f32.mrf.mxu1 }
 0x328   :  { %v1556_v1 = vmul.f32 0.5, %v1552_v58  ;;  %v1553_v2 = vadd.f32 %v1168_v60, %v245_v49 }
 0x32a   :  { %4304 = vtanh.f32 %v1556_v1  ;;  %v1560_v6 = vmul.f32 0.5, %v1553_v2 }
 0x32c   :  { %4306 = vtanh.f32 %v1560_v6 }
 0x32d   :  { %4308 = vtanh.f32 %v1554_v5  ;;  %v8901_v5 = vld [vmem:[#allocation160_spill] sm:$0xff] }
 0x337   :  { %v4305_v7 = vpop.eup %4304 }
 0x338   :  { %v1558_v8 = vmul.f32 0.5, %v4305_v7 }
 0x339   :  { %v4307_v9 = vpop.eup %4306 }
 0x33a   :  { %v1559_v10 = vadd.f32 0.5, %v1558_v8  ;;  %v1562_v11 = vmul.f32 0.5, %v4307_v9  ;;  %v4309_v12 = vpop.eup %4308 }
 0x33c   :  { %v1563_v13 = vadd.f32 0.5, %v1562_v11  ;;  %v1570_v14 = vmul.f32 %v4309_v12, %v1559_v10 }
 0x33e   :  { %v1569_v26 = vmul.f32 %v1563_v13, %v5836_v19 }
 0x340   :  { %v6066_v27 = vadd.f32 %v1570_v14, %v1569_v26 }
 0x347   :  { %v1308_v23 = vpop.f32.mrf.mxu0  ;;  %v1379_v53 = vpop.f32.mrf.mxu1 }
 0x348   :  { %v1384_v52 = vadd.f32 %v1308_v23, %v1002_v48  ;;  %v1386_v60 = vadd.f32 %v1379_v53, %v1073_v50 }
 0x349   :  { %v1310_v56 = vpop.f32.mrf.mxu0  ;;  %v1381_v2 = vpop.f32.mrf.mxu1 }
 0x34a   :  { %v1388_v49 = vadd.f32 %v1384_v52, %v8899_v57  ;;  %v1385_v58 = vadd.f32 %v1310_v56, %v1004_v51  ;;  %v1390_v6 = vadd.f32 %v1386_v60, %v8901_v5  ;;  %v1387_v19 = vadd.f32 %v1381_v2, %v1075_v55  ;;  %v6157_v2 = vld [vmem:[#allocation4 + $0x88] sm:$0xff] }
 0x34c   :  { %v1392_v59 = vmul.f32 0.5, %v1388_v49  ;;  %v1389_v62 = vadd.f32 %v1385_v58, %v8900_v61  ;;  %v1391_v7 = vadd.f32 %v1387_v19, %v5763_v34  ;;  %v8902_v49 = vld [vmem:[#allocation137_spill] sm:$0xff] }
 0x34d   :  { %v358_v58 = vadd.f32 %v8902_v49, %v5295_v33  ;;  %v6163_v19 = vld [vmem:[#allocation4 + $0x80] sm:$0xff]  ;;  %v6211_v49 = vld [vmem:[#allocation4 + $0x3a8] sm:$0xff] }
 0x34e   :  { %4310 = vtanh.f32 %v1392_v59  ;;  %v1396_v1 = vmul.f32 0.5, %v1389_v62  ;;  %v1401_v48 = vmul.f32 0.5, %v1391_v7  ;;  %v6151_v62 = vld [vmem:[#allocation4 + $0xc0] sm:$0xff]  ;;  %v6166_v7 = vld [vmem:[#allocation4 + $0x90] sm:$0xff] }
 0x34f   :  { %v1555_v59 = vadd.f32 %v1239_v28, %v358_v58  ;;  %v6148_v28 = vld [vmem:[#allocation4 + $0xd8] sm:$0xff] }
 0x350   :  { %4312 = vtanh.f32 %v1396_v1  ;;  %v6154_v1 = vld [vmem:[#allocation4 + $0xd0] sm:$0xff]  ;;  %v6214_v58 = vld [vmem:[#allocation4 + $0x3b8] sm:$0xff] }
 0x351   :  { %4314 = vtanh.f32 %v1390_v6  ;;  %v6160_v6 = vld [vmem:[#allocation4 + $0x98] sm:$0xff]  ;;  %8915 = vst [vmem:[#allocation11_spill] sm:$0xff] %v6214_v58 }
 0x352   :  { %4316 = vtanh.f32 %v1401_v48 }
 0x35b   :  { %v4311_v8 = vpop.eup %4310 }
 0x35c   :  { %v1394_v9 = vmul.f32 0.5, %v4311_v8  ;;  %v6169_v8 = vld [vmem:[#allocation4 + $0x48] sm:$0xff] }
 0x35d   :  { %v4313_v10 = vpop.eup %4312 }
 0x35e   :  { %v1395_v11 = vadd.f32 0.5, %v1394_v9  ;;  %v1398_v51 = vmul.f32 0.5, %v4313_v10  ;;  %v4315_v12 = vpop.eup %4314  ;;  %v6172_v9 = vld [vmem:[#allocation4 + $0x58] sm:$0xff] }
 0x35f   :  { %v4317_v55 = vpop.eup %4316 }
 0x360   :  { %v1399_v50 = vadd.f32 0.5, %v1398_v51  ;;  %v1406_v14 = vmul.f32 %v4315_v12, %v1395_v11  ;;  %v1403_v23 = vmul.f32 0.5, %v4317_v55  ;;  %v6175_v11 = vld [vmem:[#allocation4 + $0x40] sm:$0xff]  ;;  %v6178_v51 = vld [vmem:[#allocation4 + $0x50] sm:$0xff]  ;;  %v6184_v12 = vld [vmem:[#allocation4 + $0x18] sm:$0xff] }
 0x361   :  { %v6193_v55 = vld [vmem:[#allocation4 + $0x10] sm:$0xff] }
 0x362   :  { %v1405_v13 = vmul.f32 %v1399_v50, %v5768_v42  ;;  %v1404_v52 = vadd.f32 0.5, %v1403_v23  ;;  %v1565_v42 = vmul.f32 0.5, %v1555_v59  ;;  %v6181_v50 = vld [vmem:[#allocation4 + $0x8] sm:$0xff]  ;;  %v6217_v59 = vld [vmem:[#allocation4 + $0x3a0] sm:$0xff] }
 0x363   :  { %v6199_v23 = vld [vmem:[#allocation4 + $0x3e8] sm:$0xff]  ;;  %8916 = vst [vmem:[#allocation12_spill] sm:$0xff] %v6217_v59 }
 0x364   :  { %v6073_v26 = vadd.f32 %v1406_v14, %v1405_v13  ;;  %v6187_v13 = vld [vmem:[#allocation4] sm:$0xff] }
 0x366   :  { %4318 = vtanh.f32 %v6073_v26 }
 0x367   :  { %4320 = vtanh.f32 %v1565_v42  ;;  %v6220_v42 = vld [vmem:[#allocation4 + $0x3b0] sm:$0xff] }
 0x368   :  { %4322 = vtanh.f32 %v6066_v27  ;;  %8917 = vst [vmem:[#allocation13_spill] sm:$0xff] %v6220_v42 }
 0x373   :  { %v4319_v53 = vpop.eup %4318 }
 0x374   :  { %v1409_v56 = vmul.f32 %v4319_v53, %v1404_v52  ;;  %v6202_v52 = vld [vmem:[#allocation4 + $0x3f8] sm:$0xff]  ;;  %v6205_v53 = vld [vmem:[#allocation4 + $0x3e0] sm:$0xff] }
 0x376   :  { %1475 = vmatmul.mubr.f32.vlgmr.msra.gmra.mxu0 %v1409_v56  ;;  %1546 = vmatmul.mubr.f32.vlgmr.msra.gmra.mxu1 %v1409_v56  ;;  %v6208_v56 = vld [vmem:[#allocation4 + $0x3f0] sm:$0xff] }
 0x377   :  { %1575 = vmatpush1.msra.mxu0 %v5775_v40  ;;  %1646 = vmatpush1.msra.mxu1 %v5778_v15  ;;  %v8903_v40 = vld [vmem:[#allocation161_spill] sm:$0xff]  ;;  %v8904_v15 = vld [vmem:[#allocation162_spill] sm:$0xff] }
 0x378   :  { %1576 = vmatprep.subr.mxu0 %v5781_v4  ;;  %1647 = vmatprep.subr.mxu1 %v5784_v37  ;;  %v8905_v4 = vld [vmem:[#allocation163_spill] sm:$0xff]  ;;  %v8906_v37 = vld [vmem:[#allocation164_spill] sm:$0xff] }
 0x379   :  { %1577 = vmatpush1.msra.mxu0 %v5787_v24  ;;  %1648 = vmatpush1.msra.mxu1 %v5790_v41  ;;  %v8907_v24 = vld [vmem:[#allocation165_spill] sm:$0xff]  ;;  %v8908_v41 = vld [vmem:[#allocation166_spill] sm:$0xff] }
 0x37a   :  { %1578 = vmatprep.subr.mxu0 %v5793_v36  ;;  %1649 = vmatprep.subr.mxu1 %v5796_v16  ;;  %v8909_v36 = vld [vmem:[#allocation167_spill] sm:$0xff]  ;;  %v8910_v16 = vld [vmem:[#allocation168_spill] sm:$0xff] }
 0x37b   :  { %1579 = vmatpush1.msra.mxu0 %v5799_v35  ;;  %1650 = vmatpush1.msra.mxu1 %v5802_v21  ;;  %v8911_v35 = vld [vmem:[#allocation169_spill] sm:$0xff]  ;;  %v8912_v21 = vld [vmem:[#allocation170_spill] sm:$0xff] }
 0x37c   :  { %1580 = vmatprep.subr.mxu0 %v5805_v31  ;;  %1651 = vmatprep.subr.mxu1 %v5808_v30  ;;  %v8913_v31 = vld [vmem:[#allocation171_spill] sm:$0xff]  ;;  %v8914_v30 = vld [vmem:[#allocation172_spill] sm:$0xff] }
 0x37d   :  { %1581 = vmatpush1.msra.mxu0 %v5812_v32  ;;  %1652 = vmatpush1.msra.mxu1 %v5815_v45  ;;  %v6115_v32 = vld [vmem:[#allocation4 + $0x180] sm:$0xff]  ;;  %v6118_v45 = vld [vmem:[#allocation4 + $0x190] sm:$0xff] }
 0x37e   :  { %1582 = vmatprep.subr.mxu0 %v5818_v17  ;;  %1653 = vmatprep.subr.mxu1 %v5821_v39  ;;  %v6121_v17 = vld [vmem:[#allocation4 + $0x148] sm:$0xff]  ;;  %v6124_v39 = vld [vmem:[#allocation4 + $0x158] sm:$0xff] }
 0x37f   :  { %1583 = vmatpush1.msra.mxu0 %v5824_v54  ;;  %1654 = vmatpush1.msra.mxu1 %v8903_v40  ;;  %v6127_v54 = vld [vmem:[#allocation4 + $0x140] sm:$0xff]  ;;  %v6223_v40 = vld [vmem:[#allocation4 + $0x368] sm:$0xff] }
 0x380   :  { %1584 = vmatprep.subr.mxu0 %v8904_v15  ;;  %1655 = vmatprep.subr.mxu1 %v5833_v29  ;;  %v6133_v29 = vld [vmem:[#allocation4 + $0x108] sm:$0xff]  ;;  %8918 = vst [vmem:[#allocation14_spill] sm:$0xff] %v6223_v40  ;;  %v6226_v15 = vld [vmem:[#allocation4 + $0x378] sm:$0xff] }
 0x381   :  { %1585 = vmatpush1.msra.mxu0 %v5838_v0  ;;  %1656 = vmatpush1.msra.mxu1 %v8905_v4  ;;  %v6136_v0 = vld [vmem:[#allocation4 + $0x118] sm:$0xff]  ;;  %8919 = vst [vmem:[#allocation15_spill] sm:$0xff] %v6226_v15  ;;  %v6229_v4 = vld [vmem:[#allocation4 + $0x360] sm:$0xff] }
 0x382   :  { %1586 = vmatprep.subr.mxu0 %v8906_v37  ;;  %1657 = vmatprep.subr.mxu1 %v8907_v24  ;;  %8920 = vst [vmem:[#allocation16_spill] sm:$0xff] %v6229_v4  ;;  %v6232_v37 = vld [vmem:[#allocation4 + $0x370] sm:$0xff]  ;;  %v6235_v24 = vld [vmem:[#allocation4 + $0x328] sm:$0xff] }
 0x383   :  { %1587 = vmatpush1.msra.mxu0 %v8908_v41  ;;  %1658 = vmatpush1.msra.mxu1 %v8909_v36  ;;  %8921 = vst [vmem:[#allocation17_spill] sm:$0xff] %v6232_v37  ;;  %8922 = vst [vmem:[#allocation18_spill] sm:$0xff] %v6235_v24  ;;  %v6238_v41 = vld [vmem:[#allocation4 + $0x338] sm:$0xff]  ;;  %v6241_v36 = vld [vmem:[#allocation4 + $0x320] sm:$0xff] }
 0x384   :  { %1588 = vmatprep.subr.mxu0 %v8910_v16  ;;  %1659 = vmatprep.subr.mxu1 %v8911_v35  ;;  %8923 = vst [vmem:[#allocation19_spill] sm:$0xff] %v6238_v41  ;;  %8924 = vst [vmem:[#allocation20_spill] sm:$0xff] %v6241_v36  ;;  %v6244_v16 = vld [vmem:[#allocation4 + $0x330] sm:$0xff]  ;;  %v6247_v35 = vld [vmem:[#allocation4 + $0x2e8] sm:$0xff] }
 0x385   :  { %1589 = vmatpush1.msra.mxu0 %v8912_v21  ;;  %1660 = vmatpush1.msra.mxu1 %v8913_v31  ;;  %8925 = vst [vmem:[#allocation21_spill] sm:$0xff] %v6244_v16  ;;  %8926 = vst [vmem:[#allocation22_spill] sm:$0xff] %v6247_v35  ;;  %v6250_v21 = vld [vmem:[#allocation4 + $0x2f8] sm:$0xff]  ;;  %v6253_v31 = vld [vmem:[#allocation4 + $0x2e0] sm:$0xff] }
 0x386   :  { %1590 = vmatprep.subr.mxu0 %v5869_v63  ;;  %1661 = vmatprep.subr.mxu1 %v5872_v44  ;;  %v4321_v63 = vpop.eup %4320  ;;  %v6142_v44 = vld [vmem:[#allocation4 + $0x110] sm:$0xff]  ;;  %8927 = vst [vmem:[#allocation23_spill] sm:$0xff] %v6250_v21  ;;  %8928 = vst [vmem:[#allocation24_spill] sm:$0xff] %v6253_v31 }
 0x387   :  { %1591 = vmatpush1.msra.mxu0 %v5875_v38  ;;  %1662 = vmatpush1.msra.mxu1 %v8914_v30  ;;  %v6145_v38 = vld [vmem:[#allocation4 + $0xc8] sm:$0xff]  ;;  %v1567_v60 = vmul.f32 0.5, %v4321_v63  ;;  %v4323_v48 = vpop.eup %4322  ;;  %v6256_v30 = vld [vmem:[#allocation4 + $0x2f0] sm:$0xff] }
 0x388   :  { %1592 = vmatprep.subr.mxu0 %v5881_v3  ;;  %1663 = vmatprep.subr.mxu1 %v5884_v43  ;;  %v6130_v43 = vld [vmem:[#allocation4 + $0x150] sm:$0xff]  ;;  %v6139_v3 = vld [vmem:[#allocation4 + $0x100] sm:$0xff]  ;;  %8929 = vst [vmem:[#allocation25_spill] sm:$0xff] %v6256_v30  ;;  %v6259_v63 = vld [vmem:[#allocation4 + $0x2a8] sm:$0xff] }
 0x389   :  { %1593 = vmatpush1.msra.mxu0 %v6115_v32  ;;  %1664 = vmatpush1.msra.mxu1 %v6118_v45  ;;  %v1568_v10 = vadd.f32 0.5, %v1567_v60  ;;  %8930 = vst [vmem:[#allocation26_spill] sm:$0xff] %v6259_v63  ;;  %v6262_v60 = vld [vmem:[#allocation4 + $0x2b8] sm:$0xff] }
 0x38a   :  { %1594 = vmatprep.subr.mxu0 %v6121_v17  ;;  %1665 = vmatprep.subr.mxu1 %v6124_v39  ;;  %8931 = vst [vmem:[#allocation27_spill] sm:$0xff] %v6262_v60 }
 0x38b   :  { %1595 = vmatpush1.msra.mxu0 %v6127_v54  ;;  %1666 = vmatpush1.msra.mxu1 %v6130_v43  ;;  %v6191_v14 = vmul.f32 %v4323_v48, %v1568_v10  ;;  %v6265_v48 = vld [vmem:[#allocation4 + $0x2a0] sm:$0xff]  ;;  %v6268_v10 = vld [vmem:[#allocation4 + $0x2b0] sm:$0xff] }
 0x38c   :  { %1596 = vmatprep.subr.mxu0 %v6133_v29  ;;  %1667 = vmatprep.subr.mxu1 %v6136_v0  ;;  %8932 = vst [vmem:[#allocation28_spill] sm:$0xff] %v6265_v48  ;;  %8933 = vst [vmem:[#allocation29_spill] sm:$0xff] %v6268_v10 }
 0x38d   :  { %1597 = vmatpush1.msra.mxu0 %v6139_v3  ;;  %1668 = vmatpush1.msra.mxu1 %v6142_v44 }
 0x38e   :  { %1598 = vmatprep.subr.mxu0 %v6145_v38  ;;  %1669 = vmatprep.subr.mxu1 %v6148_v28 }
 0x38f   :  { %1599 = vmatpush1.msra.mxu0 %v6151_v62  ;;  %1670 = vmatpush1.msra.mxu1 %v6154_v1 }
 0x390   :  { %1600 = vmatprep.subr.mxu0 %v6157_v2  ;;  %1671 = vmatprep.subr.mxu1 %v6160_v6 }
 0x391   :  { %1601 = vmatpush1.msra.mxu0 %v6163_v19  ;;  %1672 = vmatpush1.msra.mxu1 %v6166_v7 }
 0x392   :  { %1602 = vmatprep.subr.mxu0 %v6169_v8  ;;  %1673 = vmatprep.subr.mxu1 %v6172_v9 }
 0x393   :  { %1603 = vmatpush1.msra.mxu0 %v6175_v11  ;;  %1674 = vmatpush1.msra.mxu1 %v6178_v51 }
 0x394   :  { %1604 = vmatprep.subr.mxu0 %v6181_v50  ;;  %1675 = vmatprep.subr.mxu1 %v6184_v12 }
 0x395   :  { %1605 = vmatpush1.msra.mxu0 %v6187_v13  ;;  %1638 = vmatprep.mubr.f32.mxu0 %v8665_v18 }
 0x396   :  { %1676 = vmatpush1.msra.mxu1 %v6193_v55  ;;  %1709 = vmatprep.mubr.f32.mxu1 %v8665_v18 }
 0x397   :  { %1639 = vmatmul.mubr.f32.vlgmr.msra.gmra.mxu0 %v6191_v14  ;;  %1710 = vmatmul.mubr.f32.vlgmr.msra.gmra.mxu1 %v6191_v14 }
 0x398   :  { %1716 = vmatprep.subr.mxu0 %v6199_v23  ;;  %1787 = vmatprep.subr.mxu1 %v6202_v52 }
 0x399   :  { %1717 = vmatpush1.msra.mxu0 %v6205_v53  ;;  %1788 = vmatpush1.msra.mxu1 %v6208_v56 }
 0x39a   :  { %1718 = vmatprep.subr.mxu0 %v6211_v49  ;;  %1789 = vmatprep.subr.mxu1 %v6214_v58 }
 0x39b   :  { %1719 = vmatpush1.msra.mxu0 %v6217_v59  ;;  %1790 = vmatpush1.msra.mxu1 %v6220_v42 }
 0x39c   :  { %1720 = vmatprep.subr.mxu0 %v6223_v40  ;;  %1791 = vmatprep.subr.mxu1 %v6226_v15 }
 0x39d   :  { %1721 = vmatpush1.msra.mxu0 %v6229_v4  ;;  %1792 = vmatpush1.msra.mxu1 %v6232_v37 }
 0x39e   :  { %1722 = vmatprep.subr.mxu0 %v6235_v24  ;;  %1793 = vmatprep.subr.mxu1 %v6238_v41  ;;  %v9040_v24 = vld [vmem:[#allocation139_spill] sm:$0xff] }
 0x39f   :  { %1723 = vmatpush1.msra.mxu0 %v6241_v36  ;;  %1794 = vmatpush1.msra.mxu1 %v6244_v16  ;;  %v362_v37 = vadd.f32 %v9040_v24, %v5288_v25 }
 0x3a0   :  { %1724 = vmatprep.subr.mxu0 %v6247_v35  ;;  %1795 = vmatprep.subr.mxu1 %v6250_v21  ;;  %v9039_v35 = vld [vmem:[#allocation140_spill] sm:$0xff] }
 0x3a1   :  { %1725 = vmatpush1.msra.mxu0 %v6253_v31  ;;  %1796 = vmatpush1.msra.mxu1 %v6256_v30  ;;  %v6271_v31 = vld [vmem:[#allocation4 + $0x268] sm:$0xff]  ;;  %v6274_v30 = vld [vmem:[#allocation4 + $0x278] sm:$0xff]  ;;  %v251_v16 = vadd.f32 %v9039_v35, %v5283_v22 }
 0x3a2   :  { %1726 = vmatprep.subr.mxu0 %v6259_v63  ;;  %1797 = vmatprep.subr.mxu1 %v6262_v60  ;;  %8934 = vst [vmem:[#allocation30_spill] sm:$0xff] %v6271_v31  ;;  %8935 = vst [vmem:[#allocation31_spill] sm:$0xff] %v6274_v30  ;;  %v6277_v63 = vld [vmem:[#allocation4 + $0x260] sm:$0xff]  ;;  %v6280_v60 = vld [vmem:[#allocation4 + $0x270] sm:$0xff] }
 0x3a3   :  { %1727 = vmatpush1.msra.mxu0 %v6265_v48  ;;  %1798 = vmatpush1.msra.mxu1 %v6268_v10  ;;  %8936 = vst [vmem:[#allocation32_spill] sm:$0xff] %v6277_v63  ;;  %8937 = vst [vmem:[#allocation33_spill] sm:$0xff] %v6280_v60  ;;  %v6283_v48 = vld [vmem:[#allocation4 + $0x228] sm:$0xff]  ;;  %v6286_v10 = vld [vmem:[#allocation4 + $0x238] sm:$0xff] }
 0x3a4   :  { %1728 = vmatprep.subr.mxu0 %v6271_v31  ;;  %1799 = vmatprep.subr.mxu1 %v6274_v30  ;;  %8938 = vst [vmem:[#allocation34_spill] sm:$0xff] %v6283_v48  ;;  %8939 = vst [vmem:[#allocation35_spill] sm:$0xff] %v6286_v10  ;;  %v6289_v31 = vld [vmem:[#allocation4 + $0x220] sm:$0xff]  ;;  %v6292_v30 = vld [vmem:[#allocation4 + $0x230] sm:$0xff] }
 0x3a5   :  { %1729 = vmatpush1.msra.mxu0 %v6277_v63  ;;  %1800 = vmatpush1.msra.mxu1 %v6280_v60  ;;  %8940 = vst [vmem:[#allocation36_spill] sm:$0xff] %v6289_v31  ;;  %8941 = vst [vmem:[#allocation37_spill] sm:$0xff] %v6292_v30  ;;  %v6295_v63 = vld [vmem:[#allocation4 + $0x1e8] sm:$0xff]  ;;  %v6298_v60 = vld [vmem:[#allocation4 + $0x1f8] sm:$0xff] }
 0x3a6   :  { %1730 = vmatprep.subr.mxu0 %v6283_v48  ;;  %1801 = vmatprep.subr.mxu1 %v6286_v10  ;;  %8942 = vst [vmem:[#allocation38_spill] sm:$0xff] %v6295_v63  ;;  %8943 = vst [vmem:[#allocation39_spill] sm:$0xff] %v6298_v60  ;;  %v6301_v48 = vld [vmem:[#allocation4 + $0x1e0] sm:$0xff]  ;;  %v6304_v10 = vld [vmem:[#allocation4 + $0x1f0] sm:$0xff] }
 0x3a7   :  { %1731 = vmatpush1.msra.mxu0 %v6289_v31  ;;  %1802 = vmatpush1.msra.mxu1 %v6292_v30  ;;  %8944 = vst [vmem:[#allocation40_spill] sm:$0xff] %v6301_v48  ;;  %8945 = vst [vmem:[#allocation41_spill] sm:$0xff] %v6304_v10  ;;  %v6307_v31 = vld [vmem:[#allocation4 + $0x1a8] sm:$0xff]  ;;  %v6310_v30 = vld [vmem:[#allocation4 + $0x1b8] sm:$0xff] }
 0x3a8   :  { %1732 = vmatprep.subr.mxu0 %v6295_v63  ;;  %1803 = vmatprep.subr.mxu1 %v6298_v60  ;;  %8946 = vst [vmem:[#allocation42_spill] sm:$0xff] %v6307_v31  ;;  %8947 = vst [vmem:[#allocation43_spill] sm:$0xff] %v6310_v30  ;;  %v6313_v63 = vld [vmem:[#allocation4 + $0x1a0] sm:$0xff]  ;;  %v6316_v60 = vld [vmem:[#allocation4 + $0x1b0] sm:$0xff] }
 0x3a9   :  { %1733 = vmatpush1.msra.mxu0 %v6301_v48  ;;  %1804 = vmatpush1.msra.mxu1 %v6304_v10  ;;  %8948 = vst [vmem:[#allocation44_spill] sm:$0xff] %v6313_v63  ;;  %8949 = vst [vmem:[#allocation45_spill] sm:$0xff] %v6316_v60  ;;  %v6319_v48 = vld [vmem:[#allocation4 + $0x168] sm:$0xff]  ;;  %v6322_v10 = vld [vmem:[#allocation4 + $0x178] sm:$0xff] }
 0x3aa   :  { %1734 = vmatprep.subr.mxu0 %v6307_v31  ;;  %1805 = vmatprep.subr.mxu1 %v6310_v30  ;;  %8950 = vst [vmem:[#allocation46_spill] sm:$0xff] %v6319_v48  ;;  %8951 = vst [vmem:[#allocation47_spill] sm:$0xff] %v6322_v10  ;;  %v6325_v31 = vld [vmem:[#allocation4 + $0x160] sm:$0xff]  ;;  %v6328_v30 = vld [vmem:[#allocation4 + $0x170] sm:$0xff] }
 0x3ab   :  { %1735 = vmatpush1.msra.mxu0 %v6313_v63  ;;  %1806 = vmatpush1.msra.mxu1 %v6316_v60  ;;  %8952 = vst [vmem:[#allocation48_spill] sm:$0xff] %v6325_v31  ;;  %8953 = vst [vmem:[#allocation49_spill] sm:$0xff] %v6328_v30  ;;  %v6331_v63 = vld [vmem:[#allocation4 + $0x128] sm:$0xff]  ;;  %v6334_v60 = vld [vmem:[#allocation4 + $0x138] sm:$0xff] }
 0x3ac   :  { %1736 = vmatprep.subr.mxu0 %v6319_v48  ;;  %1807 = vmatprep.subr.mxu1 %v6322_v10  ;;  %8954 = vst [vmem:[#allocation50_spill] sm:$0xff] %v6331_v63  ;;  %8955 = vst [vmem:[#allocation51_spill] sm:$0xff] %v6334_v60  ;;  %v6337_v48 = vld [vmem:[#allocation4 + $0x120] sm:$0xff]  ;;  %v6340_v10 = vld [vmem:[#allocation4 + $0x130] sm:$0xff] }
 0x3ad   :  { %1737 = vmatpush1.msra.mxu0 %v6325_v31  ;;  %1808 = vmatpush1.msra.mxu1 %v6328_v30  ;;  %8956 = vst [vmem:[#allocation52_spill] sm:$0xff] %v6337_v48  ;;  %8957 = vst [vmem:[#allocation53_spill] sm:$0xff] %v6340_v10  ;;  %v6343_v31 = vld [vmem:[#allocation4 + $0xe8] sm:$0xff]  ;;  %v6346_v30 = vld [vmem:[#allocation4 + $0xf8] sm:$0xff] }
 0x3ae   :  { %1738 = vmatprep.subr.mxu0 %v6331_v63  ;;  %1809 = vmatprep.subr.mxu1 %v6334_v60  ;;  %8958 = vst [vmem:[#allocation54_spill] sm:$0xff] %v6343_v31  ;;  %8959 = vst [vmem:[#allocation55_spill] sm:$0xff] %v6346_v30  ;;  %v6349_v63 = vld [vmem:[#allocation4 + $0xe0] sm:$0xff]  ;;  %v6352_v60 = vld [vmem:[#allocation4 + $0xf0] sm:$0xff] }
 0x3af   :  { %1739 = vmatpush1.msra.mxu0 %v6337_v48  ;;  %1810 = vmatpush1.msra.mxu1 %v6340_v10  ;;  %8960 = vst [vmem:[#allocation56_spill] sm:$0xff] %v6349_v63  ;;  %8961 = vst [vmem:[#allocation57_spill] sm:$0xff] %v6352_v60  ;;  %v6355_v48 = vld [vmem:[#allocation4 + $0xa8] sm:$0xff]  ;;  %v6358_v10 = vld [vmem:[#allocation4 + $0xb8] sm:$0xff] }
 0x3b0   :  { %1740 = vmatprep.subr.mxu0 %v6343_v31  ;;  %1811 = vmatprep.subr.mxu1 %v6346_v30  ;;  %8962 = vst [vmem:[#allocation58_spill] sm:$0xff] %v6355_v48  ;;  %8963 = vst [vmem:[#allocation59_spill] sm:$0xff] %v6358_v10  ;;  %v6361_v31 = vld [vmem:[#allocation4 + $0xa0] sm:$0xff]  ;;  %v6364_v30 = vld [vmem:[#allocation4 + $0xb0] sm:$0xff] }
 0x3b1   :  { %1741 = vmatpush1.msra.mxu0 %v6349_v63  ;;  %1812 = vmatpush1.msra.mxu1 %v6352_v60  ;;  %8964 = vst [vmem:[#allocation60_spill] sm:$0xff] %v6361_v31  ;;  %8965 = vst [vmem:[#allocation61_spill] sm:$0xff] %v6364_v30  ;;  %v6367_v63 = vld [vmem:[#allocation4 + $0x68] sm:$0xff]  ;;  %v6370_v60 = vld [vmem:[#allocation4 + $0x78] sm:$0xff] }
 0x3b2   :  { %1742 = vmatprep.subr.mxu0 %v6355_v48  ;;  %1813 = vmatprep.subr.mxu1 %v6358_v10  ;;  %8966 = vst [vmem:[#allocation62_spill] sm:$0xff] %v6367_v63  ;;  %8967 = vst [vmem:[#allocation63_spill] sm:$0xff] %v6370_v60  ;;  %v6373_v48 = vld [vmem:[#allocation4 + $0x60] sm:$0xff]  ;;  %v6376_v10 = vld [vmem:[#allocation4 + $0x70] sm:$0xff] }
 0x3b3   :  { %1743 = vmatpush1.msra.mxu0 %v6361_v31  ;;  %1814 = vmatpush1.msra.mxu1 %v6364_v30  ;;  %8968 = vst [vmem:[#allocation64_spill] sm:$0xff] %v6373_v48  ;;  %8969 = vst [vmem:[#allocation65_spill] sm:$0xff] %v6376_v10  ;;  %v6379_v31 = vld [vmem:[#allocation4 + $0x28] sm:$0xff]  ;;  %v6382_v30 = vld [vmem:[#allocation4 + $0x38] sm:$0xff] }
 0x3b4   :  { %1744 = vmatprep.subr.mxu0 %v6367_v63  ;;  %1815 = vmatprep.subr.mxu1 %v6370_v60  ;;  %8970 = vst [vmem:[#allocation66_spill] sm:$0xff] %v6379_v31  ;;  %8971 = vst [vmem:[#allocation67_spill] sm:$0xff] %v6382_v30  ;;  %v6385_v63 = vld [vmem:[#allocation4 + $0x20] sm:$0xff]  ;;  %v6389_v60 = vld [vmem:[#allocation4 + $0x30] sm:$0xff] }
 0x3b5   :  { %1745 = vmatpush1.msra.mxu0 %v6373_v48  ;;  %1816 = vmatpush1.msra.mxu1 %v6376_v10  ;;  %8972 = vst [vmem:[#allocation68_spill] sm:$0xff] %v6385_v63  ;;  %8973 = vst [vmem:[#allocation69_spill] sm:$0xff] %v6389_v60  ;;  %v6404_v10 = vld [vmem:[#allocation6 + $0x1f0] sm:$0xff] }
 0x3b6   :  { %1746 = vmatprep.subr.mxu0 %v6379_v31  ;;  %1817 = vmatprep.subr.mxu1 %v6382_v30  ;;  %v6395_v31 = vld [vmem:[#allocation6 + $0x1e8] sm:$0xff]  ;;  %v6398_v30 = vld [vmem:[#allocation6 + $0x1f8] sm:$0xff]  ;;  %8977 = vst [vmem:[#allocation73_spill] sm:$0xff] %v6404_v10 }
 0x3b7   :  { %1747 = vmatpush1.msra.mxu0 %v6385_v63  ;;  %1780 = vmatprep.mubr.f32.mxu0 %v8665_v18  ;;  %8974 = vst [vmem:[#allocation70_spill] sm:$0xff] %v6395_v31  ;;  %8975 = vst [vmem:[#allocation71_spill] sm:$0xff] %v6398_v30  ;;  %v6401_v63 = vld [vmem:[#allocation6 + $0x1e0] sm:$0xff] }
 0x3b8   :  { %1818 = vmatpush1.msra.mxu1 %v6389_v60  ;;  %1851 = vmatprep.mubr.f32.mxu1 %v8665_v18  ;;  %8976 = vst [vmem:[#allocation72_spill] sm:$0xff] %v6401_v63  ;;  %v6407_v60 = vld [vmem:[#allocation6 + $0x1c8] sm:$0xff] }
 0x3b9   :  { %1781 = vmatmul.mubr.f32.vlgmr.msra.gmra.mxu0 %v6191_v14  ;;  %1852 = vmatmul.mubr.f32.vlgmr.msra.gmra.mxu1 %v6191_v14  ;;  %8978 = vst [vmem:[#allocation74_spill] sm:$0xff] %v6407_v60  ;;  %v6410_v14 = vld [vmem:[#allocation6 + $0x1d8] sm:$0xff] }
 0x3ba   :  { %1884 = vmatprep.subr.mxu0 %v6395_v31  ;;  %1955 = vmatprep.subr.mxu1 %v6398_v30  ;;  %8979 = vst [vmem:[#allocation75_spill] sm:$0xff] %v6410_v14  ;;  %v6413_v31 = vld [vmem:[#allocation6 + $0x1c0] sm:$0xff]  ;;  %v6416_v30 = vld [vmem:[#allocation6 + $0x1d0] sm:$0xff] }
 0x3bb   :  { %1885 = vmatpush1.msra.mxu0 %v6401_v63  ;;  %1956 = vmatpush1.msra.mxu1 %v6404_v10  ;;  %8980 = vst [vmem:[#allocation76_spill] sm:$0xff] %v6413_v31  ;;  %8981 = vst [vmem:[#allocation77_spill] sm:$0xff] %v6416_v30  ;;  %v6419_v63 = vld [vmem:[#allocation6 + $0x1a8] sm:$0xff]  ;;  %v6422_v10 = vld [vmem:[#allocation6 + $0x1b8] sm:$0xff] }
 0x3bc   :  { %1886 = vmatprep.subr.mxu0 %v6407_v60  ;;  %1957 = vmatprep.subr.mxu1 %v6410_v14  ;;  %8982 = vst [vmem:[#allocation78_spill] sm:$0xff] %v6419_v63  ;;  %8983 = vst [vmem:[#allocation79_spill] sm:$0xff] %v6422_v10  ;;  %v6425_v60 = vld [vmem:[#allocation6 + $0x1a0] sm:$0xff]  ;;  %v6428_v14 = vld [vmem:[#allocation6 + $0x1b0] sm:$0xff] }
 0x3bd   :  { %1887 = vmatpush1.msra.mxu0 %v6413_v31  ;;  %1958 = vmatpush1.msra.mxu1 %v6416_v30  ;;  %8984 = vst [vmem:[#allocation80_spill] sm:$0xff] %v6425_v60  ;;  %8985 = vst [vmem:[#allocation81_spill] sm:$0xff] %v6428_v14  ;;  %v6431_v31 = vld [vmem:[#allocation6 + $0x188] sm:$0xff]  ;;  %v6434_v30 = vld [vmem:[#allocation6 + $0x198] sm:$0xff] }
 0x3be   :  { %1888 = vmatprep.subr.mxu0 %v6419_v63  ;;  %1959 = vmatprep.subr.mxu1 %v6422_v10  ;;  %8986 = vst [vmem:[#allocation82_spill] sm:$0xff] %v6431_v31  ;;  %8987 = vst [vmem:[#allocation83_spill] sm:$0xff] %v6434_v30  ;;  %v6437_v63 = vld [vmem:[#allocation6 + $0x180] sm:$0xff]  ;;  %v6440_v10 = vld [vmem:[#allocation6 + $0x190] sm:$0xff] }
 0x3bf   :  { %1889 = vmatpush1.msra.mxu0 %v6425_v60  ;;  %1960 = vmatpush1.msra.mxu1 %v6428_v14  ;;  %8988 = vst [vmem:[#allocation84_spill] sm:$0xff] %v6437_v63  ;;  %8989 = vst [vmem:[#allocation85_spill] sm:$0xff] %v6440_v10  ;;  %v6443_v60 = vld [vmem:[#allocation6 + $0x168] sm:$0xff]  ;;  %v6446_v14 = vld [vmem:[#allocation6 + $0x178] sm:$0xff] }
 0x3c0   :  { %1890 = vmatprep.subr.mxu0 %v6431_v31  ;;  %1961 = vmatprep.subr.mxu1 %v6434_v30  ;;  %8990 = vst [vmem:[#allocation86_spill] sm:$0xff] %v6443_v60  ;;  %8991 = vst [vmem:[#allocation87_spill] sm:$0xff] %v6446_v14  ;;  %v6449_v31 = vld [vmem:[#allocation6 + $0x160] sm:$0xff]  ;;  %v6452_v30 = vld [vmem:[#allocation6 + $0x170] sm:$0xff] }
 0x3c1   :  { %1891 = vmatpush1.msra.mxu0 %v6437_v63  ;;  %1962 = vmatpush1.msra.mxu1 %v6440_v10  ;;  %8992 = vst [vmem:[#allocation88_spill] sm:$0xff] %v6449_v31  ;;  %8993 = vst [vmem:[#allocation89_spill] sm:$0xff] %v6452_v30  ;;  %v6455_v63 = vld [vmem:[#allocation6 + $0x148] sm:$0xff]  ;;  %v6458_v10 = vld [vmem:[#allocation6 + $0x158] sm:$0xff] }
 0x3c2   :  { %1892 = vmatprep.subr.mxu0 %v6443_v60  ;;  %1963 = vmatprep.subr.mxu1 %v6446_v14  ;;  %8994 = vst [vmem:[#allocation90_spill] sm:$0xff] %v6455_v63  ;;  %8995 = vst [vmem:[#allocation91_spill] sm:$0xff] %v6458_v10  ;;  %v6461_v60 = vld [vmem:[#allocation6 + $0x140] sm:$0xff]  ;;  %v6464_v14 = vld [vmem:[#allocation6 + $0x150] sm:$0xff] }
 0x3c3   :  { %1893 = vmatpush1.msra.mxu0 %v6449_v31  ;;  %1964 = vmatpush1.msra.mxu1 %v6452_v30  ;;  %8996 = vst [vmem:[#allocation92_spill] sm:$0xff] %v6461_v60  ;;  %8997 = vst [vmem:[#allocation93_spill] sm:$0xff] %v6464_v14  ;;  %v6467_v31 = vld [vmem:[#allocation6 + $0x128] sm:$0xff]  ;;  %v6470_v30 = vld [vmem:[#allocation6 + $0x138] sm:$0xff] }
 0x3c4   :  { %1894 = vmatprep.subr.mxu0 %v6455_v63  ;;  %1965 = vmatprep.subr.mxu1 %v6458_v10  ;;  %8998 = vst [vmem:[#allocation94_spill] sm:$0xff] %v6467_v31  ;;  %8999 = vst [vmem:[#allocation95_spill] sm:$0xff] %v6470_v30  ;;  %v6473_v63 = vld [vmem:[#allocation6 + $0x120] sm:$0xff]  ;;  %v6476_v10 = vld [vmem:[#allocation6 + $0x130] sm:$0xff] }
 0x3c5   :  { %1895 = vmatpush1.msra.mxu0 %v6461_v60  ;;  %1966 = vmatpush1.msra.mxu1 %v6464_v14  ;;  %9000 = vst [vmem:[#allocation96_spill] sm:$0xff] %v6473_v63  ;;  %9001 = vst [vmem:[#allocation97_spill] sm:$0xff] %v6476_v10  ;;  %v6479_v60 = vld [vmem:[#allocation6 + $0x108] sm:$0xff]  ;;  %v6482_v14 = vld [vmem:[#allocation6 + $0x118] sm:$0xff] }
 0x3c6   :  { %1896 = vmatprep.subr.mxu0 %v6467_v31  ;;  %1967 = vmatprep.subr.mxu1 %v6470_v30  ;;  %9002 = vst [vmem:[#allocation98_spill] sm:$0xff] %v6479_v60  ;;  %9003 = vst [vmem:[#allocation99_spill] sm:$0xff] %v6482_v14  ;;  %v6485_v31 = vld [vmem:[#allocation6 + $0x100] sm:$0xff]  ;;  %v6488_v30 = vld [vmem:[#allocation6 + $0x110] sm:$0xff] }
 0x3c7   :  { %1897 = vmatpush1.msra.mxu0 %v6473_v63  ;;  %1968 = vmatpush1.msra.mxu1 %v6476_v10  ;;  %9004 = vst [vmem:[#allocation100_spill] sm:$0xff] %v6485_v31  ;;  %9005 = vst [vmem:[#allocation101_spill] sm:$0xff] %v6488_v30  ;;  %v6491_v63 = vld [vmem:[#allocation6 + $0xe8] sm:$0xff]  ;;  %v6494_v10 = vld [vmem:[#allocation6 + $0xf8] sm:$0xff] }
 0x3c8   :  { %1898 = vmatprep.subr.mxu0 %v6479_v60  ;;  %1969 = vmatprep.subr.mxu1 %v6482_v14  ;;  %9006 = vst [vmem:[#allocation102_spill] sm:$0xff] %v6491_v63  ;;  %9007 = vst [vmem:[#allocation103_spill] sm:$0xff] %v6494_v10  ;;  %v6497_v60 = vld [vmem:[#allocation6 + $0xe0] sm:$0xff]  ;;  %v6500_v14 = vld [vmem:[#allocation6 + $0xf0] sm:$0xff] }
 0x3c9   :  { %1899 = vmatpush1.msra.mxu0 %v6485_v31  ;;  %1970 = vmatpush1.msra.mxu1 %v6488_v30  ;;  %9008 = vst [vmem:[#allocation104_spill] sm:$0xff] %v6497_v60  ;;  %9009 = vst [vmem:[#allocation105_spill] sm:$0xff] %v6500_v14  ;;  %v6503_v31 = vld [vmem:[#allocation6 + $0xc8] sm:$0xff]  ;;  %v6506_v30 = vld [vmem:[#allocation6 + $0xd8] sm:$0xff] }
 0x3ca   :  { %1900 = vmatprep.subr.mxu0 %v6491_v63  ;;  %1971 = vmatprep.subr.mxu1 %v6494_v10  ;;  %9010 = vst [vmem:[#allocation106_spill] sm:$0xff] %v6503_v31  ;;  %9011 = vst [vmem:[#allocation107_spill] sm:$0xff] %v6506_v30  ;;  %v6509_v63 = vld [vmem:[#allocation6 + $0xc0] sm:$0xff]  ;;  %v6512_v10 = vld [vmem:[#allocation6 + $0xd0] sm:$0xff] }
 0x3cb   :  { %1901 = vmatpush1.msra.mxu0 %v6497_v60  ;;  %1972 = vmatpush1.msra.mxu1 %v6500_v14  ;;  %9012 = vst [vmem:[#allocation108_spill] sm:$0xff] %v6509_v63  ;;  %9013 = vst [vmem:[#allocation109_spill] sm:$0xff] %v6512_v10  ;;  %v6515_v60 = vld [vmem:[#allocation6 + $0xa8] sm:$0xff]  ;;  %v6518_v14 = vld [vmem:[#allocation6 + $0xb8] sm:$0xff] }
 0x3cc   :  { %1902 = vmatprep.subr.mxu0 %v6503_v31  ;;  %1973 = vmatprep.subr.mxu1 %v6506_v30  ;;  %9014 = vst [vmem:[#allocation110_spill] sm:$0xff] %v6515_v60  ;;  %9015 = vst [vmem:[#allocation111_spill] sm:$0xff] %v6518_v14  ;;  %v6521_v31 = vld [vmem:[#allocation6 + $0xa0] sm:$0xff]  ;;  %v6524_v30 = vld [vmem:[#allocation6 + $0xb0] sm:$0xff] }
 0x3cd   :  { %1903 = vmatpush1.msra.mxu0 %v6509_v63  ;;  %1974 = vmatpush1.msra.mxu1 %v6512_v10  ;;  %9016 = vst [vmem:[#allocation112_spill] sm:$0xff] %v6521_v31  ;;  %9017 = vst [vmem:[#allocation113_spill] sm:$0xff] %v6524_v30  ;;  %v6527_v63 = vld [vmem:[#allocation6 + $0x88] sm:$0xff]  ;;  %v6530_v10 = vld [vmem:[#allocation6 + $0x98] sm:$0xff] }
 0x3ce   :  { %1904 = vmatprep.subr.mxu0 %v6515_v60  ;;  %1975 = vmatprep.subr.mxu1 %v6518_v14  ;;  %9018 = vst [vmem:[#allocation114_spill] sm:$0xff] %v6527_v63  ;;  %9019 = vst [vmem:[#allocation115_spill] sm:$0xff] %v6530_v10  ;;  %v6533_v60 = vld [vmem:[#allocation6 + $0x80] sm:$0xff]  ;;  %v6536_v14 = vld [vmem:[#allocation6 + $0x90] sm:$0xff] }
 0x3cf   :  { %1905 = vmatpush1.msra.mxu0 %v6521_v31  ;;  %1976 = vmatpush1.msra.mxu1 %v6524_v30  ;;  %9020 = vst [vmem:[#allocation116_spill] sm:$0xff] %v6533_v60  ;;  %9021 = vst [vmem:[#allocation117_spill] sm:$0xff] %v6536_v14  ;;  %v6539_v31 = vld [vmem:[#allocation6 + $0x68] sm:$0xff]  ;;  %v6542_v30 = vld [vmem:[#allocation6 + $0x78] sm:$0xff] }
 0x3d0   :  { %1906 = vmatprep.subr.mxu0 %v6527_v63  ;;  %1977 = vmatprep.subr.mxu1 %v6530_v10  ;;  %9022 = vst [vmem:[#allocation118_spill] sm:$0xff] %v6539_v31  ;;  %9023 = vst [vmem:[#allocation119_spill] sm:$0xff] %v6542_v30  ;;  %v6545_v63 = vld [vmem:[#allocation6 + $0x60] sm:$0xff]  ;;  %v6548_v10 = vld [vmem:[#allocation6 + $0x70] sm:$0xff] }
 0x3d1   :  { %1907 = vmatpush1.msra.mxu0 %v6533_v60  ;;  %1978 = vmatpush1.msra.mxu1 %v6536_v14  ;;  %9024 = vst [vmem:[#allocation120_spill] sm:$0xff] %v6545_v63  ;;  %9025 = vst [vmem:[#allocation121_spill] sm:$0xff] %v6548_v10  ;;  %v6551_v60 = vld [vmem:[#allocation6 + $0x48] sm:$0xff]  ;;  %v6554_v14 = vld [vmem:[#allocation6 + $0x58] sm:$0xff] }
 0x3d2   :  { %1908 = vmatprep.subr.mxu0 %v6539_v31  ;;  %1979 = vmatprep.subr.mxu1 %v6542_v30  ;;  %9026 = vst [vmem:[#allocation122_spill] sm:$0xff] %v6551_v60  ;;  %9027 = vst [vmem:[#allocation123_spill] sm:$0xff] %v6554_v14  ;;  %v6557_v31 = vld [vmem:[#allocation6 + $0x40] sm:$0xff]  ;;  %v6560_v30 = vld [vmem:[#allocation6 + $0x50] sm:$0xff] }
 0x3d3   :  { %1909 = vmatpush1.msra.mxu0 %v6545_v63  ;;  %1980 = vmatpush1.msra.mxu1 %v6548_v10  ;;  %9028 = vst [vmem:[#allocation124_spill] sm:$0xff] %v6557_v31  ;;  %9029 = vst [vmem:[#allocation125_spill] sm:$0xff] %v6560_v30  ;;  %v6563_v63 = vld [vmem:[#allocation6 + $0x28] sm:$0xff]  ;;  %v6566_v10 = vld [vmem:[#allocation6 + $0x38] sm:$0xff] }
 0x3d4   :  { %1910 = vmatprep.subr.mxu0 %v6551_v60  ;;  %1981 = vmatprep.subr.mxu1 %v6554_v14  ;;  %9030 = vst [vmem:[#allocation126_spill] sm:$0xff] %v6563_v63  ;;  %9031 = vst [vmem:[#allocation127_spill] sm:$0xff] %v6566_v10  ;;  %v6569_v60 = vld [vmem:[#allocation6 + $0x20] sm:$0xff]  ;;  %v6572_v14 = vld [vmem:[#allocation6 + $0x30] sm:$0xff] }
 0x3d5   :  { %1911 = vmatpush1.msra.mxu0 %v6557_v31  ;;  %1982 = vmatpush1.msra.mxu1 %v6560_v30  ;;  %9032 = vst [vmem:[#allocation128_spill] sm:$0xff] %v6569_v60  ;;  %9033 = vst [vmem:[#allocation129_spill] sm:$0xff] %v6572_v14  ;;  %v6575_v31 = vld [vmem:[#allocation6 + $0x8] sm:$0xff]  ;;  %v6578_v30 = vld [vmem:[#allocation6 + $0x18] sm:$0xff] }
 0x3d6   :  { %1912 = vmatprep.subr.mxu0 %v6563_v63  ;;  %1983 = vmatprep.subr.mxu1 %v6566_v10  ;;  %9034 = vst [vmem:[#allocation130_spill] sm:$0xff] %v6575_v31  ;;  %9035 = vst [vmem:[#allocation131_spill] sm:$0xff] %v6578_v30  ;;  %v6581_v63 = vld [vmem:[#allocation6] sm:$0xff]  ;;  %v6584_v10 = vld [vmem:[#allocation6 + $0x10] sm:$0xff] }
 0x3d7   :  { %1913 = vmatpush1.msra.mxu0 %v6569_v60  ;;  %1984 = vmatpush1.msra.mxu1 %v6572_v14  ;;  %9036 = vst [vmem:[#allocation132_spill] sm:$0xff] %v6581_v63  ;;  %9037 = vst [vmem:[#allocation133_spill] sm:$0xff] %v6584_v10 }
 0x3d8   :  { %1914 = vmatprep.subr.mxu0 %v6575_v31  ;;  %1985 = vmatprep.subr.mxu1 %v6578_v30  ;;  %v9038_v30 = vld [vmem:[#allocation138_spill] sm:$0xff] }
 0x3d9   :  { %1915 = vmatpush1.msra.mxu0 %v6581_v63  ;;  %1986 = vmatpush1.msra.mxu1 %v6584_v10  ;;  %v249_v48 = vadd.f32 %v9038_v30, %v5278_v20 }
 0x3da   :  { %1948 = vmatprep.mubr.f32.mxu0 %v8665_v18  ;;  %2019 = vmatprep.mubr.f32.mxu1 %v8665_v18 }
 0x3db   :  { %2048 = vmatprep.subr.mxu0 %v6053_v46  ;;  %2119 = vmatprep.subr.mxu1 %v6056_v47 }
 0x436   :  { %v1476_v31 = vpop.f32.mrf.mxu0  ;;  %v1547_v14 = vpop.f32.mrf.mxu1 }
 0x438   :  { %v1478_v60 = vpop.f32.mrf.mxu0  ;;  %v1549_v21 = vpop.f32.mrf.mxu1 }
 0x457   :  { %v1640_v63 = vpop.f32.mrf.mxu0  ;;  %v1711_v36 = vpop.f32.mrf.mxu1 }
 0x458   :  { %v2026_v10 = vadd.f32 %v1640_v63, %v249_v48  ;;  %v2028_v47 = vadd.f32 %v1711_v36, %v362_v37 }
 0x459   :  { %v1642_v41 = vpop.f32.mrf.mxu0  ;;  %v1713_v24 = vpop.f32.mrf.mxu1 }
 0x45a   :  { %v2030_v46 = vmul.f32 0.5, %v2026_v10  ;;  %v2027_v4 = vadd.f32 %v1642_v41, %v251_v16 }
 0x45c   :  { %4324 = vtanh.f32 %v2030_v46  ;;  %v2034_v15 = vmul.f32 0.5, %v2027_v4 }
 0x45e   :  { %4326 = vtanh.f32 %v2034_v15 }
 0x45f   :  { %4328 = vtanh.f32 %v2028_v47 }
 0x469   :  { %v4325_v40 = vpop.eup %4324 }
 0x46a   :  { %v2032_v30 = vmul.f32 0.5, %v4325_v40 }
 0x46b   :  { %v4327_v20 = vpop.eup %4326 }
 0x46c   :  { %v2033_v42 = vadd.f32 0.5, %v2032_v30  ;;  %v2036_v59 = vmul.f32 0.5, %v4327_v20  ;;  %v4329_v58 = vpop.eup %4328 }
 0x46e   :  { %v2037_v35 = vadd.f32 0.5, %v2036_v59  ;;  %v2044_v63 = vmul.f32 %v4329_v58, %v2033_v42 }
 0x470   :  { %v2043_v48 = vmul.f32 %v2037_v35, %v6066_v27 }
 0x472   :  { %v6598_v22 = vadd.f32 %v2044_v63, %v2043_v48 }
 0x479   :  { %v1782_v10 = vpop.f32.mrf.mxu0  ;;  %v1853_v16 = vpop.f32.mrf.mxu1 }
 0x47a   :  { %v1858_v41 = vadd.f32 %v1782_v10, %v1476_v31  ;;  %v1860_v40 = vadd.f32 %v1853_v16, %v1547_v14 }
 0x47b   :  { %v1784_v37 = vpop.f32.mrf.mxu0  ;;  %v1855_v59 = vpop.f32.mrf.mxu1 }
 0x47c   :  { %v1862_v15 = vadd.f32 %v1858_v41, %v8899_v57  ;;  %v1859_v4 = vadd.f32 %v1784_v37, %v1478_v60  ;;  %v1864_v58 = vadd.f32 %v1860_v40, %v8901_v5  ;;  %v1861_v27 = vadd.f32 %v1855_v59, %v1549_v21  ;;  %v9041_v40 = vld [vmem:[#allocation141_spill] sm:$0xff] }
 0x47d   :  { %v6610_v59 = vld [vmem:[#allocation4 + $0x3c0] sm:$0xff] }
 0x47e   :  { %v1866_v36 = vmul.f32 0.5, %v1862_v15  ;;  %v1863_v46 = vadd.f32 %v1859_v4, %v8900_v61  ;;  %v1865_v42 = vadd.f32 %v1861_v27, %v5763_v34  ;;  %v6619_v27 = vld [vmem:[#allocation4 + $0x398] sm:$0xff] }
 0x480   :  { %4330 = vtanh.f32 %v1866_v36  ;;  %v1870_v20 = vmul.f32 0.5, %v1863_v46  ;;  %v1875_v31 = vmul.f32 0.5, %v1865_v42  ;;  %v364_v46 = vadd.f32 %v9041_v40, %v5295_v33  ;;  %v6622_v42 = vld [vmem:[#allocation4 + $0x380] sm:$0xff] }
 0x481   :  { %v6670_v40 = vld [vmem:[#allocation4 + $0x280] sm:$0xff] }
 0x482   :  { %4332 = vtanh.f32 %v1870_v20  ;;  %v2029_v20 = vadd.f32 %v1713_v24, %v364_v46  ;;  %v6625_v24 = vld [vmem:[#allocation4 + $0x390] sm:$0xff]  ;;  %9044 = vst [vmem:[#allocation135_spill] sm:$0xff] %v6670_v40 }
 0x483   :  { %4334 = vtanh.f32 %v1864_v58  ;;  %v6616_v58 = vld [vmem:[#allocation4 + $0x388] sm:$0xff]  ;;  %v6673_v46 = vld [vmem:[#allocation4 + $0x290] sm:$0xff] }
 0x484   :  { %4336 = vtanh.f32 %v1875_v31  ;;  %v6628_v31 = vld [vmem:[#allocation4 + $0x348] sm:$0xff]  ;;  %9045 = vst [vmem:[#allocation158_spill] sm:$0xff] %v6673_v46 }
 0x48d   :  { %v4331_v47 = vpop.eup %4330 }
 0x48e   :  { %v1868_v30 = vmul.f32 0.5, %v4331_v47  ;;  %v6631_v47 = vld [vmem:[#allocation4 + $0x358] sm:$0xff] }
 0x48f   :  { %v4333_v35 = vpop.eup %4332 }
 0x490   :  { %v1869_v63 = vadd.f32 0.5, %v1868_v30  ;;  %v1872_v60 = vmul.f32 0.5, %v4333_v35  ;;  %v4335_v48 = vpop.eup %4334  ;;  %v2039_v30 = vmul.f32 0.5, %v2029_v20  ;;  %v6634_v35 = vld [vmem:[#allocation4 + $0x340] sm:$0xff]  ;;  %v6676_v20 = vld [vmem:[#allocation4 + $0x248] sm:$0xff] }
 0x491   :  { %v4337_v21 = vpop.eup %4336  ;;  %9046 = vst [vmem:[#allocation159_spill] sm:$0xff] %v6676_v20 }
 0x492   :  { %v1873_v14 = vadd.f32 0.5, %v1872_v60  ;;  %v1880_v41 = vmul.f32 %v4335_v48, %v1869_v63  ;;  %v1877_v37 = vmul.f32 0.5, %v4337_v21  ;;  %v6637_v63 = vld [vmem:[#allocation4 + $0x350] sm:$0xff]  ;;  %v6640_v60 = vld [vmem:[#allocation4 + $0x308] sm:$0xff]  ;;  %v6646_v48 = vld [vmem:[#allocation4 + $0x300] sm:$0xff] }
 0x493   :  { %v6655_v21 = vld [vmem:[#allocation4 + $0x2d8] sm:$0xff] }
 0x494   :  { %v1879_v10 = vmul.f32 %v1873_v14, %v6073_v26  ;;  %v1878_v15 = vadd.f32 0.5, %v1877_v37  ;;  %v6613_v26 = vld [vmem:[#allocation4 + $0x3d0] sm:$0xff]  ;;  %v6643_v14 = vld [vmem:[#allocation4 + $0x318] sm:$0xff]  ;;  %v6658_v37 = vld [vmem:[#allocation4 + $0x2c0] sm:$0xff] }
 0x496   :  { %v6605_v16 = vadd.f32 %v1880_v41, %v1879_v10  ;;  %v6649_v10 = vld [vmem:[#allocation4 + $0x310] sm:$0xff]  ;;  %v6652_v41 = vld [vmem:[#allocation4 + $0x2c8] sm:$0xff] }
 0x498   :  { %4338 = vtanh.f32 %v6605_v16 }
 0x499   :  { %4340 = vtanh.f32 %v2039_v30  ;;  %v6679_v30 = vld [vmem:[#allocation4 + $0x258] sm:$0xff] }
 0x49a   :  { %9047 = vst [vmem:[#allocation160_spill] sm:$0xff] %v6679_v30  ;;  %4342 = vtanh.f32 %v6598_v22 }
 0x4a5   :  { %v4339_v4 = vpop.eup %4338 }
 0x4a6   :  { %v1883_v36 = vmul.f32 %v4339_v4, %v1878_v15  ;;  %v6661_v15 = vld [vmem:[#allocation4 + $0x2d0] sm:$0xff]  ;;  %v6664_v4 = vld [vmem:[#allocation4 + $0x288] sm:$0xff] }
 0x4a7   :  { %9042 = vst [vmem:[#allocation134_spill] sm:$0xff] %v6664_v4 }
 0x4a8   :  { %1949 = vmatmul.mubr.f32.vlgmr.msra.gmra.mxu0 %v1883_v36  ;;  %2020 = vmatmul.mubr.f32.vlgmr.msra.gmra.mxu1 %v1883_v36  ;;  %v6667_v36 = vld [vmem:[#allocation4 + $0x298] sm:$0xff] }
 0x4a9   :  { %2049 = vmatpush1.msra.mxu0 %v6610_v59  ;;  %2120 = vmatpush1.msra.mxu1 %v6613_v26  ;;  %9043 = vst [vmem:[#allocation136_spill] sm:$0xff] %v6667_v36 }
 0x4aa   :  { %2050 = vmatprep.subr.mxu0 %v6616_v58  ;;  %2121 = vmatprep.subr.mxu1 %v6619_v27 }
 0x4ab   :  { %2051 = vmatpush1.msra.mxu0 %v6622_v42  ;;  %2122 = vmatpush1.msra.mxu1 %v6625_v24 }
 0x4ac   :  { %2052 = vmatprep.subr.mxu0 %v6628_v31  ;;  %2123 = vmatprep.subr.mxu1 %v6631_v47 }
 0x4ad   :  { %2053 = vmatpush1.msra.mxu0 %v6634_v35  ;;  %2124 = vmatpush1.msra.mxu1 %v6637_v63 }
 0x4ae   :  { %2054 = vmatprep.subr.mxu0 %v6640_v60  ;;  %2125 = vmatprep.subr.mxu1 %v6643_v14 }
 0x4af   :  { %2055 = vmatpush1.msra.mxu0 %v6646_v48  ;;  %2126 = vmatpush1.msra.mxu1 %v6649_v10 }
 0x4b0   :  { %2056 = vmatprep.subr.mxu0 %v6652_v41  ;;  %2127 = vmatprep.subr.mxu1 %v6655_v21 }
 0x4b1   :  { %2057 = vmatpush1.msra.mxu0 %v6658_v37  ;;  %2128 = vmatpush1.msra.mxu1 %v6661_v15 }
 0x4b2   :  { %2058 = vmatprep.subr.mxu0 %v6664_v4  ;;  %2129 = vmatprep.subr.mxu1 %v6667_v36  ;;  %v6682_v4 = vld [vmem:[#allocation4 + $0x240] sm:$0xff]  ;;  %v6685_v36 = vld [vmem:[#allocation4 + $0x250] sm:$0xff] }
 0x4b3   :  { %2059 = vmatpush1.msra.mxu0 %v6670_v40  ;;  %2130 = vmatpush1.msra.mxu1 %v6673_v46  ;;  %9048 = vst [vmem:[#allocation137_spill] sm:$0xff] %v6682_v4  ;;  %9049 = vst [vmem:[#allocation161_spill] sm:$0xff] %v6685_v36  ;;  %v6688_v40 = vld [vmem:[#allocation4 + $0x208] sm:$0xff]  ;;  %v6691_v46 = vld [vmem:[#allocation4 + $0x218] sm:$0xff] }
 0x4b4   :  { %2060 = vmatprep.subr.mxu0 %v6676_v20  ;;  %2131 = vmatprep.subr.mxu1 %v6679_v30  ;;  %9050 = vst [vmem:[#allocation162_spill] sm:$0xff] %v6688_v40  ;;  %9051 = vst [vmem:[#allocation163_spill] sm:$0xff] %v6691_v46  ;;  %v6695_v20 = vld [vmem:[#allocation4 + $0x200] sm:$0xff]  ;;  %v6698_v30 = vld [vmem:[#allocation4 + $0x210] sm:$0xff] }
 0x4b5   :  { %2061 = vmatpush1.msra.mxu0 %v6682_v4  ;;  %2132 = vmatpush1.msra.mxu1 %v6685_v36  ;;  %9052 = vst [vmem:[#allocation164_spill] sm:$0xff] %v6695_v20  ;;  %9053 = vst [vmem:[#allocation165_spill] sm:$0xff] %v6698_v30  ;;  %v6701_v4 = vld [vmem:[#allocation4 + $0x1c8] sm:$0xff]  ;;  %v6704_v36 = vld [vmem:[#allocation4 + $0x1d8] sm:$0xff] }
 0x4b6   :  { %2062 = vmatprep.subr.mxu0 %v6688_v40  ;;  %2133 = vmatprep.subr.mxu1 %v6691_v46  ;;  %v6707_v40 = vld [vmem:[#allocation4 + $0x1c0] sm:$0xff]  ;;  %v6710_v46 = vld [vmem:[#allocation4 + $0x1d0] sm:$0xff] }
 0x4b7   :  { %2063 = vmatpush1.msra.mxu0 %v6695_v20  ;;  %2134 = vmatpush1.msra.mxu1 %v6698_v30  ;;  %9054 = vst [vmem:[#allocation166_spill] sm:$0xff] %v6710_v46  ;;  %v6713_v20 = vld [vmem:[#allocation4 + $0x188] sm:$0xff]  ;;  %v6716_v30 = vld [vmem:[#allocation4 + $0x198] sm:$0xff] }
 0x4b8   :  { %2064 = vmatprep.subr.mxu0 %v6701_v4  ;;  %2135 = vmatprep.subr.mxu1 %v6704_v36 }
 0x4b9   :  { %2065 = vmatpush1.msra.mxu0 %v6707_v40  ;;  %2136 = vmatpush1.msra.mxu1 %v6710_v46  ;;  %v4341_v46 = vpop.eup %4340 }
 0x4ba   :  { %2066 = vmatprep.subr.mxu0 %v6713_v20  ;;  %2137 = vmatprep.subr.mxu1 %v6716_v30 }
 0x4bb   :  { %2067 = vmatpush1.msra.mxu0 %v6115_v32  ;;  %2138 = vmatpush1.msra.mxu1 %v6118_v45  ;;  %v2041_v32 = vmul.f32 0.5, %v4341_v46  ;;  %v4343_v45 = vpop.eup %4342  ;;  %v9082_v46 = vld [vmem:[#allocation38_spill] sm:$0xff] }
 0x4bc   :  { %2068 = vmatprep.subr.mxu0 %v6121_v17  ;;  %2139 = vmatprep.subr.mxu1 %v6124_v39 }
 0x4bd   :  { %2069 = vmatpush1.msra.mxu0 %v6127_v54  ;;  %2140 = vmatpush1.msra.mxu1 %v6130_v43  ;;  %v2042_v17 = vadd.f32 0.5, %v2041_v32  ;;  %v9055_v54 = vld [vmem:[#allocation11_spill] sm:$0xff]  ;;  %v9056_v43 = vld [vmem:[#allocation12_spill] sm:$0xff] }
 0x4be   :  { %2070 = vmatprep.subr.mxu0 %v6133_v29  ;;  %2141 = vmatprep.subr.mxu1 %v6136_v0  ;;  %v9057_v29 = vld [vmem:[#allocation13_spill] sm:$0xff]  ;;  %v9058_v0 = vld [vmem:[#allocation14_spill] sm:$0xff]  ;;  %v9083_v32 = vld [vmem:[#allocation39_spill] sm:$0xff] }
 0x4bf   :  { %2071 = vmatpush1.msra.mxu0 %v6139_v3  ;;  %2142 = vmatpush1.msra.mxu1 %v6142_v44  ;;  %v6745_v39 = vmul.f32 %v4343_v45, %v2042_v17  ;;  %v9059_v3 = vld [vmem:[#allocation15_spill] sm:$0xff]  ;;  %v9060_v44 = vld [vmem:[#allocation16_spill] sm:$0xff]  ;;  %v9085_v17 = vld [vmem:[#allocation41_spill] sm:$0xff] }
 0x4c0   :  { %2072 = vmatprep.subr.mxu0 %v6145_v38  ;;  %2143 = vmatprep.subr.mxu1 %v6148_v28  ;;  %v9061_v38 = vld [vmem:[#allocation17_spill] sm:$0xff]  ;;  %v9062_v28 = vld [vmem:[#allocation18_spill] sm:$0xff]  ;;  %v9084_v45 = vld [vmem:[#allocation40_spill] sm:$0xff] }
 0x4c1   :  { %2073 = vmatpush1.msra.mxu0 %v6151_v62  ;;  %2144 = vmatpush1.msra.mxu1 %v6154_v1  ;;  %v9063_v62 = vld [vmem:[#allocation19_spill] sm:$0xff]  ;;  %v9064_v1 = vld [vmem:[#allocation20_spill] sm:$0xff] }
 0x4c2   :  { %2074 = vmatprep.subr.mxu0 %v6157_v2  ;;  %2145 = vmatprep.subr.mxu1 %v6160_v6  ;;  %v9065_v2 = vld [vmem:[#allocation21_spill] sm:$0xff]  ;;  %v9066_v6 = vld [vmem:[#allocation22_spill] sm:$0xff] }
 0x4c3   :  { %2075 = vmatpush1.msra.mxu0 %v6163_v19  ;;  %2146 = vmatpush1.msra.mxu1 %v6166_v7  ;;  %v9067_v19 = vld [vmem:[#allocation23_spill] sm:$0xff]  ;;  %v9068_v7 = vld [vmem:[#allocation24_spill] sm:$0xff] }
 0x4c4   :  { %2076 = vmatprep.subr.mxu0 %v6169_v8  ;;  %2147 = vmatprep.subr.mxu1 %v6172_v9  ;;  %v9069_v8 = vld [vmem:[#allocation25_spill] sm:$0xff]  ;;  %v9070_v9 = vld [vmem:[#allocation26_spill] sm:$0xff] }
 0x4c5   :  { %2077 = vmatpush1.msra.mxu0 %v6175_v11  ;;  %2148 = vmatpush1.msra.mxu1 %v6178_v51  ;;  %v9071_v11 = vld [vmem:[#allocation27_spill] sm:$0xff]  ;;  %v9072_v51 = vld [vmem:[#allocation28_spill] sm:$0xff] }
 0x4c6   :  { %2078 = vmatprep.subr.mxu0 %v6181_v50  ;;  %2149 = vmatprep.subr.mxu1 %v6184_v12  ;;  %v9073_v50 = vld [vmem:[#allocation29_spill] sm:$0xff]  ;;  %v9074_v12 = vld [vmem:[#allocation30_spill] sm:$0xff] }
 0x4c7   :  { %2079 = vmatpush1.msra.mxu0 %v6187_v13  ;;  %2112 = vmatprep.mubr.f32.mxu0 %v8665_v18  ;;  %v9075_v13 = vld [vmem:[#allocation31_spill] sm:$0xff] }
 0x4c8   :  { %2150 = vmatpush1.msra.mxu1 %v6193_v55  ;;  %2183 = vmatprep.mubr.f32.mxu1 %v8665_v18  ;;  %v9076_v55 = vld [vmem:[#allocation32_spill] sm:$0xff] }
 0x4c9   :  { %2113 = vmatmul.mubr.f32.vlgmr.msra.gmra.mxu0 %v6745_v39  ;;  %2184 = vmatmul.mubr.f32.vlgmr.msra.gmra.mxu1 %v6745_v39 }
 0x4ca   :  { %2190 = vmatprep.subr.mxu0 %v6199_v23  ;;  %2261 = vmatprep.subr.mxu1 %v6202_v52  ;;  %v9077_v23 = vld [vmem:[#allocation33_spill] sm:$0xff]  ;;  %v9078_v52 = vld [vmem:[#allocation34_spill] sm:$0xff] }
 0x4cb   :  { %2191 = vmatpush1.msra.mxu0 %v6205_v53  ;;  %2262 = vmatpush1.msra.mxu1 %v6208_v56  ;;  %v9079_v53 = vld [vmem:[#allocation35_spill] sm:$0xff]  ;;  %v9080_v56 = vld [vmem:[#allocation36_spill] sm:$0xff] }
 0x4cc   :  { %2192 = vmatprep.subr.mxu0 %v6211_v49  ;;  %2263 = vmatprep.subr.mxu1 %v9055_v54  ;;  %v9081_v49 = vld [vmem:[#allocation37_spill] sm:$0xff]  ;;  %v9086_v54 = vld [vmem:[#allocation42_spill] sm:$0xff] }
 0x4cd   :  { %2193 = vmatpush1.msra.mxu0 %v9056_v43  ;;  %2264 = vmatpush1.msra.mxu1 %v9057_v29  ;;  %v9087_v43 = vld [vmem:[#allocation43_spill] sm:$0xff]  ;;  %v9088_v29 = vld [vmem:[#allocation44_spill] sm:$0xff] }
 0x4ce   :  { %2194 = vmatprep.subr.mxu0 %v9058_v0  ;;  %2265 = vmatprep.subr.mxu1 %v9059_v3  ;;  %v9089_v0 = vld [vmem:[#allocation45_spill] sm:$0xff]  ;;  %v9090_v3 = vld [vmem:[#allocation46_spill] sm:$0xff] }
 0x4cf   :  { %2195 = vmatpush1.msra.mxu0 %v9060_v44  ;;  %2266 = vmatpush1.msra.mxu1 %v9061_v38  ;;  %v9091_v44 = vld [vmem:[#allocation47_spill] sm:$0xff]  ;;  %v9092_v38 = vld [vmem:[#allocation48_spill] sm:$0xff] }
 0x4d0   :  { %2196 = vmatprep.subr.mxu0 %v9062_v28  ;;  %2267 = vmatprep.subr.mxu1 %v9063_v62  ;;  %v9093_v28 = vld [vmem:[#allocation49_spill] sm:$0xff]  ;;  %v9094_v62 = vld [vmem:[#allocation50_spill] sm:$0xff] }
 0x4d1   :  { %2197 = vmatpush1.msra.mxu0 %v9064_v1  ;;  %2268 = vmatpush1.msra.mxu1 %v9065_v2  ;;  %v9095_v1 = vld [vmem:[#allocation51_spill] sm:$0xff]  ;;  %v9096_v2 = vld [vmem:[#allocation52_spill] sm:$0xff] }
 0x4d2   :  { %2198 = vmatprep.subr.mxu0 %v9066_v6  ;;  %2269 = vmatprep.subr.mxu1 %v9067_v19  ;;  %v9097_v6 = vld [vmem:[#allocation53_spill] sm:$0xff]  ;;  %v9098_v19 = vld [vmem:[#allocation54_spill] sm:$0xff] }
 0x4d3   :  { %2199 = vmatpush1.msra.mxu0 %v9068_v7  ;;  %2270 = vmatpush1.msra.mxu1 %v9069_v8  ;;  %v9099_v7 = vld [vmem:[#allocation55_spill] sm:$0xff]  ;;  %v9100_v8 = vld [vmem:[#allocation56_spill] sm:$0xff] }
 0x4d4   :  { %2200 = vmatprep.subr.mxu0 %v9070_v9  ;;  %2271 = vmatprep.subr.mxu1 %v9071_v11  ;;  %v9101_v9 = vld [vmem:[#allocation57_spill] sm:$0xff]  ;;  %v9102_v11 = vld [vmem:[#allocation58_spill] sm:$0xff] }
 0x4d5   :  { %2201 = vmatpush1.msra.mxu0 %v9072_v51  ;;  %2272 = vmatpush1.msra.mxu1 %v9073_v50  ;;  %v9103_v51 = vld [vmem:[#allocation59_spill] sm:$0xff]  ;;  %v9104_v50 = vld [vmem:[#allocation60_spill] sm:$0xff] }
 0x4d6   :  { %2202 = vmatprep.subr.mxu0 %v9074_v12  ;;  %2273 = vmatprep.subr.mxu1 %v9075_v13  ;;  %v9105_v12 = vld [vmem:[#allocation61_spill] sm:$0xff]  ;;  %v9106_v13 = vld [vmem:[#allocation62_spill] sm:$0xff] }
 0x4d7   :  { %2203 = vmatpush1.msra.mxu0 %v9076_v55  ;;  %2274 = vmatpush1.msra.mxu1 %v9077_v23  ;;  %v9107_v55 = vld [vmem:[#allocation63_spill] sm:$0xff]  ;;  %v9108_v23 = vld [vmem:[#allocation64_spill] sm:$0xff] }
 0x4d8   :  { %2204 = vmatprep.subr.mxu0 %v9078_v52  ;;  %2275 = vmatprep.subr.mxu1 %v9079_v53  ;;  %v9109_v52 = vld [vmem:[#allocation65_spill] sm:$0xff]  ;;  %v9110_v53 = vld [vmem:[#allocation66_spill] sm:$0xff] }
 0x4d9   :  { %2205 = vmatpush1.msra.mxu0 %v9080_v56  ;;  %2276 = vmatpush1.msra.mxu1 %v9081_v49  ;;  %v9111_v56 = vld [vmem:[#allocation67_spill] sm:$0xff]  ;;  %v9112_v49 = vld [vmem:[#allocation68_spill] sm:$0xff] }
 0x4da   :  { %2206 = vmatprep.subr.mxu0 %v9082_v46  ;;  %2277 = vmatprep.subr.mxu1 %v9083_v32  ;;  %v9113_v46 = vld [vmem:[#allocation69_spill] sm:$0xff]  ;;  %v9114_v32 = vld [vmem:[#allocation70_spill] sm:$0xff] }
 0x4db   :  { %2207 = vmatpush1.msra.mxu0 %v9084_v45  ;;  %2278 = vmatpush1.msra.mxu1 %v9085_v17  ;;  %v9115_v45 = vld [vmem:[#allocation71_spill] sm:$0xff]  ;;  %v9116_v17 = vld [vmem:[#allocation72_spill] sm:$0xff] }
 0x4dc   :  { %2208 = vmatprep.subr.mxu0 %v9086_v54  ;;  %2279 = vmatprep.subr.mxu1 %v9087_v43  ;;  %v9117_v54 = vld [vmem:[#allocation73_spill] sm:$0xff]  ;;  %v9118_v43 = vld [vmem:[#allocation74_spill] sm:$0xff] }
 0x4dd   :  { %2209 = vmatpush1.msra.mxu0 %v9088_v29  ;;  %2280 = vmatpush1.msra.mxu1 %v9089_v0  ;;  %v9119_v29 = vld [vmem:[#allocation75_spill] sm:$0xff]  ;;  %v9120_v0 = vld [vmem:[#allocation76_spill] sm:$0xff] }
 0x4de   :  { %2210 = vmatprep.subr.mxu0 %v9090_v3  ;;  %2281 = vmatprep.subr.mxu1 %v9091_v44  ;;  %v9121_v3 = vld [vmem:[#allocation77_spill] sm:$0xff]  ;;  %v9122_v44 = vld [vmem:[#allocation78_spill] sm:$0xff] }
 0x4df   :  { %2211 = vmatpush1.msra.mxu0 %v9092_v38  ;;  %2282 = vmatpush1.msra.mxu1 %v9093_v28  ;;  %v9123_v38 = vld [vmem:[#allocation79_spill] sm:$0xff]  ;;  %v9125_v28 = vld [vmem:[#allocation81_spill] sm:$0xff] }
 0x4e0   :  { %2212 = vmatprep.subr.mxu0 %v9094_v62  ;;  %2283 = vmatprep.subr.mxu1 %v9095_v1  ;;  %v9126_v62 = vld [vmem:[#allocation82_spill] sm:$0xff]  ;;  %v9127_v1 = vld [vmem:[#allocation83_spill] sm:$0xff] }
 0x4e1   :  { %2213 = vmatpush1.msra.mxu0 %v9096_v2  ;;  %2284 = vmatpush1.msra.mxu1 %v9097_v6  ;;  %v9128_v2 = vld [vmem:[#allocation84_spill] sm:$0xff]  ;;  %v9129_v6 = vld [vmem:[#allocation85_spill] sm:$0xff] }
 0x4e2   :  { %2214 = vmatprep.subr.mxu0 %v9098_v19  ;;  %2285 = vmatprep.subr.mxu1 %v9099_v7  ;;  %v9130_v19 = vld [vmem:[#allocation86_spill] sm:$0xff]  ;;  %v9131_v7 = vld [vmem:[#allocation87_spill] sm:$0xff] }
 0x4e3   :  { %2215 = vmatpush1.msra.mxu0 %v9100_v8  ;;  %2286 = vmatpush1.msra.mxu1 %v9101_v9  ;;  %v9132_v8 = vld [vmem:[#allocation88_spill] sm:$0xff]  ;;  %v9133_v9 = vld [vmem:[#allocation89_spill] sm:$0xff] }
 0x4e4   :  { %2216 = vmatprep.subr.mxu0 %v9102_v11  ;;  %2287 = vmatprep.subr.mxu1 %v9103_v51  ;;  %v9134_v11 = vld [vmem:[#allocation90_spill] sm:$0xff]  ;;  %v9135_v51 = vld [vmem:[#allocation91_spill] sm:$0xff] }
 0x4e5   :  { %2217 = vmatpush1.msra.mxu0 %v9104_v50  ;;  %2288 = vmatpush1.msra.mxu1 %v9105_v12  ;;  %v9136_v50 = vld [vmem:[#allocation92_spill] sm:$0xff]  ;;  %v9137_v12 = vld [vmem:[#allocation93_spill] sm:$0xff] }
 0x4e6   :  { %2218 = vmatprep.subr.mxu0 %v9106_v13  ;;  %2289 = vmatprep.subr.mxu1 %v9107_v55  ;;  %v9138_v13 = vld [vmem:[#allocation94_spill] sm:$0xff]  ;;  %v9139_v55 = vld [vmem:[#allocation95_spill] sm:$0xff] }
 0x4e7   :  { %2219 = vmatpush1.msra.mxu0 %v9108_v23  ;;  %2290 = vmatpush1.msra.mxu1 %v9109_v52  ;;  %v9140_v23 = vld [vmem:[#allocation96_spill] sm:$0xff]  ;;  %v9141_v52 = vld [vmem:[#allocation97_spill] sm:$0xff] }
 0x4e8   :  { %2220 = vmatprep.subr.mxu0 %v9110_v53  ;;  %2291 = vmatprep.subr.mxu1 %v9111_v56  ;;  %v9142_v53 = vld [vmem:[#allocation98_spill] sm:$0xff]  ;;  %v9143_v56 = vld [vmem:[#allocation99_spill] sm:$0xff] }
 0x4e9   :  { %2221 = vmatpush1.msra.mxu0 %v9112_v49  ;;  %2254 = vmatprep.mubr.f32.mxu0 %v8665_v18  ;;  %v9144_v49 = vld [vmem:[#allocation100_spill] sm:$0xff] }
 0x4ea   :  { %2292 = vmatpush1.msra.mxu1 %v9113_v46  ;;  %2325 = vmatprep.mubr.f32.mxu1 %v8665_v18  ;;  %v9145_v46 = vld [vmem:[#allocation101_spill] sm:$0xff] }
 0x4eb   :  { %2255 = vmatmul.mubr.f32.vlgmr.msra.gmra.mxu0 %v6745_v39  ;;  %2326 = vmatmul.mubr.f32.vlgmr.msra.gmra.mxu1 %v6745_v39  ;;  %v9124_v39 = vld [vmem:[#allocation80_spill] sm:$0xff] }
 0x4ec   :  { %2358 = vmatprep.subr.mxu0 %v9114_v32  ;;  %2429 = vmatprep.subr.mxu1 %v9115_v45  ;;  %v9146_v32 = vld [vmem:[#allocation102_spill] sm:$0xff]  ;;  %v9147_v45 = vld [vmem:[#allocation103_spill] sm:$0xff] }
 0x4ed   :  { %2359 = vmatpush1.msra.mxu0 %v9116_v17  ;;  %2430 = vmatpush1.msra.mxu1 %v9117_v54  ;;  %v9148_v17 = vld [vmem:[#allocation104_spill] sm:$0xff]  ;;  %v9149_v54 = vld [vmem:[#allocation105_spill] sm:$0xff] }
 0x4ee   :  { %2360 = vmatprep.subr.mxu0 %v9118_v43  ;;  %2431 = vmatprep.subr.mxu1 %v9119_v29  ;;  %v9150_v43 = vld [vmem:[#allocation106_spill] sm:$0xff]  ;;  %v9151_v29 = vld [vmem:[#allocation107_spill] sm:$0xff] }
 0x4ef   :  { %2361 = vmatpush1.msra.mxu0 %v9120_v0  ;;  %2432 = vmatpush1.msra.mxu1 %v9121_v3  ;;  %v9152_v0 = vld [vmem:[#allocation108_spill] sm:$0xff]  ;;  %v9153_v3 = vld [vmem:[#allocation109_spill] sm:$0xff] }
 0x4f0   :  { %2362 = vmatprep.subr.mxu0 %v9122_v44  ;;  %2433 = vmatprep.subr.mxu1 %v9123_v38  ;;  %v9154_v44 = vld [vmem:[#allocation110_spill] sm:$0xff]  ;;  %v9155_v38 = vld [vmem:[#allocation111_spill] sm:$0xff] }
 0x4f1   :  { %2363 = vmatpush1.msra.mxu0 %v9124_v39  ;;  %2434 = vmatpush1.msra.mxu1 %v9125_v28  ;;  %v9156_v39 = vld [vmem:[#allocation112_spill] sm:$0xff]  ;;  %v9157_v28 = vld [vmem:[#allocation113_spill] sm:$0xff] }
 0x4f2   :  { %2364 = vmatprep.subr.mxu0 %v9126_v62  ;;  %2435 = vmatprep.subr.mxu1 %v9127_v1  ;;  %v9158_v62 = vld [vmem:[#allocation114_spill] sm:$0xff]  ;;  %v9159_v1 = vld [vmem:[#allocation115_spill] sm:$0xff] }
 0x4f3   :  { %2365 = vmatpush1.msra.mxu0 %v9128_v2  ;;  %2436 = vmatpush1.msra.mxu1 %v9129_v6  ;;  %v9160_v2 = vld [vmem:[#allocation116_spill] sm:$0xff]  ;;  %v9161_v6 = vld [vmem:[#allocation117_spill] sm:$0xff] }
 0x4f4   :  { %2366 = vmatprep.subr.mxu0 %v9130_v19  ;;  %2437 = vmatprep.subr.mxu1 %v9131_v7  ;;  %v9162_v19 = vld [vmem:[#allocation118_spill] sm:$0xff]  ;;  %v9163_v7 = vld [vmem:[#allocation119_spill] sm:$0xff] }
 0x4f5   :  { %2367 = vmatpush1.msra.mxu0 %v9132_v8  ;;  %2438 = vmatpush1.msra.mxu1 %v9133_v9  ;;  %v9164_v8 = vld [vmem:[#allocation120_spill] sm:$0xff]  ;;  %v9165_v9 = vld [vmem:[#allocation121_spill] sm:$0xff] }
 0x4f6   :  { %2368 = vmatprep.subr.mxu0 %v9134_v11  ;;  %2439 = vmatprep.subr.mxu1 %v9135_v51  ;;  %v9166_v11 = vld [vmem:[#allocation122_spill] sm:$0xff]  ;;  %v9167_v51 = vld [vmem:[#allocation123_spill] sm:$0xff] }
 0x4f7   :  { %2369 = vmatpush1.msra.mxu0 %v9136_v50  ;;  %2440 = vmatpush1.msra.mxu1 %v9137_v12  ;;  %v9168_v50 = vld [vmem:[#allocation124_spill] sm:$0xff]  ;;  %v9169_v12 = vld [vmem:[#allocation125_spill] sm:$0xff] }
 0x4f8   :  { %2370 = vmatprep.subr.mxu0 %v9138_v13  ;;  %2441 = vmatprep.subr.mxu1 %v9139_v55  ;;  %v9170_v13 = vld [vmem:[#allocation126_spill] sm:$0xff]  ;;  %v9171_v55 = vld [vmem:[#allocation127_spill] sm:$0xff] }
 0x4f9   :  { %2371 = vmatpush1.msra.mxu0 %v9140_v23  ;;  %2442 = vmatpush1.msra.mxu1 %v9141_v52  ;;  %v9172_v23 = vld [vmem:[#allocation128_spill] sm:$0xff]  ;;  %v9173_v52 = vld [vmem:[#allocation129_spill] sm:$0xff] }
 0x4fa   :  { %2372 = vmatprep.subr.mxu0 %v9142_v53  ;;  %2443 = vmatprep.subr.mxu1 %v9143_v56  ;;  %v9174_v53 = vld [vmem:[#allocation130_spill] sm:$0xff]  ;;  %v9175_v56 = vld [vmem:[#allocation131_spill] sm:$0xff] }
 0x4fb   :  { %2373 = vmatpush1.msra.mxu0 %v9144_v49  ;;  %2444 = vmatpush1.msra.mxu1 %v9145_v46  ;;  %v9176_v49 = vld [vmem:[#allocation132_spill] sm:$0xff]  ;;  %v9177_v46 = vld [vmem:[#allocation133_spill] sm:$0xff] }
 0x4fc   :  { %2374 = vmatprep.subr.mxu0 %v9146_v32  ;;  %2445 = vmatprep.subr.mxu1 %v9147_v45  ;;  %v6885_v32 = vld [vmem:[#allocation4 + $0x3c8] sm:$0xff]  ;;  %v6888_v45 = vld [vmem:[#allocation4 + $0x3d8] sm:$0xff] }
 0x4fd   :  { %2375 = vmatpush1.msra.mxu0 %v9148_v17  ;;  %2446 = vmatpush1.msra.mxu1 %v9149_v54 }
 0x4fe   :  { %2376 = vmatprep.subr.mxu0 %v9150_v43  ;;  %2447 = vmatprep.subr.mxu1 %v9151_v29  ;;  %v9178_v29 = vld [vmem:[#allocation9_spill] sm:$0xff] }
 0x4ff   :  { %2377 = vmatpush1.msra.mxu0 %v9152_v0  ;;  %2448 = vmatpush1.msra.mxu1 %v9153_v3  ;;  %v9179_v0 = vld [vmem:[#allocation142_spill] sm:$0xff] }
 0x500   :  { %2378 = vmatprep.subr.mxu0 %v9154_v44  ;;  %2449 = vmatprep.subr.mxu1 %v9155_v38  ;;  %v255_v3 = vadd.f32 %v9179_v0, %v9178_v29 }
 0x501   :  { %2379 = vmatpush1.msra.mxu0 %v9156_v39  ;;  %2450 = vmatpush1.msra.mxu1 %v9157_v28  ;;  %v9180_v39 = vld [vmem:[#allocation10_spill] sm:$0xff]  ;;  %v9181_v28 = vld [vmem:[#allocation144_spill] sm:$0xff] }
 0x502   :  { %2380 = vmatprep.subr.mxu0 %v9158_v62  ;;  %2451 = vmatprep.subr.mxu1 %v9159_v1  ;;  %v257_v62 = vadd.f32 %v9181_v28, %v9180_v39 }
 0x503   :  { %2381 = vmatpush1.msra.mxu0 %v9160_v2  ;;  %2452 = vmatpush1.msra.mxu1 %v9161_v6 }
 0x504   :  { %2382 = vmatprep.subr.mxu0 %v9162_v19  ;;  %2453 = vmatprep.subr.mxu1 %v9163_v7  ;;  %v9182_v19 = vld [vmem:[#allocation143_spill] sm:$0xff] }
 0x505   :  { %2383 = vmatpush1.msra.mxu0 %v9164_v8  ;;  %2454 = vmatpush1.msra.mxu1 %v9165_v9  ;;  %v368_v7 = vadd.f32 %v9182_v19, %v5288_v25 }
 0x506   :  { %2384 = vmatprep.subr.mxu0 %v9166_v11  ;;  %2455 = vmatprep.subr.mxu1 %v9167_v51 }
 0x507   :  { %2385 = vmatpush1.msra.mxu0 %v9168_v50  ;;  %2456 = vmatpush1.msra.mxu1 %v9169_v12 }
 0x508   :  { %2386 = vmatprep.subr.mxu0 %v9170_v13  ;;  %2457 = vmatprep.subr.mxu1 %v9171_v55 }
 0x509   :  { %2387 = vmatpush1.msra.mxu0 %v9172_v23  ;;  %2458 = vmatpush1.msra.mxu1 %v9173_v52 }
 0x50a   :  { %2388 = vmatprep.subr.mxu0 %v9174_v53  ;;  %2459 = vmatprep.subr.mxu1 %v9175_v56 }
 0x50b   :  { %2389 = vmatpush1.msra.mxu0 %v9176_v49  ;;  %2460 = vmatpush1.msra.mxu1 %v9177_v46 }
 0x50c   :  { %2422 = vmatprep.mubr.f32.mxu0 %v8665_v18  ;;  %2493 = vmatprep.mubr.f32.mxu1 %v8665_v18 }
 0x50d   :  { %2522 = vmatprep.subr.mxu0 %v6885_v32  ;;  %2593 = vmatprep.subr.mxu1 %v6888_v45 }
 0x568   :  { %v1950_v17 = vpop.f32.mrf.mxu0  ;;  %v2021_v54 = vpop.f32.mrf.mxu1 }
 0x56a   :  { %v1952_v43 = vpop.f32.mrf.mxu0  ;;  %v2023_v44 = vpop.f32.mrf.mxu1 }
 0x589   :  { %v2114_v38 = vpop.f32.mrf.mxu0  ;;  %v2185_v2 = vpop.f32.mrf.mxu1 }
 0x58a   :  { %v2500_v1 = vadd.f32 %v2114_v38, %v255_v3  ;;  %v2502_v11 = vadd.f32 %v2185_v2, %v368_v7 }
 0x58b   :  { %v2116_v6 = vpop.f32.mrf.mxu0  ;;  %v2187_v0 = vpop.f32.mrf.mxu1 }
 0x58c   :  { %v2504_v8 = vmul.f32 0.5, %v2500_v1  ;;  %v2501_v9 = vadd.f32 %v2116_v6, %v257_v62 }
 0x58e   :  { %4344 = vtanh.f32 %v2504_v8  ;;  %v2508_v51 = vmul.f32 0.5, %v2501_v9 }
 0x590   :  { %4346 = vtanh.f32 %v2508_v51 }
 0x591   :  { %4348 = vtanh.f32 %v2502_v11 }
 0x59b   :  { %v4345_v50 = vpop.eup %4344 }
 0x59c   :  { %v2506_v12 = vmul.f32 0.5, %v4345_v50 }
 0x59d   :  { %v4347_v13 = vpop.eup %4346 }
 0x59e   :  { %v2507_v55 = vadd.f32 0.5, %v2506_v12  ;;  %v2510_v23 = vmul.f32 0.5, %v4347_v13  ;;  %v4349_v52 = vpop.eup %4348 }
 0x5a0   :  { %v2511_v53 = vadd.f32 0.5, %v2510_v23  ;;  %v2518_v56 = vmul.f32 %v4349_v52, %v2507_v55 }
 0x5a2   :  { %v2517_v49 = vmul.f32 %v2511_v53, %v6598_v22 }
 0x5a4   :  { %v6898_v46 = vadd.f32 %v2518_v56, %v2517_v49 }
 0x5ab   :  { %v2256_v3 = vpop.f32.mrf.mxu0  ;;  %v2327_v28 = vpop.f32.mrf.mxu1 }
 0x5ac   :  { %v2332_v38 = vadd.f32 %v2256_v3, %v1950_v17  ;;  %v2334_v19 = vadd.f32 %v2327_v28, %v2021_v54 }
 0x5ad   :  { %v2258_v62 = vpop.f32.mrf.mxu0  ;;  %v2329_v9 = vpop.f32.mrf.mxu1 }
 0x5ae   :  { %v2336_v1 = vadd.f32 %v2332_v38, %v8899_v57  ;;  %v2333_v2 = vadd.f32 %v2258_v62, %v1952_v43  ;;  %v2338_v11 = vadd.f32 %v2334_v19, %v8901_v5  ;;  %v2335_v22 = vadd.f32 %v2329_v9, %v2023_v44  ;;  %v9183_v62 = vld [vmem:[#allocation145_spill] sm:$0xff]  ;;  %v6980_v19 = vld [vmem:[#allocation4 + $0xd8] sm:$0xff]  ;;  %v6986_v9 = vld [vmem:[#allocation4 + $0xd0] sm:$0xff] }
 0x5b0   :  { %v2340_v6 = vmul.f32 0.5, %v2336_v1  ;;  %v2337_v7 = vadd.f32 %v2333_v2, %v8900_v61  ;;  %v2339_v51 = vadd.f32 %v2335_v22, %v5763_v34  ;;  %v370_v1 = vadd.f32 %v9183_v62, %v5295_v33  ;;  %v6992_v22 = vld [vmem:[#allocation4 + $0x98] sm:$0xff]  ;;  %v7040_v62 = vld [vmem:[#allocation4 + $0x3f0] sm:$0xff] }
 0x5b2   :  { %4350 = vtanh.f32 %v2340_v6  ;;  %v2344_v8 = vmul.f32 0.5, %v2337_v7  ;;  %v2349_v17 = vmul.f32 0.5, %v2339_v51  ;;  %v2503_v2 = vadd.f32 %v2187_v0, %v370_v1  ;;  %v6974_v0 = vld [vmem:[#allocation4 + $0x110] sm:$0xff]  ;;  %v6977_v6 = vld [vmem:[#allocation4 + $0xc8] sm:$0xff]  ;;  %v6995_v51 = vld [vmem:[#allocation4 + $0x80] sm:$0xff] }
 0x5b3   :  { %v7043_v1 = vld [vmem:[#allocation4 + $0x3a8] sm:$0xff] }
 0x5b4   :  { %4352 = vtanh.f32 %v2344_v8  ;;  %v6983_v8 = vld [vmem:[#allocation4 + $0xc0] sm:$0xff] }
 0x5b5   :  { %4354 = vtanh.f32 %v2338_v11  ;;  %v6989_v11 = vld [vmem:[#allocation4 + $0x88] sm:$0xff] }
 0x5b6   :  { %4356 = vtanh.f32 %v2349_v17  ;;  %v6998_v17 = vld [vmem:[#allocation4 + $0x90] sm:$0xff] }
 0x5bf   :  { %v4351_v50 = vpop.eup %4350 }
 0x5c0   :  { %v2342_v12 = vmul.f32 0.5, %v4351_v50 }
 0x5c1   :  { %v4353_v13 = vpop.eup %4352 }
 0x5c2   :  { %v2343_v55 = vadd.f32 0.5, %v2342_v12  ;;  %v2346_v43 = vmul.f32 0.5, %v4353_v13  ;;  %v4355_v23 = vpop.eup %4354  ;;  %v7001_v12 = vld [vmem:[#allocation4 + $0x48] sm:$0xff]  ;;  %v7004_v13 = vld [vmem:[#allocation4 + $0x58] sm:$0xff] }
 0x5c3   :  { %v4357_v44 = vpop.eup %4356 }
 0x5c4   :  { %v2347_v54 = vadd.f32 0.5, %v2346_v43  ;;  %v2354_v53 = vmul.f32 %v4355_v23, %v2343_v55  ;;  %v2351_v49 = vmul.f32 0.5, %v4357_v44  ;;  %v7007_v43 = vld [vmem:[#allocation4 + $0x40] sm:$0xff]  ;;  %v7013_v23 = vld [vmem:[#allocation4 + $0x8] sm:$0xff] }
 0x5c6   :  { %v2353_v52 = vmul.f32 %v2347_v54, %v6605_v16  ;;  %v2352_v3 = vadd.f32 0.5, %v2351_v49  ;;  %v2513_v16 = vmul.f32 0.5, %v2503_v2  ;;  %v7010_v54 = vld [vmem:[#allocation4 + $0x50] sm:$0xff]  ;;  %v7046_v2 = vld [vmem:[#allocation4 + $0x3b8] sm:$0xff] }
 0x5c7   :  { %v7025_v49 = vld [vmem:[#allocation4 + $0x10] sm:$0xff]  ;;  %9197 = vst [vmem:[#allocation167_spill] sm:$0xff] %v7046_v2 }
 0x5c8   :  { %v6905_v56 = vadd.f32 %v2354_v53, %v2353_v52  ;;  %v7016_v52 = vld [vmem:[#allocation4 + $0x18] sm:$0xff]  ;;  %v7019_v53 = vld [vmem:[#allocation4] sm:$0xff] }
 0x5ca   :  { %4358 = vtanh.f32 %v6905_v56 }
 0x5cb   :  { %4360 = vtanh.f32 %v2513_v16  ;;  %v7049_v16 = vld [vmem:[#allocation4 + $0x3a0] sm:$0xff] }
 0x5cc   :  { %4362 = vtanh.f32 %v6898_v46  ;;  %9198 = vst [vmem:[#allocation168_spill] sm:$0xff] %v7049_v16 }
 0x5d7   :  { %v4359_v38 = vpop.eup %4358 }
 0x5d8   :  { %v2357_v28 = vmul.f32 %v4359_v38, %v2352_v3  ;;  %v7031_v3 = vld [vmem:[#allocation4 + $0x3e8] sm:$0xff]  ;;  %v7034_v38 = vld [vmem:[#allocation4 + $0x3f8] sm:$0xff] }
 0x5da   :  { %2423 = vmatmul.mubr.f32.vlgmr.msra.gmra.mxu0 %v2357_v28  ;;  %2494 = vmatmul.mubr.f32.vlgmr.msra.gmra.mxu1 %v2357_v28  ;;  %v7037_v28 = vld [vmem:[#allocation4 + $0x3e0] sm:$0xff] }
 0x5db   :  { %2523 = vmatpush1.msra.mxu0 %v6610_v59  ;;  %2594 = vmatpush1.msra.mxu1 %v6613_v26  ;;  %v9184_v59 = vld [vmem:[#allocation134_spill] sm:$0xff]  ;;  %v9185_v26 = vld [vmem:[#allocation136_spill] sm:$0xff] }
 0x5dc   :  { %2524 = vmatprep.subr.mxu0 %v6616_v58  ;;  %2595 = vmatprep.subr.mxu1 %v6619_v27  ;;  %v9186_v58 = vld [vmem:[#allocation135_spill] sm:$0xff]  ;;  %v9187_v27 = vld [vmem:[#allocation158_spill] sm:$0xff] }
 0x5dd   :  { %2525 = vmatpush1.msra.mxu0 %v6622_v42  ;;  %2596 = vmatpush1.msra.mxu1 %v6625_v24  ;;  %v9188_v42 = vld [vmem:[#allocation159_spill] sm:$0xff]  ;;  %v9189_v24 = vld [vmem:[#allocation160_spill] sm:$0xff] }
 0x5de   :  { %2526 = vmatprep.subr.mxu0 %v6628_v31  ;;  %2597 = vmatprep.subr.mxu1 %v6631_v47  ;;  %v9190_v31 = vld [vmem:[#allocation137_spill] sm:$0xff] }
 0x5df   :  { %2527 = vmatpush1.msra.mxu0 %v6634_v35  ;;  %2598 = vmatpush1.msra.mxu1 %v6637_v63  ;;  %v9191_v47 = vld [vmem:[#allocation161_spill] sm:$0xff]  ;;  %v9192_v35 = vld [vmem:[#allocation162_spill] sm:$0xff]  ;;  %v9193_v63 = vld [vmem:[#allocation163_spill] sm:$0xff] }
 0x5e0   :  { %2528 = vmatprep.subr.mxu0 %v6640_v60  ;;  %2599 = vmatprep.subr.mxu1 %v6643_v14  ;;  %v9194_v60 = vld [vmem:[#allocation164_spill] sm:$0xff]  ;;  %v9195_v14 = vld [vmem:[#allocation165_spill] sm:$0xff] }
 0x5e1   :  { %2529 = vmatpush1.msra.mxu0 %v6646_v48  ;;  %2600 = vmatpush1.msra.mxu1 %v6649_v10  ;;  %v9196_v48 = vld [vmem:[#allocation166_spill] sm:$0xff]  ;;  %v6947_v10 = vld [vmem:[#allocation4 + $0x180] sm:$0xff] }
 0x5e2   :  { %2530 = vmatprep.subr.mxu0 %v6652_v41  ;;  %2601 = vmatprep.subr.mxu1 %v6655_v21  ;;  %v6950_v41 = vld [vmem:[#allocation4 + $0x190] sm:$0xff]  ;;  %v6953_v21 = vld [vmem:[#allocation4 + $0x148] sm:$0xff] }
 0x5e3   :  { %2531 = vmatpush1.msra.mxu0 %v6658_v37  ;;  %2602 = vmatpush1.msra.mxu1 %v6661_v15  ;;  %v6956_v37 = vld [vmem:[#allocation4 + $0x158] sm:$0xff]  ;;  %v6959_v15 = vld [vmem:[#allocation4 + $0x140] sm:$0xff] }
 0x5e4   :  { %2532 = vmatprep.subr.mxu0 %v9184_v59  ;;  %2603 = vmatprep.subr.mxu1 %v9185_v26  ;;  %v7052_v59 = vld [vmem:[#allocation4 + $0x3b0] sm:$0xff]  ;;  %v7055_v26 = vld [vmem:[#allocation4 + $0x368] sm:$0xff] }
 0x5e5   :  { %2533 = vmatpush1.msra.mxu0 %v9186_v58  ;;  %2604 = vmatpush1.msra.mxu1 %v9187_v27  ;;  %9199 = vst [vmem:[#allocation169_spill] sm:$0xff] %v7052_v59  ;;  %9200 = vst [vmem:[#allocation170_spill] sm:$0xff] %v7055_v26  ;;  %v7058_v58 = vld [vmem:[#allocation4 + $0x378] sm:$0xff]  ;;  %v7061_v27 = vld [vmem:[#allocation4 + $0x360] sm:$0xff] }
 0x5e6   :  { %2534 = vmatprep.subr.mxu0 %v9188_v42  ;;  %2605 = vmatprep.subr.mxu1 %v9189_v24  ;;  %9201 = vst [vmem:[#allocation171_spill] sm:$0xff] %v7058_v58  ;;  %9202 = vst [vmem:[#allocation172_spill] sm:$0xff] %v7061_v27  ;;  %v7064_v42 = vld [vmem:[#allocation4 + $0x370] sm:$0xff]  ;;  %v7067_v24 = vld [vmem:[#allocation4 + $0x328] sm:$0xff] }
 0x5e7   :  { %2535 = vmatpush1.msra.mxu0 %v9190_v31  ;;  %2606 = vmatpush1.msra.mxu1 %v9191_v47  ;;  %9203 = vst [vmem:[#allocation138_spill] sm:$0xff] %v7064_v42  ;;  %9204 = vst [vmem:[#allocation140_spill] sm:$0xff] %v7067_v24  ;;  %v7070_v31 = vld [vmem:[#allocation4 + $0x338] sm:$0xff]  ;;  %v7073_v47 = vld [vmem:[#allocation4 + $0x320] sm:$0xff] }
 0x5e8   :  { %2536 = vmatprep.subr.mxu0 %v9192_v35  ;;  %2607 = vmatprep.subr.mxu1 %v9193_v63  ;;  %9205 = vst [vmem:[#allocation139_spill] sm:$0xff] %v7070_v31  ;;  %9206 = vst [vmem:[#allocation141_spill] sm:$0xff] %v7073_v47  ;;  %v7076_v35 = vld [vmem:[#allocation4 + $0x330] sm:$0xff]  ;;  %v7079_v63 = vld [vmem:[#allocation4 + $0x2e8] sm:$0xff] }
 0x5e9   :  { %2537 = vmatpush1.msra.mxu0 %v9194_v60  ;;  %2608 = vmatpush1.msra.mxu1 %v9195_v14  ;;  %9207 = vst [vmem:[#allocation11_spill] sm:$0xff] %v7076_v35  ;;  %9208 = vst [vmem:[#allocation12_spill] sm:$0xff] %v7079_v63  ;;  %v7082_v60 = vld [vmem:[#allocation4 + $0x2f8] sm:$0xff]  ;;  %v7085_v14 = vld [vmem:[#allocation4 + $0x2e0] sm:$0xff] }
 0x5ea   :  { %2538 = vmatprep.subr.mxu0 %v6701_v4  ;;  %2609 = vmatprep.subr.mxu1 %v6704_v36  ;;  %v6962_v4 = vld [vmem:[#allocation4 + $0x150] sm:$0xff]  ;;  %v4361_v36 = vpop.eup %4360  ;;  %9209 = vst [vmem:[#allocation13_spill] sm:$0xff] %v7082_v60  ;;  %9210 = vst [vmem:[#allocation14_spill] sm:$0xff] %v7085_v14 }
 0x5eb   :  { %2539 = vmatpush1.msra.mxu0 %v6707_v40  ;;  %2610 = vmatpush1.msra.mxu1 %v9196_v48  ;;  %v6965_v40 = vld [vmem:[#allocation4 + $0x108] sm:$0xff]  ;;  %v2515_v7 = vmul.f32 0.5, %v4361_v36  ;;  %v4363_v50 = vpop.eup %4362  ;;  %v7088_v48 = vld [vmem:[#allocation4 + $0x2f0] sm:$0xff] }
 0x5ec   :  { %2540 = vmatprep.subr.mxu0 %v6713_v20  ;;  %2611 = vmatprep.subr.mxu1 %v6716_v30  ;;  %v6968_v20 = vld [vmem:[#allocation4 + $0x118] sm:$0xff]  ;;  %v6971_v30 = vld [vmem:[#allocation4 + $0x100] sm:$0xff]  ;;  %9211 = vst [vmem:[#allocation15_spill] sm:$0xff] %v7088_v48  ;;  %v7091_v36 = vld [vmem:[#allocation4 + $0x2a8] sm:$0xff] }
 0x5ed   :  { %2541 = vmatpush1.msra.mxu0 %v6947_v10  ;;  %2612 = vmatpush1.msra.mxu1 %v6950_v41  ;;  %v2516_v55 = vadd.f32 0.5, %v2515_v7  ;;  %9212 = vst [vmem:[#allocation16_spill] sm:$0xff] %v7091_v36  ;;  %v7094_v7 = vld [vmem:[#allocation4 + $0x2b8] sm:$0xff] }
 0x5ee   :  { %2542 = vmatprep.subr.mxu0 %v6953_v21  ;;  %2613 = vmatprep.subr.mxu1 %v6956_v37  ;;  %9213 = vst [vmem:[#allocation17_spill] sm:$0xff] %v7094_v7 }
 0x5ef   :  { %2543 = vmatpush1.msra.mxu0 %v6959_v15  ;;  %2614 = vmatpush1.msra.mxu1 %v6962_v4  ;;  %v7023_v44 = vmul.f32 %v4363_v50, %v2516_v55  ;;  %v7097_v50 = vld [vmem:[#allocation4 + $0x2a0] sm:$0xff]  ;;  %v7100_v55 = vld [vmem:[#allocation4 + $0x2b0] sm:$0xff] }
 0x5f0   :  { %2544 = vmatprep.subr.mxu0 %v6965_v40  ;;  %2615 = vmatprep.subr.mxu1 %v6968_v20  ;;  %9214 = vst [vmem:[#allocation18_spill] sm:$0xff] %v7097_v50  ;;  %9215 = vst [vmem:[#allocation19_spill] sm:$0xff] %v7100_v55 }
 0x5f1   :  { %2545 = vmatpush1.msra.mxu0 %v6971_v30  ;;  %2616 = vmatpush1.msra.mxu1 %v6974_v0 }
 0x5f2   :  { %2546 = vmatprep.subr.mxu0 %v6977_v6  ;;  %2617 = vmatprep.subr.mxu1 %v6980_v19 }
 0x5f3   :  { %2547 = vmatpush1.msra.mxu0 %v6983_v8  ;;  %2618 = vmatpush1.msra.mxu1 %v6986_v9 }
 0x5f4   :  { %2548 = vmatprep.subr.mxu0 %v6989_v11  ;;  %2619 = vmatprep.subr.mxu1 %v6992_v22 }
 0x5f5   :  { %2549 = vmatpush1.msra.mxu0 %v6995_v51  ;;  %2620 = vmatpush1.msra.mxu1 %v6998_v17 }
 0x5f6   :  { %2550 = vmatprep.subr.mxu0 %v7001_v12  ;;  %2621 = vmatprep.subr.mxu1 %v7004_v13 }
 0x5f7   :  { %2551 = vmatpush1.msra.mxu0 %v7007_v43  ;;  %2622 = vmatpush1.msra.mxu1 %v7010_v54 }
 0x5f8   :  { %2552 = vmatprep.subr.mxu0 %v7013_v23  ;;  %2623 = vmatprep.subr.mxu1 %v7016_v52 }
 0x5f9   :  { %2553 = vmatpush1.msra.mxu0 %v7019_v53  ;;  %2586 = vmatprep.mubr.f32.mxu0 %v8665_v18 }
 0x5fa   :  { %2624 = vmatpush1.msra.mxu1 %v7025_v49  ;;  %2657 = vmatprep.mubr.f32.mxu1 %v8665_v18 }
 0x5fb   :  { %2587 = vmatmul.mubr.f32.vlgmr.msra.gmra.mxu0 %v7023_v44  ;;  %2658 = vmatmul.mubr.f32.vlgmr.msra.gmra.mxu1 %v7023_v44 }
 0x5fc   :  { %2664 = vmatprep.subr.mxu0 %v7031_v3  ;;  %2735 = vmatprep.subr.mxu1 %v7034_v38 }
 0x5fd   :  { %2665 = vmatpush1.msra.mxu0 %v7037_v28  ;;  %2736 = vmatpush1.msra.mxu1 %v7040_v62 }
 0x5fe   :  { %2666 = vmatprep.subr.mxu0 %v7043_v1  ;;  %2737 = vmatprep.subr.mxu1 %v7046_v2 }
 0x5ff   :  { %2667 = vmatpush1.msra.mxu0 %v7049_v16  ;;  %2738 = vmatpush1.msra.mxu1 %v7052_v59 }
 0x600   :  { %2668 = vmatprep.subr.mxu0 %v7055_v26  ;;  %2739 = vmatprep.subr.mxu1 %v7058_v58 }
 0x601   :  { %2669 = vmatpush1.msra.mxu0 %v7061_v27  ;;  %2740 = vmatpush1.msra.mxu1 %v7064_v42 }
 0x602   :  { %2670 = vmatprep.subr.mxu0 %v7067_v24  ;;  %2741 = vmatprep.subr.mxu1 %v7070_v31  ;;  %v9322_v24 = vld [vmem:[#allocation147_spill] sm:$0xff] }
 0x603   :  { %2671 = vmatpush1.msra.mxu0 %v7073_v47  ;;  %2742 = vmatpush1.msra.mxu1 %v7076_v35  ;;  %v374_v42 = vadd.f32 %v9322_v24, %v5288_v25 }
 0x604   :  { %2672 = vmatprep.subr.mxu0 %v7079_v63  ;;  %2743 = vmatprep.subr.mxu1 %v7082_v60  ;;  %v9321_v63 = vld [vmem:[#allocation148_spill] sm:$0xff] }
 0x605   :  { %2673 = vmatpush1.msra.mxu0 %v7085_v14  ;;  %2744 = vmatpush1.msra.mxu1 %v7088_v48  ;;  %v7103_v14 = vld [vmem:[#allocation4 + $0x268] sm:$0xff]  ;;  %v7106_v48 = vld [vmem:[#allocation4 + $0x278] sm:$0xff]  ;;  %v263_v35 = vadd.f32 %v9321_v63, %v9180_v39 }
 0x606   :  { %2674 = vmatprep.subr.mxu0 %v7091_v36  ;;  %2745 = vmatprep.subr.mxu1 %v7094_v7  ;;  %9216 = vst [vmem:[#allocation20_spill] sm:$0xff] %v7103_v14  ;;  %9217 = vst [vmem:[#allocation21_spill] sm:$0xff] %v7106_v48  ;;  %v7109_v36 = vld [vmem:[#allocation4 + $0x260] sm:$0xff]  ;;  %v7112_v7 = vld [vmem:[#allocation4 + $0x270] sm:$0xff] }
 0x607   :  { %2675 = vmatpush1.msra.mxu0 %v7097_v50  ;;  %2746 = vmatpush1.msra.mxu1 %v7100_v55  ;;  %9218 = vst [vmem:[#allocation22_spill] sm:$0xff] %v7109_v36  ;;  %9219 = vst [vmem:[#allocation23_spill] sm:$0xff] %v7112_v7  ;;  %v7115_v50 = vld [vmem:[#allocation4 + $0x228] sm:$0xff]  ;;  %v7118_v55 = vld [vmem:[#allocation4 + $0x238] sm:$0xff] }
 0x608   :  { %2676 = vmatprep.subr.mxu0 %v7103_v14  ;;  %2747 = vmatprep.subr.mxu1 %v7106_v48  ;;  %9220 = vst [vmem:[#allocation24_spill] sm:$0xff] %v7115_v50  ;;  %9221 = vst [vmem:[#allocation25_spill] sm:$0xff] %v7118_v55  ;;  %v7121_v14 = vld [vmem:[#allocation4 + $0x220] sm:$0xff]  ;;  %v7124_v48 = vld [vmem:[#allocation4 + $0x230] sm:$0xff] }
 0x609   :  { %2677 = vmatpush1.msra.mxu0 %v7109_v36  ;;  %2748 = vmatpush1.msra.mxu1 %v7112_v7  ;;  %9222 = vst [vmem:[#allocation26_spill] sm:$0xff] %v7121_v14  ;;  %9223 = vst [vmem:[#allocation27_spill] sm:$0xff] %v7124_v48  ;;  %v7127_v36 = vld [vmem:[#allocation4 + $0x1e8] sm:$0xff]  ;;  %v7130_v7 = vld [vmem:[#allocation4 + $0x1f8] sm:$0xff] }
 0x60a   :  { %2678 = vmatprep.subr.mxu0 %v7115_v50  ;;  %2749 = vmatprep.subr.mxu1 %v7118_v55  ;;  %9224 = vst [vmem:[#allocation28_spill] sm:$0xff] %v7127_v36  ;;  %9225 = vst [vmem:[#allocation29_spill] sm:$0xff] %v7130_v7  ;;  %v7133_v50 = vld [vmem:[#allocation4 + $0x1e0] sm:$0xff]  ;;  %v7136_v55 = vld [vmem:[#allocation4 + $0x1f0] sm:$0xff] }
 0x60b   :  { %2679 = vmatpush1.msra.mxu0 %v7121_v14  ;;  %2750 = vmatpush1.msra.mxu1 %v7124_v48  ;;  %9226 = vst [vmem:[#allocation30_spill] sm:$0xff] %v7133_v50  ;;  %9227 = vst [vmem:[#allocation31_spill] sm:$0xff] %v7136_v55  ;;  %v7139_v14 = vld [vmem:[#allocation4 + $0x1a8] sm:$0xff]  ;;  %v7142_v48 = vld [vmem:[#allocation4 + $0x1b8] sm:$0xff] }
 0x60c   :  { %2680 = vmatprep.subr.mxu0 %v7127_v36  ;;  %2751 = vmatprep.subr.mxu1 %v7130_v7  ;;  %9228 = vst [vmem:[#allocation32_spill] sm:$0xff] %v7139_v14  ;;  %9229 = vst [vmem:[#allocation33_spill] sm:$0xff] %v7142_v48  ;;  %v7145_v36 = vld [vmem:[#allocation4 + $0x1a0] sm:$0xff]  ;;  %v7148_v7 = vld [vmem:[#allocation4 + $0x1b0] sm:$0xff] }
 0x60d   :  { %2681 = vmatpush1.msra.mxu0 %v7133_v50  ;;  %2752 = vmatpush1.msra.mxu1 %v7136_v55  ;;  %9230 = vst [vmem:[#allocation34_spill] sm:$0xff] %v7145_v36  ;;  %9231 = vst [vmem:[#allocation35_spill] sm:$0xff] %v7148_v7  ;;  %v7151_v50 = vld [vmem:[#allocation4 + $0x168] sm:$0xff]  ;;  %v7154_v55 = vld [vmem:[#allocation4 + $0x178] sm:$0xff] }
 0x60e   :  { %2682 = vmatprep.subr.mxu0 %v7139_v14  ;;  %2753 = vmatprep.subr.mxu1 %v7142_v48  ;;  %9232 = vst [vmem:[#allocation36_spill] sm:$0xff] %v7151_v50  ;;  %9233 = vst [vmem:[#allocation37_spill] sm:$0xff] %v7154_v55  ;;  %v7157_v14 = vld [vmem:[#allocation4 + $0x160] sm:$0xff]  ;;  %v7160_v48 = vld [vmem:[#allocation4 + $0x170] sm:$0xff] }
 0x60f   :  { %2683 = vmatpush1.msra.mxu0 %v7145_v36  ;;  %2754 = vmatpush1.msra.mxu1 %v7148_v7  ;;  %9234 = vst [vmem:[#allocation38_spill] sm:$0xff] %v7157_v14  ;;  %9235 = vst [vmem:[#allocation39_spill] sm:$0xff] %v7160_v48  ;;  %v7163_v36 = vld [vmem:[#allocation4 + $0x128] sm:$0xff]  ;;  %v7166_v7 = vld [vmem:[#allocation4 + $0x138] sm:$0xff] }
 0x610   :  { %2684 = vmatprep.subr.mxu0 %v7151_v50  ;;  %2755 = vmatprep.subr.mxu1 %v7154_v55  ;;  %9236 = vst [vmem:[#allocation40_spill] sm:$0xff] %v7163_v36  ;;  %9237 = vst [vmem:[#allocation41_spill] sm:$0xff] %v7166_v7  ;;  %v7169_v50 = vld [vmem:[#allocation4 + $0x120] sm:$0xff]  ;;  %v7172_v55 = vld [vmem:[#allocation4 + $0x130] sm:$0xff] }
 0x611   :  { %2685 = vmatpush1.msra.mxu0 %v7157_v14  ;;  %2756 = vmatpush1.msra.mxu1 %v7160_v48  ;;  %9238 = vst [vmem:[#allocation42_spill] sm:$0xff] %v7169_v50  ;;  %9239 = vst [vmem:[#allocation43_spill] sm:$0xff] %v7172_v55  ;;  %v7175_v14 = vld [vmem:[#allocation4 + $0xe8] sm:$0xff]  ;;  %v7178_v48 = vld [vmem:[#allocation4 + $0xf8] sm:$0xff] }
 0x612   :  { %2686 = vmatprep.subr.mxu0 %v7163_v36  ;;  %2757 = vmatprep.subr.mxu1 %v7166_v7  ;;  %9240 = vst [vmem:[#allocation44_spill] sm:$0xff] %v7175_v14  ;;  %9241 = vst [vmem:[#allocation45_spill] sm:$0xff] %v7178_v48  ;;  %v7181_v36 = vld [vmem:[#allocation4 + $0xe0] sm:$0xff]  ;;  %v7184_v7 = vld [vmem:[#allocation4 + $0xf0] sm:$0xff] }
 0x613   :  { %2687 = vmatpush1.msra.mxu0 %v7169_v50  ;;  %2758 = vmatpush1.msra.mxu1 %v7172_v55  ;;  %9242 = vst [vmem:[#allocation46_spill] sm:$0xff] %v7181_v36  ;;  %9243 = vst [vmem:[#allocation47_spill] sm:$0xff] %v7184_v7  ;;  %v7187_v50 = vld [vmem:[#allocation4 + $0xa8] sm:$0xff]  ;;  %v7190_v55 = vld [vmem:[#allocation4 + $0xb8] sm:$0xff] }
 0x614   :  { %2688 = vmatprep.subr.mxu0 %v7175_v14  ;;  %2759 = vmatprep.subr.mxu1 %v7178_v48  ;;  %9244 = vst [vmem:[#allocation48_spill] sm:$0xff] %v7187_v50  ;;  %9245 = vst [vmem:[#allocation49_spill] sm:$0xff] %v7190_v55  ;;  %v7193_v14 = vld [vmem:[#allocation4 + $0xa0] sm:$0xff]  ;;  %v7196_v48 = vld [vmem:[#allocation4 + $0xb0] sm:$0xff] }
 0x615   :  { %2689 = vmatpush1.msra.mxu0 %v7181_v36  ;;  %2760 = vmatpush1.msra.mxu1 %v7184_v7  ;;  %9246 = vst [vmem:[#allocation50_spill] sm:$0xff] %v7193_v14  ;;  %9247 = vst [vmem:[#allocation51_spill] sm:$0xff] %v7196_v48  ;;  %v7199_v36 = vld [vmem:[#allocation4 + $0x68] sm:$0xff]  ;;  %v7202_v7 = vld [vmem:[#allocation4 + $0x78] sm:$0xff] }
 0x616   :  { %2690 = vmatprep.subr.mxu0 %v7187_v50  ;;  %2761 = vmatprep.subr.mxu1 %v7190_v55  ;;  %9248 = vst [vmem:[#allocation52_spill] sm:$0xff] %v7199_v36  ;;  %9249 = vst [vmem:[#allocation53_spill] sm:$0xff] %v7202_v7  ;;  %v7205_v50 = vld [vmem:[#allocation4 + $0x60] sm:$0xff]  ;;  %v7208_v55 = vld [vmem:[#allocation4 + $0x70] sm:$0xff] }
 0x617   :  { %2691 = vmatpush1.msra.mxu0 %v7193_v14  ;;  %2762 = vmatpush1.msra.mxu1 %v7196_v48  ;;  %9250 = vst [vmem:[#allocation54_spill] sm:$0xff] %v7205_v50  ;;  %9251 = vst [vmem:[#allocation55_spill] sm:$0xff] %v7208_v55  ;;  %v7211_v14 = vld [vmem:[#allocation4 + $0x28] sm:$0xff]  ;;  %v7214_v48 = vld [vmem:[#allocation4 + $0x38] sm:$0xff] }
 0x618   :  { %2692 = vmatprep.subr.mxu0 %v7199_v36  ;;  %2763 = vmatprep.subr.mxu1 %v7202_v7  ;;  %9252 = vst [vmem:[#allocation56_spill] sm:$0xff] %v7211_v14  ;;  %9253 = vst [vmem:[#allocation57_spill] sm:$0xff] %v7214_v48  ;;  %v7217_v36 = vld [vmem:[#allocation4 + $0x20] sm:$0xff]  ;;  %v7221_v7 = vld [vmem:[#allocation4 + $0x30] sm:$0xff] }
 0x619   :  { %2693 = vmatpush1.msra.mxu0 %v7205_v50  ;;  %2764 = vmatpush1.msra.mxu1 %v7208_v55  ;;  %9254 = vst [vmem:[#allocation58_spill] sm:$0xff] %v7217_v36  ;;  %9255 = vst [vmem:[#allocation59_spill] sm:$0xff] %v7221_v7  ;;  %v7236_v55 = vld [vmem:[#allocation6 + $0x1f0] sm:$0xff] }
 0x61a   :  { %2694 = vmatprep.subr.mxu0 %v7211_v14  ;;  %2765 = vmatprep.subr.mxu1 %v7214_v48  ;;  %v7227_v14 = vld [vmem:[#allocation6 + $0x1e8] sm:$0xff]  ;;  %v7230_v48 = vld [vmem:[#allocation6 + $0x1f8] sm:$0xff]  ;;  %9259 = vst [vmem:[#allocation63_spill] sm:$0xff] %v7236_v55 }
 0x61b   :  { %2695 = vmatpush1.msra.mxu0 %v7217_v36  ;;  %2728 = vmatprep.mubr.f32.mxu0 %v8665_v18  ;;  %9256 = vst [vmem:[#allocation60_spill] sm:$0xff] %v7227_v14  ;;  %9257 = vst [vmem:[#allocation61_spill] sm:$0xff] %v7230_v48  ;;  %v7233_v36 = vld [vmem:[#allocation6 + $0x1e0] sm:$0xff] }
 0x61c   :  { %2766 = vmatpush1.msra.mxu1 %v7221_v7  ;;  %2799 = vmatprep.mubr.f32.mxu1 %v8665_v18  ;;  %9258 = vst [vmem:[#allocation62_spill] sm:$0xff] %v7233_v36  ;;  %v7239_v7 = vld [vmem:[#allocation6 + $0x1c8] sm:$0xff] }
 0x61d   :  { %2729 = vmatmul.mubr.f32.vlgmr.msra.gmra.mxu0 %v7023_v44  ;;  %2800 = vmatmul.mubr.f32.vlgmr.msra.gmra.mxu1 %v7023_v44  ;;  %9260 = vst [vmem:[#allocation64_spill] sm:$0xff] %v7239_v7  ;;  %v7242_v44 = vld [vmem:[#allocation6 + $0x1d8] sm:$0xff] }
 0x61e   :  { %2832 = vmatprep.subr.mxu0 %v7227_v14  ;;  %2903 = vmatprep.subr.mxu1 %v7230_v48  ;;  %9261 = vst [vmem:[#allocation65_spill] sm:$0xff] %v7242_v44  ;;  %v7245_v14 = vld [vmem:[#allocation6 + $0x1c0] sm:$0xff]  ;;  %v7248_v48 = vld [vmem:[#allocation6 + $0x1d0] sm:$0xff] }
 0x61f   :  { %2833 = vmatpush1.msra.mxu0 %v7233_v36  ;;  %2904 = vmatpush1.msra.mxu1 %v7236_v55  ;;  %9262 = vst [vmem:[#allocation66_spill] sm:$0xff] %v7245_v14  ;;  %9263 = vst [vmem:[#allocation67_spill] sm:$0xff] %v7248_v48  ;;  %v7251_v36 = vld [vmem:[#allocation6 + $0x1a8] sm:$0xff]  ;;  %v7254_v55 = vld [vmem:[#allocation6 + $0x1b8] sm:$0xff] }
 0x620   :  { %2834 = vmatprep.subr.mxu0 %v7239_v7  ;;  %2905 = vmatprep.subr.mxu1 %v7242_v44  ;;  %9264 = vst [vmem:[#allocation68_spill] sm:$0xff] %v7251_v36  ;;  %9265 = vst [vmem:[#allocation69_spill] sm:$0xff] %v7254_v55  ;;  %v7257_v7 = vld [vmem:[#allocation6 + $0x1a0] sm:$0xff]  ;;  %v7260_v44 = vld [vmem:[#allocation6 + $0x1b0] sm:$0xff] }
 0x621   :  { %2835 = vmatpush1.msra.mxu0 %v7245_v14  ;;  %2906 = vmatpush1.msra.mxu1 %v7248_v48  ;;  %9266 = vst [vmem:[#allocation70_spill] sm:$0xff] %v7257_v7  ;;  %9267 = vst [vmem:[#allocation71_spill] sm:$0xff] %v7260_v44  ;;  %v7263_v14 = vld [vmem:[#allocation6 + $0x188] sm:$0xff]  ;;  %v7266_v48 = vld [vmem:[#allocation6 + $0x198] sm:$0xff] }
 0x622   :  { %2836 = vmatprep.subr.mxu0 %v7251_v36  ;;  %2907 = vmatprep.subr.mxu1 %v7254_v55  ;;  %9268 = vst [vmem:[#allocation72_spill] sm:$0xff] %v7263_v14  ;;  %9269 = vst [vmem:[#allocation73_spill] sm:$0xff] %v7266_v48  ;;  %v7269_v36 = vld [vmem:[#allocation6 + $0x180] sm:$0xff]  ;;  %v7272_v55 = vld [vmem:[#allocation6 + $0x190] sm:$0xff] }
 0x623   :  { %2837 = vmatpush1.msra.mxu0 %v7257_v7  ;;  %2908 = vmatpush1.msra.mxu1 %v7260_v44  ;;  %9270 = vst [vmem:[#allocation74_spill] sm:$0xff] %v7269_v36  ;;  %9271 = vst [vmem:[#allocation75_spill] sm:$0xff] %v7272_v55  ;;  %v7275_v7 = vld [vmem:[#allocation6 + $0x168] sm:$0xff]  ;;  %v7278_v44 = vld [vmem:[#allocation6 + $0x178] sm:$0xff] }
 0x624   :  { %2838 = vmatprep.subr.mxu0 %v7263_v14  ;;  %2909 = vmatprep.subr.mxu1 %v7266_v48  ;;  %9272 = vst [vmem:[#allocation76_spill] sm:$0xff] %v7275_v7  ;;  %9273 = vst [vmem:[#allocation77_spill] sm:$0xff] %v7278_v44  ;;  %v7281_v14 = vld [vmem:[#allocation6 + $0x160] sm:$0xff]  ;;  %v7284_v48 = vld [vmem:[#allocation6 + $0x170] sm:$0xff] }
 0x625   :  { %2839 = vmatpush1.msra.mxu0 %v7269_v36  ;;  %2910 = vmatpush1.msra.mxu1 %v7272_v55  ;;  %9274 = vst [vmem:[#allocation78_spill] sm:$0xff] %v7281_v14  ;;  %9275 = vst [vmem:[#allocation79_spill] sm:$0xff] %v7284_v48  ;;  %v7287_v36 = vld [vmem:[#allocation6 + $0x148] sm:$0xff]  ;;  %v7290_v55 = vld [vmem:[#allocation6 + $0x158] sm:$0xff] }
 0x626   :  { %2840 = vmatprep.subr.mxu0 %v7275_v7  ;;  %2911 = vmatprep.subr.mxu1 %v7278_v44  ;;  %9276 = vst [vmem:[#allocation80_spill] sm:$0xff] %v7287_v36  ;;  %9277 = vst [vmem:[#allocation81_spill] sm:$0xff] %v7290_v55  ;;  %v7293_v7 = vld [vmem:[#allocation6 + $0x140] sm:$0xff]  ;;  %v7296_v44 = vld [vmem:[#allocation6 + $0x150] sm:$0xff] }
 0x627   :  { %2841 = vmatpush1.msra.mxu0 %v7281_v14  ;;  %2912 = vmatpush1.msra.mxu1 %v7284_v48  ;;  %9278 = vst [vmem:[#allocation82_spill] sm:$0xff] %v7293_v7  ;;  %9279 = vst [vmem:[#allocation83_spill] sm:$0xff] %v7296_v44  ;;  %v7299_v14 = vld [vmem:[#allocation6 + $0x128] sm:$0xff]  ;;  %v7302_v48 = vld [vmem:[#allocation6 + $0x138] sm:$0xff] }
 0x628   :  { %2842 = vmatprep.subr.mxu0 %v7287_v36  ;;  %2913 = vmatprep.subr.mxu1 %v7290_v55  ;;  %9280 = vst [vmem:[#allocation84_spill] sm:$0xff] %v7299_v14  ;;  %9281 = vst [vmem:[#allocation85_spill] sm:$0xff] %v7302_v48  ;;  %v7305_v36 = vld [vmem:[#allocation6 + $0x120] sm:$0xff]  ;;  %v7308_v55 = vld [vmem:[#allocation6 + $0x130] sm:$0xff] }
 0x629   :  { %2843 = vmatpush1.msra.mxu0 %v7293_v7  ;;  %2914 = vmatpush1.msra.mxu1 %v7296_v44  ;;  %9282 = vst [vmem:[#allocation86_spill] sm:$0xff] %v7305_v36  ;;  %9283 = vst [vmem:[#allocation87_spill] sm:$0xff] %v7308_v55  ;;  %v7311_v7 = vld [vmem:[#allocation6 + $0x108] sm:$0xff]  ;;  %v7314_v44 = vld [vmem:[#allocation6 + $0x118] sm:$0xff] }
 0x62a   :  { %2844 = vmatprep.subr.mxu0 %v7299_v14  ;;  %2915 = vmatprep.subr.mxu1 %v7302_v48  ;;  %9284 = vst [vmem:[#allocation88_spill] sm:$0xff] %v7311_v7  ;;  %9285 = vst [vmem:[#allocation89_spill] sm:$0xff] %v7314_v44  ;;  %v7317_v14 = vld [vmem:[#allocation6 + $0x100] sm:$0xff]  ;;  %v7320_v48 = vld [vmem:[#allocation6 + $0x110] sm:$0xff] }
 0x62b   :  { %2845 = vmatpush1.msra.mxu0 %v7305_v36  ;;  %2916 = vmatpush1.msra.mxu1 %v7308_v55  ;;  %9286 = vst [vmem:[#allocation90_spill] sm:$0xff] %v7317_v14  ;;  %9287 = vst [vmem:[#allocation91_spill] sm:$0xff] %v7320_v48  ;;  %v7323_v36 = vld [vmem:[#allocation6 + $0xe8] sm:$0xff]  ;;  %v7326_v55 = vld [vmem:[#allocation6 + $0xf8] sm:$0xff] }
 0x62c   :  { %2846 = vmatprep.subr.mxu0 %v7311_v7  ;;  %2917 = vmatprep.subr.mxu1 %v7314_v44  ;;  %9288 = vst [vmem:[#allocation92_spill] sm:$0xff] %v7323_v36  ;;  %9289 = vst [vmem:[#allocation93_spill] sm:$0xff] %v7326_v55  ;;  %v7329_v7 = vld [vmem:[#allocation6 + $0xe0] sm:$0xff]  ;;  %v7332_v44 = vld [vmem:[#allocation6 + $0xf0] sm:$0xff] }
 0x62d   :  { %2847 = vmatpush1.msra.mxu0 %v7317_v14  ;;  %2918 = vmatpush1.msra.mxu1 %v7320_v48  ;;  %9290 = vst [vmem:[#allocation94_spill] sm:$0xff] %v7329_v7  ;;  %9291 = vst [vmem:[#allocation95_spill] sm:$0xff] %v7332_v44  ;;  %v7335_v14 = vld [vmem:[#allocation6 + $0xc8] sm:$0xff]  ;;  %v7338_v48 = vld [vmem:[#allocation6 + $0xd8] sm:$0xff] }
 0x62e   :  { %2848 = vmatprep.subr.mxu0 %v7323_v36  ;;  %2919 = vmatprep.subr.mxu1 %v7326_v55  ;;  %9292 = vst [vmem:[#allocation96_spill] sm:$0xff] %v7335_v14  ;;  %9293 = vst [vmem:[#allocation97_spill] sm:$0xff] %v7338_v48  ;;  %v7341_v36 = vld [vmem:[#allocation6 + $0xc0] sm:$0xff]  ;;  %v7344_v55 = vld [vmem:[#allocation6 + $0xd0] sm:$0xff] }
 0x62f   :  { %2849 = vmatpush1.msra.mxu0 %v7329_v7  ;;  %2920 = vmatpush1.msra.mxu1 %v7332_v44  ;;  %9294 = vst [vmem:[#allocation98_spill] sm:$0xff] %v7341_v36  ;;  %9295 = vst [vmem:[#allocation99_spill] sm:$0xff] %v7344_v55  ;;  %v7347_v7 = vld [vmem:[#allocation6 + $0xa8] sm:$0xff]  ;;  %v7350_v44 = vld [vmem:[#allocation6 + $0xb8] sm:$0xff] }
 0x630   :  { %2850 = vmatprep.subr.mxu0 %v7335_v14  ;;  %2921 = vmatprep.subr.mxu1 %v7338_v48  ;;  %9296 = vst [vmem:[#allocation100_spill] sm:$0xff] %v7347_v7  ;;  %9297 = vst [vmem:[#allocation101_spill] sm:$0xff] %v7350_v44  ;;  %v7353_v14 = vld [vmem:[#allocation6 + $0xa0] sm:$0xff]  ;;  %v7356_v48 = vld [vmem:[#allocation6 + $0xb0] sm:$0xff] }
 0x631   :  { %2851 = vmatpush1.msra.mxu0 %v7341_v36  ;;  %2922 = vmatpush1.msra.mxu1 %v7344_v55  ;;  %9298 = vst [vmem:[#allocation102_spill] sm:$0xff] %v7353_v14  ;;  %9299 = vst [vmem:[#allocation103_spill] sm:$0xff] %v7356_v48  ;;  %v7359_v36 = vld [vmem:[#allocation6 + $0x88] sm:$0xff]  ;;  %v7362_v55 = vld [vmem:[#allocation6 + $0x98] sm:$0xff] }
 0x632   :  { %2852 = vmatprep.subr.mxu0 %v7347_v7  ;;  %2923 = vmatprep.subr.mxu1 %v7350_v44  ;;  %9300 = vst [vmem:[#allocation104_spill] sm:$0xff] %v7359_v36  ;;  %9301 = vst [vmem:[#allocation105_spill] sm:$0xff] %v7362_v55  ;;  %v7365_v7 = vld [vmem:[#allocation6 + $0x80] sm:$0xff]  ;;  %v7368_v44 = vld [vmem:[#allocation6 + $0x90] sm:$0xff] }
 0x633   :  { %2853 = vmatpush1.msra.mxu0 %v7353_v14  ;;  %2924 = vmatpush1.msra.mxu1 %v7356_v48  ;;  %9302 = vst [vmem:[#allocation106_spill] sm:$0xff] %v7365_v7  ;;  %9303 = vst [vmem:[#allocation107_spill] sm:$0xff] %v7368_v44  ;;  %v7371_v14 = vld [vmem:[#allocation6 + $0x68] sm:$0xff]  ;;  %v7374_v48 = vld [vmem:[#allocation6 + $0x78] sm:$0xff] }
 0x634   :  { %2854 = vmatprep.subr.mxu0 %v7359_v36  ;;  %2925 = vmatprep.subr.mxu1 %v7362_v55  ;;  %9304 = vst [vmem:[#allocation108_spill] sm:$0xff] %v7371_v14  ;;  %9305 = vst [vmem:[#allocation109_spill] sm:$0xff] %v7374_v48  ;;  %v7377_v36 = vld [vmem:[#allocation6 + $0x60] sm:$0xff]  ;;  %v7380_v55 = vld [vmem:[#allocation6 + $0x70] sm:$0xff] }
 0x635   :  { %2855 = vmatpush1.msra.mxu0 %v7365_v7  ;;  %2926 = vmatpush1.msra.mxu1 %v7368_v44  ;;  %9306 = vst [vmem:[#allocation110_spill] sm:$0xff] %v7377_v36  ;;  %9307 = vst [vmem:[#allocation111_spill] sm:$0xff] %v7380_v55  ;;  %v7383_v7 = vld [vmem:[#allocation6 + $0x48] sm:$0xff]  ;;  %v7386_v44 = vld [vmem:[#allocation6 + $0x58] sm:$0xff] }
 0x636   :  { %2856 = vmatprep.subr.mxu0 %v7371_v14  ;;  %2927 = vmatprep.subr.mxu1 %v7374_v48  ;;  %9308 = vst [vmem:[#allocation112_spill] sm:$0xff] %v7383_v7  ;;  %9309 = vst [vmem:[#allocation113_spill] sm:$0xff] %v7386_v44  ;;  %v7389_v14 = vld [vmem:[#allocation6 + $0x40] sm:$0xff]  ;;  %v7392_v48 = vld [vmem:[#allocation6 + $0x50] sm:$0xff] }
 0x637   :  { %2857 = vmatpush1.msra.mxu0 %v7377_v36  ;;  %2928 = vmatpush1.msra.mxu1 %v7380_v55  ;;  %9310 = vst [vmem:[#allocation114_spill] sm:$0xff] %v7389_v14  ;;  %9311 = vst [vmem:[#allocation115_spill] sm:$0xff] %v7392_v48  ;;  %v7395_v36 = vld [vmem:[#allocation6 + $0x28] sm:$0xff]  ;;  %v7398_v55 = vld [vmem:[#allocation6 + $0x38] sm:$0xff] }
 0x638   :  { %2858 = vmatprep.subr.mxu0 %v7383_v7  ;;  %2929 = vmatprep.subr.mxu1 %v7386_v44  ;;  %9312 = vst [vmem:[#allocation116_spill] sm:$0xff] %v7395_v36  ;;  %9313 = vst [vmem:[#allocation117_spill] sm:$0xff] %v7398_v55  ;;  %v7401_v7 = vld [vmem:[#allocation6 + $0x20] sm:$0xff]  ;;  %v7404_v44 = vld [vmem:[#allocation6 + $0x30] sm:$0xff] }
 0x639   :  { %2859 = vmatpush1.msra.mxu0 %v7389_v14  ;;  %2930 = vmatpush1.msra.mxu1 %v7392_v48  ;;  %9314 = vst [vmem:[#allocation118_spill] sm:$0xff] %v7401_v7  ;;  %9315 = vst [vmem:[#allocation119_spill] sm:$0xff] %v7404_v44  ;;  %v7407_v14 = vld [vmem:[#allocation6 + $0x8] sm:$0xff]  ;;  %v7410_v48 = vld [vmem:[#allocation6 + $0x18] sm:$0xff] }
 0x63a   :  { %2860 = vmatprep.subr.mxu0 %v7395_v36  ;;  %2931 = vmatprep.subr.mxu1 %v7398_v55  ;;  %9316 = vst [vmem:[#allocation120_spill] sm:$0xff] %v7407_v14  ;;  %9317 = vst [vmem:[#allocation121_spill] sm:$0xff] %v7410_v48  ;;  %v7413_v36 = vld [vmem:[#allocation6] sm:$0xff]  ;;  %v7416_v55 = vld [vmem:[#allocation6 + $0x10] sm:$0xff] }
 0x63b   :  { %2861 = vmatpush1.msra.mxu0 %v7401_v7  ;;  %2932 = vmatpush1.msra.mxu1 %v7404_v44  ;;  %9318 = vst [vmem:[#allocation122_spill] sm:$0xff] %v7413_v36  ;;  %9319 = vst [vmem:[#allocation123_spill] sm:$0xff] %v7416_v55 }
 0x63c   :  { %2862 = vmatprep.subr.mxu0 %v7407_v14  ;;  %2933 = vmatprep.subr.mxu1 %v7410_v48  ;;  %v9320_v48 = vld [vmem:[#allocation146_spill] sm:$0xff] }
 0x63d   :  { %2863 = vmatpush1.msra.mxu0 %v7413_v36  ;;  %2934 = vmatpush1.msra.mxu1 %v7416_v55  ;;  %v261_v50 = vadd.f32 %v9320_v48, %v9178_v29 }
 0x63e   :  { %2896 = vmatprep.mubr.f32.mxu0 %v8665_v18  ;;  %2967 = vmatprep.mubr.f32.mxu1 %v8665_v18 }
 0x63f   :  { %2996 = vmatprep.subr.mxu0 %v6885_v32  ;;  %3067 = vmatprep.subr.mxu1 %v6888_v45 }
 0x69a   :  { %v2424_v14 = vpop.f32.mrf.mxu0  ;;  %v2495_v44 = vpop.f32.mrf.mxu1 }
 0x69c   :  { %v2426_v7 = vpop.f32.mrf.mxu0  ;;  %v2497_v60 = vpop.f32.mrf.mxu1 }
 0x6bb   :  { %v2588_v36 = vpop.f32.mrf.mxu0  ;;  %v2659_v47 = vpop.f32.mrf.mxu1 }
 0x6bc   :  { %v2974_v55 = vadd.f32 %v2588_v36, %v261_v50  ;;  %v2976_v45 = vadd.f32 %v2659_v47, %v374_v42 }
 0x6bd   :  { %v2590_v31 = vpop.f32.mrf.mxu0  ;;  %v2661_v24 = vpop.f32.mrf.mxu1 }
 0x6be   :  { %v2978_v32 = vmul.f32 0.5, %v2974_v55  ;;  %v2975_v27 = vadd.f32 %v2590_v31, %v263_v35 }
 0x6c0   :  { %4364 = vtanh.f32 %v2978_v32  ;;  %v2982_v58 = vmul.f32 0.5, %v2975_v27 }
 0x6c2   :  { %4366 = vtanh.f32 %v2982_v58 }
 0x6c3   :  { %4368 = vtanh.f32 %v2976_v45 }
 0x6cd   :  { %v4365_v26 = vpop.eup %4364 }
 0x6ce   :  { %v2980_v48 = vmul.f32 0.5, %v4365_v26 }
 0x6cf   :  { %v4367_v29 = vpop.eup %4366 }
 0x6d0   :  { %v2981_v59 = vadd.f32 0.5, %v2980_v48  ;;  %v2984_v16 = vmul.f32 0.5, %v4367_v29  ;;  %v4369_v2 = vpop.eup %4368 }
 0x6d2   :  { %v2985_v63 = vadd.f32 0.5, %v2984_v16  ;;  %v2992_v36 = vmul.f32 %v4369_v2, %v2981_v59 }
 0x6d4   :  { %v2991_v50 = vmul.f32 %v2985_v63, %v6898_v46 }
 0x6d6   :  { %v7430_v39 = vadd.f32 %v2992_v36, %v2991_v50 }
 0x6dd   :  { %v2730_v55 = vpop.f32.mrf.mxu0  ;;  %v2801_v35 = vpop.f32.mrf.mxu1 }
 0x6de   :  { %v2806_v31 = vadd.f32 %v2730_v55, %v2424_v14  ;;  %v2808_v26 = vadd.f32 %v2801_v35, %v2495_v44 }
 0x6df   :  { %v2732_v42 = vpop.f32.mrf.mxu0  ;;  %v2803_v16 = vpop.f32.mrf.mxu1 }
 0x6e0   :  { %v2810_v58 = vadd.f32 %v2806_v31, %v8899_v57  ;;  %v2807_v27 = vadd.f32 %v2732_v42, %v2426_v7  ;;  %v2812_v2 = vadd.f32 %v2808_v26, %v8901_v5  ;;  %v2809_v46 = vadd.f32 %v2803_v16, %v2497_v60  ;;  %v9323_v26 = vld [vmem:[#allocation149_spill] sm:$0xff] }
 0x6e1   :  { %v7442_v16 = vld [vmem:[#allocation4 + $0x3c0] sm:$0xff] }
 0x6e2   :  { %v2814_v47 = vmul.f32 0.5, %v2810_v58  ;;  %v2811_v32 = vadd.f32 %v2807_v27, %v8900_v61  ;;  %v2813_v59 = vadd.f32 %v2809_v46, %v5763_v34  ;;  %v7451_v46 = vld [vmem:[#allocation4 + $0x398] sm:$0xff] }
 0x6e4   :  { %4370 = vtanh.f32 %v2814_v47  ;;  %v2818_v29 = vmul.f32 0.5, %v2811_v32  ;;  %v2823_v14 = vmul.f32 0.5, %v2813_v59  ;;  %v376_v32 = vadd.f32 %v9323_v26, %v5295_v33  ;;  %v7454_v59 = vld [vmem:[#allocation4 + $0x380] sm:$0xff] }
 0x6e5   :  { %v7502_v26 = vld [vmem:[#allocation4 + $0x280] sm:$0xff] }
 0x6e6   :  { %4372 = vtanh.f32 %v2818_v29  ;;  %v2977_v29 = vadd.f32 %v2661_v24, %v376_v32  ;;  %v7457_v24 = vld [vmem:[#allocation4 + $0x390] sm:$0xff]  ;;  %9326 = vst [vmem:[#allocation126_spill] sm:$0xff] %v7502_v26 }
 0x6e7   :  { %4374 = vtanh.f32 %v2812_v2  ;;  %v7448_v2 = vld [vmem:[#allocation4 + $0x388] sm:$0xff]  ;;  %v7505_v32 = vld [vmem:[#allocation4 + $0x290] sm:$0xff] }
 0x6e8   :  { %4376 = vtanh.f32 %v2823_v14  ;;  %v7460_v14 = vld [vmem:[#allocation4 + $0x348] sm:$0xff]  ;;  %9327 = vst [vmem:[#allocation127_spill] sm:$0xff] %v7505_v32 }
 0x6f1   :  { %v4371_v45 = vpop.eup %4370 }
 0x6f2   :  { %v2816_v48 = vmul.f32 0.5, %v4371_v45  ;;  %v7463_v45 = vld [vmem:[#allocation4 + $0x358] sm:$0xff] }
 0x6f3   :  { %v4373_v63 = vpop.eup %4372 }
 0x6f4   :  { %v2817_v36 = vadd.f32 0.5, %v2816_v48  ;;  %v2820_v7 = vmul.f32 0.5, %v4373_v63  ;;  %v4375_v50 = vpop.eup %4374  ;;  %v2987_v48 = vmul.f32 0.5, %v2977_v29  ;;  %v7466_v63 = vld [vmem:[#allocation4 + $0x340] sm:$0xff]  ;;  %v7508_v29 = vld [vmem:[#allocation4 + $0x248] sm:$0xff] }
 0x6f5   :  { %v4377_v60 = vpop.eup %4376  ;;  %9328 = vst [vmem:[#allocation128_spill] sm:$0xff] %v7508_v29 }
 0x6f6   :  { %v2821_v44 = vadd.f32 0.5, %v2820_v7  ;;  %v2828_v31 = vmul.f32 %v4375_v50, %v2817_v36  ;;  %v2825_v42 = vmul.f32 0.5, %v4377_v60  ;;  %v7469_v36 = vld [vmem:[#allocation4 + $0x350] sm:$0xff]  ;;  %v7472_v7 = vld [vmem:[#allocation4 + $0x308] sm:$0xff]  ;;  %v7478_v50 = vld [vmem:[#allocation4 + $0x300] sm:$0xff] }
 0x6f7   :  { %v7487_v60 = vld [vmem:[#allocation4 + $0x2d8] sm:$0xff] }
 0x6f8   :  { %v2827_v55 = vmul.f32 %v2821_v44, %v6905_v56  ;;  %v2826_v58 = vadd.f32 0.5, %v2825_v42  ;;  %v7445_v56 = vld [vmem:[#allocation4 + $0x3d0] sm:$0xff]  ;;  %v7475_v44 = vld [vmem:[#allocation4 + $0x318] sm:$0xff]  ;;  %v7490_v42 = vld [vmem:[#allocation4 + $0x2c0] sm:$0xff] }
 0x6fa   :  { %v7437_v35 = vadd.f32 %v2828_v31, %v2827_v55  ;;  %v7481_v55 = vld [vmem:[#allocation4 + $0x310] sm:$0xff]  ;;  %v7484_v31 = vld [vmem:[#allocation4 + $0x2c8] sm:$0xff] }
 0x6fc   :  { %4378 = vtanh.f32 %v7437_v35 }
 0x6fd   :  { %4380 = vtanh.f32 %v2987_v48  ;;  %v7511_v48 = vld [vmem:[#allocation4 + $0x258] sm:$0xff] }
 0x6fe   :  { %9329 = vst [vmem:[#allocation129_spill] sm:$0xff] %v7511_v48  ;;  %4382 = vtanh.f32 %v7430_v39 }
 0x709   :  { %v4379_v27 = vpop.eup %4378 }
 0x70a   :  { %v2831_v47 = vmul.f32 %v4379_v27, %v2826_v58  ;;  %v7493_v58 = vld [vmem:[#allocation4 + $0x2d0] sm:$0xff]  ;;  %v7496_v27 = vld [vmem:[#allocation4 + $0x288] sm:$0xff] }
 0x70b   :  { %9324 = vst [vmem:[#allocation124_spill] sm:$0xff] %v7496_v27 }
 0x70c   :  { %2897 = vmatmul.mubr.f32.vlgmr.msra.gmra.mxu0 %v2831_v47  ;;  %2968 = vmatmul.mubr.f32.vlgmr.msra.gmra.mxu1 %v2831_v47  ;;  %v7499_v47 = vld [vmem:[#allocation4 + $0x298] sm:$0xff] }
 0x70d   :  { %2997 = vmatpush1.msra.mxu0 %v7442_v16  ;;  %3068 = vmatpush1.msra.mxu1 %v7445_v56  ;;  %9325 = vst [vmem:[#allocation125_spill] sm:$0xff] %v7499_v47 }
 0x70e   :  { %2998 = vmatprep.subr.mxu0 %v7448_v2  ;;  %3069 = vmatprep.subr.mxu1 %v7451_v46 }
 0x70f   :  { %2999 = vmatpush1.msra.mxu0 %v7454_v59  ;;  %3070 = vmatpush1.msra.mxu1 %v7457_v24 }
 0x710   :  { %3000 = vmatprep.subr.mxu0 %v7460_v14  ;;  %3071 = vmatprep.subr.mxu1 %v7463_v45 }
 0x711   :  { %3001 = vmatpush1.msra.mxu0 %v7466_v63  ;;  %3072 = vmatpush1.msra.mxu1 %v7469_v36 }
 0x712   :  { %3002 = vmatprep.subr.mxu0 %v7472_v7  ;;  %3073 = vmatprep.subr.mxu1 %v7475_v44 }
 0x713   :  { %3003 = vmatpush1.msra.mxu0 %v7478_v50  ;;  %3074 = vmatpush1.msra.mxu1 %v7481_v55 }
 0x714   :  { %3004 = vmatprep.subr.mxu0 %v7484_v31  ;;  %3075 = vmatprep.subr.mxu1 %v7487_v60 }
 0x715   :  { %3005 = vmatpush1.msra.mxu0 %v7490_v42  ;;  %3076 = vmatpush1.msra.mxu1 %v7493_v58 }
 0x716   :  { %3006 = vmatprep.subr.mxu0 %v7496_v27  ;;  %3077 = vmatprep.subr.mxu1 %v7499_v47  ;;  %v7514_v27 = vld [vmem:[#allocation4 + $0x240] sm:$0xff]  ;;  %v7517_v47 = vld [vmem:[#allocation4 + $0x250] sm:$0xff] }
 0x717   :  { %3007 = vmatpush1.msra.mxu0 %v7502_v26  ;;  %3078 = vmatpush1.msra.mxu1 %v7505_v32  ;;  %9330 = vst [vmem:[#allocation130_spill] sm:$0xff] %v7514_v27  ;;  %9331 = vst [vmem:[#allocation131_spill] sm:$0xff] %v7517_v47  ;;  %v7520_v26 = vld [vmem:[#allocation4 + $0x208] sm:$0xff]  ;;  %v7523_v32 = vld [vmem:[#allocation4 + $0x218] sm:$0xff] }
 0x718   :  { %3008 = vmatprep.subr.mxu0 %v7508_v29  ;;  %3079 = vmatprep.subr.mxu1 %v7511_v48  ;;  %9332 = vst [vmem:[#allocation132_spill] sm:$0xff] %v7520_v26  ;;  %9333 = vst [vmem:[#allocation133_spill] sm:$0xff] %v7523_v32  ;;  %v7527_v29 = vld [vmem:[#allocation4 + $0x200] sm:$0xff]  ;;  %v7530_v48 = vld [vmem:[#allocation4 + $0x210] sm:$0xff] }
 0x719   :  { %3009 = vmatpush1.msra.mxu0 %v7514_v27  ;;  %3080 = vmatpush1.msra.mxu1 %v7517_v47  ;;  %9334 = vst [vmem:[#allocation142_spill] sm:$0xff] %v7527_v29  ;;  %9335 = vst [vmem:[#allocation144_spill] sm:$0xff] %v7530_v48  ;;  %v7533_v27 = vld [vmem:[#allocation4 + $0x1c8] sm:$0xff]  ;;  %v7536_v47 = vld [vmem:[#allocation4 + $0x1d8] sm:$0xff] }
 0x71a   :  { %3010 = vmatprep.subr.mxu0 %v7520_v26  ;;  %3081 = vmatprep.subr.mxu1 %v7523_v32  ;;  %v7539_v26 = vld [vmem:[#allocation4 + $0x1c0] sm:$0xff]  ;;  %v7542_v32 = vld [vmem:[#allocation4 + $0x1d0] sm:$0xff] }
 0x71b   :  { %3011 = vmatpush1.msra.mxu0 %v7527_v29  ;;  %3082 = vmatpush1.msra.mxu1 %v7530_v48  ;;  %9336 = vst [vmem:[#allocation143_spill] sm:$0xff] %v7542_v32  ;;  %v7545_v29 = vld [vmem:[#allocation4 + $0x188] sm:$0xff]  ;;  %v7548_v48 = vld [vmem:[#allocation4 + $0x198] sm:$0xff] }
 0x71c   :  { %3012 = vmatprep.subr.mxu0 %v7533_v27  ;;  %3083 = vmatprep.subr.mxu1 %v7536_v47 }
 0x71d   :  { %3013 = vmatpush1.msra.mxu0 %v7539_v26  ;;  %3084 = vmatpush1.msra.mxu1 %v7542_v32  ;;  %v4381_v32 = vpop.eup %4380 }
 0x71e   :  { %3014 = vmatprep.subr.mxu0 %v7545_v29  ;;  %3085 = vmatprep.subr.mxu1 %v7548_v48 }
 0x71f   :  { %3015 = vmatpush1.msra.mxu0 %v6947_v10  ;;  %3086 = vmatpush1.msra.mxu1 %v6950_v41  ;;  %v2989_v10 = vmul.f32 0.5, %v4381_v32  ;;  %v4383_v41 = vpop.eup %4382  ;;  %v9364_v32 = vld [vmem:[#allocation28_spill] sm:$0xff] }
 0x720   :  { %3016 = vmatprep.subr.mxu0 %v6953_v21  ;;  %3087 = vmatprep.subr.mxu1 %v6956_v37 }
 0x721   :  { %3017 = vmatpush1.msra.mxu0 %v6959_v15  ;;  %3088 = vmatpush1.msra.mxu1 %v6962_v4  ;;  %v2990_v21 = vadd.f32 0.5, %v2989_v10  ;;  %v9337_v15 = vld [vmem:[#allocation167_spill] sm:$0xff]  ;;  %v9338_v4 = vld [vmem:[#allocation168_spill] sm:$0xff]  ;;  %v9365_v10 = vld [vmem:[#allocation29_spill] sm:$0xff] }
 0x722   :  { %3018 = vmatprep.subr.mxu0 %v6965_v40  ;;  %3089 = vmatprep.subr.mxu1 %v6968_v20  ;;  %v9339_v40 = vld [vmem:[#allocation169_spill] sm:$0xff]  ;;  %v9340_v20 = vld [vmem:[#allocation170_spill] sm:$0xff] }
 0x723   :  { %3019 = vmatpush1.msra.mxu0 %v6971_v30  ;;  %3090 = vmatpush1.msra.mxu1 %v6974_v0  ;;  %v7577_v37 = vmul.f32 %v4383_v41, %v2990_v21  ;;  %v9341_v30 = vld [vmem:[#allocation171_spill] sm:$0xff]  ;;  %v9342_v0 = vld [vmem:[#allocation172_spill] sm:$0xff]  ;;  %v9366_v41 = vld [vmem:[#allocation30_spill] sm:$0xff] }
 0x724   :  { %3020 = vmatprep.subr.mxu0 %v6977_v6  ;;  %3091 = vmatprep.subr.mxu1 %v6980_v19  ;;  %v9343_v6 = vld [vmem:[#allocation138_spill] sm:$0xff]  ;;  %v9344_v19 = vld [vmem:[#allocation140_spill] sm:$0xff]  ;;  %v9367_v21 = vld [vmem:[#allocation31_spill] sm:$0xff] }
 0x725   :  { %3021 = vmatpush1.msra.mxu0 %v6983_v8  ;;  %3092 = vmatpush1.msra.mxu1 %v6986_v9  ;;  %v9345_v8 = vld [vmem:[#allocation139_spill] sm:$0xff]  ;;  %v9346_v9 = vld [vmem:[#allocation141_spill] sm:$0xff] }
 0x726   :  { %3022 = vmatprep.subr.mxu0 %v6989_v11  ;;  %3093 = vmatprep.subr.mxu1 %v6992_v22  ;;  %v9347_v11 = vld [vmem:[#allocation11_spill] sm:$0xff]  ;;  %v9348_v22 = vld [vmem:[#allocation12_spill] sm:$0xff] }
 0x727   :  { %3023 = vmatpush1.msra.mxu0 %v6995_v51  ;;  %3094 = vmatpush1.msra.mxu1 %v6998_v17  ;;  %v9349_v51 = vld [vmem:[#allocation13_spill] sm:$0xff]  ;;  %v9350_v17 = vld [vmem:[#allocation14_spill] sm:$0xff] }
 0x728   :  { %3024 = vmatprep.subr.mxu0 %v7001_v12  ;;  %3095 = vmatprep.subr.mxu1 %v7004_v13  ;;  %v9351_v12 = vld [vmem:[#allocation15_spill] sm:$0xff]  ;;  %v9352_v13 = vld [vmem:[#allocation16_spill] sm:$0xff] }
 0x729   :  { %3025 = vmatpush1.msra.mxu0 %v7007_v43  ;;  %3096 = vmatpush1.msra.mxu1 %v7010_v54  ;;  %v9353_v43 = vld [vmem:[#allocation17_spill] sm:$0xff]  ;;  %v9354_v54 = vld [vmem:[#allocation18_spill] sm:$0xff] }
 0x72a   :  { %3026 = vmatprep.subr.mxu0 %v7013_v23  ;;  %3097 = vmatprep.subr.mxu1 %v7016_v52  ;;  %v9355_v23 = vld [vmem:[#allocation19_spill] sm:$0xff]  ;;  %v9356_v52 = vld [vmem:[#allocation20_spill] sm:$0xff] }
 0x72b   :  { %3027 = vmatpush1.msra.mxu0 %v7019_v53  ;;  %3060 = vmatprep.mubr.f32.mxu0 %v8665_v18  ;;  %v9357_v53 = vld [vmem:[#allocation21_spill] sm:$0xff] }
 0x72c   :  { %3098 = vmatpush1.msra.mxu1 %v7025_v49  ;;  %3131 = vmatprep.mubr.f32.mxu1 %v8665_v18  ;;  %v9358_v49 = vld [vmem:[#allocation22_spill] sm:$0xff] }
 0x72d   :  { %3061 = vmatmul.mubr.f32.vlgmr.msra.gmra.mxu0 %v7577_v37  ;;  %3132 = vmatmul.mubr.f32.vlgmr.msra.gmra.mxu1 %v7577_v37 }
 0x72e   :  { %3138 = vmatprep.subr.mxu0 %v7031_v3  ;;  %3209 = vmatprep.subr.mxu1 %v7034_v38  ;;  %v9359_v3 = vld [vmem:[#allocation23_spill] sm:$0xff]  ;;  %v9360_v38 = vld [vmem:[#allocation24_spill] sm:$0xff] }
 0x72f   :  { %3139 = vmatpush1.msra.mxu0 %v7037_v28  ;;  %3210 = vmatpush1.msra.mxu1 %v7040_v62  ;;  %v9361_v28 = vld [vmem:[#allocation25_spill] sm:$0xff]  ;;  %v9362_v62 = vld [vmem:[#allocation26_spill] sm:$0xff] }
 0x730   :  { %3140 = vmatprep.subr.mxu0 %v7043_v1  ;;  %3211 = vmatprep.subr.mxu1 %v9337_v15  ;;  %v9363_v1 = vld [vmem:[#allocation27_spill] sm:$0xff]  ;;  %v9368_v15 = vld [vmem:[#allocation32_spill] sm:$0xff] }
 0x731   :  { %3141 = vmatpush1.msra.mxu0 %v9338_v4  ;;  %3212 = vmatpush1.msra.mxu1 %v9339_v40  ;;  %v9369_v4 = vld [vmem:[#allocation33_spill] sm:$0xff]  ;;  %v9370_v40 = vld [vmem:[#allocation34_spill] sm:$0xff] }
 0x732   :  { %3142 = vmatprep.subr.mxu0 %v9340_v20  ;;  %3213 = vmatprep.subr.mxu1 %v9341_v30  ;;  %v9371_v20 = vld [vmem:[#allocation35_spill] sm:$0xff]  ;;  %v9372_v30 = vld [vmem:[#allocation36_spill] sm:$0xff] }
 0x733   :  { %3143 = vmatpush1.msra.mxu0 %v9342_v0  ;;  %3214 = vmatpush1.msra.mxu1 %v9343_v6  ;;  %v9373_v0 = vld [vmem:[#allocation37_spill] sm:$0xff]  ;;  %v9374_v6 = vld [vmem:[#allocation38_spill] sm:$0xff] }
 0x734   :  { %3144 = vmatprep.subr.mxu0 %v9344_v19  ;;  %3215 = vmatprep.subr.mxu1 %v9345_v8  ;;  %v9375_v19 = vld [vmem:[#allocation39_spill] sm:$0xff]  ;;  %v9376_v8 = vld [vmem:[#allocation40_spill] sm:$0xff] }
 0x735   :  { %3145 = vmatpush1.msra.mxu0 %v9346_v9  ;;  %3216 = vmatpush1.msra.mxu1 %v9347_v11  ;;  %v9377_v9 = vld [vmem:[#allocation41_spill] sm:$0xff]  ;;  %v9378_v11 = vld [vmem:[#allocation42_spill] sm:$0xff] }
 0x736   :  { %3146 = vmatprep.subr.mxu0 %v9348_v22  ;;  %3217 = vmatprep.subr.mxu1 %v9349_v51  ;;  %v9379_v22 = vld [vmem:[#allocation43_spill] sm:$0xff]  ;;  %v9380_v51 = vld [vmem:[#allocation44_spill] sm:$0xff] }
 0x737   :  { %3147 = vmatpush1.msra.mxu0 %v9350_v17  ;;  %3218 = vmatpush1.msra.mxu1 %v9351_v12  ;;  %v9381_v17 = vld [vmem:[#allocation45_spill] sm:$0xff]  ;;  %v9382_v12 = vld [vmem:[#allocation46_spill] sm:$0xff] }
 0x738   :  { %3148 = vmatprep.subr.mxu0 %v9352_v13  ;;  %3219 = vmatprep.subr.mxu1 %v9353_v43  ;;  %v9383_v13 = vld [vmem:[#allocation47_spill] sm:$0xff]  ;;  %v9384_v43 = vld [vmem:[#allocation48_spill] sm:$0xff] }
 0x739   :  { %3149 = vmatpush1.msra.mxu0 %v9354_v54  ;;  %3220 = vmatpush1.msra.mxu1 %v9355_v23  ;;  %v9385_v54 = vld [vmem:[#allocation49_spill] sm:$0xff]  ;;  %v9386_v23 = vld [vmem:[#allocation50_spill] sm:$0xff] }
 0x73a   :  { %3150 = vmatprep.subr.mxu0 %v9356_v52  ;;  %3221 = vmatprep.subr.mxu1 %v9357_v53  ;;  %v9387_v52 = vld [vmem:[#allocation51_spill] sm:$0xff]  ;;  %v9388_v53 = vld [vmem:[#allocation52_spill] sm:$0xff] }
 0x73b   :  { %3151 = vmatpush1.msra.mxu0 %v9358_v49  ;;  %3222 = vmatpush1.msra.mxu1 %v9359_v3  ;;  %v9389_v49 = vld [vmem:[#allocation53_spill] sm:$0xff]  ;;  %v9390_v3 = vld [vmem:[#allocation54_spill] sm:$0xff] }
 0x73c   :  { %3152 = vmatprep.subr.mxu0 %v9360_v38  ;;  %3223 = vmatprep.subr.mxu1 %v9361_v28  ;;  %v9391_v38 = vld [vmem:[#allocation55_spill] sm:$0xff]  ;;  %v9392_v28 = vld [vmem:[#allocation56_spill] sm:$0xff] }
 0x73d   :  { %3153 = vmatpush1.msra.mxu0 %v9362_v62  ;;  %3224 = vmatpush1.msra.mxu1 %v9363_v1  ;;  %v9393_v62 = vld [vmem:[#allocation57_spill] sm:$0xff]  ;;  %v9394_v1 = vld [vmem:[#allocation58_spill] sm:$0xff] }
 0x73e   :  { %3154 = vmatprep.subr.mxu0 %v9364_v32  ;;  %3225 = vmatprep.subr.mxu1 %v9365_v10  ;;  %v9395_v32 = vld [vmem:[#allocation59_spill] sm:$0xff]  ;;  %v9396_v10 = vld [vmem:[#allocation60_spill] sm:$0xff] }
 0x73f   :  { %3155 = vmatpush1.msra.mxu0 %v9366_v41  ;;  %3226 = vmatpush1.msra.mxu1 %v9367_v21  ;;  %v9397_v41 = vld [vmem:[#allocation61_spill] sm:$0xff]  ;;  %v9398_v21 = vld [vmem:[#allocation62_spill] sm:$0xff] }
 0x740   :  { %3156 = vmatprep.subr.mxu0 %v9368_v15  ;;  %3227 = vmatprep.subr.mxu1 %v9369_v4  ;;  %v9399_v15 = vld [vmem:[#allocation63_spill] sm:$0xff]  ;;  %v9400_v4 = vld [vmem:[#allocation64_spill] sm:$0xff] }
 0x741   :  { %3157 = vmatpush1.msra.mxu0 %v9370_v40  ;;  %3228 = vmatpush1.msra.mxu1 %v9371_v20  ;;  %v9401_v40 = vld [vmem:[#allocation65_spill] sm:$0xff]  ;;  %v9402_v20 = vld [vmem:[#allocation66_spill] sm:$0xff] }
 0x742   :  { %3158 = vmatprep.subr.mxu0 %v9372_v30  ;;  %3229 = vmatprep.subr.mxu1 %v9373_v0  ;;  %v9403_v30 = vld [vmem:[#allocation67_spill] sm:$0xff]  ;;  %v9404_v0 = vld [vmem:[#allocation68_spill] sm:$0xff] }
 0x743   :  { %3159 = vmatpush1.msra.mxu0 %v9374_v6  ;;  %3230 = vmatpush1.msra.mxu1 %v9375_v19  ;;  %v9405_v6 = vld [vmem:[#allocation69_spill] sm:$0xff]  ;;  %v9407_v19 = vld [vmem:[#allocation71_spill] sm:$0xff] }
 0x744   :  { %3160 = vmatprep.subr.mxu0 %v9376_v8  ;;  %3231 = vmatprep.subr.mxu1 %v9377_v9  ;;  %v9408_v8 = vld [vmem:[#allocation72_spill] sm:$0xff]  ;;  %v9409_v9 = vld [vmem:[#allocation73_spill] sm:$0xff] }
 0x745   :  { %3161 = vmatpush1.msra.mxu0 %v9378_v11  ;;  %3232 = vmatpush1.msra.mxu1 %v9379_v22  ;;  %v9410_v11 = vld [vmem:[#allocation74_spill] sm:$0xff]  ;;  %v9411_v22 = vld [vmem:[#allocation75_spill] sm:$0xff] }
 0x746   :  { %3162 = vmatprep.subr.mxu0 %v9380_v51  ;;  %3233 = vmatprep.subr.mxu1 %v9381_v17  ;;  %v9412_v51 = vld [vmem:[#allocation76_spill] sm:$0xff]  ;;  %v9413_v17 = vld [vmem:[#allocation77_spill] sm:$0xff] }
 0x747   :  { %3163 = vmatpush1.msra.mxu0 %v9382_v12  ;;  %3234 = vmatpush1.msra.mxu1 %v9383_v13  ;;  %v9414_v12 = vld [vmem:[#allocation78_spill] sm:$0xff]  ;;  %v9415_v13 = vld [vmem:[#allocation79_spill] sm:$0xff] }
 0x748   :  { %3164 = vmatprep.subr.mxu0 %v9384_v43  ;;  %3235 = vmatprep.subr.mxu1 %v9385_v54  ;;  %v9416_v43 = vld [vmem:[#allocation80_spill] sm:$0xff]  ;;  %v9417_v54 = vld [vmem:[#allocation81_spill] sm:$0xff] }
 0x749   :  { %3165 = vmatpush1.msra.mxu0 %v9386_v23  ;;  %3236 = vmatpush1.msra.mxu1 %v9387_v52  ;;  %v9418_v23 = vld [vmem:[#allocation82_spill] sm:$0xff]  ;;  %v9419_v52 = vld [vmem:[#allocation83_spill] sm:$0xff] }
 0x74a   :  { %3166 = vmatprep.subr.mxu0 %v9388_v53  ;;  %3237 = vmatprep.subr.mxu1 %v9389_v49  ;;  %v9420_v53 = vld [vmem:[#allocation84_spill] sm:$0xff]  ;;  %v9421_v49 = vld [vmem:[#allocation85_spill] sm:$0xff] }
 0x74b   :  { %3167 = vmatpush1.msra.mxu0 %v9390_v3  ;;  %3238 = vmatpush1.msra.mxu1 %v9391_v38  ;;  %v9422_v3 = vld [vmem:[#allocation86_spill] sm:$0xff]  ;;  %v9423_v38 = vld [vmem:[#allocation87_spill] sm:$0xff] }
 0x74c   :  { %3168 = vmatprep.subr.mxu0 %v9392_v28  ;;  %3239 = vmatprep.subr.mxu1 %v9393_v62  ;;  %v9424_v28 = vld [vmem:[#allocation88_spill] sm:$0xff]  ;;  %v9425_v62 = vld [vmem:[#allocation89_spill] sm:$0xff] }
 0x74d   :  { %3169 = vmatpush1.msra.mxu0 %v9394_v1  ;;  %3202 = vmatprep.mubr.f32.mxu0 %v8665_v18  ;;  %v9426_v1 = vld [vmem:[#allocation90_spill] sm:$0xff] }
 0x74e   :  { %3240 = vmatpush1.msra.mxu1 %v9395_v32  ;;  %3273 = vmatprep.mubr.f32.mxu1 %v8665_v18  ;;  %v9427_v32 = vld [vmem:[#allocation91_spill] sm:$0xff] }
 0x74f   :  { %3203 = vmatmul.mubr.f32.vlgmr.msra.gmra.mxu0 %v7577_v37  ;;  %3274 = vmatmul.mubr.f32.vlgmr.msra.gmra.mxu1 %v7577_v37  ;;  %v9406_v37 = vld [vmem:[#allocation70_spill] sm:$0xff] }
 0x750   :  { %3306 = vmatprep.subr.mxu0 %v9396_v10  ;;  %3377 = vmatprep.subr.mxu1 %v9397_v41  ;;  %v9428_v10 = vld [vmem:[#allocation92_spill] sm:$0xff]  ;;  %v9429_v41 = vld [vmem:[#allocation93_spill] sm:$0xff] }
 0x751   :  { %3307 = vmatpush1.msra.mxu0 %v9398_v21  ;;  %3378 = vmatpush1.msra.mxu1 %v9399_v15  ;;  %v9430_v21 = vld [vmem:[#allocation94_spill] sm:$0xff]  ;;  %v9431_v15 = vld [vmem:[#allocation95_spill] sm:$0xff] }
 0x752   :  { %3308 = vmatprep.subr.mxu0 %v9400_v4  ;;  %3379 = vmatprep.subr.mxu1 %v9401_v40  ;;  %v9432_v4 = vld [vmem:[#allocation96_spill] sm:$0xff]  ;;  %v9433_v40 = vld [vmem:[#allocation97_spill] sm:$0xff] }
 0x753   :  { %3309 = vmatpush1.msra.mxu0 %v9402_v20  ;;  %3380 = vmatpush1.msra.mxu1 %v9403_v30  ;;  %v9434_v20 = vld [vmem:[#allocation98_spill] sm:$0xff]  ;;  %v9435_v30 = vld [vmem:[#allocation99_spill] sm:$0xff] }
 0x754   :  { %3310 = vmatprep.subr.mxu0 %v9404_v0  ;;  %3381 = vmatprep.subr.mxu1 %v9405_v6  ;;  %v9436_v0 = vld [vmem:[#allocation100_spill] sm:$0xff]  ;;  %v9437_v6 = vld [vmem:[#allocation101_spill] sm:$0xff] }
 0x755   :  { %3311 = vmatpush1.msra.mxu0 %v9406_v37  ;;  %3382 = vmatpush1.msra.mxu1 %v9407_v19  ;;  %v9438_v37 = vld [vmem:[#allocation102_spill] sm:$0xff]  ;;  %v9439_v19 = vld [vmem:[#allocation103_spill] sm:$0xff] }
 0x756   :  { %3312 = vmatprep.subr.mxu0 %v9408_v8  ;;  %3383 = vmatprep.subr.mxu1 %v9409_v9  ;;  %v9440_v8 = vld [vmem:[#allocation104_spill] sm:$0xff]  ;;  %v9441_v9 = vld [vmem:[#allocation105_spill] sm:$0xff] }
 0x757   :  { %3313 = vmatpush1.msra.mxu0 %v9410_v11  ;;  %3384 = vmatpush1.msra.mxu1 %v9411_v22  ;;  %v9442_v11 = vld [vmem:[#allocation106_spill] sm:$0xff]  ;;  %v9443_v22 = vld [vmem:[#allocation107_spill] sm:$0xff] }
 0x758   :  { %3314 = vmatprep.subr.mxu0 %v9412_v51  ;;  %3385 = vmatprep.subr.mxu1 %v9413_v17  ;;  %v9444_v51 = vld [vmem:[#allocation108_spill] sm:$0xff]  ;;  %v9445_v17 = vld [vmem:[#allocation109_spill] sm:$0xff] }
 0x759   :  { %3315 = vmatpush1.msra.mxu0 %v9414_v12  ;;  %3386 = vmatpush1.msra.mxu1 %v9415_v13  ;;  %v9446_v12 = vld [vmem:[#allocation110_spill] sm:$0xff]  ;;  %v9447_v13 = vld [vmem:[#allocation111_spill] sm:$0xff] }
 0x75a   :  { %3316 = vmatprep.subr.mxu0 %v9416_v43  ;;  %3387 = vmatprep.subr.mxu1 %v9417_v54  ;;  %v9448_v43 = vld [vmem:[#allocation112_spill] sm:$0xff]  ;;  %v9449_v54 = vld [vmem:[#allocation113_spill] sm:$0xff] }
 0x75b   :  { %3317 = vmatpush1.msra.mxu0 %v9418_v23  ;;  %3388 = vmatpush1.msra.mxu1 %v9419_v52  ;;  %v9450_v23 = vld [vmem:[#allocation114_spill] sm:$0xff]  ;;  %v9451_v52 = vld [vmem:[#allocation115_spill] sm:$0xff] }
 0x75c   :  { %3318 = vmatprep.subr.mxu0 %v9420_v53  ;;  %3389 = vmatprep.subr.mxu1 %v9421_v49  ;;  %v9452_v53 = vld [vmem:[#allocation116_spill] sm:$0xff]  ;;  %v9453_v49 = vld [vmem:[#allocation117_spill] sm:$0xff] }
 0x75d   :  { %3319 = vmatpush1.msra.mxu0 %v9422_v3  ;;  %3390 = vmatpush1.msra.mxu1 %v9423_v38  ;;  %v9454_v3 = vld [vmem:[#allocation118_spill] sm:$0xff]  ;;  %v9455_v38 = vld [vmem:[#allocation119_spill] sm:$0xff] }
 0x75e   :  { %3320 = vmatprep.subr.mxu0 %v9424_v28  ;;  %3391 = vmatprep.subr.mxu1 %v9425_v62  ;;  %v9456_v28 = vld [vmem:[#allocation120_spill] sm:$0xff]  ;;  %v9457_v62 = vld [vmem:[#allocation121_spill] sm:$0xff] }
 0x75f   :  { %3321 = vmatpush1.msra.mxu0 %v9426_v1  ;;  %3392 = vmatpush1.msra.mxu1 %v9427_v32  ;;  %v9458_v1 = vld [vmem:[#allocation122_spill] sm:$0xff]  ;;  %v9459_v32 = vld [vmem:[#allocation123_spill] sm:$0xff] }
 0x760   :  { %3322 = vmatprep.subr.mxu0 %v9428_v10  ;;  %3393 = vmatprep.subr.mxu1 %v9429_v41  ;;  %v4854_v10 = vld [vmem:[#allocation4 + $0x3c8] sm:$0xff]  ;;  %v4855_v41 = vld [vmem:[#allocation4 + $0x3d8] sm:$0xff] }
 0x761   :  { %3323 = vmatpush1.msra.mxu0 %v9430_v21  ;;  %3394 = vmatpush1.msra.mxu1 %v9431_v15 }
 0x762   :  { %3324 = vmatprep.subr.mxu0 %v9432_v4  ;;  %3395 = vmatprep.subr.mxu1 %v9433_v40  ;;  %v9460_v40 = vld [vmem:[#allocation9_spill] sm:$0xff] }
 0x763   :  { %3325 = vmatpush1.msra.mxu0 %v9434_v20  ;;  %3396 = vmatpush1.msra.mxu1 %v9435_v30  ;;  %v9461_v20 = vld [vmem:[#allocation150_spill] sm:$0xff] }
 0x764   :  { %3326 = vmatprep.subr.mxu0 %v9436_v0  ;;  %3397 = vmatprep.subr.mxu1 %v9437_v6  ;;  %v267_v30 = vadd.f32 %v9461_v20, %v9460_v40 }
 0x765   :  { %3327 = vmatpush1.msra.mxu0 %v9438_v37  ;;  %3398 = vmatpush1.msra.mxu1 %v9439_v19  ;;  %v9462_v37 = vld [vmem:[#allocation10_spill] sm:$0xff]  ;;  %v9463_v19 = vld [vmem:[#allocation152_spill] sm:$0xff] }
 0x766   :  { %3328 = vmatprep.subr.mxu0 %v9440_v8  ;;  %3399 = vmatprep.subr.mxu1 %v9441_v9  ;;  %v269_v8 = vadd.f32 %v9463_v19, %v9462_v37 }
 0x767   :  { %3329 = vmatpush1.msra.mxu0 %v9442_v11  ;;  %3400 = vmatpush1.msra.mxu1 %v9443_v22 }
 0x768   :  { %3330 = vmatprep.subr.mxu0 %v9444_v51  ;;  %3401 = vmatprep.subr.mxu1 %v9445_v17  ;;  %v9464_v51 = vld [vmem:[#allocation151_spill] sm:$0xff] }
 0x769   :  { %3331 = vmatpush1.msra.mxu0 %v9446_v12  ;;  %3402 = vmatpush1.msra.mxu1 %v9447_v13  ;;  %v380_v17 = vadd.f32 %v9464_v51, %v5288_v25 }
 0x76a   :  { %3332 = vmatprep.subr.mxu0 %v9448_v43  ;;  %3403 = vmatprep.subr.mxu1 %v9449_v54 }
 0x76b   :  { %3333 = vmatpush1.msra.mxu0 %v9450_v23  ;;  %3404 = vmatpush1.msra.mxu1 %v9451_v52 }
 0x76c   :  { %3334 = vmatprep.subr.mxu0 %v9452_v53  ;;  %3405 = vmatprep.subr.mxu1 %v9453_v49 }
 0x76d   :  { %3335 = vmatpush1.msra.mxu0 %v9454_v3  ;;  %3406 = vmatpush1.msra.mxu1 %v9455_v38 }
 0x76e   :  { %3336 = vmatprep.subr.mxu0 %v9456_v28  ;;  %3407 = vmatprep.subr.mxu1 %v9457_v62 }
 0x76f   :  { %3337 = vmatpush1.msra.mxu0 %v9458_v1  ;;  %3408 = vmatpush1.msra.mxu1 %v9459_v32 }
 0x770   :  { %3370 = vmatprep.mubr.f32.mxu0 %v8665_v18  ;;  %3441 = vmatprep.mubr.f32.mxu1 %v8665_v18 }
 0x771   :  { %3470 = vmatprep.subr.mxu0 %v4854_v10  ;;  %3541 = vmatprep.subr.mxu1 %v4855_v41 }
 0x7cc   :  { %v2898_v21 = vpop.f32.mrf.mxu0  ;;  %v2969_v15 = vpop.f32.mrf.mxu1 }
 0x7ce   :  { %v2900_v4 = vpop.f32.mrf.mxu0  ;;  %v2971_v0 = vpop.f32.mrf.mxu1 }
 0x7ed   :  { %v3062_v6 = vpop.f32.mrf.mxu0  ;;  %v3133_v11 = vpop.f32.mrf.mxu1 }
 0x7ee   :  { %v3448_v9 = vadd.f32 %v3062_v6, %v267_v30  ;;  %v3450_v43 = vadd.f32 %v3133_v11, %v380_v17 }
 0x7ef   :  { %v3064_v22 = vpop.f32.mrf.mxu0  ;;  %v3135_v10 = vpop.f32.mrf.mxu1 }
 0x7f0   :  { %v3452_v12 = vmul.f32 0.5, %v3448_v9  ;;  %v3449_v13 = vadd.f32 %v3064_v22, %v269_v8 }
 0x7f2   :  { %4384 = vtanh.f32 %v3452_v12  ;;  %v3456_v54 = vmul.f32 0.5, %v3449_v13 }
 0x7f4   :  { %4386 = vtanh.f32 %v3456_v54 }
 0x7f5   :  { %4388 = vtanh.f32 %v3450_v43 }
 0x7ff   :  { %v4385_v23 = vpop.eup %4384 }
 0x800   :  { %v3454_v52 = vmul.f32 0.5, %v4385_v23 }
 0x801   :  { %v4387_v53 = vpop.eup %4386 }
 0x802   :  { %v3455_v49 = vadd.f32 0.5, %v3454_v52  ;;  %v3458_v3 = vmul.f32 0.5, %v4387_v53  ;;  %v4389_v38 = vpop.eup %4388 }
 0x804   :  { %v3459_v28 = vadd.f32 0.5, %v3458_v3  ;;  %v3466_v62 = vmul.f32 %v4389_v38, %v3455_v49 }
 0x806   :  { %v3465_v1 = vmul.f32 %v3459_v28, %v7430_v39 }
 0x808   :  { %v7724_v32 = vadd.f32 %v3466_v62, %v3465_v1 }
 0x80f   :  { %v3204_v41 = vpop.f32.mrf.mxu0  ;;  %v3275_v30 = vpop.f32.mrf.mxu1 }
 0x810   :  { %v3280_v20 = vadd.f32 %v3204_v41, %v2898_v21  ;;  %v3282_v11 = vadd.f32 %v3275_v30, %v2969_v15 }
 0x811   :  { %v3206_v6 = vpop.f32.mrf.mxu0  ;;  %v3277_v17 = vpop.f32.mrf.mxu1 }
 0x812   :  { %v3284_v19 = vadd.f32 %v3280_v20, %v8899_v57  ;;  %v3281_v8 = vadd.f32 %v3206_v6, %v2900_v4  ;;  %v3286_v12 = vadd.f32 %v3282_v11, %v8901_v5  ;;  %v3283_v39 = vadd.f32 %v3277_v17, %v2971_v0  ;;  %v9465_v20 = vld [vmem:[#allocation153_spill] sm:$0xff]  ;;  %v4871_v17 = vld [vmem:[#allocation4 + $0x98] sm:$0xff] }
 0x813   :  { %v382_v30 = vadd.f32 %v9465_v20, %v5295_v33  ;;  %v4868_v11 = vld [vmem:[#allocation4 + $0xc0] sm:$0xff]  ;;  %v7794_v20 = vld [vmem:[#allocation4 + $0x3b8] sm:$0xff] }
 0x814   :  { %v3288_v9 = vmul.f32 0.5, %v3284_v19  ;;  %v3285_v22 = vadd.f32 %v3281_v8, %v8900_v61  ;;  %v3287_v13 = vadd.f32 %v3283_v39, %v5763_v34  ;;  %v4866_v19 = vld [vmem:[#allocation4 + $0xc8] sm:$0xff]  ;;  %v4867_v8 = vld [vmem:[#allocation4 + $0xd8] sm:$0xff]  ;;  %v4873_v39 = vld [vmem:[#allocation4 + $0x90] sm:$0xff] }
 0x815   :  { %v3451_v6 = vadd.f32 %v3135_v10, %v382_v30  ;;  %v4863_v10 = vld [vmem:[#allocation4 + $0x118] sm:$0xff]  ;;  %v7797_v30 = vld [vmem:[#allocation4 + $0x3a0] sm:$0xff] }
 0x816   :  { %4390 = vtanh.f32 %v3288_v9  ;;  %v3292_v51 = vmul.f32 0.5, %v3285_v22  ;;  %v3297_v21 = vmul.f32 0.5, %v3287_v13  ;;  %v4869_v22 = vld [vmem:[#allocation4 + $0xd0] sm:$0xff] }
 0x818   :  { %4392 = vtanh.f32 %v3292_v51  ;;  %v4870_v51 = vld [vmem:[#allocation4 + $0x88] sm:$0xff] }
 0x819   :  { %4394 = vtanh.f32 %v3286_v12  ;;  %v4872_v12 = vld [vmem:[#allocation4 + $0x80] sm:$0xff] }
 0x81a   :  { %4396 = vtanh.f32 %v3297_v21  ;;  %v4874_v21 = vld [vmem:[#allocation4 + $0x48] sm:$0xff] }
 0x823   :  { %v4391_v43 = vpop.eup %4390 }
 0x824   :  { %v3290_v54 = vmul.f32 0.5, %v4391_v43  ;;  %v4875_v43 = vld [vmem:[#allocation4 + $0x58] sm:$0xff] }
 0x825   :  { %v4393_v23 = vpop.eup %4392 }
 0x826   :  { %v3291_v52 = vadd.f32 0.5, %v3290_v54  ;;  %v3294_v4 = vmul.f32 0.5, %v4393_v23  ;;  %v4395_v53 = vpop.eup %4394  ;;  %v4876_v23 = vld [vmem:[#allocation4 + $0x40] sm:$0xff] }
 0x827   :  { %v4397_v0 = vpop.eup %4396 }
 0x828   :  { %v3295_v15 = vadd.f32 0.5, %v3294_v4  ;;  %v3302_v3 = vmul.f32 %v4395_v53, %v3291_v52  ;;  %v3299_v28 = vmul.f32 0.5, %v4397_v0  ;;  %v4877_v52 = vld [vmem:[#allocation4 + $0x50] sm:$0xff]  ;;  %v4878_v4 = vld [vmem:[#allocation4 + $0x8] sm:$0xff]  ;;  %v4880_v53 = vld [vmem:[#allocation4] sm:$0xff] }
 0x829   :  { %v7779_v0 = vld [vmem:[#allocation4 + $0x3e8] sm:$0xff] }
 0x82a   :  { %v3301_v49 = vmul.f32 %v3295_v15, %v7437_v35  ;;  %v3300_v62 = vadd.f32 0.5, %v3299_v28  ;;  %v3461_v35 = vmul.f32 0.5, %v3451_v6  ;;  %v4879_v15 = vld [vmem:[#allocation4 + $0x18] sm:$0xff]  ;;  %v7800_v6 = vld [vmem:[#allocation4 + $0x3b0] sm:$0xff] }
 0x82b   :  { %v7782_v28 = vld [vmem:[#allocation4 + $0x3f8] sm:$0xff] }
 0x82c   :  { %v7731_v38 = vadd.f32 %v3302_v3, %v3301_v49  ;;  %v4881_v3 = vld [vmem:[#allocation4 + $0x10] sm:$0xff] }
 0x82e   :  { %4398 = vtanh.f32 %v7731_v38 }
 0x82f   :  { %4400 = vtanh.f32 %v3461_v35  ;;  %v7803_v35 = vld [vmem:[#allocation4 + $0x368] sm:$0xff] }
 0x830   :  { %4402 = vtanh.f32 %v7724_v32 }
 0x83b   :  { %v4399_v1 = vpop.eup %4398 }
 0x83c   :  { %v3305_v41 = vmul.f32 %v4399_v1, %v3300_v62  ;;  %v7785_v62 = vld [vmem:[#allocation4 + $0x3e0] sm:$0xff]  ;;  %v7788_v1 = vld [vmem:[#allocation4 + $0x3f0] sm:$0xff] }
 0x83e   :  { %3371 = vmatmul.mubr.f32.vlgmr.msra.gmra.mxu0 %v3305_v41  ;;  %3442 = vmatmul.mubr.f32.vlgmr.msra.gmra.mxu1 %v3305_v41  ;;  %v7791_v41 = vld [vmem:[#allocation4 + $0x3a8] sm:$0xff] }
 0x83f   :  { %3471 = vmatpush1.msra.mxu0 %v7442_v16  ;;  %3542 = vmatpush1.msra.mxu1 %v7445_v56  ;;  %v9466_v16 = vld [vmem:[#allocation124_spill] sm:$0xff]  ;;  %v9467_v56 = vld [vmem:[#allocation125_spill] sm:$0xff] }
 0x840   :  { %3472 = vmatprep.subr.mxu0 %v7448_v2  ;;  %3543 = vmatprep.subr.mxu1 %v7451_v46  ;;  %v9468_v2 = vld [vmem:[#allocation126_spill] sm:$0xff]  ;;  %v9469_v46 = vld [vmem:[#allocation127_spill] sm:$0xff] }
 0x841   :  { %3473 = vmatpush1.msra.mxu0 %v7454_v59  ;;  %3544 = vmatpush1.msra.mxu1 %v7457_v24  ;;  %v9470_v59 = vld [vmem:[#allocation128_spill] sm:$0xff]  ;;  %v9471_v24 = vld [vmem:[#allocation129_spill] sm:$0xff] }
 0x842   :  { %3474 = vmatprep.subr.mxu0 %v7460_v14  ;;  %3545 = vmatprep.subr.mxu1 %v7463_v45  ;;  %v9472_v14 = vld [vmem:[#allocation130_spill] sm:$0xff]  ;;  %v9473_v45 = vld [vmem:[#allocation131_spill] sm:$0xff] }
 0x843   :  { %3475 = vmatpush1.msra.mxu0 %v7466_v63  ;;  %3546 = vmatpush1.msra.mxu1 %v7469_v36  ;;  %v9474_v63 = vld [vmem:[#allocation132_spill] sm:$0xff]  ;;  %v9475_v36 = vld [vmem:[#allocation133_spill] sm:$0xff] }
 0x844   :  { %3476 = vmatprep.subr.mxu0 %v7472_v7  ;;  %3547 = vmatprep.subr.mxu1 %v7475_v44  ;;  %v9476_v7 = vld [vmem:[#allocation142_spill] sm:$0xff]  ;;  %v9477_v44 = vld [vmem:[#allocation144_spill] sm:$0xff] }
 0x845   :  { %3477 = vmatpush1.msra.mxu0 %v7478_v50  ;;  %3548 = vmatpush1.msra.mxu1 %v7481_v55  ;;  %v9478_v50 = vld [vmem:[#allocation143_spill] sm:$0xff]  ;;  %v4856_v55 = vld [vmem:[#allocation4 + $0x180] sm:$0xff] }
 0x846   :  { %3478 = vmatprep.subr.mxu0 %v7484_v31  ;;  %3549 = vmatprep.subr.mxu1 %v7487_v60  ;;  %v4857_v31 = vld [vmem:[#allocation4 + $0x190] sm:$0xff]  ;;  %v4858_v60 = vld [vmem:[#allocation4 + $0x148] sm:$0xff] }
 0x847   :  { %3479 = vmatpush1.msra.mxu0 %v7490_v42  ;;  %3550 = vmatpush1.msra.mxu1 %v7493_v58  ;;  %v4859_v42 = vld [vmem:[#allocation4 + $0x158] sm:$0xff]  ;;  %v4860_v58 = vld [vmem:[#allocation4 + $0x140] sm:$0xff] }
 0x848   :  { %3480 = vmatprep.subr.mxu0 %v9466_v16  ;;  %3551 = vmatprep.subr.mxu1 %v9467_v56  ;;  %v7806_v16 = vld [vmem:[#allocation4 + $0x378] sm:$0xff]  ;;  %v7809_v56 = vld [vmem:[#allocation4 + $0x360] sm:$0xff] }
 0x849   :  { %3481 = vmatpush1.msra.mxu0 %v9468_v2  ;;  %3552 = vmatpush1.msra.mxu1 %v9469_v46  ;;  %v7812_v2 = vld [vmem:[#allocation4 + $0x370] sm:$0xff]  ;;  %v7815_v46 = vld [vmem:[#allocation4 + $0x328] sm:$0xff] }
 0x84a   :  { %3482 = vmatprep.subr.mxu0 %v9470_v59  ;;  %3553 = vmatprep.subr.mxu1 %v9471_v24  ;;  %v7818_v59 = vld [vmem:[#allocation4 + $0x338] sm:$0xff]  ;;  %v7821_v24 = vld [vmem:[#allocation4 + $0x320] sm:$0xff] }
 0x84b   :  { %3483 = vmatpush1.msra.mxu0 %v9472_v14  ;;  %3554 = vmatpush1.msra.mxu1 %v9473_v45  ;;  %v7824_v14 = vld [vmem:[#allocation4 + $0x330] sm:$0xff]  ;;  %v7827_v45 = vld [vmem:[#allocation4 + $0x2e8] sm:$0xff] }
 0x84c   :  { %3484 = vmatprep.subr.mxu0 %v9474_v63  ;;  %3555 = vmatprep.subr.mxu1 %v9475_v36  ;;  %v7830_v63 = vld [vmem:[#allocation4 + $0x2f8] sm:$0xff]  ;;  %v7833_v36 = vld [vmem:[#allocation4 + $0x2e0] sm:$0xff] }
 0x84d   :  { %3485 = vmatpush1.msra.mxu0 %v9476_v7  ;;  %3556 = vmatpush1.msra.mxu1 %v9477_v44  ;;  %v7836_v7 = vld [vmem:[#allocation4 + $0x2f0] sm:$0xff]  ;;  %v7839_v44 = vld [vmem:[#allocation4 + $0x2a8] sm:$0xff] }
 0x84e   :  { %3486 = vmatprep.subr.mxu0 %v7533_v27  ;;  %3557 = vmatprep.subr.mxu1 %v7536_v47  ;;  %v4861_v27 = vld [vmem:[#allocation4 + $0x150] sm:$0xff]  ;;  %v4401_v47 = vpop.eup %4400 }
 0x84f   :  { %3487 = vmatpush1.msra.mxu0 %v7539_v26  ;;  %3558 = vmatpush1.msra.mxu1 %v9478_v50  ;;  %v4862_v26 = vld [vmem:[#allocation4 + $0x108] sm:$0xff]  ;;  %v3463_v9 = vmul.f32 0.5, %v4401_v47  ;;  %v4403_v13 = vpop.eup %4402  ;;  %v7842_v50 = vld [vmem:[#allocation4 + $0x2b8] sm:$0xff] }
 0x850   :  { %3488 = vmatprep.subr.mxu0 %v7545_v29  ;;  %3559 = vmatprep.subr.mxu1 %v7548_v48  ;;  %v4864_v29 = vld [vmem:[#allocation4 + $0x100] sm:$0xff]  ;;  %v4865_v48 = vld [vmem:[#allocation4 + $0x110] sm:$0xff]  ;;  %v7863_v47 = vld [vmem:[#allocation4 + $0x228] sm:$0xff] }
 0x851   :  { %3489 = vmatpush1.msra.mxu0 %v4856_v55  ;;  %3560 = vmatpush1.msra.mxu1 %v4857_v31  ;;  %v3464_v54 = vadd.f32 0.5, %v3463_v9  ;;  %v7845_v55 = vld [vmem:[#allocation4 + $0x2a0] sm:$0xff]  ;;  %v7848_v31 = vld [vmem:[#allocation4 + $0x2b0] sm:$0xff] }
 0x852   :  { %3490 = vmatprep.subr.mxu0 %v4858_v60  ;;  %3561 = vmatprep.subr.mxu1 %v4859_v42  ;;  %v7851_v60 = vld [vmem:[#allocation4 + $0x268] sm:$0xff]  ;;  %v7854_v42 = vld [vmem:[#allocation4 + $0x278] sm:$0xff]  ;;  %v7884_v9 = vld [vmem:[#allocation4 + $0x1f0] sm:$0xff] }
 0x853   :  { %3491 = vmatpush1.msra.mxu0 %v4860_v58  ;;  %3562 = vmatpush1.msra.mxu1 %v4861_v27  ;;  %v7774_v49 = vmul.f32 %v4403_v13, %v3464_v54  ;;  %v7857_v58 = vld [vmem:[#allocation4 + $0x260] sm:$0xff]  ;;  %v7860_v27 = vld [vmem:[#allocation4 + $0x270] sm:$0xff]  ;;  %9480 = vst [vmem:[#allocation134_spill] sm:$0xff] %v7884_v9  ;;  %v7914_v54 = vld [vmem:[#allocation4 + $0x138] sm:$0xff] }
 0x854   :  { %3492 = vmatprep.subr.mxu0 %v4862_v26  ;;  %3563 = vmatprep.subr.mxu1 %v4863_v10  ;;  %v7866_v26 = vld [vmem:[#allocation4 + $0x238] sm:$0xff]  ;;  %v7869_v10 = vld [vmem:[#allocation4 + $0x220] sm:$0xff]  ;;  %9490 = vst [vmem:[#allocation164_spill] sm:$0xff] %v7914_v54 }
 0x855   :  { %3493 = vmatpush1.msra.mxu0 %v4864_v29  ;;  %3564 = vmatpush1.msra.mxu1 %v4865_v48  ;;  %v7872_v29 = vld [vmem:[#allocation4 + $0x230] sm:$0xff]  ;;  %v7875_v48 = vld [vmem:[#allocation4 + $0x1e8] sm:$0xff]  ;;  %v7905_v13 = vld [vmem:[#allocation4 + $0x160] sm:$0xff] }
 0x856   :  { %3494 = vmatprep.subr.mxu0 %v4866_v19  ;;  %3565 = vmatprep.subr.mxu1 %v4867_v8  ;;  %v7878_v19 = vld [vmem:[#allocation4 + $0x1f8] sm:$0xff]  ;;  %v7881_v8 = vld [vmem:[#allocation4 + $0x1e0] sm:$0xff]  ;;  %9487 = vst [vmem:[#allocation161_spill] sm:$0xff] %v7905_v13 }
 0x857   :  { %3495 = vmatpush1.msra.mxu0 %v4868_v11  ;;  %3566 = vmatpush1.msra.mxu1 %v4869_v22  ;;  %9479 = vst [vmem:[#allocation145_spill] sm:$0xff] %v7881_v8  ;;  %v7887_v11 = vld [vmem:[#allocation4 + $0x1a8] sm:$0xff]  ;;  %v7890_v22 = vld [vmem:[#allocation4 + $0x1b8] sm:$0xff] }
 0x858   :  { %3496 = vmatprep.subr.mxu0 %v4870_v51  ;;  %3567 = vmatprep.subr.mxu1 %v4871_v17  ;;  %9481 = vst [vmem:[#allocation136_spill] sm:$0xff] %v7887_v11  ;;  %9482 = vst [vmem:[#allocation135_spill] sm:$0xff] %v7890_v22  ;;  %v7893_v51 = vld [vmem:[#allocation4 + $0x1a0] sm:$0xff]  ;;  %v7896_v17 = vld [vmem:[#allocation4 + $0x1b0] sm:$0xff] }
 0x859   :  { %3497 = vmatpush1.msra.mxu0 %v4872_v12  ;;  %3568 = vmatpush1.msra.mxu1 %v4873_v39  ;;  %9483 = vst [vmem:[#allocation158_spill] sm:$0xff] %v7893_v51  ;;  %9484 = vst [vmem:[#allocation159_spill] sm:$0xff] %v7896_v17  ;;  %v7899_v12 = vld [vmem:[#allocation4 + $0x168] sm:$0xff]  ;;  %v7902_v39 = vld [vmem:[#allocation4 + $0x178] sm:$0xff] }
 0x85a   :  { %3498 = vmatprep.subr.mxu0 %v4874_v21  ;;  %3569 = vmatprep.subr.mxu1 %v4875_v43  ;;  %9485 = vst [vmem:[#allocation160_spill] sm:$0xff] %v7899_v12  ;;  %9486 = vst [vmem:[#allocation137_spill] sm:$0xff] %v7902_v39  ;;  %v7908_v21 = vld [vmem:[#allocation4 + $0x170] sm:$0xff]  ;;  %v7911_v43 = vld [vmem:[#allocation4 + $0x128] sm:$0xff] }
 0x85b   :  { %3499 = vmatpush1.msra.mxu0 %v4876_v23  ;;  %3570 = vmatpush1.msra.mxu1 %v4877_v52  ;;  %9488 = vst [vmem:[#allocation162_spill] sm:$0xff] %v7908_v21  ;;  %9489 = vst [vmem:[#allocation163_spill] sm:$0xff] %v7911_v43  ;;  %v7917_v23 = vld [vmem:[#allocation4 + $0x120] sm:$0xff]  ;;  %v7920_v52 = vld [vmem:[#allocation4 + $0x130] sm:$0xff] }
 0x85c   :  { %3500 = vmatprep.subr.mxu0 %v4878_v4  ;;  %3571 = vmatprep.subr.mxu1 %v4879_v15  ;;  %9491 = vst [vmem:[#allocation165_spill] sm:$0xff] %v7917_v23  ;;  %9492 = vst [vmem:[#allocation166_spill] sm:$0xff] %v7920_v52  ;;  %v7923_v4 = vld [vmem:[#allocation4 + $0xe8] sm:$0xff]  ;;  %v7926_v15 = vld [vmem:[#allocation4 + $0xf8] sm:$0xff] }
 0x85d   :  { %3501 = vmatpush1.msra.mxu0 %v4880_v53  ;;  %3534 = vmatprep.mubr.f32.mxu0 %v8665_v18  ;;  %9493 = vst [vmem:[#allocation146_spill] sm:$0xff] %v7923_v4  ;;  %9494 = vst [vmem:[#allocation148_spill] sm:$0xff] %v7926_v15  ;;  %v7929_v53 = vld [vmem:[#allocation4 + $0xe0] sm:$0xff] }
 0x85e   :  { %3572 = vmatpush1.msra.mxu1 %v4881_v3  ;;  %3605 = vmatprep.mubr.f32.mxu1 %v8665_v18  ;;  %9495 = vst [vmem:[#allocation147_spill] sm:$0xff] %v7929_v53  ;;  %v7932_v3 = vld [vmem:[#allocation4 + $0xf0] sm:$0xff] }
 0x85f   :  { %3535 = vmatmul.mubr.f32.vlgmr.msra.gmra.mxu0 %v7774_v49  ;;  %3606 = vmatmul.mubr.f32.vlgmr.msra.gmra.mxu1 %v7774_v49  ;;  %9496 = vst [vmem:[#allocation149_spill] sm:$0xff] %v7932_v3 }
 0x860   :  { %3612 = vmatprep.subr.mxu0 %v7779_v0  ;;  %3683 = vmatprep.subr.mxu1 %v7782_v28 }
 0x861   :  { %3613 = vmatpush1.msra.mxu0 %v7785_v62  ;;  %3684 = vmatpush1.msra.mxu1 %v7788_v1 }
 0x862   :  { %3614 = vmatprep.subr.mxu0 %v7791_v41  ;;  %3685 = vmatprep.subr.mxu1 %v7794_v20 }
 0x863   :  { %3615 = vmatpush1.msra.mxu0 %v7797_v30  ;;  %3686 = vmatpush1.msra.mxu1 %v7800_v6 }
 0x864   :  { %3616 = vmatprep.subr.mxu0 %v7803_v35  ;;  %3687 = vmatprep.subr.mxu1 %v7806_v16 }
 0x865   :  { %3617 = vmatpush1.msra.mxu0 %v7809_v56  ;;  %3688 = vmatpush1.msra.mxu1 %v7812_v2 }
 0x866   :  { %3618 = vmatprep.subr.mxu0 %v7815_v46  ;;  %3689 = vmatprep.subr.mxu1 %v7818_v59 }
 0x867   :  { %3619 = vmatpush1.msra.mxu0 %v7821_v24  ;;  %3690 = vmatpush1.msra.mxu1 %v7824_v14 }
 0x868   :  { %3620 = vmatprep.subr.mxu0 %v7827_v45  ;;  %3691 = vmatprep.subr.mxu1 %v7830_v63 }
 0x869   :  { %3621 = vmatpush1.msra.mxu0 %v7833_v36  ;;  %3692 = vmatpush1.msra.mxu1 %v7836_v7 }
 0x86a   :  { %3622 = vmatprep.subr.mxu0 %v7839_v44  ;;  %3693 = vmatprep.subr.mxu1 %v7842_v50 }
 0x86b   :  { %3623 = vmatpush1.msra.mxu0 %v7845_v55  ;;  %3694 = vmatpush1.msra.mxu1 %v7848_v31 }
 0x86c   :  { %3624 = vmatprep.subr.mxu0 %v7851_v60  ;;  %3695 = vmatprep.subr.mxu1 %v7854_v42 }
 0x86d   :  { %3625 = vmatpush1.msra.mxu0 %v7857_v58  ;;  %3696 = vmatpush1.msra.mxu1 %v7860_v27 }
 0x86e   :  { %3626 = vmatprep.subr.mxu0 %v7863_v47  ;;  %3697 = vmatprep.subr.mxu1 %v7866_v26 }
 0x86f   :  { %3627 = vmatpush1.msra.mxu0 %v7869_v10  ;;  %3698 = vmatpush1.msra.mxu1 %v7872_v29 }
 0x870   :  { %3628 = vmatprep.subr.mxu0 %v7875_v48  ;;  %3699 = vmatprep.subr.mxu1 %v7878_v19 }
 0x871   :  { %3629 = vmatpush1.msra.mxu0 %v7881_v8  ;;  %3700 = vmatpush1.msra.mxu1 %v7884_v9 }
 0x872   :  { %3630 = vmatprep.subr.mxu0 %v7887_v11  ;;  %3701 = vmatprep.subr.mxu1 %v7890_v22 }
 0x873   :  { %3631 = vmatpush1.msra.mxu0 %v7893_v51  ;;  %3702 = vmatpush1.msra.mxu1 %v7896_v17 }
 0x874   :  { %3632 = vmatprep.subr.mxu0 %v7899_v12  ;;  %3703 = vmatprep.subr.mxu1 %v7902_v39 }
 0x875   :  { %3633 = vmatpush1.msra.mxu0 %v7905_v13  ;;  %3704 = vmatpush1.msra.mxu1 %v7908_v21  ;;  %v4954_v21 = vld [vmem:[#allocation6 + $0x1a8] sm:$0xff]  ;;  %v4955_v13 = vld [vmem:[#allocation6 + $0x1b8] sm:$0xff] }
 0x876   :  { %3634 = vmatprep.subr.mxu0 %v7911_v43  ;;  %3705 = vmatprep.subr.mxu1 %v7914_v54  ;;  %v4951_v54 = vld [vmem:[#allocation6 + $0x1d8] sm:$0xff]  ;;  %v4952_v43 = vld [vmem:[#allocation6 + $0x1c0] sm:$0xff] }
 0x877   :  { %3635 = vmatpush1.msra.mxu0 %v7917_v23  ;;  %3706 = vmatpush1.msra.mxu1 %v7920_v52  ;;  %v7935_v23 = vld [vmem:[#allocation4 + $0xa8] sm:$0xff]  ;;  %v7938_v52 = vld [vmem:[#allocation4 + $0xb8] sm:$0xff] }
 0x878   :  { %3636 = vmatprep.subr.mxu0 %v7923_v4  ;;  %3707 = vmatprep.subr.mxu1 %v7926_v15  ;;  %9497 = vst [vmem:[#allocation167_spill] sm:$0xff] %v7935_v23  ;;  %9498 = vst [vmem:[#allocation168_spill] sm:$0xff] %v7938_v52  ;;  %v7941_v4 = vld [vmem:[#allocation4 + $0xa0] sm:$0xff]  ;;  %v7944_v15 = vld [vmem:[#allocation4 + $0xb0] sm:$0xff] }
 0x879   :  { %3637 = vmatpush1.msra.mxu0 %v7929_v53  ;;  %3708 = vmatpush1.msra.mxu1 %v7932_v3  ;;  %9499 = vst [vmem:[#allocation169_spill] sm:$0xff] %v7941_v4  ;;  %9500 = vst [vmem:[#allocation170_spill] sm:$0xff] %v7944_v15  ;;  %v7947_v53 = vld [vmem:[#allocation4 + $0x68] sm:$0xff]  ;;  %v7950_v3 = vld [vmem:[#allocation4 + $0x78] sm:$0xff] }
 0x87a   :  { %3638 = vmatprep.subr.mxu0 %v7935_v23  ;;  %3709 = vmatprep.subr.mxu1 %v7938_v52  ;;  %9501 = vst [vmem:[#allocation171_spill] sm:$0xff] %v7947_v53  ;;  %9502 = vst [vmem:[#allocation172_spill] sm:$0xff] %v7950_v3  ;;  %v7953_v23 = vld [vmem:[#allocation4 + $0x60] sm:$0xff]  ;;  %v7956_v52 = vld [vmem:[#allocation4 + $0x70] sm:$0xff] }
 0x87b   :  { %3639 = vmatpush1.msra.mxu0 %v7941_v4  ;;  %3710 = vmatpush1.msra.mxu1 %v7944_v15  ;;  %9503 = vst [vmem:[#allocation138_spill] sm:$0xff] %v7953_v23  ;;  %9504 = vst [vmem:[#allocation140_spill] sm:$0xff] %v7956_v52  ;;  %v7959_v4 = vld [vmem:[#allocation4 + $0x28] sm:$0xff]  ;;  %v7962_v15 = vld [vmem:[#allocation4 + $0x38] sm:$0xff] }
 0x87c   :  { %3640 = vmatprep.subr.mxu0 %v7947_v53  ;;  %3711 = vmatprep.subr.mxu1 %v7950_v3  ;;  %9505 = vst [vmem:[#allocation139_spill] sm:$0xff] %v7959_v4  ;;  %9506 = vst [vmem:[#allocation141_spill] sm:$0xff] %v7962_v15  ;;  %v7965_v53 = vld [vmem:[#allocation4 + $0x20] sm:$0xff]  ;;  %v7969_v3 = vld [vmem:[#allocation4 + $0x30] sm:$0xff] }
 0x87d   :  { %3641 = vmatpush1.msra.mxu0 %v7953_v23  ;;  %3712 = vmatpush1.msra.mxu1 %v7956_v52  ;;  %9507 = vst [vmem:[#allocation11_spill] sm:$0xff] %v7965_v53  ;;  %9508 = vst [vmem:[#allocation12_spill] sm:$0xff] %v7969_v3  ;;  %v4947_v52 = vld [vmem:[#allocation6 + $0x1f8] sm:$0xff]  ;;  %v4949_v23 = vld [vmem:[#allocation6 + $0x1f0] sm:$0xff] }
 0x87e   :  { %3642 = vmatprep.subr.mxu0 %v7959_v4  ;;  %3713 = vmatprep.subr.mxu1 %v7962_v15  ;;  %v4946_v4 = vld [vmem:[#allocation6 + $0x1e8] sm:$0xff]  ;;  %v4948_v15 = vld [vmem:[#allocation6 + $0x1e0] sm:$0xff] }
 0x87f   :  { %3643 = vmatpush1.msra.mxu0 %v7965_v53  ;;  %3676 = vmatprep.mubr.f32.mxu0 %v8665_v18  ;;  %v4950_v53 = vld [vmem:[#allocation6 + $0x1c8] sm:$0xff] }
 0x880   :  { %3714 = vmatpush1.msra.mxu1 %v7969_v3  ;;  %3747 = vmatprep.mubr.f32.mxu1 %v8665_v18  ;;  %v4953_v3 = vld [vmem:[#allocation6 + $0x1d0] sm:$0xff] }
 0x881   :  { %3677 = vmatmul.mubr.f32.vlgmr.msra.gmra.mxu0 %v7774_v49  ;;  %3748 = vmatmul.mubr.f32.vlgmr.msra.gmra.mxu1 %v7774_v49  ;;  %v4956_v49 = vld [vmem:[#allocation6 + $0x1a0] sm:$0xff] }
 0x882   :  { %3780 = vmatprep.subr.mxu0 %v4946_v4  ;;  %3851 = vmatprep.subr.mxu1 %v4947_v52  ;;  %v4957_v4 = vld [vmem:[#allocation6 + $0x1b0] sm:$0xff]  ;;  %v4958_v52 = vld [vmem:[#allocation6 + $0x188] sm:$0xff] }
 0x883   :  { %3781 = vmatpush1.msra.mxu0 %v4948_v15  ;;  %3852 = vmatpush1.msra.mxu1 %v4949_v23  ;;  %v4959_v15 = vld [vmem:[#allocation6 + $0x198] sm:$0xff]  ;;  %v4960_v23 = vld [vmem:[#allocation6 + $0x180] sm:$0xff] }
 0x884   :  { %3782 = vmatprep.subr.mxu0 %v4950_v53  ;;  %3853 = vmatprep.subr.mxu1 %v4951_v54  ;;  %v4961_v53 = vld [vmem:[#allocation6 + $0x190] sm:$0xff]  ;;  %v4962_v54 = vld [vmem:[#allocation6 + $0x168] sm:$0xff] }
 0x885   :  { %3783 = vmatpush1.msra.mxu0 %v4952_v43  ;;  %3854 = vmatpush1.msra.mxu1 %v4953_v3  ;;  %v4963_v43 = vld [vmem:[#allocation6 + $0x178] sm:$0xff]  ;;  %v4964_v3 = vld [vmem:[#allocation6 + $0x160] sm:$0xff] }
 0x886   :  { %3784 = vmatprep.subr.mxu0 %v4954_v21  ;;  %3855 = vmatprep.subr.mxu1 %v4955_v13  ;;  %v4965_v21 = vld [vmem:[#allocation6 + $0x170] sm:$0xff]  ;;  %v4966_v13 = vld [vmem:[#allocation6 + $0x148] sm:$0xff] }
 0x887   :  { %3785 = vmatpush1.msra.mxu0 %v4956_v49  ;;  %3856 = vmatpush1.msra.mxu1 %v4957_v4  ;;  %v4967_v49 = vld [vmem:[#allocation6 + $0x158] sm:$0xff]  ;;  %v4968_v4 = vld [vmem:[#allocation6 + $0x140] sm:$0xff] }
 0x888   :  { %3786 = vmatprep.subr.mxu0 %v4958_v52  ;;  %3857 = vmatprep.subr.mxu1 %v4959_v15  ;;  %v4969_v52 = vld [vmem:[#allocation6 + $0x150] sm:$0xff]  ;;  %v4970_v15 = vld [vmem:[#allocation6 + $0x128] sm:$0xff] }
 0x889   :  { %3787 = vmatpush1.msra.mxu0 %v4960_v23  ;;  %3858 = vmatpush1.msra.mxu1 %v4961_v53  ;;  %v4971_v23 = vld [vmem:[#allocation6 + $0x138] sm:$0xff]  ;;  %v4972_v53 = vld [vmem:[#allocation6 + $0x120] sm:$0xff] }
 0x88a   :  { %3788 = vmatprep.subr.mxu0 %v4962_v54  ;;  %3859 = vmatprep.subr.mxu1 %v4963_v43  ;;  %v4973_v54 = vld [vmem:[#allocation6 + $0x130] sm:$0xff]  ;;  %v4974_v43 = vld [vmem:[#allocation6 + $0x108] sm:$0xff] }
 0x88b   :  { %3789 = vmatpush1.msra.mxu0 %v4964_v3  ;;  %3860 = vmatpush1.msra.mxu1 %v4965_v21  ;;  %v4975_v3 = vld [vmem:[#allocation6 + $0x118] sm:$0xff]  ;;  %v4976_v21 = vld [vmem:[#allocation6 + $0x100] sm:$0xff] }
 0x88c   :  { %3790 = vmatprep.subr.mxu0 %v4966_v13  ;;  %3861 = vmatprep.subr.mxu1 %v4967_v49  ;;  %v4977_v13 = vld [vmem:[#allocation6 + $0x110] sm:$0xff]  ;;  %v4978_v49 = vld [vmem:[#allocation6 + $0xe8] sm:$0xff] }
 0x88d   :  { %3791 = vmatpush1.msra.mxu0 %v4968_v4  ;;  %3862 = vmatpush1.msra.mxu1 %v4969_v52  ;;  %v4979_v4 = vld [vmem:[#allocation6 + $0xf8] sm:$0xff]  ;;  %v4980_v52 = vld [vmem:[#allocation6 + $0xe0] sm:$0xff] }
 0x88e   :  { %3792 = vmatprep.subr.mxu0 %v4970_v15  ;;  %3863 = vmatprep.subr.mxu1 %v4971_v23  ;;  %v4981_v15 = vld [vmem:[#allocation6 + $0xf0] sm:$0xff]  ;;  %v4982_v23 = vld [vmem:[#allocation6 + $0xc8] sm:$0xff] }
 0x88f   :  { %3793 = vmatpush1.msra.mxu0 %v4972_v53  ;;  %3864 = vmatpush1.msra.mxu1 %v4973_v54  ;;  %v4983_v53 = vld [vmem:[#allocation6 + $0xd8] sm:$0xff]  ;;  %v4984_v54 = vld [vmem:[#allocation6 + $0xc0] sm:$0xff] }
 0x890   :  { %3794 = vmatprep.subr.mxu0 %v4974_v43  ;;  %3865 = vmatprep.subr.mxu1 %v4975_v3  ;;  %v4985_v43 = vld [vmem:[#allocation6 + $0xd0] sm:$0xff]  ;;  %v4986_v3 = vld [vmem:[#allocation6 + $0xa8] sm:$0xff] }
 0x891   :  { %3795 = vmatpush1.msra.mxu0 %v4976_v21  ;;  %3866 = vmatpush1.msra.mxu1 %v4977_v13  ;;  %v4987_v21 = vld [vmem:[#allocation6 + $0xb8] sm:$0xff]  ;;  %v4988_v13 = vld [vmem:[#allocation6 + $0xa0] sm:$0xff] }
 0x892   :  { %3796 = vmatprep.subr.mxu0 %v4978_v49  ;;  %3867 = vmatprep.subr.mxu1 %v4979_v4  ;;  %v4989_v49 = vld [vmem:[#allocation6 + $0xb0] sm:$0xff]  ;;  %v4990_v4 = vld [vmem:[#allocation6 + $0x88] sm:$0xff] }
 0x893   :  { %3797 = vmatpush1.msra.mxu0 %v4980_v52  ;;  %3868 = vmatpush1.msra.mxu1 %v4981_v15  ;;  %v4991_v52 = vld [vmem:[#allocation6 + $0x98] sm:$0xff]  ;;  %v4992_v15 = vld [vmem:[#allocation6 + $0x80] sm:$0xff] }
 0x894   :  { %3798 = vmatprep.subr.mxu0 %v4982_v23  ;;  %3869 = vmatprep.subr.mxu1 %v4983_v53  ;;  %v4993_v23 = vld [vmem:[#allocation6 + $0x90] sm:$0xff]  ;;  %v4994_v53 = vld [vmem:[#allocation6 + $0x68] sm:$0xff] }
 0x895   :  { %3799 = vmatpush1.msra.mxu0 %v4984_v54  ;;  %3870 = vmatpush1.msra.mxu1 %v4985_v43  ;;  %v4995_v54 = vld [vmem:[#allocation6 + $0x78] sm:$0xff]  ;;  %v4996_v43 = vld [vmem:[#allocation6 + $0x60] sm:$0xff] }
 0x896   :  { %3800 = vmatprep.subr.mxu0 %v4986_v3  ;;  %3871 = vmatprep.subr.mxu1 %v4987_v21  ;;  %v4997_v3 = vld [vmem:[#allocation6 + $0x70] sm:$0xff]  ;;  %v4998_v21 = vld [vmem:[#allocation6 + $0x48] sm:$0xff] }
 0x897   :  { %3801 = vmatpush1.msra.mxu0 %v4988_v13  ;;  %3872 = vmatpush1.msra.mxu1 %v4989_v49  ;;  %v4999_v13 = vld [vmem:[#allocation6 + $0x58] sm:$0xff]  ;;  %v5000_v49 = vld [vmem:[#allocation6 + $0x40] sm:$0xff] }
 0x898   :  { %3802 = vmatprep.subr.mxu0 %v4990_v4  ;;  %3873 = vmatprep.subr.mxu1 %v4991_v52  ;;  %v5001_v4 = vld [vmem:[#allocation6 + $0x50] sm:$0xff]  ;;  %v5002_v52 = vld [vmem:[#allocation6 + $0x28] sm:$0xff] }
 0x899   :  { %3803 = vmatpush1.msra.mxu0 %v4992_v15  ;;  %3874 = vmatpush1.msra.mxu1 %v4993_v23  ;;  %v5003_v15 = vld [vmem:[#allocation6 + $0x38] sm:$0xff]  ;;  %v5004_v23 = vld [vmem:[#allocation6 + $0x20] sm:$0xff] }
 0x89a   :  { %3804 = vmatprep.subr.mxu0 %v4994_v53  ;;  %3875 = vmatprep.subr.mxu1 %v4995_v54  ;;  %v5005_v53 = vld [vmem:[#allocation6 + $0x30] sm:$0xff]  ;;  %v5006_v54 = vld [vmem:[#allocation6 + $0x8] sm:$0xff] }
 0x89b   :  { %3805 = vmatpush1.msra.mxu0 %v4996_v43  ;;  %3876 = vmatpush1.msra.mxu1 %v4997_v3  ;;  %v5007_v43 = vld [vmem:[#allocation6 + $0x18] sm:$0xff]  ;;  %v5008_v3 = vld [vmem:[#allocation6] sm:$0xff] }
 0x89c   :  { %3806 = vmatprep.subr.mxu0 %v4998_v21  ;;  %3877 = vmatprep.subr.mxu1 %v4999_v13  ;;  %v5009_v21 = vld [vmem:[#allocation6 + $0x10] sm:$0xff] }
 0x89d   :  { %3807 = vmatpush1.msra.mxu0 %v5000_v49  ;;  %3878 = vmatpush1.msra.mxu1 %v5001_v4 }
 0x89e   :  { %3808 = vmatprep.subr.mxu0 %v5002_v52  ;;  %3879 = vmatprep.subr.mxu1 %v5003_v15  ;;  %v9509_v52 = vld [vmem:[#allocation154_spill] sm:$0xff] }
 0x89f   :  { %3809 = vmatpush1.msra.mxu0 %v5004_v23  ;;  %3880 = vmatpush1.msra.mxu1 %v5005_v53  ;;  %v273_v15 = vadd.f32 %v9509_v52, %v9460_v40 }
 0x8a0   :  { %3810 = vmatprep.subr.mxu0 %v5006_v54  ;;  %3881 = vmatprep.subr.mxu1 %v5007_v43 }
 0x8a1   :  { %3811 = vmatpush1.msra.mxu0 %v5008_v3  ;;  %3882 = vmatpush1.msra.mxu1 %v5009_v21  ;;  %v9510_v3 = vld [vmem:[#allocation155_spill] sm:$0xff] }
 0x8a2   :  { %3844 = vmatprep.mubr.f32.mxu0 %v8665_v18  ;;  %3915 = vmatprep.mubr.f32.mxu1 %v8665_v18  ;;  %v386_v21 = vadd.f32 %v9510_v3, %v5288_v25 }
 0x8a3   :  { %3944 = vmatprep.subr.mxu0 %v7779_v0  ;;  %4015 = vmatprep.subr.mxu1 %v7782_v28 }
 0x8fe   :  { %v3372_v13 = vpop.f32.mrf.mxu0  ;;  %v3443_v49 = vpop.f32.mrf.mxu1 }
 0x900   :  { %v3374_v4 = vpop.f32.mrf.mxu0  ;;  %v3445_v23 = vpop.f32.mrf.mxu1 }
 0x91f   :  { %v3536_v53 = vpop.f32.mrf.mxu0  ;;  %v3607_v43 = vpop.f32.mrf.mxu1 }
 0x920   :  { %v3922_v54 = vadd.f32 %v3536_v53, %v273_v15  ;;  %v3924_v18 = vadd.f32 %v3607_v43, %v386_v21 }
 0x921   :  { %v3538_v22 = vpop.f32.mrf.mxu0  ;;  %v3609_v11 = vpop.f32.mrf.mxu1 }
 0x922   :  { %v3926_v39 = vmul.f32 0.5, %v3922_v54 }
 0x924   :  { %4404 = vtanh.f32 %v3926_v39 }
 0x925   :  { %4406 = vtanh.f32 %v3924_v18 }
 0x931   :  { %v4405_v0 = vpop.eup %4404 }
 0x932   :  { %v3928_v12 = vmul.f32 0.5, %v4405_v0  ;;  %v4407_v17 = vpop.eup %4406  ;;  %v9511_v0 = vld [vmem:[#allocation156_spill] sm:$0xff] }
 0x934   :  { %v3929_v28 = vadd.f32 0.5, %v3928_v12 }
 0x936   :  { %v7983_v51 = vmul.f32 %v4407_v17, %v3929_v28  ;;  %v275_v28 = vadd.f32 %v9511_v0, %v9462_v37  ;;  %v9542_v0 = vmov 0.0  }
 0x941   :  { %v3678_v40 = vpop.f32.mrf.mxu0  ;;  %v3749_v9 = vpop.f32.mrf.mxu1 }
 0x942   :  { %v3754_v52 = vadd.f32 %v3678_v40, %v3372_v13  ;;  %v3756_v54 = vadd.f32 %v3749_v9, %v3443_v49  ;;  %v3923_v9 = vadd.f32 %v3538_v22, %v275_v28 }
 0x943   :  { %v3680_v15 = vpop.f32.mrf.mxu0  ;;  %v3751_v43 = vpop.f32.mrf.mxu1 }
 0x944   :  { %v3758_v53 = vadd.f32 %v3754_v52, %v8899_v57  ;;  %v3755_v8 = vadd.f32 %v3680_v15, %v3374_v4  ;;  %v3760_v12 = vadd.f32 %v3756_v54, %v8901_v5  ;;  %v3757_v17 = vadd.f32 %v3751_v43, %v3445_v23 }
 0x946   :  { %v3762_v25 = vmul.f32 0.5, %v3758_v53  ;;  %v3759_v39 = vadd.f32 %v3755_v8, %v8900_v61  ;;  %v3761_v3 = vadd.f32 %v3757_v17, %v5763_v34  ;;  %v3930_v53 = vmul.f32 0.5, %v3923_v9  ;;  %v9512_v17 = vld [vmem:[#allocation157_spill] sm:$0xff]  ;;  %v4126_v9 = vld [vmem:[%s8145_s6 + $0x70] sm:$0xff] }
 0x948   :  { %4408 = vtanh.f32 %v3762_v25  ;;  %v3766_v18 = vmul.f32 0.5, %v3759_v39  ;;  %v3771_v13 = vmul.f32 0.5, %v3761_v3  ;;  %v388_v3 = vadd.f32 %v9512_v17, %v5295_v33  ;;  %v4112_v17 = vld [vmem:[%s8145_s6] sm:$0xff] }
 0x94a   :  { %4410 = vtanh.f32 %v3766_v18 }
 0x94b   :  { %4412 = vtanh.f32 %v3760_v12 }
 0x94c   :  { %4414 = vtanh.f32 %v3771_v13 }
 0x94d   :  { %4416 = vtanh.f32 %v3930_v53  ;;  %v4121_v53 = vld [vmem:[%s8145_s6 + $0x48] sm:$0xff] }
 0x955   :  { %v4409_v21 = vpop.eup %4408 }
 0x956   :  { %v3764_v4 = vmul.f32 0.5, %v4409_v21  ;;  %v3925_v21 = vadd.f32 %v3609_v11, %v388_v3  ;;  %v9540_v11 = vld [vmem:[#allocation141_spill] sm:$0xff] }
 0x957   :  { %v4411_v40 = vpop.eup %4410 }
 0x958   :  { %v3765_v49 = vadd.f32 0.5, %v3764_v4  ;;  %v3768_v8 = vmul.f32 0.5, %v4411_v40  ;;  %v4413_v15 = vpop.eup %4412  ;;  %v3935_v33 = vmul.f32 0.5, %v3925_v21  ;;  %v9543_v4 = vld [vmem:[#allocation12_spill] sm:$0xff] }
 0x959   :  { %v4415_v39 = vpop.eup %4414  ;;  %v4127_v40 = vld [vmem:[%s8145_s6 + $0x78] sm:$0xff] }
 0x95a   :  { %v3769_v52 = vadd.f32 0.5, %v3768_v8  ;;  %v3776_v23 = vmul.f32 %v4413_v15, %v3765_v49  ;;  %v3773_v18 = vmul.f32 0.5, %v4415_v39  ;;  %v4417_v37 = vpop.eup %4416  ;;  %v4125_v49 = vld [vmem:[%s8145_s6 + $0x68] sm:$0xff]  ;;  %v4124_v8 = vld [vmem:[%s8145_s6 + $0x60] sm:$0xff]  ;;  %v4122_v15 = vld [vmem:[%s8145_s6 + $0x50] sm:$0xff] }
 0x95b   :  { %v3932_v13 = vmul.f32 0.5, %v4417_v37  ;;  %v4118_v39 = vld [vmem:[%s8145_s6 + $0x30] sm:$0xff]  ;;  %v4116_v37 = vld [vmem:[%s8145_s6 + $0x20] sm:$0xff] }
 0x95c   :  { %v3775_v25 = vmul.f32 %v3769_v52, %v7731_v38  ;;  %v3774_v43 = vadd.f32 0.5, %v3773_v18  ;;  %v4123_v52 = vld [vmem:[%s8145_s6 + $0x58] sm:$0xff]  ;;  %v4117_v18 = vld [vmem:[%s8145_s6 + $0x28] sm:$0xff] }
 0x95d   :  { %v3933_v38 = vadd.f32 0.5, %v3932_v13 }
 0x95e   :  { %v7992_v54 = vadd.f32 %v3776_v23, %v3775_v25  ;;  %v4120_v25 = vld [vmem:[%s8145_s6 + $0x40] sm:$0xff]  ;;  %v4119_v23 = vld [vmem:[%s8145_s6 + $0x38] sm:$0xff] }
 0x960   :  { %4418 = vtanh.f32 %v7992_v54 }
 0x961   :  { %4420 = vtanh.f32 %v3935_v33 }
 0x96d   :  { %v4419_v12 = vpop.eup %4418 }
 0x96e   :  { %v3779_v22 = vmul.f32 %v4419_v12, %v3774_v43  ;;  %v4115_v43 = vld [vmem:[%s8145_s6 + $0x18] sm:$0xff]  ;;  %v4114_v12 = vld [vmem:[%s8145_s6 + $0x10] sm:$0xff] }
 0x970   :  { %3845 = vmatmul.mubr.f32.vlgmr.msra.gmra.mxu0 %v3779_v22  ;;  %3916 = vmatmul.mubr.f32.vlgmr.msra.gmra.mxu1 %v3779_v22  ;;  %v4113_v22 = vld [vmem:[%s8145_s6 + $0x8] sm:$0xff] }
 0x971   :  { %3945 = vmatpush1.msra.mxu0 %v7785_v62  ;;  %4016 = vmatpush1.msra.mxu1 %v7788_v1  ;;  %v3939_v62 = vmul.f32 %v3933_v38, %v7724_v32  ;;  %v9513_v32 = vld [vmem:[#allocation145_spill] sm:$0xff] }
 0x972   :  { %3946 = vmatprep.subr.mxu0 %v7791_v41  ;;  %4017 = vmatprep.subr.mxu1 %v7794_v20  ;;  %v9514_v41 = vld [vmem:[#allocation134_spill] sm:$0xff]  ;;  %v9515_v20 = vld [vmem:[#allocation136_spill] sm:$0xff] }
 0x973   :  { %3947 = vmatpush1.msra.mxu0 %v7797_v30  ;;  %4018 = vmatpush1.msra.mxu1 %v7800_v6  ;;  %v3941_v1 = vadd.f32 %v7983_v51, %v3939_v62  ;;  %v9516_v30 = vld [vmem:[#allocation135_spill] sm:$0xff]  ;;  %v9517_v6 = vld [vmem:[#allocation158_spill] sm:$0xff] }
 0x974   :  { %3948 = vmatprep.subr.mxu0 %v7803_v35  ;;  %4019 = vmatprep.subr.mxu1 %v7806_v16  ;;  %v9518_v35 = vld [vmem:[#allocation159_spill] sm:$0xff]  ;;  %v9519_v16 = vld [vmem:[#allocation160_spill] sm:$0xff] }
 0x975   :  { %3949 = vmatpush1.msra.mxu0 %v7809_v56  ;;  %4020 = vmatpush1.msra.mxu1 %v7812_v2  ;;  %4422 = vtanh.f32 %v3941_v1  ;;  %v9520_v56 = vld [vmem:[#allocation137_spill] sm:$0xff]  ;;  %v9541_v51 = vld [vmem:[#allocation11_spill] sm:$0xff] }
 0x976   :  { %3950 = vmatprep.subr.mxu0 %v7815_v46  ;;  %4021 = vmatprep.subr.mxu1 %v7818_v59  ;;  %v9521_v2 = vld [vmem:[#allocation161_spill] sm:$0xff]  ;;  %v9522_v46 = vld [vmem:[#allocation162_spill] sm:$0xff]  ;;  %v4421_v59 = vpop.eup %4420 }
 0x977   :  { %3951 = vmatpush1.msra.mxu0 %v7821_v24  ;;  %4022 = vmatpush1.msra.mxu1 %v7824_v14  ;;  %v9523_v24 = vld [vmem:[#allocation163_spill] sm:$0xff]  ;;  %v9524_v14 = vld [vmem:[#allocation164_spill] sm:$0xff] }
 0x978   :  { %3952 = vmatprep.subr.mxu0 %v7827_v45  ;;  %4023 = vmatprep.subr.mxu1 %v7830_v63  ;;  %v9525_v45 = vld [vmem:[#allocation165_spill] sm:$0xff]  ;;  %v9526_v63 = vld [vmem:[#allocation166_spill] sm:$0xff] }
 0x979   :  { %3953 = vmatpush1.msra.mxu0 %v7833_v36  ;;  %4024 = vmatpush1.msra.mxu1 %v7836_v7  ;;  %v9527_v36 = vld [vmem:[#allocation146_spill] sm:$0xff]  ;;  %v9528_v7 = vld [vmem:[#allocation148_spill] sm:$0xff] }
 0x97a   :  { %3954 = vmatprep.subr.mxu0 %v7839_v44  ;;  %4025 = vmatprep.subr.mxu1 %v7842_v50  ;;  %v3937_v44 = vmul.f32 0.5, %v4421_v59  ;;  %v9529_v50 = vld [vmem:[#allocation147_spill] sm:$0xff] }
 0x97b   :  { %3955 = vmatpush1.msra.mxu0 %v7845_v55  ;;  %4026 = vmatpush1.msra.mxu1 %v7848_v31  ;;  %v9530_v55 = vld [vmem:[#allocation149_spill] sm:$0xff]  ;;  %v9531_v31 = vld [vmem:[#allocation167_spill] sm:$0xff] }
 0x97c   :  { %3956 = vmatprep.subr.mxu0 %v7851_v60  ;;  %4027 = vmatprep.subr.mxu1 %v7854_v42  ;;  %v9532_v60 = vld [vmem:[#allocation168_spill] sm:$0xff]  ;;  %v9533_v42 = vld [vmem:[#allocation169_spill] sm:$0xff] }
 0x97d   :  { %3957 = vmatpush1.msra.mxu0 %v7857_v58  ;;  %4028 = vmatpush1.msra.mxu1 %v7860_v27  ;;  %v9534_v58 = vld [vmem:[#allocation170_spill] sm:$0xff] }
 0x97e   :  { %3958 = vmatprep.subr.mxu0 %v7863_v47  ;;  %4029 = vmatprep.subr.mxu1 %v7866_v26  ;;  %v9535_v47 = vld [vmem:[#allocation171_spill] sm:$0xff]  ;;  %v9536_v26 = vld [vmem:[#allocation172_spill] sm:$0xff] }
 0x97f   :  { %3959 = vmatpush1.msra.mxu0 %v7869_v10  ;;  %4030 = vmatpush1.msra.mxu1 %v7872_v29  ;;  %v3938_v10 = vadd.f32 0.5, %v3937_v44  ;;  %v9537_v29 = vld [vmem:[#allocation138_spill] sm:$0xff] }
 0x980   :  { %3960 = vmatprep.subr.mxu0 %v7875_v48  ;;  %4031 = vmatprep.subr.mxu1 %v7878_v19  ;;  %v9538_v48 = vld [vmem:[#allocation140_spill] sm:$0xff]  ;;  %v9539_v19 = vld [vmem:[#allocation139_spill] sm:$0xff] }
 0x981   :  { %3961 = vmatpush1.msra.mxu0 %v9513_v32  ;;  %4032 = vmatpush1.msra.mxu1 %v9514_v41 }
 0x982   :  { %3962 = vmatprep.subr.mxu0 %v9515_v20  ;;  %4033 = vmatprep.subr.mxu1 %v9516_v30  ;;  %v4423_v27 = vpop.eup %4422 }
 0x983   :  { %3963 = vmatpush1.msra.mxu0 %v9517_v6  ;;  %4034 = vmatpush1.msra.mxu1 %v9518_v35  ;;  %v3943_v28 = vmul.f32 %v4423_v27, %v3938_v10 }
 0x984   :  { %3964 = vmatprep.subr.mxu0 %v9519_v16  ;;  %4035 = vmatprep.subr.mxu1 %v9520_v56 }
 0x985   :  { %3965 = vmatpush1.msra.mxu0 %v9521_v2  ;;  %4036 = vmatpush1.msra.mxu1 %v9522_v46 }
 0x986   :  { %3966 = vmatprep.subr.mxu0 %v9523_v24  ;;  %4037 = vmatprep.subr.mxu1 %v9524_v14 }
 0x987   :  { %3967 = vmatpush1.msra.mxu0 %v9525_v45  ;;  %4038 = vmatpush1.msra.mxu1 %v9526_v63 }
 0x988   :  { %3968 = vmatprep.subr.mxu0 %v9527_v36  ;;  %4039 = vmatprep.subr.mxu1 %v9528_v7 }
 0x989   :  { %3969 = vmatpush1.msra.mxu0 %v9529_v50  ;;  %4040 = vmatpush1.msra.mxu1 %v9530_v55 }
 0x98a   :  { %3970 = vmatprep.subr.mxu0 %v9531_v31  ;;  %4041 = vmatprep.subr.mxu1 %v9532_v60 }
 0x98b   :  { %3971 = vmatpush1.msra.mxu0 %v9533_v42  ;;  %4042 = vmatpush1.msra.mxu1 %v9534_v58 }
 0x98c   :  { %3972 = vmatprep.subr.mxu0 %v9535_v47  ;;  %4043 = vmatprep.subr.mxu1 %v9536_v26 }
 0x98d   :  { %3973 = vmatpush1.msra.mxu0 %v9537_v29  ;;  %4044 = vmatpush1.msra.mxu1 %v9538_v48 }
 0x98e   :  { %3974 = vmatprep.subr.mxu0 %v9539_v19  ;;  %4045 = vmatprep.subr.mxu1 %v9540_v11 }
 0x98f   :  { %3975 = vmatpush1.msra.mxu0 %v9541_v51  ;;  %4008 = vmatprep.mubr.f32.mxu0 %v9542_v0 }
 0x990   :  { %4046 = vmatpush1.msra.mxu1 %v9543_v4  ;;  %4079 = vmatprep.mubr.f32.mxu1 %v9542_v0 }
 0x991   :  { %4009 = vmatmul.mubr.f32.vlgmr.msra.gmra.mxu0 %v3943_v28  ;;  %4080 = vmatmul.mubr.f32.vlgmr.msra.gmra.mxu1 %v3943_v28 }
 0x992   :  { %4230 = vmatprep.subr.mxu0 %v9542_v0  ;;  %4262 = vmatprep.mubr.msk.f32.mxu0 %vm5082_vm0, %v9542_v0 }
 0x993   :  { %4231 = vmatpush3.msra.mxu0 %v4127_v40 }
 0x994   :  { %4232 = vmatprep.subr.mxu0 %v9542_v0 }
 0x995   :  { %4233 = vmatpush3.msra.mxu0 %v4126_v9 }
 0x996   :  { %4234 = vmatprep.subr.mxu0 %v9542_v0 }
 0x997   :  { %4235 = vmatpush3.msra.mxu0 %v4125_v49 }
 0x998   :  { %4236 = vmatprep.subr.mxu0 %v9542_v0 }
 0x999   :  { %4237 = vmatpush3.msra.mxu0 %v4124_v8 }
 0x99a   :  { %4238 = vmatprep.subr.mxu0 %v9542_v0 }
 0x99b   :  { %4239 = vmatpush3.msra.mxu0 %v4123_v52 }
 0x99c   :  { %4240 = vmatprep.subr.mxu0 %v9542_v0 }
 0x99d   :  { %4241 = vmatpush3.msra.mxu0 %v4122_v15 }
 0x99e   :  { %4242 = vmatprep.subr.mxu0 %v9542_v0 }
 0x99f   :  { %4243 = vmatpush3.msra.mxu0 %v4121_v53 }
 0x9a0   :  { %4244 = vmatprep.subr.mxu0 %v9542_v0 }
 0x9a1   :  { %4245 = vmatpush3.msra.mxu0 %v4120_v25 }
 0x9a2   :  { %4246 = vmatprep.subr.mxu0 %v9542_v0 }
 0x9a3   :  { %4247 = vmatpush3.msra.mxu0 %v4119_v23 }
 0x9a4   :  { %4248 = vmatprep.subr.mxu0 %v9542_v0 }
 0x9a5   :  { %4249 = vmatpush3.msra.mxu0 %v4118_v39 }
 0x9a6   :  { %4250 = vmatprep.subr.mxu0 %v9542_v0 }
 0x9a7   :  { %4251 = vmatpush3.msra.mxu0 %v4117_v18 }
 0x9a8   :  { %4252 = vmatprep.subr.mxu0 %v9542_v0 }
 0x9a9   :  { %4253 = vmatpush3.msra.mxu0 %v4116_v37 }
 0x9aa   :  { %4254 = vmatprep.subr.mxu0 %v9542_v0 }
 0x9ab   :  { %4255 = vmatpush3.msra.mxu0 %v4115_v43 }
 0x9ac   :  { %4256 = vmatprep.subr.mxu0 %v9542_v0 }
 0x9ad   :  { %4257 = vmatpush3.msra.mxu0 %v4114_v12 }
 0x9ae   :  { %4258 = vmatprep.subr.mxu0 %v9542_v0 }
 0x9af   :  { %4259 = vmatpush3.msra.mxu0 %v4113_v22 }
 0x9b0   :  { %4260 = vmatprep.subr.mxu0 %v9542_v0 }
 0x9b1   :  { %4261 = vmatpush3.msra.mxu0 %v4112_v17 }
 0xa30   :  { %v3846_v3 = vpop.f32.mrf.mxu0  ;;  %v3917_v13 = vpop.f32.mrf.mxu1 }
 0xa32   :  { %v3848_v21 = vpop.f32.mrf.mxu0  ;;  %v3919_v38 = vpop.f32.mrf.mxu1 }
 0xa51   :  { %v4010_v33 = vpop.f32.mrf.mxu0  ;;  %v4081_v1 = vpop.f32.mrf.mxu1 }
 0xa52   :  { %v4086_v62 = vadd.f32 %v4010_v33, %v3846_v3  ;;  %v4088_v6 = vadd.f32 %v4081_v1, %v3917_v13 }
 0xa53   :  { %v4012_v32 = vpop.f32.mrf.mxu0  ;;  %v4083_v56 = vpop.f32.mrf.mxu1 }
 0xa54   :  { %v4090_v41 = vadd.f32 %v4086_v62, %v8899_v57  ;;  %v4087_v20 = vadd.f32 %v4012_v32, %v3848_v21  ;;  %v4092_v2 = vadd.f32 %v4088_v6, %v8901_v5  ;;  %v4089_v46 = vadd.f32 %v4083_v56, %v3919_v38 }
 0xa56   :  { %v4094_v30 = vmul.f32 0.5, %v4090_v41  ;;  %v4091_v35 = vadd.f32 %v4087_v20, %v8900_v61  ;;  %v4093_v59 = vadd.f32 %v4089_v46, %v5763_v34  ;;  %v4212_v34 = vld [vmem:[%s8146_s7] ss:$0 sm:$0xff] }
 0xa58   :  { %4424 = vtanh.f32 %v4094_v30  ;;  %v4098_v16 = vmul.f32 0.5, %v4091_v35  ;;  %v4103_v24 = vmul.f32 0.5, %v4093_v59 }
 0xa5a   :  { %4426 = vtanh.f32 %v4098_v16 }
 0xa5b   :  { %4428 = vtanh.f32 %v4092_v2 }
 0xa5c   :  { %4430 = vtanh.f32 %v4103_v24 }
 0xa65   :  { %v4425_v14 = vpop.eup %4424 }
 0xa66   :  { %v4096_v45 = vmul.f32 0.5, %v4425_v14 }
 0xa67   :  { %v4427_v63 = vpop.eup %4426 }
 0xa68   :  { %v4097_v57 = vadd.f32 0.5, %v4096_v45  ;;  %v4100_v36 = vmul.f32 0.5, %v4427_v63  ;;  %v4429_v44 = vpop.eup %4428 }
 0xa69   :  { %v4431_v5 = vpop.eup %4430 }
 0xa6a   :  { %v4101_v7 = vadd.f32 0.5, %v4100_v36  ;;  %v4108_v50 = vmul.f32 %v4429_v44, %v4097_v57  ;;  %v4105_v31 = vmul.f32 0.5, %v4431_v5 }
 0xa6c   :  { %v4107_v61 = vmul.f32 %v4101_v7, %v7992_v54  ;;  %v4106_v60 = vadd.f32 0.5, %v4105_v31 }
 0xa6e   :  { %v4109_v55 = vadd.f32 %v4108_v50, %v4107_v61 }
 0xa70   :  { %4432 = vtanh.f32 %v4109_v55 }
 0xa7d   :  { %v4433_v42 = vpop.eup %4432 }
 0xa7e   :  { %v4111_v58 = vmul.f32 %v4433_v42, %v4106_v60 }
 0xa80   :  { %4263 = vmatmul.mubr.f32.vlgmr.msra.gmra.mxu0 %v4111_v58 }
 0xb40   :  { %v4201_v27 = vpop.f32.mrf.mxu0 }
 0xb41   :  { %v4202_v47 = vadd.f32 %v4212_v34, %v4201_v27 }
 0xb42   :  { %v4264_v26 = vpop.f32.mrf.mxu0 }
 0xb43   :  { %4205 = vst [vmem:[%s8147_s8] sm:$0xff] %v4202_v47 }
 0xb44   :  { %4210 = vsyncpa [#allocation3], 1 }
 0xb45   :  { %4211 = vsyncpa [#allocation5], 1 }

</bundles_post_ra>
